<compile_context>
chip_gen: v7x
topology: tpu7x:2x2x1
jax: 0.10.0
libtpu: 0.0.40
codegen_flags: <defaults>
</compile_context>

<pallas_src>
import functools

import jax
import jax.numpy as jnp
from jax.experimental import pallas as pl
from jax.experimental.pallas import tpu as pltpu


def _fused_conv_kernel(p_ref, w_ref, b_ref, o_ref, *, norm, act, eps, slope):
    """One discriminator layer for one batch element.

    p_ref: (1, M, K)   im2col patches, M = D*Ho*Wo, K = KH*KW*Cin
    w_ref: (K, Cout)   flattened conv weight
    b_ref: (1, Cout)   bias
    o_ref: (1, M, Cout)
    """
    _, m, k = p_ref.shape
    p = p_ref[...].reshape(m, k)
    y = jnp.dot(p, w_ref[...], preferred_element_type=jnp.float32) + b_ref[...]

    if norm:
        # InstanceNorm3d(affine=False): per-channel stats over D*Ho*Wo computed
        # in one pass (sum and sum of squares), biased variance, eps in rsqrt.
        inv_m = 1.0 / m
        s1 = jnp.sum(y, axis=0, keepdims=True)
        s2 = jnp.sum(y * y, axis=0, keepdims=True)
        mean = s1 * inv_m
        var = jnp.maximum(s2 * inv_m - mean * mean, 0.0)
        y = (y - mean) * jax.lax.rsqrt(var + eps)

    if act == "leakyrelu":
        y = jnp.where(y > 0, y, slope * y)
    elif act == "sigmoid":
        y = jax.nn.sigmoid(y)

    o_ref[...] = y.reshape(1, m, -1).astype(o_ref.dtype)


def _im2col(x, kh, kw, stride):
    """x: (B, D, H, W, C) -> patches (B, D*Ho*Wo, KH*KW*C), plus (Ho, Wo).

    Static (possibly strided) slices handled by XLA outside the kernel, so the
    Pallas kernel sees a dense, contiguous operand and does a single matmul.
    Tap ordering (i-major, j, then Cin) matches w.reshape(KH*KW*Cin, Cout).
    """
    b, d, h, w, c = x.shape
    ho = (h - kh) // stride + 1
    wo = (w - kw) // stride + 1
    taps = []
    for i in range(kh):
        for j in range(kw):
            taps.append(x[:, :,
                          i:i + stride * (ho - 1) + 1:stride,
                          j:j + stride * (wo - 1) + 1:stride, :])
    patches = jnp.concatenate(taps, axis=-1)          # (B, D, Ho, Wo, KH*KW*C)
    return patches.reshape(b, d * ho * wo, kh * kw * c), ho, wo


def conv_layer(x, w, bias, *, stride, norm, act, eps=1e-5, slope=0.2):
    """Fused Conv3d(depth-kernel 1) [+ InstanceNorm3d + LeakyReLU | + Sigmoid].

    x: (B, D, H, W, Cin)   w: (KH, KW, Cin, Cout)   bias: (Cout,)
    returns: (B, D, Ho, Wo, Cout)
    """
    b, d, h, wdim, cin = x.shape
    kh, kw, _, cout = w.shape
    patches, ho, wo = _im2col(x, kh, kw, stride)
    m = d * ho * wo
    k = kh * kw * cin

    kernel = functools.partial(_fused_conv_kernel, norm=norm, act=act,
                               eps=eps, slope=slope)
    out = pl.pallas_call(
        kernel,
        out_shape=jax.ShapeDtypeStruct((b, m, cout), jnp.float32),
        grid=(b,),
        in_specs=[
            pl.BlockSpec((1, m, k), lambda i: (i, 0, 0)),
            pl.BlockSpec((k, cout), lambda i: (0, 0)),
            pl.BlockSpec((1, cout), lambda i: (0, 0)),
        ],
        out_specs=pl.BlockSpec((1, m, cout), lambda i: (i, 0, 0)),
        compiler_params=pltpu.CompilerParams(
            dimension_semantics=("parallel",)),   # batch items are independent
    )(patches, w.reshape(k, cout), bias.reshape(1, cout))
    return out.reshape(b, d, ho, wo, cout)


def init_params(key, input_channels, nlayers=3, nfilt=16, kernel_size=3):
    """Deterministic synthetic weights matching the PyTorch layer shapes."""
    specs, strides = [], []
    prev, nxt = input_channels, nfilt
    for i in range(nlayers):
        specs.append((prev, nxt))
        strides.append(2)
        prev = nxt
        nxt = nfilt * min(2 ** i, 8)
    specs.append((prev, nxt))   # Conv3d(32, 64), stride 1
    strides.append(1)
    specs.append((nxt, 1))      # Conv3d(64, 1), stride 1
    strides.append(1)

    params = []
    for cin, cout in specs:
        key, k_w, k_b = jax.random.split(key, 3)
        fan_in = cin * kernel_size * kernel_size
        w = jax.random.normal(k_w, (kernel_size, kernel_size, cin, cout),
                              jnp.float32) * (1.0 / jnp.sqrt(fan_in))
        b = jax.random.normal(k_b, (cout,), jnp.float32) * 0.01
        params.append((w, b))
    return params, strides


def patch_discriminator_forward(x, params, strides):
    """x: (B, D, C, H, W)  ->  (B, 1, D, 1, 1)  (matches PyTorch NCDHW output)."""
    y = jnp.transpose(x, (0, 1, 3, 4, 2))   # (B, D, H, W, C), channels-last
    n_layers = len(params)
    # TODO(synk): nn.Dropout(0.25) before the 4th conv is identity at inference.
    for idx, ((wk, bk), s) in enumerate(zip(params, strides)):
        last = idx == n_layers - 1
        y = conv_layer(y, wk, bk, stride=s, norm=not last,
                       act="sigmoid" if last else "leakyrelu")
    # final y: (B, D, 1, 1, 1) in (B, D, Ho, Wo, Cout) layout -> (B, 1, D, 1, 1)
    return jnp.transpose(y, (0, 4, 1, 2, 3))


if __name__ == "__main__":
    key = jax.random.PRNGKey(0)
    k_x, k_p = jax.random.split(key)

    # Smallest clean shapes: the 5 valid-padding convs need H, W >= 47.
    B, D, C, H, W = 2, 2, 3, 48, 48
    x = jax.random.normal(k_x, (B, D, C, H, W), jnp.float32)

    params, strides = init_params(k_p, input_channels=C)

    fwd = jax.jit(functools.partial(patch_discriminator_forward,
                                    strides=tuple(strides)))
    out = jax.block_until_ready(fwd(x, params))

    assert out.shape == (B, 1, D, 1, 1), out.shape
    assert bool(jnp.all(jnp.isfinite(out)))
    assert bool(jnp.all((out >= 0.0) & (out <= 1.0)))   # sigmoid output
    print("KERNEL_OK")
</pallas_src>

<mosaic_0001>
module attributes {stable_mosaic.version = 11 : i64} {
  func.func @_fused_conv_kernel(%arg0: i32, %arg1: memref<1x1058x27xf32, #tpu.memory_space<vmem>>, %arg2: memref<27x16xf32, #tpu.memory_space<vmem>>, %arg3: memref<1x16xf32, #tpu.memory_space<vmem>>, %arg4: memref<1x1058x16xf32, #tpu.memory_space<vmem>>) attributes {dimension_semantics = [#tpu.dimension_semantics<parallel>], iteration_bounds = array<i64: 2>, scalar_prefetch = 0 : i64, scratch_operands = 0 : i64, tpu.core_type = #tpu.core_type<tc>, window_params = [{transform_indices = @transform_0, window_bounds = array<i64: 1, 1058, 27>}, {pipeline_mode = #tpu.pipeline_mode<synchronous>, transform_indices = @transform_1, window_bounds = array<i64: 27, 16>}, {pipeline_mode = #tpu.pipeline_mode<synchronous>, transform_indices = @transform_2, window_bounds = array<i64: 1, 16>}, {transform_indices = @transform_3, window_bounds = array<i64: 1, 1058, 16>}]} {
    %c0 = arith.constant 0 : index
    %c0_0 = arith.constant 0 : index
    %c0_1 = arith.constant 0 : index
    %0 = vector.load %arg1[%c0, %c0_0, %c0_1] : memref<1x1058x27xf32, #tpu.memory_space<vmem>>, vector<1x1058x27xf32>
    %1 = vector.shape_cast %0 : vector<1x1058x27xf32> to vector<1058x27xf32>
    %c0_2 = arith.constant 0 : index
    %c0_3 = arith.constant 0 : index
    %2 = vector.load %arg2[%c0_2, %c0_3] : memref<27x16xf32, #tpu.memory_space<vmem>>, vector<27x16xf32>
    %cst = arith.constant dense<0.000000e+00> : vector<1058x16xf32>
    %3 = tpu.matmul %1, %2, %cst {dimension_numbers = #tpu.dot_dimension_numbers<[1], [0], [0], [1], [0, 0, 1, 1], [], []>} : vector<1058x27xf32>, vector<27x16xf32>, vector<1058x16xf32> -> vector<1058x16xf32>
    %c0_4 = arith.constant 0 : index
    %c0_5 = arith.constant 0 : index
    %4 = vector.load %arg3[%c0_4, %c0_5] : memref<1x16xf32, #tpu.memory_space<vmem>>, vector<1x16xf32>
    %5 = vector.broadcast %4 : vector<1x16xf32> to vector<1058x16xf32>
    %6 = arith.addf %3, %5 : vector<1058x16xf32>
    %cst_6 = arith.constant dense<0.000000e+00> : vector<16xf32>
    %7 = vector.multi_reduction <add>, %6, %cst_6 [0] : vector<1058x16xf32> to vector<16xf32>
    %8 = vector.shape_cast %7 : vector<16xf32> to vector<1x16xf32>
    %9 = arith.mulf %6, %6 : vector<1058x16xf32>
    %cst_7 = arith.constant dense<0.000000e+00> : vector<16xf32>
    %10 = vector.multi_reduction <add>, %9, %cst_7 [0] : vector<1058x16xf32> to vector<16xf32>
    %11 = vector.shape_cast %10 : vector<16xf32> to vector<1x16xf32>
    %cst_8 = arith.constant 9.45179606E-4 : f32
    %12 = vector.broadcast %cst_8 : f32 to vector<1x16xf32>
    %13 = arith.mulf %8, %12 : vector<1x16xf32>
    %cst_9 = arith.constant 9.45179606E-4 : f32
    %14 = vector.broadcast %cst_9 : f32 to vector<1x16xf32>
    %15 = arith.mulf %11, %14 : vector<1x16xf32>
    %16 = arith.mulf %13, %13 : vector<1x16xf32>
    %17 = arith.subf %15, %16 : vector<1x16xf32>
    %cst_10 = arith.constant 0.000000e+00 : f32
    %18 = vector.broadcast %cst_10 : f32 to vector<1x16xf32>
    %19 = arith.maximumf %17, %18 : vector<1x16xf32>
    %20 = vector.broadcast %13 : vector<1x16xf32> to vector<1058x16xf32>
    %21 = arith.subf %6, %20 : vector<1058x16xf32>
    %cst_11 = arith.constant 9.99999974E-6 : f32
    %22 = vector.broadcast %cst_11 : f32 to vector<1x16xf32>
    %23 = arith.addf %19, %22 : vector<1x16xf32>
    %24 = math.rsqrt %23 : vector<1x16xf32>
    %25 = vector.broadcast %24 : vector<1x16xf32> to vector<1058x16xf32>
    %26 = arith.mulf %21, %25 : vector<1058x16xf32>
    %cst_12 = arith.constant 0.000000e+00 : f32
    %27 = vector.broadcast %cst_12 : f32 to vector<1058x16xf32>
    %28 = arith.cmpf ogt, %26, %27 : vector<1058x16xf32>
    %cst_13 = arith.constant 2.000000e-01 : f32
    %29 = vector.broadcast %cst_13 : f32 to vector<1058x16xf32>
    %30 = arith.mulf %29, %26 : vector<1058x16xf32>
    %31 = arith.select %28, %26, %30 : vector<1058x16xi1>, vector<1058x16xf32>
    %32 = vector.shape_cast %31 : vector<1058x16xf32> to vector<1x1058x16xf32>
    %c0_14 = arith.constant 0 : index
    %c0_15 = arith.constant 0 : index
    %c0_16 = arith.constant 0 : index
    %33 = vector.load %arg4[%c0_14, %c0_15, %c0_16] : memref<1x1058x16xf32, #tpu.memory_space<vmem>>, vector<1x1058x16xf32>
    tpu.vector_store %arg4[%c0_14, %c0_15, %c0_16], %32 {strides = array<i32>} : memref<1x1058x16xf32, #tpu.memory_space<vmem>>, vector<1x1058x16xf32>,
    return
  }
  func.func @transform_0(%arg0: i32) -> (i32, i32, i32) {
    %c0_i32 = arith.constant 0 : i32
    %c0_i32_0 = arith.constant 0 : i32
    %c0_i32_1 = arith.constant 0 : i32
    return %arg0, %c0_i32, %c0_i32_0 : i32, i32, i32
  }
  func.func @transform_1(%arg0: i32) -> (i32, i32) {
    %c0_i32 = arith.constant 0 : i32
    %c0_i32_0 = arith.constant 0 : i32
    %c0_i32_1 = arith.constant 0 : i32
    return %c0_i32, %c0_i32_0 : i32, i32
  }
  func.func @transform_2(%arg0: i32) -> (i32, i32) {
    %c0_i32 = arith.constant 0 : i32
    %c0_i32_0 = arith.constant 0 : i32
    %c0_i32_1 = arith.constant 0 : i32
    return %c0_i32, %c0_i32_0 : i32, i32
  }
  func.func @transform_3(%arg0: i32) -> (i32, i32, i32) {
    %c0_i32 = arith.constant 0 : i32
    %c0_i32_0 = arith.constant 0 : i32
    %c0_i32_1 = arith.constant 0 : i32
    return %arg0, %c0_i32, %c0_i32_0 : i32, i32, i32
  }
}

module attributes {stable_mosaic.version = 11 : i64} {
  func.func @_fused_conv_kernel(%arg0: i32, %arg1: memref<1x242x144xf32, #tpu.memory_space<vmem>>, %arg2: memref<144x16xf32, #tpu.memory_space<vmem>>, %arg3: memref<1x16xf32, #tpu.memory_space<vmem>>, %arg4: memref<1x242x16xf32, #tpu.memory_space<vmem>>) attributes {dimension_semantics = [#tpu.dimension_semantics<parallel>], iteration_bounds = array<i64: 2>, scalar_prefetch = 0 : i64, scratch_operands = 0 : i64, tpu.core_type = #tpu.core_type<tc>, window_params = [{transform_indices = @transform_0, window_bounds = array<i64: 1, 242, 144>}, {pipeline_mode = #tpu.pipeline_mode<synchronous>, transform_indices = @transform_1, window_bounds = array<i64: 144, 16>}, {pipeline_mode = #tpu.pipeline_mode<synchronous>, transform_indices = @transform_2, window_bounds = array<i64: 1, 16>}, {transform_indices = @transform_3, window_bounds = array<i64: 1, 242, 16>}]} {
    %c0 = arith.constant 0 : index
    %c0_0 = arith.constant 0 : index
    %c0_1 = arith.constant 0 : index
    %0 = vector.load %arg1[%c0, %c0_0, %c0_1] : memref<1x242x144xf32, #tpu.memory_space<vmem>>, vector<1x242x144xf32>
    %1 = vector.shape_cast %0 : vector<1x242x144xf32> to vector<242x144xf32>
    %c0_2 = arith.constant 0 : index
    %c0_3 = arith.constant 0 : index
    %2 = vector.load %arg2[%c0_2, %c0_3] : memref<144x16xf32, #tpu.memory_space<vmem>>, vector<144x16xf32>
    %cst = arith.constant dense<0.000000e+00> : vector<242x16xf32>
    %3 = tpu.matmul %1, %2, %cst {dimension_numbers = #tpu.dot_dimension_numbers<[1], [0], [0], [1], [0, 0, 1, 1], [], []>} : vector<242x144xf32>, vector<144x16xf32>, vector<242x16xf32> -> vector<242x16xf32>
    %c0_4 = arith.constant 0 : index
    %c0_5 = arith.constant 0 : index
    %4 = vector.load %arg3[%c0_4, %c0_5] : memref<1x16xf32, #tpu.memory_space<vmem>>, vector<1x16xf32>
    %5 = vector.broadcast %4 : vector<1x16xf32> to vector<242x16xf32>
    %6 = arith.addf %3, %5 : vector<242x16xf32>
    %cst_6 = arith.constant dense<0.000000e+00> : vector<16xf32>
    %7 = vector.multi_reduction <add>, %6, %cst_6 [0] : vector<242x16xf32> to vector<16xf32>
    %8 = vector.shape_cast %7 : vector<16xf32> to vector<1x16xf32>
    %9 = arith.mulf %6, %6 : vector<242x16xf32>
    %cst_7 = arith.constant dense<0.000000e+00> : vector<16xf32>
    %10 = vector.multi_reduction <add>, %9, %cst_7 [0] : vector<242x16xf32> to vector<16xf32>
    %11 = vector.shape_cast %10 : vector<16xf32> to vector<1x16xf32>
    %cst_8 = arith.constant 0.00413223123 : f32
    %12 = vector.broadcast %cst_8 : f32 to vector<1x16xf32>
    %13 = arith.mulf %8, %12 : vector<1x16xf32>
    %cst_9 = arith.constant 0.00413223123 : f32
    %14 = vector.broadcast %cst_9 : f32 to vector<1x16xf32>
    %15 = arith.mulf %11, %14 : vector<1x16xf32>
    %16 = arith.mulf %13, %13 : vector<1x16xf32>
    %17 = arith.subf %15, %16 : vector<1x16xf32>
    %cst_10 = arith.constant 0.000000e+00 : f32
    %18 = vector.broadcast %cst_10 : f32 to vector<1x16xf32>
    %19 = arith.maximumf %17, %18 : vector<1x16xf32>
    %20 = vector.broadcast %13 : vector<1x16xf32> to vector<242x16xf32>
    %21 = arith.subf %6, %20 : vector<242x16xf32>
    %cst_11 = arith.constant 9.99999974E-6 : f32
    %22 = vector.broadcast %cst_11 : f32 to vector<1x16xf32>
    %23 = arith.addf %19, %22 : vector<1x16xf32>
    %24 = math.rsqrt %23 : vector<1x16xf32>
    %25 = vector.broadcast %24 : vector<1x16xf32> to vector<242x16xf32>
    %26 = arith.mulf %21, %25 : vector<242x16xf32>
    %cst_12 = arith.constant 0.000000e+00 : f32
    %27 = vector.broadcast %cst_12 : f32 to vector<242x16xf32>
    %28 = arith.cmpf ogt, %26, %27 : vector<242x16xf32>
    %cst_13 = arith.constant 2.000000e-01 : f32
    %29 = vector.broadcast %cst_13 : f32 to vector<242x16xf32>
    %30 = arith.mulf %29, %26 : vector<242x16xf32>
    %31 = arith.select %28, %26, %30 : vector<242x16xi1>, vector<242x16xf32>
    %32 = vector.shape_cast %31 : vector<242x16xf32> to vector<1x242x16xf32>
    %c0_14 = arith.constant 0 : index
    %c0_15 = arith.constant 0 : index
    %c0_16 = arith.constant 0 : index
    %33 = vector.load %arg4[%c0_14, %c0_15, %c0_16] : memref<1x242x16xf32, #tpu.memory_space<vmem>>, vector<1x242x16xf32>
    tpu.vector_store %arg4[%c0_14, %c0_15, %c0_16], %32 {strides = array<i32>} : memref<1x242x16xf32, #tpu.memory_space<vmem>>, vector<1x242x16xf32>,
    return
  }
  func.func @transform_0(%arg0: i32) -> (i32, i32, i32) {
    %c0_i32 = arith.constant 0 : i32
    %c0_i32_0 = arith.constant 0 : i32
    %c0_i32_1 = arith.constant 0 : i32
    return %arg0, %c0_i32, %c0_i32_0 : i32, i32, i32
  }
  func.func @transform_1(%arg0: i32) -> (i32, i32) {
    %c0_i32 = arith.constant 0 : i32
    %c0_i32_0 = arith.constant 0 : i32
    %c0_i32_1 = arith.constant 0 : i32
    return %c0_i32, %c0_i32_0 : i32, i32
  }
  func.func @transform_2(%arg0: i32) -> (i32, i32) {
    %c0_i32 = arith.constant 0 : i32
    %c0_i32_0 = arith.constant 0 : i32
    %c0_i32_1 = arith.constant 0 : i32
    return %c0_i32, %c0_i32_0 : i32, i32
  }
  func.func @transform_3(%arg0: i32) -> (i32, i32, i32) {
    %c0_i32 = arith.constant 0 : i32
    %c0_i32_0 = arith.constant 0 : i32
    %c0_i32_1 = arith.constant 0 : i32
    return %arg0, %c0_i32, %c0_i32_0 : i32, i32, i32
  }
}

module attributes {stable_mosaic.version = 11 : i64} {
  func.func @_fused_conv_kernel(%arg0: i32, %arg1: memref<1x50x144xf32, #tpu.memory_space<vmem>>, %arg2: memref<144x32xf32, #tpu.memory_space<vmem>>, %arg3: memref<1x32xf32, #tpu.memory_space<vmem>>, %arg4: memref<1x50x32xf32, #tpu.memory_space<vmem>>) attributes {dimension_semantics = [#tpu.dimension_semantics<parallel>], iteration_bounds = array<i64: 2>, scalar_prefetch = 0 : i64, scratch_operands = 0 : i64, tpu.core_type = #tpu.core_type<tc>, window_params = [{transform_indices = @transform_0, window_bounds = array<i64: 1, 50, 144>}, {pipeline_mode = #tpu.pipeline_mode<synchronous>, transform_indices = @transform_1, window_bounds = array<i64: 144, 32>}, {pipeline_mode = #tpu.pipeline_mode<synchronous>, transform_indices = @transform_2, window_bounds = array<i64: 1, 32>}, {transform_indices = @transform_3, window_bounds = array<i64: 1, 50, 32>}]} {
    %c0 = arith.constant 0 : index
    %c0_0 = arith.constant 0 : index
    %c0_1 = arith.constant 0 : index
    %0 = vector.load %arg1[%c0, %c0_0, %c0_1] : memref<1x50x144xf32, #tpu.memory_space<vmem>>, vector<1x50x144xf32>
    %1 = vector.shape_cast %0 : vector<1x50x144xf32> to vector<50x144xf32>
    %c0_2 = arith.constant 0 : index
    %c0_3 = arith.constant 0 : index
    %2 = vector.load %arg2[%c0_2, %c0_3] : memref<144x32xf32, #tpu.memory_space<vmem>>, vector<144x32xf32>
    %cst = arith.constant dense<0.000000e+00> : vector<50x32xf32>
    %3 = tpu.matmul %1, %2, %cst {dimension_numbers = #tpu.dot_dimension_numbers<[1], [0], [0], [1], [0, 0, 1, 1], [], []>} : vector<50x144xf32>, vector<144x32xf32>, vector<50x32xf32> -> vector<50x32xf32>
    %c0_4 = arith.constant 0 : index
    %c0_5 = arith.constant 0 : index
    %4 = vector.load %arg3[%c0_4, %c0_5] : memref<1x32xf32, #tpu.memory_space<vmem>>, vector<1x32xf32>
    %5 = vector.broadcast %4 : vector<1x32xf32> to vector<50x32xf32>
    %6 = arith.addf %3, %5 : vector<50x32xf32>
    %cst_6 = arith.constant dense<0.000000e+00> : vector<32xf32>
    %7 = vector.multi_reduction <add>, %6, %cst_6 [0] : vector<50x32xf32> to vector<32xf32>
    %8 = vector.shape_cast %7 : vector<32xf32> to vector<1x32xf32>
    %9 = arith.mulf %6, %6 : vector<50x32xf32>
    %cst_7 = arith.constant dense<0.000000e+00> : vector<32xf32>
    %10 = vector.multi_reduction <add>, %9, %cst_7 [0] : vector<50x32xf32> to vector<32xf32>
    %11 = vector.shape_cast %10 : vector<32xf32> to vector<1x32xf32>
    %cst_8 = arith.constant 2.000000e-02 : f32
    %12 = vector.broadcast %cst_8 : f32 to vector<1x32xf32>
    %13 = arith.mulf %8, %12 : vector<1x32xf32>
    %cst_9 = arith.constant 2.000000e-02 : f32
    %14 = vector.broadcast %cst_9 : f32 to vector<1x32xf32>
    %15 = arith.mulf %11, %14 : vector<1x32xf32>
    %16 = arith.mulf %13, %13 : vector<1x32xf32>
    %17 = arith.subf %15, %16 : vector<1x32xf32>
    %cst_10 = arith.constant 0.000000e+00 : f32
    %18 = vector.broadcast %cst_10 : f32 to vector<1x32xf32>
    %19 = arith.maximumf %17, %18 : vector<1x32xf32>
    %20 = vector.broadcast %13 : vector<1x32xf32> to vector<50x32xf32>
    %21 = arith.subf %6, %20 : vector<50x32xf32>
    %cst_11 = arith.constant 9.99999974E-6 : f32
    %22 = vector.broadcast %cst_11 : f32 to vector<1x32xf32>
    %23 = arith.addf %19, %22 : vector<1x32xf32>
    %24 = math.rsqrt %23 : vector<1x32xf32>
    %25 = vector.broadcast %24 : vector<1x32xf32> to vector<50x32xf32>
    %26 = arith.mulf %21, %25 : vector<50x32xf32>
    %cst_12 = arith.constant 0.000000e+00 : f32
    %27 = vector.broadcast %cst_12 : f32 to vector<50x32xf32>
    %28 = arith.cmpf ogt, %26, %27 : vector<50x32xf32>
    %cst_13 = arith.constant 2.000000e-01 : f32
    %29 = vector.broadcast %cst_13 : f32 to vector<50x32xf32>
    %30 = arith.mulf %29, %26 : vector<50x32xf32>
    %31 = arith.select %28, %26, %30 : vector<50x32xi1>, vector<50x32xf32>
    %32 = vector.shape_cast %31 : vector<50x32xf32> to vector<1x50x32xf32>
    %c0_14 = arith.constant 0 : index
    %c0_15 = arith.constant 0 : index
    %c0_16 = arith.constant 0 : index
    %33 = vector.load %arg4[%c0_14, %c0_15, %c0_16] : memref<1x50x32xf32, #tpu.memory_space<vmem>>, vector<1x50x32xf32>
    tpu.vector_store %arg4[%c0_14, %c0_15, %c0_16], %32 {strides = array<i32>} : memref<1x50x32xf32, #tpu.memory_space<vmem>>, vector<1x50x32xf32>,
    return
  }
  func.func @transform_0(%arg0: i32) -> (i32, i32, i32) {
    %c0_i32 = arith.constant 0 : i32
    %c0_i32_0 = arith.constant 0 : i32
    %c0_i32_1 = arith.constant 0 : i32
    return %arg0, %c0_i32, %c0_i32_0 : i32, i32, i32
  }
  func.func @transform_1(%arg0: i32) -> (i32, i32) {
    %c0_i32 = arith.constant 0 : i32
    %c0_i32_0 = arith.constant 0 : i32
    %c0_i32_1 = arith.constant 0 : i32
    return %c0_i32, %c0_i32_0 : i32, i32
  }
  func.func @transform_2(%arg0: i32) -> (i32, i32) {
    %c0_i32 = arith.constant 0 : i32
    %c0_i32_0 = arith.constant 0 : i32
    %c0_i32_1 = arith.constant 0 : i32
    return %c0_i32, %c0_i32_0 : i32, i32
  }
  func.func @transform_3(%arg0: i32) -> (i32, i32, i32) {
    %c0_i32 = arith.constant 0 : i32
    %c0_i32_0 = arith.constant 0 : i32
    %c0_i32_1 = arith.constant 0 : i32
    return %arg0, %c0_i32, %c0_i32_0 : i32, i32, i32
  }
}

module attributes {stable_mosaic.version = 11 : i64} {
  func.func @_fused_conv_kernel(%arg0: i32, %arg1: memref<1x18x288xf32, #tpu.memory_space<vmem>>, %arg2: memref<288x64xf32, #tpu.memory_space<vmem>>, %arg3: memref<1x64xf32, #tpu.memory_space<vmem>>, %arg4: memref<1x18x64xf32, #tpu.memory_space<vmem>>) attributes {dimension_semantics = [#tpu.dimension_semantics<parallel>], iteration_bounds = array<i64: 2>, scalar_prefetch = 0 : i64, scratch_operands = 0 : i64, tpu.core_type = #tpu.core_type<tc>, window_params = [{transform_indices = @transform_0, window_bounds = array<i64: 1, 18, 288>}, {pipeline_mode = #tpu.pipeline_mode<synchronous>, transform_indices = @transform_1, window_bounds = array<i64: 288, 64>}, {pipeline_mode = #tpu.pipeline_mode<synchronous>, transform_indices = @transform_2, window_bounds = array<i64: 1, 64>}, {transform_indices = @transform_3, window_bounds = array<i64: 1, 18, 64>}]} {
    %c0 = arith.constant 0 : index
    %c0_0 = arith.constant 0 : index
    %c0_1 = arith.constant 0 : index
    %0 = vector.load %arg1[%c0, %c0_0, %c0_1] : memref<1x18x288xf32, #tpu.memory_space<vmem>>, vector<1x18x288xf32>
    %1 = vector.shape_cast %0 : vector<1x18x288xf32> to vector<18x288xf32>
    %c0_2 = arith.constant 0 : index
    %c0_3 = arith.constant 0 : index
    %2 = vector.load %arg2[%c0_2, %c0_3] : memref<288x64xf32, #tpu.memory_space<vmem>>, vector<288x64xf32>
    %cst = arith.constant dense<0.000000e+00> : vector<18x64xf32>
    %3 = tpu.matmul %1, %2, %cst {dimension_numbers = #tpu.dot_dimension_numbers<[1], [0], [0], [1], [0, 0, 1, 1], [], []>} : vector<18x288xf32>, vector<288x64xf32>, vector<18x64xf32> -> vector<18x64xf32>
    %c0_4 = arith.constant 0 : index
    %c0_5 = arith.constant 0 : index
    %4 = vector.load %arg3[%c0_4, %c0_5] : memref<1x64xf32, #tpu.memory_space<vmem>>, vector<1x64xf32>
    %5 = vector.broadcast %4 : vector<1x64xf32> to vector<18x64xf32>
    %6 = arith.addf %3, %5 : vector<18x64xf32>
    %cst_6 = arith.constant dense<0.000000e+00> : vector<64xf32>
    %7 = vector.multi_reduction <add>, %6, %cst_6 [0] : vector<18x64xf32> to vector<64xf32>
    %8 = vector.shape_cast %7 : vector<64xf32> to vector<1x64xf32>
    %9 = arith.mulf %6, %6 : vector<18x64xf32>
    %cst_7 = arith.constant dense<0.000000e+00> : vector<64xf32>
    %10 = vector.multi_reduction <add>, %9, %cst_7 [0] : vector<18x64xf32> to vector<64xf32>
    %11 = vector.shape_cast %10 : vector<64xf32> to vector<1x64xf32>
    %cst_8 = arith.constant 0.055555556 : f32
    %12 = vector.broadcast %cst_8 : f32 to vector<1x64xf32>
    %13 = arith.mulf %8, %12 : vector<1x64xf32>
    %cst_9 = arith.constant 0.055555556 : f32
    %14 = vector.broadcast %cst_9 : f32 to vector<1x64xf32>
    %15 = arith.mulf %11, %14 : vector<1x64xf32>
    %16 = arith.mulf %13, %13 : vector<1x64xf32>
    %17 = arith.subf %15, %16 : vector<1x64xf32>
    %cst_10 = arith.constant 0.000000e+00 : f32
    %18 = vector.broadcast %cst_10 : f32 to vector<1x64xf32>
    %19 = arith.maximumf %17, %18 : vector<1x64xf32>
    %20 = vector.broadcast %13 : vector<1x64xf32> to vector<18x64xf32>
    %21 = arith.subf %6, %20 : vector<18x64xf32>
    %cst_11 = arith.constant 9.99999974E-6 : f32
    %22 = vector.broadcast %cst_11 : f32 to vector<1x64xf32>
    %23 = arith.addf %19, %22 : vector<1x64xf32>
    %24 = math.rsqrt %23 : vector<1x64xf32>
    %25 = vector.broadcast %24 : vector<1x64xf32> to vector<18x64xf32>
    %26 = arith.mulf %21, %25 : vector<18x64xf32>
    %cst_12 = arith.constant 0.000000e+00 : f32
    %27 = vector.broadcast %cst_12 : f32 to vector<18x64xf32>
    %28 = arith.cmpf ogt, %26, %27 : vector<18x64xf32>
    %cst_13 = arith.constant 2.000000e-01 : f32
    %29 = vector.broadcast %cst_13 : f32 to vector<18x64xf32>
    %30 = arith.mulf %29, %26 : vector<18x64xf32>
    %31 = arith.select %28, %26, %30 : vector<18x64xi1>, vector<18x64xf32>
    %32 = vector.shape_cast %31 : vector<18x64xf32> to vector<1x18x64xf32>
    %c0_14 = arith.constant 0 : index
    %c0_15 = arith.constant 0 : index
    %c0_16 = arith.constant 0 : index
    %33 = vector.load %arg4[%c0_14, %c0_15, %c0_16] : memref<1x18x64xf32, #tpu.memory_space<vmem>>, vector<1x18x64xf32>
    tpu.vector_store %arg4[%c0_14, %c0_15, %c0_16], %32 {strides = array<i32>} : memref<1x18x64xf32, #tpu.memory_space<vmem>>, vector<1x18x64xf32>,
    return
  }
  func.func @transform_0(%arg0: i32) -> (i32, i32, i32) {
    %c0_i32 = arith.constant 0 : i32
    %c0_i32_0 = arith.constant 0 : i32
    %c0_i32_1 = arith.constant 0 : i32
    return %arg0, %c0_i32, %c0_i32_0 : i32, i32, i32
  }
  func.func @transform_1(%arg0: i32) -> (i32, i32) {
    %c0_i32 = arith.constant 0 : i32
    %c0_i32_0 = arith.constant 0 : i32
    %c0_i32_1 = arith.constant 0 : i32
    return %c0_i32, %c0_i32_0 : i32, i32
  }
  func.func @transform_2(%arg0: i32) -> (i32, i32) {
    %c0_i32 = arith.constant 0 : i32
    %c0_i32_0 = arith.constant 0 : i32
    %c0_i32_1 = arith.constant 0 : i32
    return %c0_i32, %c0_i32_0 : i32, i32
  }
  func.func @transform_3(%arg0: i32) -> (i32, i32, i32) {
    %c0_i32 = arith.constant 0 : i32
    %c0_i32_0 = arith.constant 0 : i32
    %c0_i32_1 = arith.constant 0 : i32
    return %arg0, %c0_i32, %c0_i32_0 : i32, i32, i32
  }
}

module attributes {stable_mosaic.version = 11 : i64} {
  func.func @_fused_conv_kernel(%arg0: i32, %arg1: memref<1x2x576xf32, #tpu.memory_space<vmem>>, %arg2: memref<576x1xf32, #tpu.memory_space<vmem>>, %arg3: memref<1x1xf32, #tpu.memory_space<vmem>>, %arg4: memref<1x2x1xf32, #tpu.memory_space<vmem>>) attributes {dimension_semantics = [#tpu.dimension_semantics<parallel>], iteration_bounds = array<i64: 2>, scalar_prefetch = 0 : i64, scratch_operands = 0 : i64, tpu.core_type = #tpu.core_type<tc>, window_params = [{transform_indices = @transform_0, window_bounds = array<i64: 1, 2, 576>}, {pipeline_mode = #tpu.pipeline_mode<synchronous>, transform_indices = @transform_1, window_bounds = array<i64: 576, 1>}, {pipeline_mode = #tpu.pipeline_mode<synchronous>, transform_indices = @transform_2, window_bounds = array<i64: 1, 1>}, {transform_indices = @transform_3, window_bounds = array<i64: 1, 2, 1>}]} {
    %c0 = arith.constant 0 : index
    %c0_0 = arith.constant 0 : index
    %c0_1 = arith.constant 0 : index
    %0 = vector.load %arg1[%c0, %c0_0, %c0_1] : memref<1x2x576xf32, #tpu.memory_space<vmem>>, vector<1x2x576xf32>
    %1 = vector.shape_cast %0 : vector<1x2x576xf32> to vector<2x576xf32>
    %c0_2 = arith.constant 0 : index
    %c0_3 = arith.constant 0 : index
    %2 = vector.load %arg2[%c0_2, %c0_3] : memref<576x1xf32, #tpu.memory_space<vmem>>, vector<576x1xf32>
    %cst = arith.constant dense<0.000000e+00> : vector<2x1xf32>
    %3 = tpu.matmul %1, %2, %cst {dimension_numbers = #tpu.dot_dimension_numbers<[1], [0], [0], [1], [0, 0, 1, 1], [], []>} : vector<2x576xf32>, vector<576x1xf32>, vector<2x1xf32> -> vector<2x1xf32>
    %c0_4 = arith.constant 0 : index
    %c0_5 = arith.constant 0 : index
    %4 = vector.load %arg3[%c0_4, %c0_5] : memref<1x1xf32, #tpu.memory_space<vmem>>, vector<1x1xf32>
    %5 = vector.broadcast %4 : vector<1x1xf32> to vector<2x1xf32>
    %6 = arith.addf %3, %5 : vector<2x1xf32>
    %7 = arith.negf %6 : vector<2x1xf32>
    %8 = math.exp %7 : vector<2x1xf32>
    %cst_6 = arith.constant 1.000000e+00 : f32
    %9 = vector.broadcast %cst_6 : f32 to vector<2x1xf32>
    %10 = arith.addf %9, %8 : vector<2x1xf32>
    %11 = arith.divf %9, %10 : vector<2x1xf32>
    %12 = vector.shape_cast %11 : vector<2x1xf32> to vector<1x2x1xf32>
    %c0_7 = arith.constant 0 : index
    %c0_8 = arith.constant 0 : index
    %c0_9 = arith.constant 0 : index
    %13 = vector.load %arg4[%c0_7, %c0_8, %c0_9] : memref<1x2x1xf32, #tpu.memory_space<vmem>>, vector<1x2x1xf32>
    tpu.vector_store %arg4[%c0_7, %c0_8, %c0_9], %12 {strides = array<i32>} : memref<1x2x1xf32, #tpu.memory_space<vmem>>, vector<1x2x1xf32>,
    return
  }
  func.func @transform_0(%arg0: i32) -> (i32, i32, i32) {
    %c0_i32 = arith.constant 0 : i32
    %c0_i32_0 = arith.constant 0 : i32
    %c0_i32_1 = arith.constant 0 : i32
    return %arg0, %c0_i32, %c0_i32_0 : i32, i32, i32
  }
  func.func @transform_1(%arg0: i32) -> (i32, i32) {
    %c0_i32 = arith.constant 0 : i32
    %c0_i32_0 = arith.constant 0 : i32
    %c0_i32_1 = arith.constant 0 : i32
    return %c0_i32, %c0_i32_0 : i32, i32
  }
  func.func @transform_2(%arg0: i32) -> (i32, i32) {
    %c0_i32 = arith.constant 0 : i32
    %c0_i32_0 = arith.constant 0 : i32
    %c0_i32_1 = arith.constant 0 : i32
    return %c0_i32, %c0_i32_0 : i32, i32
  }
  func.func @transform_3(%arg0: i32) -> (i32, i32, i32) {
    %c0_i32 = arith.constant 0 : i32
    %c0_i32_0 = arith.constant 0 : i32
    %c0_i32_1 = arith.constant 0 : i32
    return %arg0, %c0_i32, %c0_i32_0 : i32, i32, i32
  }
}

</mosaic_0001>

<bundles_post_ra>
// kernel: patch_discriminator_forward.5
= control target key start
LH: loop header
LB: loop body
LE: loop exit
PB: predicated region body
PF: predicated region fallthrough
CT: control target
= control target key end

     0   :  { %s3733_s12 = smov 0   ;;  %s7975_s0 = inlined_call_operand.vmem [shape: f32[2,1058,27], index: 0, kind: input, shape index: {}]   ;;  %s7976_s1 = inlined_call_operand.vmem [shape: f32[27,16], index: 1, kind: input, shape index: {}]   ;;  %s7977_s2 = inlined_call_operand.vmem [shape: f32[1,16], index: 2, kind: input, shape index: {}]   ;;  %s7978_s3 = inlined_call_operand.vmem [shape: f32[2,1058,16], index: 3, kind: output, shape index: {}]  }
   0x1 LB: > { %s2986_s13 = sadd.s32 4294967295, %s3707_s12   ;;  %p2990_p0 = scmp.ge.s32.totalorder %s3707_s12, 1  ;;  %s3707_s12 = sphi %s3733_s12, %s13_s12  }
   0x2   : > { %p137_p1 = scmp.lt.s32.totalorder %s3707_s12, 3 }
   0x4   : > { %p138_p2 = pnand %p2990_p0, %p137_p1 }
   0x6   : > { %141 = sbr.rel (%p138_p2) target bundleno = 914 (0x392), region = 32 }
   0xd   : > { %v304_v0 = vld [vmem:[%s7976_s1] sm:$0xff]  ;;  %v305_v1 = vld [vmem:[%s7976_s1 + $0x8] sm:$0xff]  ;;  %v306_v2 = vld [vmem:[%s7976_s1 + $0x10] sm:$0xff]  ;;  %vm715_vm0 = vcmask 1042432   ;;  %v3709_v3 = vmov 0.0|0.0   ;;  %p161_p3 = scmp.lt.s32.totalorder %s2986_s13, 1 }
   0xe   : > { %3674 = vmatprep.subr.bf16.mxu0 %v3709_v3  ;;  %v3675_v4 = vpack.c.bf16 %v305_v1, %v304_v0  ;;  %v307_v5 = vld [vmem:[%s7976_s1 + $0x18] sm:$0x7]  ;;  %3681 = vmatprep.subr.bf16.mxu1 %v3709_v3  ;;  %vm3710_vm1 = vmmov 0   ;;  %v3711_v6 = vmov 0.0   ;;  %vm3712_vm2 = vmmov 1  }
   0xf   : > { %3275 = vmatprep.mubr.msk.f32.mxu0 %vm3710_vm1, %v3711_v6  ;;  %3476 = vmatprep.mubr.msk.f32.mxu1 %vm3710_vm1, %v3711_v6  ;;  %v3678_v7 = vpack.c.bf16 %v307_v5, %v306_v2  ;;  %s9169_s13 = smov (!%p161_p3, %s2986_s13), 1  ;;  %vm3679_vm3 = vmpackc.low %vm715_vm0, %vm3712_vm2  ;;  %vm315_vm4 = vcmask 220160   ;;  %vm1449_vm5 = vcmask 130048   ;;  %vm8261_vm6 = vcmask 123904  }
  0x10   : > { %3676 = vmatpush3.bf16.msra.mxu0 %v3675_v4  ;;  %3683 = vmatpush3.bf16.msra.mxu1 %v3675_v4  ;;  %s3685_s22 = smul.u32 1064, %s9169_s13 }
  0x11   : > { %3677 = vmatprep.subr.bf16.mxu0 %v3709_v3  ;;  %3682 = vmatprep.subr.bf16.mxu1 %v3709_v3 }
  0x12   : > { %s3766_s25 = scalar_lea.vmem %s7975_s0, %s3685_s22  ;;  %s6678_s5 = scalar_lea.vmem %s7978_s3, %s3685_s22 }
  0x13   : > { %v171_v8 = vld [vmem:[%s3766_s25] sm:$0xff]  ;;  %v172_v9 = vld [vmem:[%s3766_s25 + $0x8] sm:$0xff]  ;;  %v173_v10 = vld [vmem:[%s3766_s25 + $0x10] sm:$0xff] }
  0x14   : > { %3680 = vmatpush3.bf16.msk.msra.mxu0 %vm3679_vm3, %v3678_v7  ;;  %3684 = vmatpush3.bf16.msk.msra.mxu1 %vm3679_vm3, %v3678_v7  ;;  %v174_v11 = vld [vmem:[%s3766_s25 + $0x18] sm:$0xff]  ;;  %v239_v13 = vld [vmem:[%s3766_s25 + $0x220] sm:$0xff]  ;;  %v240_v15 = vld [vmem:[%s3766_s25 + $0x228] sm:$0xff] }
  0x15   : > { %v238_v12 = vld [vmem:[%s3766_s25 + $0x218] sm:$0xff]  ;;  %v175_v14 = vld [vmem:[%s3766_s25 + $0x20] sm:$0xff]  ;;  %v176_v16 = vld [vmem:[%s3766_s25 + $0x28] sm:$0xff] }
  0x16   : > { %v241_v17 = vld [vmem:[%s3766_s25 + $0x230] sm:$0xff]  ;;  %v242_v19 = vld [vmem:[%s3766_s25 + $0x238] sm:$0xff]  ;;  %v243_v21 = vld [vmem:[%s3766_s25 + $0x240] sm:$0xff] }
  0x17   : > { %3276 = vmatmul.mubr.msk.f32.vlgmr.msra.gmra.mrb[0].mxu0 %vm315_vm4, %v171_v8  ;;  %3477 = vmatmul.mubr.msk.f32.vlgmr.msra.gmra.mrb[0].mxu1 %vm315_vm4, %v238_v12  ;;  %v177_v18 = vld [vmem:[%s3766_s25 + $0x30] sm:$0xff]  ;;  %v178_v20 = vld [vmem:[%s3766_s25 + $0x38] sm:$0xff]  ;;  %v179_v22 = vld [vmem:[%s3766_s25 + $0x40] sm:$0xff] }
  0x18   : > { %3278 = vmatprep.mubr.msk.f32.mxu0 %vm3710_vm1, %v3711_v6  ;;  %3479 = vmatprep.mubr.msk.f32.mxu1 %vm3710_vm1, %v3711_v6  ;;  %v244_v23 = vld [vmem:[%s3766_s25 + $0x248] sm:$0xff]  ;;  %v245_v25 = vld [vmem:[%s3766_s25 + $0x250] sm:$0xff]  ;;  %v246_v27 = vld [vmem:[%s3766_s25 + $0x258] sm:$0xff] }
  0x19   : > { %v180_v24 = vld [vmem:[%s3766_s25 + $0x48] sm:$0xff]  ;;  %v181_v26 = vld [vmem:[%s3766_s25 + $0x50] sm:$0xff]  ;;  %v182_v28 = vld [vmem:[%s3766_s25 + $0x58] sm:$0xff] }
  0x1a   : > { %v247_v29 = vld [vmem:[%s3766_s25 + $0x260] sm:$0xff]  ;;  %v248_v31 = vld [vmem:[%s3766_s25 + $0x268] sm:$0xff]  ;;  %v249_v33 = vld [vmem:[%s3766_s25 + $0x270] sm:$0xff] }
  0x1b   : > { %3279 = vmatmul.mubr.msk.f32.gmra.mrb[2].mxu0 %vm315_vm4, %v172_v9  ;;  %3480 = vmatmul.mubr.msk.f32.gmra.mrb[2].mxu1 %vm315_vm4, %v239_v13  ;;  %v183_v30 = vld [vmem:[%s3766_s25 + $0x60] sm:$0xff]  ;;  %v184_v32 = vld [vmem:[%s3766_s25 + $0x68] sm:$0xff]  ;;  %v185_v34 = vld [vmem:[%s3766_s25 + $0x70] sm:$0xff] }
  0x1c   : > { %3281 = vmatprep.mubr.msk.f32.mxu0 %vm3710_vm1, %v3711_v6  ;;  %3482 = vmatprep.mubr.msk.f32.mxu1 %vm3710_vm1, %v3711_v6  ;;  %v250_v35 = vld [vmem:[%s3766_s25 + $0x278] sm:$0xff]  ;;  %v251_v37 = vld [vmem:[%s3766_s25 + $0x280] sm:$0xff]  ;;  %v252_v39 = vld [vmem:[%s3766_s25 + $0x288] sm:$0xff] }
  0x1d   : > { %v186_v36 = vld [vmem:[%s3766_s25 + $0x78] sm:$0xff]  ;;  %v187_v38 = vld [vmem:[%s3766_s25 + $0x80] sm:$0xff]  ;;  %v188_v40 = vld [vmem:[%s3766_s25 + $0x88] sm:$0xff] }
  0x1e   : > { %v253_v41 = vld [vmem:[%s3766_s25 + $0x290] sm:$0xff]  ;;  %v254_v43 = vld [vmem:[%s3766_s25 + $0x298] sm:$0xff]  ;;  %v255_v45 = vld [vmem:[%s3766_s25 + $0x2a0] sm:$0xff] }
  0x1f   : > { %3282 = vmatmul.mubr.msk.f32.gmra.mrb[4].mxu0 %vm315_vm4, %v173_v10  ;;  %3483 = vmatmul.mubr.msk.f32.gmra.mrb[4].mxu1 %vm315_vm4, %v240_v15  ;;  %v189_v42 = vld [vmem:[%s3766_s25 + $0x90] sm:$0xff]  ;;  %v190_v44 = vld [vmem:[%s3766_s25 + $0x98] sm:$0xff]  ;;  %v191_v46 = vld [vmem:[%s3766_s25 + $0xa0] sm:$0xff] }
  0x20   : > { %3284 = vmatprep.mubr.msk.f32.mxu0 %vm3710_vm1, %v3711_v6  ;;  %3485 = vmatprep.mubr.msk.f32.mxu1 %vm3710_vm1, %v3711_v6  ;;  %v256_v47 = vld [vmem:[%s3766_s25 + $0x2a8] sm:$0xff]  ;;  %v257_v49 = vld [vmem:[%s3766_s25 + $0x2b0] sm:$0xff]  ;;  %v258_v51 = vld [vmem:[%s3766_s25 + $0x2b8] sm:$0xff] }
  0x21   : > { %v192_v48 = vld [vmem:[%s3766_s25 + $0xa8] sm:$0xff]  ;;  %v193_v50 = vld [vmem:[%s3766_s25 + $0xb0] sm:$0xff]  ;;  %v194_v52 = vld [vmem:[%s3766_s25 + $0xb8] sm:$0xff] }
  0x22   : > { %v259_v53 = vld [vmem:[%s3766_s25 + $0x2c0] sm:$0xff]  ;;  %v260_v55 = vld [vmem:[%s3766_s25 + $0x2c8] sm:$0xff]  ;;  %v261_v57 = vld [vmem:[%s3766_s25 + $0x2d0] sm:$0xff] }
  0x23   : > { %3285 = vmatmul.mubr.msk.f32.gmra.mrb[6].mxu0 %vm315_vm4, %v174_v11  ;;  %3486 = vmatmul.mubr.msk.f32.gmra.mrb[6].mxu1 %vm315_vm4, %v241_v17  ;;  %v195_v54 = vld [vmem:[%s3766_s25 + $0xc0] sm:$0xff]  ;;  %v196_v56 = vld [vmem:[%s3766_s25 + $0xc8] sm:$0xff]  ;;  %v197_v58 = vld [vmem:[%s3766_s25 + $0xd0] sm:$0xff] }
  0x24   : > { %3287 = vmatprep.mubr.msk.f32.mxu0 %vm3710_vm1, %v3711_v6  ;;  %3488 = vmatprep.mubr.msk.f32.mxu1 %vm3710_vm1, %v3711_v6  ;;  %v262_v59 = vld [vmem:[%s3766_s25 + $0x2d8] sm:$0xff]  ;;  %v263_v61 = vld [vmem:[%s3766_s25 + $0x2e0] sm:$0xff]  ;;  %v264_v63 = vld [vmem:[%s3766_s25 + $0x2e8] sm:$0xff] }
  0x25   : > { %v198_v60 = vld [vmem:[%s3766_s25 + $0xd8] sm:$0xff]  ;;  %v199_v62 = vld [vmem:[%s3766_s25 + $0xe0] sm:$0xff]  ;;  %v200_v0 = vld [vmem:[%s3766_s25 + $0xe8] sm:$0xff] }
  0x26   : > { %v265_v1 = vld [vmem:[%s3766_s25 + $0x2f0] sm:$0xff]  ;;  %v266_v3 = vld [vmem:[%s3766_s25 + $0x2f8] sm:$0xff]  ;;  %v267_v5 = vld [vmem:[%s3766_s25 + $0x300] sm:$0xff] }
  0x27   : > { %3288 = vmatmul.mubr.msk.f32.gmra.mrb[8].mxu0 %vm315_vm4, %v175_v14  ;;  %3489 = vmatmul.mubr.msk.f32.gmra.mrb[8].mxu1 %vm315_vm4, %v242_v19  ;;  %v201_v2 = vld [vmem:[%s3766_s25 + $0xf0] sm:$0xff]  ;;  %v202_v4 = vld [vmem:[%s3766_s25 + $0xf8] sm:$0xff]  ;;  %v203_v7 = vld [vmem:[%s3766_s25 + $0x100] sm:$0xff] }
  0x28   : > { %3290 = vmatprep.mubr.msk.f32.mxu0 %vm3710_vm1, %v3711_v6  ;;  %3491 = vmatprep.mubr.msk.f32.mxu1 %vm3710_vm1, %v3711_v6  ;;  %v268_v8 = vld [vmem:[%s3766_s25 + $0x308] sm:$0xff]  ;;  %v269_v10 = vld [vmem:[%s3766_s25 + $0x310] sm:$0xff]  ;;  %v270_v12 = vld [vmem:[%s3766_s25 + $0x318] sm:$0xff] }
  0x29   : > { %v204_v9 = vld [vmem:[%s3766_s25 + $0x108] sm:$0xff]  ;;  %v205_v11 = vld [vmem:[%s3766_s25 + $0x110] sm:$0xff]  ;;  %v206_v13 = vld [vmem:[%s3766_s25 + $0x118] sm:$0xff] }
  0x2a   : > { %v271_v14 = vld [vmem:[%s3766_s25 + $0x320] sm:$0xff]  ;;  %v208_v17 = vld [vmem:[%s3766_s25 + $0x128] sm:$0xff]  ;;  %v209_v19 = vld [vmem:[%s3766_s25 + $0x130] sm:$0xff] }
  0x2b   : > { %3291 = vmatmul.mubr.msk.f32.gmra.mrb[10].mxu0 %vm315_vm4, %v176_v16  ;;  %3492 = vmatmul.mubr.msk.f32.gmra.mrb[10].mxu1 %vm315_vm4, %v243_v21  ;;  %v207_v15 = vld [vmem:[%s3766_s25 + $0x120] sm:$0xff]  ;;  %v272_v16 = vld [vmem:[%s3766_s25 + $0x328] sm:$0xff]  ;;  %v210_v21 = vld [vmem:[%s3766_s25 + $0x138] sm:$0xff] }
  0x2c   : > { %3293 = vmatprep.mubr.msk.f32.mxu0 %vm3710_vm1, %v3711_v6  ;;  %3494 = vmatprep.mubr.msk.f32.mxu1 %vm3710_vm1, %v3711_v6 }
  0x2f   : > { %3294 = vmatmul.mubr.msk.f32.gmra.mrb[12].mxu0 %vm315_vm4, %v177_v18  ;;  %3495 = vmatmul.mubr.msk.f32.gmra.mrb[12].mxu1 %vm315_vm4, %v244_v23  ;;  %v273_v18 = vld [vmem:[%s3766_s25 + $0x330] sm:$0xff]  ;;  %v211_v23 = vld [vmem:[%s3766_s25 + $0x140] sm:$0xff] }
  0x30   : > { %3296 = vmatprep.mubr.msk.f32.mxu0 %vm3710_vm1, %v3711_v6  ;;  %3497 = vmatprep.mubr.msk.f32.mxu1 %vm3710_vm1, %v3711_v6 }
  0x33   : > { %3297 = vmatmul.mubr.msk.f32.gmra.mrb[14].mxu0 %vm315_vm4, %v178_v20  ;;  %3498 = vmatmul.mubr.msk.f32.gmra.mrb[14].mxu1 %vm315_vm4, %v245_v25  ;;  %v274_v20 = vld [vmem:[%s3766_s25 + $0x338] sm:$0xff]  ;;  %v212_v25 = vld [vmem:[%s3766_s25 + $0x148] sm:$0xff] }
  0x34   : > { %3299 = vmatprep.mubr.msk.f32.mxu0 %vm3710_vm1, %v3711_v6  ;;  %3500 = vmatprep.mubr.msk.f32.mxu1 %vm3710_vm1, %v3711_v6 }
  0x37   : > { %3300 = vmatmul.mubr.msk.f32.gmra.mrb[16].mxu0 %vm315_vm4, %v179_v22  ;;  %3501 = vmatmul.mubr.msk.f32.gmra.mrb[16].mxu1 %vm315_vm4, %v246_v27  ;;  %v275_v22 = vld [vmem:[%s3766_s25 + $0x340] sm:$0xff]  ;;  %v213_v27 = vld [vmem:[%s3766_s25 + $0x150] sm:$0xff] }
  0x38   : > { %3302 = vmatprep.mubr.msk.f32.mxu0 %vm3710_vm1, %v3711_v6  ;;  %3503 = vmatprep.mubr.msk.f32.mxu1 %vm3710_vm1, %v3711_v6 }
  0x3b   : > { %3303 = vmatmul.mubr.msk.f32.gmra.mrb[18].mxu0 %vm315_vm4, %v180_v24  ;;  %3504 = vmatmul.mubr.msk.f32.gmra.mrb[18].mxu1 %vm315_vm4, %v247_v29  ;;  %v276_v24 = vld [vmem:[%s3766_s25 + $0x348] sm:$0xff]  ;;  %v214_v29 = vld [vmem:[%s3766_s25 + $0x158] sm:$0xff] }
  0x3c   : > { %3305 = vmatprep.mubr.msk.f32.mxu0 %vm3710_vm1, %v3711_v6  ;;  %3506 = vmatprep.mubr.msk.f32.mxu1 %vm3710_vm1, %v3711_v6 }
  0x3f   : > { %3306 = vmatmul.mubr.msk.f32.gmra.mrb[20].mxu0 %vm315_vm4, %v181_v26  ;;  %3507 = vmatmul.mubr.msk.f32.gmra.mrb[20].mxu1 %vm315_vm4, %v248_v31  ;;  %v277_v26 = vld [vmem:[%s3766_s25 + $0x350] sm:$0xff]  ;;  %v215_v31 = vld [vmem:[%s3766_s25 + $0x160] sm:$0xff] }
  0x40   : > { %3308 = vmatprep.mubr.msk.f32.mxu0 %vm3710_vm1, %v3711_v6  ;;  %3509 = vmatprep.mubr.msk.f32.mxu1 %vm3710_vm1, %v3711_v6 }
  0x43   : > { %3309 = vmatmul.mubr.msk.f32.gmra.mrb[22].mxu0 %vm315_vm4, %v182_v28  ;;  %3510 = vmatmul.mubr.msk.f32.gmra.mrb[22].mxu1 %vm315_vm4, %v249_v33  ;;  %v278_v28 = vld [vmem:[%s3766_s25 + $0x358] sm:$0xff]  ;;  %v216_v33 = vld [vmem:[%s3766_s25 + $0x168] sm:$0xff] }
  0x44   : > { %3311 = vmatprep.mubr.msk.f32.mxu0 %vm3710_vm1, %v3711_v6  ;;  %3512 = vmatprep.mubr.msk.f32.mxu1 %vm3710_vm1, %v3711_v6 }
  0x47   : > { %3312 = vmatmul.mubr.msk.f32.gmra.mrb[24].mxu0 %vm315_vm4, %v183_v30  ;;  %3513 = vmatmul.mubr.msk.f32.gmra.mrb[24].mxu1 %vm315_vm4, %v250_v35  ;;  %v279_v30 = vld [vmem:[%s3766_s25 + $0x360] sm:$0xff]  ;;  %v217_v35 = vld [vmem:[%s3766_s25 + $0x170] sm:$0xff] }
  0x48   : > { %3314 = vmatprep.mubr.msk.f32.mxu0 %vm3710_vm1, %v3711_v6  ;;  %3515 = vmatprep.mubr.msk.f32.mxu1 %vm3710_vm1, %v3711_v6 }
  0x4b   : > { %3315 = vmatmul.mubr.msk.f32.gmra.mrb[26].mxu0 %vm315_vm4, %v184_v32  ;;  %3516 = vmatmul.mubr.msk.f32.gmra.mrb[26].mxu1 %vm315_vm4, %v251_v37  ;;  %v280_v32 = vld [vmem:[%s3766_s25 + $0x368] sm:$0xff]  ;;  %v218_v37 = vld [vmem:[%s3766_s25 + $0x178] sm:$0xff] }
  0x4c   : > { %3317 = vmatprep.mubr.msk.f32.mxu0 %vm3710_vm1, %v3711_v6  ;;  %3518 = vmatprep.mubr.msk.f32.mxu1 %vm3710_vm1, %v3711_v6 }
  0x4f   : > { %3318 = vmatmul.mubr.msk.f32.gmra.mrb[28].mxu0 %vm315_vm4, %v185_v34  ;;  %3519 = vmatmul.mubr.msk.f32.gmra.mrb[28].mxu1 %vm315_vm4, %v252_v39  ;;  %v281_v34 = vld [vmem:[%s3766_s25 + $0x370] sm:$0xff]  ;;  %v219_v39 = vld [vmem:[%s3766_s25 + $0x180] sm:$0xff] }
  0x50   : > { %3320 = vmatprep.mubr.msk.f32.mxu0 %vm3710_vm1, %v3711_v6  ;;  %3521 = vmatprep.mubr.msk.f32.mxu1 %vm3710_vm1, %v3711_v6 }
  0x53   : > { %3321 = vmatmul.mubr.msk.f32.gmra.mrb[30].mxu0 %vm315_vm4, %v186_v36  ;;  %3522 = vmatmul.mubr.msk.f32.gmra.mrb[30].mxu1 %vm315_vm4, %v253_v41  ;;  %v282_v36 = vld [vmem:[%s3766_s25 + $0x378] sm:$0xff]  ;;  %v220_v41 = vld [vmem:[%s3766_s25 + $0x188] sm:$0xff] }
  0x54   : > { %3323 = vmatprep.mubr.msk.f32.mxu0 %vm3710_vm1, %v3711_v6  ;;  %3524 = vmatprep.mubr.msk.f32.mxu1 %vm3710_vm1, %v3711_v6 }
  0x57   : > { %3324 = vmatmul.mubr.msk.f32.gmra.mrb[32].mxu0 %vm315_vm4, %v187_v38  ;;  %3525 = vmatmul.mubr.msk.f32.gmra.mrb[32].mxu1 %vm315_vm4, %v254_v43  ;;  %v283_v38 = vld [vmem:[%s3766_s25 + $0x380] sm:$0xff]  ;;  %v221_v43 = vld [vmem:[%s3766_s25 + $0x190] sm:$0xff] }
  0x58   : > { %3326 = vmatprep.mubr.msk.f32.mxu0 %vm3710_vm1, %v3711_v6  ;;  %3527 = vmatprep.mubr.msk.f32.mxu1 %vm3710_vm1, %v3711_v6 }
  0x5b   : > { %3327 = vmatmul.mubr.msk.f32.gmra.mrb[34].mxu0 %vm315_vm4, %v188_v40  ;;  %3528 = vmatmul.mubr.msk.f32.gmra.mrb[34].mxu1 %vm315_vm4, %v255_v45  ;;  %v284_v40 = vld [vmem:[%s3766_s25 + $0x388] sm:$0xff]  ;;  %v222_v45 = vld [vmem:[%s3766_s25 + $0x198] sm:$0xff] }
  0x5c   : > { %3329 = vmatprep.mubr.msk.f32.mxu0 %vm3710_vm1, %v3711_v6  ;;  %3530 = vmatprep.mubr.msk.f32.mxu1 %vm3710_vm1, %v3711_v6 }
  0x5f   : > { %3330 = vmatmul.mubr.msk.f32.gmra.mrb[36].mxu0 %vm315_vm4, %v189_v42  ;;  %3531 = vmatmul.mubr.msk.f32.gmra.mrb[36].mxu1 %vm315_vm4, %v256_v47  ;;  %v285_v42 = vld [vmem:[%s3766_s25 + $0x390] sm:$0xff]  ;;  %v223_v47 = vld [vmem:[%s3766_s25 + $0x1a0] sm:$0xff] }
  0x60   : > { %3332 = vmatprep.mubr.msk.f32.mxu0 %vm3710_vm1, %v3711_v6  ;;  %3533 = vmatprep.mubr.msk.f32.mxu1 %vm3710_vm1, %v3711_v6 }
  0x63   : > { %3333 = vmatmul.mubr.msk.f32.gmra.mrb[38].mxu0 %vm315_vm4, %v190_v44  ;;  %3534 = vmatmul.mubr.msk.f32.gmra.mrb[38].mxu1 %vm315_vm4, %v257_v49  ;;  %v286_v44 = vld [vmem:[%s3766_s25 + $0x398] sm:$0xff]  ;;  %v224_v49 = vld [vmem:[%s3766_s25 + $0x1a8] sm:$0xff] }
  0x64   : > { %3335 = vmatprep.mubr.msk.f32.mxu0 %vm3710_vm1, %v3711_v6  ;;  %3536 = vmatprep.mubr.msk.f32.mxu1 %vm3710_vm1, %v3711_v6 }
  0x67   : > { %3336 = vmatmul.mubr.msk.f32.gmra.mrb[40].mxu0 %vm315_vm4, %v191_v46  ;;  %3537 = vmatmul.mubr.msk.f32.gmra.mrb[40].mxu1 %vm315_vm4, %v258_v51  ;;  %v287_v46 = vld [vmem:[%s3766_s25 + $0x3a0] sm:$0xff]  ;;  %v289_v51 = vld [vmem:[%s3766_s25 + $0x3b0] sm:$0xff] }
  0x68   : > { %3338 = vmatprep.mubr.msk.f32.mxu0 %vm3710_vm1, %v3711_v6  ;;  %3539 = vmatprep.mubr.msk.f32.mxu1 %vm3710_vm1, %v3711_v6 }
  0x6b   : > { %3339 = vmatmul.mubr.msk.f32.gmra.mrb[42].mxu0 %vm315_vm4, %v192_v48  ;;  %3540 = vmatmul.mubr.msk.f32.gmra.mrb[42].mxu1 %vm315_vm4, %v259_v53  ;;  %v288_v48 = vld [vmem:[%s3766_s25 + $0x3a8] sm:$0xff]  ;;  %v225_v53 = vld [vmem:[%s3766_s25 + $0x1b0] sm:$0xff] }
  0x6c   : > { %3341 = vmatprep.mubr.msk.f32.mxu0 %vm3710_vm1, %v3711_v6  ;;  %3542 = vmatprep.mubr.msk.f32.mxu1 %vm3710_vm1, %v3711_v6 }
  0x6f   : > { %3342 = vmatmul.mubr.msk.f32.gmra.mrb[44].mxu0 %vm315_vm4, %v193_v50  ;;  %3543 = vmatmul.mubr.msk.f32.gmra.mrb[44].mxu1 %vm315_vm4, %v260_v55  ;;  %v290_v55 = vld [vmem:[%s3766_s25 + $0x3b8] sm:$0xff] }
  0x70   : > { %3344 = vmatprep.mubr.msk.f32.mxu0 %vm3710_vm1, %v3711_v6  ;;  %3545 = vmatprep.mubr.msk.f32.mxu1 %vm3710_vm1, %v3711_v6 }
  0x73   : > { %3345 = vmatmul.mubr.msk.f32.gmra.mrb[46].mxu0 %vm315_vm4, %v194_v52  ;;  %3546 = vmatmul.mubr.msk.f32.gmra.mrb[46].mxu1 %vm315_vm4, %v261_v57  ;;  %v226_v57 = vld [vmem:[%s3766_s25 + $0x1b8] sm:$0xff] }
  0x74   : > { %3347 = vmatprep.mubr.msk.f32.mxu0 %vm3710_vm1, %v3711_v6  ;;  %3548 = vmatprep.mubr.msk.f32.mxu1 %vm3710_vm1, %v3711_v6 }
  0x77   : > { %3348 = vmatmul.mubr.msk.f32.gmra.mrb[48].mxu0 %vm315_vm4, %v195_v54  ;;  %3549 = vmatmul.mubr.msk.f32.gmra.mrb[48].mxu1 %vm315_vm4, %v262_v59  ;;  %v291_v59 = vld [vmem:[%s3766_s25 + $0x3c0] sm:$0xff] }
  0x78   : > { %3350 = vmatprep.mubr.msk.f32.mxu0 %vm3710_vm1, %v3711_v6  ;;  %3551 = vmatprep.mubr.msk.f32.mxu1 %vm3710_vm1, %v3711_v6 }
  0x7b   : > { %3351 = vmatmul.mubr.msk.f32.gmra.mrb[50].mxu0 %vm315_vm4, %v196_v56  ;;  %3552 = vmatmul.mubr.msk.f32.gmra.mrb[50].mxu1 %vm315_vm4, %v263_v61  ;;  %v227_v61 = vld [vmem:[%s3766_s25 + $0x1c0] sm:$0xff] }
  0x7c   : > { %3353 = vmatprep.mubr.msk.f32.mxu0 %vm3710_vm1, %v3711_v6  ;;  %3554 = vmatprep.mubr.msk.f32.mxu1 %vm3710_vm1, %v3711_v6 }
  0x7f   : > { %3354 = vmatmul.mubr.msk.f32.gmra.mrb[52].mxu0 %vm315_vm4, %v197_v58  ;;  %3555 = vmatmul.mubr.msk.f32.gmra.mrb[52].mxu1 %vm315_vm4, %v264_v63 }
  0x80   : > { %3356 = vmatprep.mubr.msk.f32.mxu0 %vm3710_vm1, %v3711_v6  ;;  %3557 = vmatprep.mubr.msk.f32.mxu1 %vm3710_vm1, %v3711_v6 }
  0x83   : > { %3357 = vmatmul.mubr.msk.f32.gmra.mrb[54].mxu0 %vm315_vm4, %v198_v60  ;;  %3558 = vmatmul.mubr.msk.f32.gmra.mrb[54].mxu1 %vm315_vm4, %v265_v1  ;;  %v292_v1 = vld [vmem:[%s3766_s25 + $0x3c8] sm:$0xff] }
  0x84   : > { %3359 = vmatprep.mubr.msk.f32.mxu0 %vm3710_vm1, %v3711_v6  ;;  %3560 = vmatprep.mubr.msk.f32.mxu1 %vm3710_vm1, %v3711_v6 }
  0x87   : > { %3360 = vmatmul.mubr.msk.f32.gmra.mrb[56].mxu0 %vm315_vm4, %v199_v62  ;;  %3561 = vmatmul.mubr.msk.f32.gmra.mrb[56].mxu1 %vm315_vm4, %v266_v3  ;;  %v228_v3 = vld [vmem:[%s3766_s25 + $0x1c8] sm:$0xff] }
  0x88   : > { %3362 = vmatprep.mubr.msk.f32.mxu0 %vm3710_vm1, %v3711_v6  ;;  %3563 = vmatprep.mubr.msk.f32.mxu1 %vm3710_vm1, %v3711_v6 }
  0x8b   : > { %3363 = vmatmul.mubr.msk.f32.gmra.mrb[58].mxu0 %vm315_vm4, %v200_v0  ;;  %3564 = vmatmul.mubr.msk.f32.gmra.mrb[58].mxu1 %vm315_vm4, %v267_v5 }
  0x8c   : > { %3365 = vmatprep.mubr.msk.f32.mxu0 %vm3710_vm1, %v3711_v6  ;;  %3566 = vmatprep.mubr.msk.f32.mxu1 %vm3710_vm1, %v3711_v6 }
  0x8f   : > { %3366 = vmatmul.mubr.msk.f32.gmra.mrb[60].mxu0 %vm315_vm4, %v201_v2  ;;  %3567 = vmatmul.mubr.msk.f32.gmra.mrb[60].mxu1 %vm315_vm4, %v268_v8  ;;  %v293_v8 = vld [vmem:[%s3766_s25 + $0x3d0] sm:$0xff] }
  0x90   : > { %3368 = vmatprep.mubr.msk.f32.mxu0 %vm3710_vm1, %v3711_v6  ;;  %3569 = vmatprep.mubr.msk.f32.mxu1 %vm3710_vm1, %v3711_v6 }
  0x93   : > { %3369 = vmatmul.mubr.msk.f32.gmra.mrb[62].mxu0 %vm315_vm4, %v202_v4  ;;  %3570 = vmatmul.mubr.msk.f32.gmra.mrb[62].mxu1 %vm315_vm4, %v269_v10  ;;  %v229_v10 = vld [vmem:[%s3766_s25 + $0x1d0] sm:$0xff] }
  0x94   : > { %3371 = vmatprep.mubr.msk.f32.mxu0 %vm3710_vm1, %v3711_v6  ;;  %3572 = vmatprep.mubr.msk.f32.mxu1 %vm3710_vm1, %v3711_v6 }
  0x97   : > { %3372 = vmatmul.mubr.msk.f32.gmra.mrb[64].mxu0 %vm315_vm4, %v203_v7  ;;  %3573 = vmatmul.mubr.msk.f32.gmra.mrb[64].mxu1 %vm315_vm4, %v270_v12 }
  0x98   : > { %3374 = vmatprep.mubr.msk.f32.mxu0 %vm3710_vm1, %v3711_v6  ;;  %3575 = vmatprep.mubr.msk.f32.mxu1 %vm3710_vm1, %v3711_v6 }
  0x9b   : > { %3375 = vmatmul.mubr.msk.f32.gmra.mrb[66].mxu0 %vm315_vm4, %v204_v9  ;;  %3576 = vmatmul.mubr.msk.f32.gmra.mrb[66].mxu1 %vm315_vm4, %v271_v14  ;;  %v294_v14 = vld [vmem:[%s3766_s25 + $0x3d8] sm:$0xff] }
  0x9c   : > { %3377 = vmatprep.mubr.msk.f32.mxu0 %vm3710_vm1, %v3711_v6  ;;  %3578 = vmatprep.mubr.msk.f32.mxu1 %vm3710_vm1, %v3711_v6 }
  0x9f   : > { %3378 = vmatmul.mubr.msk.f32.gmra.mrb[68].mxu0 %vm315_vm4, %v205_v11  ;;  %3579 = vmatmul.mubr.msk.f32.gmra.mrb[68].mxu1 %vm315_vm4, %v272_v16  ;;  %v230_v16 = vld [vmem:[%s3766_s25 + $0x1d8] sm:$0xff] }
  0xa0   : > { %3380 = vmatprep.mubr.msk.f32.mxu0 %vm3710_vm1, %v3711_v6  ;;  %3581 = vmatprep.mubr.msk.f32.mxu1 %vm3710_vm1, %v3711_v6 }
  0xa3   : > { %3381 = vmatmul.mubr.msk.f32.gmra.mrb[70].mxu0 %vm315_vm4, %v206_v13  ;;  %3582 = vmatmul.mubr.msk.f32.gmra.mrb[70].mxu1 %vm315_vm4, %v273_v18 }
  0xa4   : > { %3383 = vmatprep.mubr.msk.f32.mxu0 %vm3710_vm1, %v3711_v6  ;;  %3584 = vmatprep.mubr.msk.f32.mxu1 %vm3710_vm1, %v3711_v6 }
  0xa7   : > { %3384 = vmatmul.mubr.msk.f32.gmra.mrb[72].mxu0 %vm315_vm4, %v207_v15  ;;  %3585 = vmatmul.mubr.msk.f32.gmra.mrb[72].mxu1 %vm315_vm4, %v274_v20  ;;  %v295_v20 = vld [vmem:[%s3766_s25 + $0x3e0] sm:$0xff] }
  0xa8   : > { %3386 = vmatprep.mubr.msk.f32.mxu0 %vm3710_vm1, %v3711_v6  ;;  %3587 = vmatprep.mubr.msk.f32.mxu1 %vm3710_vm1, %v3711_v6 }
  0xab   : > { %3387 = vmatmul.mubr.msk.f32.gmra.mrb[74].mxu0 %vm315_vm4, %v208_v17  ;;  %3588 = vmatmul.mubr.msk.f32.gmra.mrb[74].mxu1 %vm315_vm4, %v275_v22  ;;  %v231_v22 = vld [vmem:[%s3766_s25 + $0x1e0] sm:$0xff] }
  0xac   : > { %3389 = vmatprep.mubr.msk.f32.mxu0 %vm3710_vm1, %v3711_v6  ;;  %3590 = vmatprep.mubr.msk.f32.mxu1 %vm3710_vm1, %v3711_v6 }
  0xaf   : > { %3390 = vmatmul.mubr.msk.f32.gmra.mrb[76].mxu0 %vm315_vm4, %v209_v19  ;;  %3591 = vmatmul.mubr.msk.f32.gmra.mrb[76].mxu1 %vm315_vm4, %v276_v24 }
  0xb0   : > { %3392 = vmatprep.mubr.msk.f32.mxu0 %vm3710_vm1, %v3711_v6  ;;  %3593 = vmatprep.mubr.msk.f32.mxu1 %vm3710_vm1, %v3711_v6 }
  0xb3   : > { %3393 = vmatmul.mubr.msk.f32.gmra.mrb[78].mxu0 %vm315_vm4, %v210_v21  ;;  %3594 = vmatmul.mubr.msk.f32.gmra.mrb[78].mxu1 %vm315_vm4, %v277_v26  ;;  %v296_v26 = vld [vmem:[%s3766_s25 + $0x3e8] sm:$0xff] }
  0xb4   : > { %3395 = vmatprep.mubr.msk.f32.mxu0 %vm3710_vm1, %v3711_v6  ;;  %3596 = vmatprep.mubr.msk.f32.mxu1 %vm3710_vm1, %v3711_v6 }
  0xb7   : > { %3396 = vmatmul.mubr.msk.f32.gmra.mrb[80].mxu0 %vm315_vm4, %v211_v23  ;;  %3597 = vmatmul.mubr.msk.f32.gmra.mrb[80].mxu1 %vm315_vm4, %v278_v28  ;;  %v232_v28 = vld [vmem:[%s3766_s25 + $0x1e8] sm:$0xff] }
  0xb8   : > { %3398 = vmatprep.mubr.msk.f32.mxu0 %vm3710_vm1, %v3711_v6  ;;  %3599 = vmatprep.mubr.msk.f32.mxu1 %vm3710_vm1, %v3711_v6 }
  0xbb   : > { %3399 = vmatmul.mubr.msk.f32.gmra.mrb[82].mxu0 %vm315_vm4, %v212_v25  ;;  %3600 = vmatmul.mubr.msk.f32.gmra.mrb[82].mxu1 %vm315_vm4, %v279_v30 }
  0xbc   : > { %3401 = vmatprep.mubr.msk.f32.mxu0 %vm3710_vm1, %v3711_v6  ;;  %3602 = vmatprep.mubr.msk.f32.mxu1 %vm3710_vm1, %v3711_v6 }
  0xbf   : > { %3402 = vmatmul.mubr.msk.f32.gmra.mrb[84].mxu0 %vm315_vm4, %v213_v27  ;;  %3603 = vmatmul.mubr.msk.f32.gmra.mrb[84].mxu1 %vm315_vm4, %v280_v32  ;;  %v297_v32 = vld [vmem:[%s3766_s25 + $0x3f0] sm:$0xff] }
  0xc0   : > { %3404 = vmatprep.mubr.msk.f32.mxu0 %vm3710_vm1, %v3711_v6  ;;  %3605 = vmatprep.mubr.msk.f32.mxu1 %vm3710_vm1, %v3711_v6 }
  0xc3   : > { %3405 = vmatmul.mubr.msk.f32.gmra.mrb[86].mxu0 %vm315_vm4, %v214_v29  ;;  %3606 = vmatmul.mubr.msk.f32.gmra.mrb[86].mxu1 %vm315_vm4, %v281_v34  ;;  %v233_v34 = vld [vmem:[%s3766_s25 + $0x1f0] sm:$0xff] }
  0xc4   : > { %3407 = vmatprep.mubr.msk.f32.mxu0 %vm3710_vm1, %v3711_v6  ;;  %3608 = vmatprep.mubr.msk.f32.mxu1 %vm3710_vm1, %v3711_v6 }
  0xc7   : > { %3408 = vmatmul.mubr.msk.f32.gmra.mrb[88].mxu0 %vm315_vm4, %v215_v31  ;;  %3609 = vmatmul.mubr.msk.f32.gmra.mrb[88].mxu1 %vm315_vm4, %v282_v36 }
  0xc8   : > { %3410 = vmatprep.mubr.msk.f32.mxu0 %vm3710_vm1, %v3711_v6  ;;  %3611 = vmatprep.mubr.msk.f32.mxu1 %vm3710_vm1, %v3711_v6 }
  0xcb   : > { %3411 = vmatmul.mubr.msk.f32.gmra.mrb[90].mxu0 %vm315_vm4, %v216_v33  ;;  %3612 = vmatmul.mubr.msk.f32.gmra.mrb[90].mxu1 %vm315_vm4, %v283_v38  ;;  %v298_v38 = vld [vmem:[%s3766_s25 + $0x3f8] sm:$0xff] }
  0xcc   : > { %3413 = vmatprep.mubr.msk.f32.mxu0 %vm3710_vm1, %v3711_v6  ;;  %3614 = vmatprep.mubr.msk.f32.mxu1 %vm3710_vm1, %v3711_v6 }
  0xcf   : > { %3414 = vmatmul.mubr.msk.f32.gmra.mrb[92].mxu0 %vm315_vm4, %v217_v35  ;;  %3615 = vmatmul.mubr.msk.f32.gmra.mrb[92].mxu1 %vm315_vm4, %v284_v40  ;;  %v234_v40 = vld [vmem:[%s3766_s25 + $0x1f8] sm:$0xff] }
  0xd0   : > { %3416 = vmatprep.mubr.msk.f32.mxu0 %vm3710_vm1, %v3711_v6  ;;  %3617 = vmatprep.mubr.msk.f32.mxu1 %vm3710_vm1, %v3711_v6 }
  0xd3   : > { %3417 = vmatmul.mubr.msk.f32.gmra.mrb[94].mxu0 %vm315_vm4, %v218_v37  ;;  %3618 = vmatmul.mubr.msk.f32.gmra.mrb[94].mxu1 %vm315_vm4, %v285_v42 }
  0xd4   : > { %3419 = vmatprep.mubr.msk.f32.mxu0 %vm3710_vm1, %v3711_v6  ;;  %3620 = vmatprep.mubr.msk.f32.mxu1 %vm3710_vm1, %v3711_v6 }
  0xd7   : > { %3420 = vmatmul.mubr.msk.f32.gmra.mrb[96].mxu0 %vm315_vm4, %v219_v39  ;;  %3621 = vmatmul.mubr.msk.f32.gmra.mrb[96].mxu1 %vm315_vm4, %v286_v44  ;;  %v299_v44 = vld [vmem:[%s3766_s25 + $0x400] sm:$0xff] }
  0xd8   : > { %3422 = vmatprep.mubr.msk.f32.mxu0 %vm3710_vm1, %v3711_v6  ;;  %3623 = vmatprep.mubr.msk.f32.mxu1 %vm3710_vm1, %v3711_v6 }
  0xdb   : > { %3423 = vmatmul.mubr.msk.f32.gmra.mrb[98].mxu0 %vm315_vm4, %v220_v41  ;;  %3624 = vmatmul.mubr.msk.f32.gmra.mrb[98].mxu1 %vm315_vm4, %v287_v46  ;;  %v235_v46 = vld [vmem:[%s3766_s25 + $0x200] sm:$0xff] }
  0xdc   : > { %3425 = vmatprep.mubr.msk.f32.mxu0 %vm3710_vm1, %v3711_v6  ;;  %3626 = vmatprep.mubr.msk.f32.mxu1 %vm3710_vm1, %v3711_v6 }
  0xdf   : > { %3426 = vmatmul.mubr.msk.f32.gmra.mrb[100].mxu0 %vm315_vm4, %v221_v43  ;;  %3627 = vmatmul.mubr.msk.f32.gmra.mrb[100].mxu1 %vm315_vm4, %v288_v48 }
  0xe0   : > { %3428 = vmatprep.mubr.msk.f32.mxu0 %vm3710_vm1, %v3711_v6  ;;  %3629 = vmatprep.mubr.msk.f32.mxu1 %vm3710_vm1, %v3711_v6 }
  0xe3   : > { %3429 = vmatmul.mubr.msk.f32.gmra.mrb[102].mxu0 %vm315_vm4, %v222_v45  ;;  %3630 = vmatmul.mubr.msk.f32.gmra.mrb[102].mxu1 %vm315_vm4, %v289_v51  ;;  %v300_v51 = vld [vmem:[%s3766_s25 + $0x408] sm:$0xff] }
  0xe4   : > { %3431 = vmatprep.mubr.msk.f32.mxu0 %vm3710_vm1, %v3711_v6  ;;  %3632 = vmatprep.mubr.msk.f32.mxu1 %vm3710_vm1, %v3711_v6 }
  0xe7   : > { %3432 = vmatmul.mubr.msk.f32.gmra.mrb[104].mxu0 %vm315_vm4, %v223_v47  ;;  %3633 = vmatmul.mubr.msk.f32.gmra.mrb[104].mxu1 %vm315_vm4, %v290_v55 }
  0xe8   : > { %3434 = vmatprep.mubr.msk.f32.mxu0 %vm3710_vm1, %v3711_v6  ;;  %3635 = vmatprep.mubr.msk.f32.mxu1 %vm3710_vm1, %v3711_v6 }
  0xea   : > { %v4183_v50 = vpop.f32.mrb[0].mxu0  ;;  %v4212_v62 = vpop.f32.mrb[0].mxu1 }
  0xeb   : > { %v3277_v52 = vpop.f32.mrb[1].mxu0  ;;  %3435 = vmatmul.mubr.msk.f32.gmra.mrb[106].mxu0 %vm315_vm4, %v224_v49  ;;  %v3478_v63 = vpop.f32.mrb[1].mxu1  ;;  %3636 = vmatmul.mubr.msk.f32.gmra.mrb[106].mxu1 %vm315_vm4, %v291_v59  ;;  %v301_v59 = vld [vmem:[%s3766_s25 + $0x410] sm:$0xff] }
  0xec   : > { %3437 = vmatprep.mubr.msk.f32.mxu0 %vm3710_vm1, %v3711_v6  ;;  %3638 = vmatprep.mubr.msk.f32.mxu1 %vm3710_vm1, %v3711_v6 }
  0xee   : > { %v4193_v54 = vpop.f32.mrb[2].mxu0  ;;  %v4224_v4 = vpop.f32.mrb[2].mxu1 }
  0xef   : > { %v3280_v56 = vpop.f32.mrb[3].mxu0  ;;  %3438 = vmatmul.mubr.msk.f32.gmra.mrb[108].mxu0 %vm315_vm4, %v225_v53  ;;  %v3481_v5 = vpop.f32.mrb[3].mxu1  ;;  %3639 = vmatmul.mubr.msk.f32.gmra.mrb[108].mxu1 %vm315_vm4, %v292_v1  ;;  %v236_v53 = vld [vmem:[%s3766_s25 + $0x208] sm:$0xff] }
  0xf0   : > { %3440 = vmatprep.mubr.msk.f32.mxu0 %vm3710_vm1, %v3711_v6  ;;  %3641 = vmatprep.mubr.msk.f32.mxu1 %vm3710_vm1, %v3711_v6 }
  0xf2   : > { %v4203_v58 = vpop.f32.mrb[4].mxu0  ;;  %v4236_v11 = vpop.f32.mrb[4].mxu1 }
  0xf3   : > { %v3283_v60 = vpop.f32.mrb[5].mxu0  ;;  %3441 = vmatmul.mubr.msk.f32.gmra.mrb[110].mxu0 %vm315_vm4, %v226_v57  ;;  %v3484_v12 = vpop.f32.mrb[5].mxu1  ;;  %3642 = vmatmul.mubr.msk.f32.gmra.mrb[110].mxu1 %vm315_vm4, %v293_v8 }
  0xf4   : > { %3443 = vmatprep.mubr.msk.f32.mxu0 %vm3710_vm1, %v3711_v6  ;;  %3644 = vmatprep.mubr.msk.f32.mxu1 %vm3710_vm1, %v3711_v6  ;;  %v303_v12 = vld [vmem:[%s3766_s25 + $0x420] sm:$0x3] }
  0xf6   : > { %v4215_v0 = vpop.f32.mrb[6].mxu0  ;;  %v4248_v17 = vpop.f32.mrb[6].mxu1 }
  0xf7   : > { %v3286_v2 = vpop.f32.mrb[7].mxu0  ;;  %3444 = vmatmul.mubr.msk.f32.gmra.mrb[112].mxu0 %vm315_vm4, %v227_v61  ;;  %v3487_v18 = vpop.f32.mrb[7].mxu1  ;;  %3645 = vmatmul.mubr.msk.f32.gmra.mrb[112].mxu1 %vm315_vm4, %v294_v14  ;;  %v237_v61 = vld [vmem:[%s3766_s25 + $0x210] sm:$0xff] }
  0xf8   : > { %3446 = vmatprep.mubr.msk.f32.mxu0 %vm3710_vm1, %v3711_v6  ;;  %3647 = vmatprep.mubr.msk.f32.mxu1 %vm3710_vm1, %v3711_v6 }
  0xfa   : > { %v4227_v7 = vpop.f32.mrb[8].mxu0  ;;  %v4260_v23 = vpop.f32.mrb[8].mxu1 }
  0xfb   : > { %v3289_v9 = vpop.f32.mrb[9].mxu0  ;;  %3447 = vmatmul.mubr.msk.f32.gmra.mrb[114].mxu0 %vm315_vm4, %v228_v3  ;;  %v3490_v24 = vpop.f32.mrb[9].mxu1  ;;  %3648 = vmatmul.mubr.msk.f32.gmra.mrb[114].mxu1 %vm315_vm4, %v295_v20  ;;  %v302_v3 = vld [vmem:[%s3766_s25 + $0x418] sm:$0xff] }
  0xfc   : > { %3449 = vmatprep.mubr.msk.f32.mxu0 %vm3710_vm1, %v3711_v6  ;;  %3650 = vmatprep.mubr.msk.f32.mxu1 %vm3710_vm1, %v3711_v6 }
  0xfe   : > { %v4239_v13 = vpop.f32.mrb[10].mxu0  ;;  %v4272_v29 = vpop.f32.mrb[10].mxu1 }
  0xff   : > { %v3292_v15 = vpop.f32.mrb[11].mxu0  ;;  %3450 = vmatmul.mubr.msk.f32.gmra.mrb[116].mxu0 %vm315_vm4, %v229_v10  ;;  %v3493_v30 = vpop.f32.mrb[11].mxu1  ;;  %3651 = vmatmul.mubr.msk.f32.gmra.mrb[116].mxu1 %vm315_vm4, %v296_v26 }
 0x100   : > { %3452 = vmatprep.mubr.msk.f32.mxu0 %vm3710_vm1, %v3711_v6  ;;  %3653 = vmatprep.mubr.msk.f32.mxu1 %vm3710_vm1, %v3711_v6 }
 0x102   : > { %v4251_v19 = vpop.f32.mrb[12].mxu0  ;;  %v4284_v35 = vpop.f32.mrb[12].mxu1 }
 0x103   : > { %v3295_v21 = vpop.f32.mrb[13].mxu0  ;;  %3453 = vmatmul.mubr.msk.f32.gmra.mrb[118].mxu0 %vm315_vm4, %v230_v16  ;;  %v3496_v36 = vpop.f32.mrb[13].mxu1  ;;  %3654 = vmatmul.mubr.msk.f32.gmra.mrb[118].mxu1 %vm315_vm4, %v297_v32 }
 0x104   : > { %3455 = vmatprep.mubr.msk.f32.mxu0 %vm3710_vm1, %v3711_v6  ;;  %3656 = vmatprep.mubr.msk.f32.mxu1 %vm3710_vm1, %v3711_v6 }
 0x106   : > { %v4263_v25 = vpop.f32.mrb[14].mxu0  ;;  %v4296_v41 = vpop.f32.mrb[14].mxu1 }
 0x107   : > { %v3298_v27 = vpop.f32.mrb[15].mxu0  ;;  %3456 = vmatmul.mubr.msk.f32.gmra.mrb[120].mxu0 %vm315_vm4, %v231_v22  ;;  %v3499_v42 = vpop.f32.mrb[15].mxu1  ;;  %3657 = vmatmul.mubr.msk.f32.gmra.mrb[120].mxu1 %vm315_vm4, %v298_v38 }
 0x108   : > { %3458 = vmatprep.mubr.msk.f32.mxu0 %vm3710_vm1, %v3711_v6  ;;  %3659 = vmatprep.mubr.msk.f32.mxu1 %vm3710_vm1, %v3711_v6 }
 0x10a   : > { %v4275_v31 = vpop.f32.mrb[16].mxu0  ;;  %v4308_v47 = vpop.f32.mrb[16].mxu1 }
 0x10b   : > { %v3301_v33 = vpop.f32.mrb[17].mxu0  ;;  %3459 = vmatmul.mubr.msk.f32.gmra.mrb[122].mxu0 %vm315_vm4, %v232_v28  ;;  %v3502_v48 = vpop.f32.mrb[17].mxu1  ;;  %3660 = vmatmul.mubr.msk.f32.gmra.mrb[122].mxu1 %vm315_vm4, %v299_v44 }
 0x10c   : > { %3461 = vmatprep.mubr.msk.f32.mxu0 %vm3710_vm1, %v3711_v6  ;;  %3662 = vmatprep.mubr.msk.f32.mxu1 %vm3710_vm1, %v3711_v6 }
 0x10e   : > { %v4287_v37 = vpop.f32.mrb[18].mxu0  ;;  %v4320_v55 = vpop.f32.mrb[18].mxu1 }
 0x10f   : > { %v3304_v39 = vpop.f32.mrb[19].mxu0  ;;  %3462 = vmatmul.mubr.msk.f32.gmra.mrb[124].mxu0 %vm315_vm4, %v233_v34  ;;  %v3505_v56 = vpop.f32.mrb[19].mxu1  ;;  %3663 = vmatmul.mubr.msk.f32.gmra.mrb[124].mxu1 %vm315_vm4, %v300_v51 }
 0x110   : > { %3464 = vmatprep.mubr.msk.f32.mxu0 %vm3710_vm1, %v3711_v6  ;;  %3665 = vmatprep.mubr.msk.f32.mxu1 %vm3710_vm1, %v3711_v6 }
 0x112   : > { %v4299_v43 = vpop.f32.mrb[20].mxu0  ;;  %v4332_v63 = vpop.f32.mrb[20].mxu1 }
 0x113   : > { %v3307_v45 = vpop.f32.mrb[21].mxu0  ;;  %3465 = vmatmul.mubr.msk.f32.gmra.mrb[126].mxu0 %vm315_vm4, %v234_v40  ;;  %v3508_v1 = vpop.f32.mrb[21].mxu1  ;;  %3666 = vmatmul.mubr.msk.f32.gmra.mrb[126].mxu1 %vm315_vm4, %v301_v59 }
 0x114   : > { %3467 = vmatprep.mubr.msk.f32.mxu0 %vm3710_vm1, %v3711_v6  ;;  %3668 = vmatprep.mubr.msk.f32.mxu1 %vm3710_vm1, %v3711_v6 }
 0x116   : > { %v4311_v49 = vpop.f32.mrb[22].mxu0  ;;  %v4341_v8 = vpop.f32.mrb[22].mxu1 }
 0x117   : > { %v3310_v52 = vpop.f32.mrb[23].mxu0  ;;  %3468 = vmatmul.mubr.msk.f32.gmra.mrb[128].mxu0 %vm315_vm4, %v235_v46  ;;  %v3511_v9 = vpop.f32.mrb[23].mxu1  ;;  %3669 = vmatmul.mubr.msk.f32.gmra.mrb[128].mxu1 %vm315_vm4, %v302_v3 }
 0x118   : > { %3470 = vmatprep.mubr.msk.f32.mxu0 %vm3710_vm1, %v3711_v6  ;;  %3671 = vmatprep.mubr.msk.f32.mxu1 %vm3710_vm1, %v3711_v6 }
 0x11a   : > { %v4323_v57 = vpop.f32.mrb[24].mxu0  ;;  %v4349_v15 = vpop.f32.mrb[24].mxu1 }
 0x11b   : > { %v3313_v60 = vpop.f32.mrb[25].mxu0  ;;  %3471 = vmatmul.mubr.msk.f32.gmra.mrb[130].mxu0 %vm315_vm4, %v236_v53  ;;  %v3514_v16 = vpop.f32.mrb[25].mxu1  ;;  %3672 = vmatmul.mubr.msk.f32.gmra.mrb[130].mxu1 %vm315_vm4, %v303_v12 }
 0x11c   : > { %3473 = vmatprep.mubr.msk.f32.mxu0 %vm3710_vm1, %v3711_v6 }
 0x11e   : > { %v4335_v2 = vpop.f32.mrb[26].mxu0  ;;  %v4354_v21 = vpop.f32.mrb[26].mxu1 }
 0x11f   : > { %v3316_v5 = vpop.f32.mrb[27].mxu0  ;;  %3474 = vmatmul.mubr.msk.f32.gmra.mrb[132].mxu0 %vm315_vm4, %v237_v61  ;;  %8265 = vst [vmem:[#allocation2_spill] sm:$0xff] %v4354_v21  ;;  %v3517_v22 = vpop.f32.mrb[27].mxu1 }
 0x122   : > { %v4344_v10 = vpop.f32.mrb[28].mxu0  ;;  %v4358_v27 = vpop.f32.mrb[28].mxu1 }
 0x123   : > { %v3319_v14 = vpop.f32.mrb[29].mxu0  ;;  %8266 = vst [vmem:[#allocation3_spill] sm:$0xff] %v4358_v27  ;;  %v3520_v28 = vpop.f32.mrb[29].mxu1 }
 0x126   : > { %v4352_v18 = vpop.f32.mrb[30].mxu0  ;;  %v4362_v32 = vpop.f32.mrb[30].mxu1 }
 0x127   : > { %v3322_v20 = vpop.f32.mrb[31].mxu0  ;;  %8267 = vst [vmem:[#allocation4_spill] sm:$0xff] %v4362_v32  ;;  %v3523_v33 = vpop.f32.mrb[31].mxu1 }
 0x12a   : > { %v4356_v24 = vpop.f32.mrb[32].mxu0  ;;  %v4366_v38 = vpop.f32.mrb[32].mxu1 }
 0x12b   : > { %v3325_v26 = vpop.f32.mrb[33].mxu0  ;;  %8268 = vst [vmem:[#allocation5_spill] sm:$0xff] %v4366_v38  ;;  %v3526_v39 = vpop.f32.mrb[33].mxu1 }
 0x12e   : > { %v4360_v6 = vpop.f32.mrb[34].mxu0  ;;  %v4370_v44 = vpop.f32.mrb[34].mxu1 }
 0x12f   : > { %v3328_v30 = vpop.f32.mrb[35].mxu0  ;;  %8269 = vst [vmem:[#allocation6_spill] sm:$0xff] %v4370_v44  ;;  %v3529_v45 = vpop.f32.mrb[35].mxu1 }
 0x132   : > { %v4364_v34 = vpop.f32.mrb[36].mxu0  ;;  %v4374_v51 = vpop.f32.mrb[36].mxu1 }
 0x133   : > { %v3331_v36 = vpop.f32.mrb[37].mxu0  ;;  %8270 = vst [vmem:[#allocation7_spill] sm:$0xff] %v4374_v51  ;;  %v3532_v52 = vpop.f32.mrb[37].mxu1 }
 0x136   : > { %v4368_v40 = vpop.f32.mrb[38].mxu0  ;;  %v4378_v59 = vpop.f32.mrb[38].mxu1 }
 0x137   : > { %v3334_v42 = vpop.f32.mrb[39].mxu0  ;;  %8271 = vst [vmem:[#allocation8_spill] sm:$0xff] %v4378_v59  ;;  %v3535_v60 = vpop.f32.mrb[39].mxu1 }
 0x13a   : > { %v4372_v46 = vpop.f32.mrb[40].mxu0  ;;  %v4382_v3 = vpop.f32.mrb[40].mxu1 }
 0x13b   : > { %v3337_v48 = vpop.f32.mrb[41].mxu0  ;;  %8272 = vst [vmem:[#allocation9_spill] sm:$0xff] %v4382_v3  ;;  %v3538_v5 = vpop.f32.mrb[41].mxu1 }
 0x13e   : > { %v4376_v53 = vpop.f32.mrb[42].mxu0  ;;  %v4386_v14 = vpop.f32.mrb[42].mxu1 }
 0x13f   : > { %v3340_v56 = vpop.f32.mrb[43].mxu0  ;;  %8273 = vst [vmem:[#allocation10_spill] sm:$0xff] %v4386_v14  ;;  %v3541_v16 = vpop.f32.mrb[43].mxu1 }
 0x142   : > { %v4380_v61 = vpop.f32.mrb[44].mxu0  ;;  %v4390_v26 = vpop.f32.mrb[44].mxu1 }
 0x143   : > { %v3343_v1 = vpop.f32.mrb[45].mxu0  ;;  %8274 = vst [vmem:[#allocation11_spill] sm:$0xff] %v4390_v26  ;;  %v3544_v28 = vpop.f32.mrb[45].mxu1 }
 0x146   : > { %v4384_v9 = vpop.f32.mrb[46].mxu0  ;;  %v4394_v36 = vpop.f32.mrb[46].mxu1 }
 0x147   : > { %v3346_v12 = vpop.f32.mrb[47].mxu0  ;;  %8275 = vst [vmem:[#allocation12_spill] sm:$0xff] %v4394_v36  ;;  %v3547_v39 = vpop.f32.mrb[47].mxu1 }
 0x14a   : > { %v4388_v20 = vpop.f32.mrb[48].mxu0  ;;  %v4398_v48 = vpop.f32.mrb[48].mxu1 }
 0x14b   : > { %v3349_v22 = vpop.f32.mrb[49].mxu0  ;;  %8276 = vst [vmem:[#allocation13_spill] sm:$0xff] %v4398_v48  ;;  %v3550_v52 = vpop.f32.mrb[49].mxu1 }
 0x14e   : > { %v4392_v30 = vpop.f32.mrb[50].mxu0  ;;  %v4402_v1 = vpop.f32.mrb[50].mxu1 }
 0x14f   : > { %v3352_v33 = vpop.f32.mrb[51].mxu0  ;;  %8277 = vst [vmem:[#allocation14_spill] sm:$0xff] %v4402_v1  ;;  %v3553_v5 = vpop.f32.mrb[51].mxu1 }
 0x152   : > { %v4396_v42 = vpop.f32.mrb[52].mxu0  ;;  %v4406_v22 = vpop.f32.mrb[52].mxu1 }
 0x153   : > { %v3355_v45 = vpop.f32.mrb[53].mxu0  ;;  %8278 = vst [vmem:[#allocation15_spill] sm:$0xff] %v4406_v22  ;;  %v3556_v28 = vpop.f32.mrb[53].mxu1 }
 0x156   : > { %v4400_v56 = vpop.f32.mrb[54].mxu0  ;;  %v4410_v36 = vpop.f32.mrb[54].mxu1 }
 0x157   : > { %v3358_v60 = vpop.f32.mrb[55].mxu0  ;;  %8279 = vst [vmem:[#allocation16_spill] sm:$0xff] %v4410_v36  ;;  %v3559_v45 = vpop.f32.mrb[55].mxu1 }
 0x15a   : > { %v4404_v12 = vpop.f32.mrb[56].mxu0  ;;  %v4414_v26 = vpop.f32.mrb[56].mxu1 }
 0x15b   : > { %v3361_v16 = vpop.f32.mrb[57].mxu0  ;;  %8280 = vst [vmem:[#allocation17_spill] sm:$0xff] %v4414_v26  ;;  %v3562_v60 = vpop.f32.mrb[57].mxu1 }
 0x15c   : > { %v4423_v16 = vld [vmem:[%s7977_s2] ss:$0 sm:$0xff] }
 0x15d   : > { %v4429_v45 = vadd.f32 %v4423_v16, %v4193_v54  ;;  %v4433_v60 = vadd.f32 %v4423_v16, %v4183_v50  ;;  %v4447_v54 = vadd.f32 %v4423_v16, %v4215_v0  ;;  %v4459_v22 = vadd.f32 %v4423_v16, %v4227_v7 }
 0x15e   : > { %v4408_v33 = vpop.f32.mrb[58].mxu0  ;;  %v4418_v14 = vpop.f32.mrb[58].mxu1  ;;  %v4472_v51 = vadd.f32 %v4423_v16, %v4239_v13  ;;  %v4484_v32 = vadd.f32 %v4423_v16, %v4251_v19 }
 0x15f   : > { %v3364_v39 = vpop.f32.mrb[59].mxu0  ;;  %8281 = vst [vmem:[#allocation18_spill] sm:$0xff] %v4418_v14  ;;  %v3565_v28 = vpop.f32.mrb[59].mxu1  ;;  %8282 = vst [vmem:[#allocation19_spill] sm:$0xff] %v4429_v45  ;;  %v4439_v14 = vadd.f32 %v4423_v16, %v4203_v58  ;;  %v1722_v50 = vmul.f32 %v4433_v60, %v4433_v60  ;;  %v1451_v58 = vsel %vm1449_vm5, %v4429_v45, 0.0  ;;  %v1450_v0 = vsel %vm1449_vm5, %v4433_v60, 0.0 }
 0x160   : > { %8283 = vst [vmem:[#allocation20_spill] sm:$0xff] %v4433_v60  ;;  %v1723_v28 = vmul.f32 %v4429_v45, %v4429_v45  ;;  %8286 = vst [vmem:[#allocation23_spill] sm:$0xff] %v4447_v54  ;;  %v1725_v45 = vmul.f32 %v4447_v54, %v4447_v54  ;;  %v1452_v44 = vadd.f32 %v1451_v58, %v1450_v0  ;;  %v1457_v58 = vsel %vm1449_vm5, %v4459_v22, 0.0 }
 0x161   : > { %8285 = vst [vmem:[#allocation22_spill] sm:$0xff] %v4439_v14  ;;  %8288 = vst [vmem:[#allocation25_spill] sm:$0xff] %v4459_v22  ;;  %v4495_v0 = vadd.f32 %v4423_v16, %v4263_v25 }
 0x162   : > { %v4412_v48 = vpop.f32.mrb[60].mxu0  ;;  %v1856_v59 = vsel %vm1449_vm5, %v1723_v28, 0.0  ;;  %8289 = vst [vmem:[#allocation26_spill] sm:$0xff] %v4472_v51  ;;  %v1455_v28 = vsel %vm1449_vm5, %v4447_v54, 0.0  ;;  %8291 = vst [vmem:[#allocation28_spill] sm:$0xff] %v4484_v32 }
 0x163   : > { %v3367_v52 = vpop.f32.mrb[61].mxu0  ;;  %8292 = vst [vmem:[#allocation29_spill] sm:$0xff] %v4495_v0 }
 0x166   : > { %v4416_v1 = vpop.f32.mrb[62].mxu0 }
 0x167   : > { %v3370_v5 = vpop.f32.mrb[63].mxu0 }
 0x168   : > { %v4435_v5 = vpop.f32.mrb[60].mxu1 }
 0x169   : > { %8284 = vst [vmem:[#allocation21_spill] sm:$0xff] %v4435_v5  ;;  %v3568_v26 = vpop.f32.mrb[61].mxu1 }
 0x16a   : > { %v4425_v39 = vpop.f32.mrb[64].mxu0  ;;  %v4451_v5 = vpop.f32.mrb[62].mxu1  ;;  %v1724_v26 = vmul.f32 %v4439_v14, %v4439_v14 }
 0x16b   : > { %v3373_v52 = vpop.f32.mrb[65].mxu0  ;;  %8287 = vst [vmem:[#allocation24_spill] sm:$0xff] %v4451_v5  ;;  %v3571_v3 = vpop.f32.mrb[63].mxu1  ;;  %v1453_v5 = vsel %vm1449_vm5, %v4439_v14, 0.0  ;;  %v1726_v14 = vmul.f32 %v4459_v22, %v4459_v22 }
 0x16c   : > { %v1855_v3 = vsel %vm1449_vm5, %v1722_v50, 0.0  ;;  %v4475_v38 = vpop.f32.mrb[64].mxu1  ;;  %v1858_v60 = vsel %vm1449_vm5, %v1724_v26, 0.0  ;;  %v1860_v50 = vsel %vm1449_vm5, %v1725_v45, 0.0  ;;  %v1727_v26 = vmul.f32 %v4472_v51, %v4472_v51 }
 0x16d   : > { %8290 = vst [vmem:[#allocation27_spill] sm:$0xff] %v4475_v38  ;;  %v3574_v13 = vpop.f32.mrb[65].mxu1  ;;  %v1857_v27 = vadd.f32 %v1856_v59, %v1855_v3  ;;  %v1459_v59 = vsel %vm1449_vm5, %v4472_v51, 0.0  ;;  %v1728_v45 = vmul.f32 %v4484_v32, %v4484_v32 }
 0x16e   : > { %v4441_v36 = vpop.f32.mrb[66].mxu0  ;;  %v4497_v13 = vpop.f32.mrb[66].mxu1 }
 0x16f   : > { %v3376_v52 = vpop.f32.mrb[67].mxu0  ;;  %v1859_v19 = vadd.f32 %v1858_v60, %v1857_v27  ;;  %v3577_v3 = vpop.f32.mrb[67].mxu1  ;;  %v1864_v27 = vsel %vm1449_vm5, %v1727_v26, 0.0  ;;  %v1729_v60 = vmul.f32 %v4495_v0, %v4495_v0  ;;  %v4528_v26 = vadd.f32 %v4423_v16, %v4299_v43 }
 0x171   : > { %v1861_v25 = vadd.f32 %v1860_v50, %v1859_v19  ;;  %v1463_v50 = vsel %vm1449_vm5, %v4495_v0, 0.0  ;;  %8295 = vst [vmem:[#allocation32_spill] sm:$0xff] %v4528_v26 }
 0x172   : > { %v4463_v52 = vpop.f32.mrb[68].mxu0  ;;  %v4519_v3 = vpop.f32.mrb[68].mxu1 }
 0x173   : > { %v3379_v7 = vpop.f32.mrb[69].mxu0  ;;  %v3580_v19 = vpop.f32.mrb[69].mxu1 }
 0x174   : > { %v1454_v7 = vadd.f32 %v1453_v5, %v1452_v44  ;;  %v1862_v44 = vsel %vm1449_vm5, %v1726_v14, 0.0  ;;  %v4506_v5 = vadd.f32 %v4423_v16, %v4275_v31  ;;  %v1461_v14 = vsel %vm1449_vm5, %v4484_v32, 0.0 }
 0x175   : > { %v1863_v31 = vadd.f32 %v1862_v44, %v1861_v25 }
 0x176   : > { %v4486_v21 = vpop.f32.mrb[70].mxu0  ;;  %v1456_v38 = vadd.f32 %v1455_v28, %v1454_v7  ;;  %8293 = vst [vmem:[#allocation30_spill] sm:$0xff] %v4506_v5  ;;  %v4517_v28 = vadd.f32 %v4423_v16, %v4287_v37  ;;  %v1465_v44 = vsel %vm1449_vm5, %v4506_v5, 0.0  ;;  %v4541_v19 = vpop.f32.mrb[70].mxu1 }
 0x177   : > { %v3382_v54 = vpop.f32.mrb[71].mxu0  ;;  %v1865_v37 = vadd.f32 %v1864_v27, %v1863_v31  ;;  %v3583_v31 = vpop.f32.mrb[71].mxu1 }
 0x178   : > { %v1458_v22 = vadd.f32 %v1457_v58, %v1456_v38  ;;  %8294 = vst [vmem:[#allocation31_spill] sm:$0xff] %v4517_v28  ;;  %v1866_v38 = vsel %vm1449_vm5, %v1728_v45, 0.0  ;;  %v1730_v58 = vmul.f32 %v4506_v5, %v4506_v5  ;;  %v4539_v45 = vadd.f32 %v4423_v16, %v4311_v49 }
 0x179   : > { %v1867_v43 = vadd.f32 %v1866_v38, %v1865_v37  ;;  %v1467_v27 = vsel %vm1449_vm5, %v4517_v28, 0.0  ;;  %v1469_v38 = vsel %vm1449_vm5, %v4528_v26, 0.0 }
 0x17a   : > { %v4508_v54 = vpop.f32.mrb[72].mxu0  ;;  %v1460_v51 = vadd.f32 %v1459_v59, %v1458_v22  ;;  %v1868_v22 = vsel %vm1449_vm5, %v1729_v60, 0.0  ;;  %v1731_v59 = vmul.f32 %v4517_v28, %v4517_v28  ;;  %8296 = vst [vmem:[#allocation33_spill] sm:$0xff] %v4539_v45  ;;  %v4550_v60 = vadd.f32 %v4423_v16, %v4323_v57  ;;  %v4563_v31 = vpop.f32.mrb[72].mxu1 }
 0x17b   : > { %v3385_v7 = vpop.f32.mrb[73].mxu0  ;;  %v1869_v49 = vadd.f32 %v1868_v22, %v1867_v43  ;;  %v1471_v22 = vsel %vm1449_vm5, %v4539_v45, 0.0  ;;  %v3586_v43 = vpop.f32.mrb[73].mxu1 }
 0x17c   : > { %v1462_v32 = vadd.f32 %v1461_v14, %v1460_v51  ;;  %v1870_v51 = vsel %vm1449_vm5, %v1730_v58, 0.0  ;;  %v1732_v14 = vmul.f32 %v4528_v26, %v4528_v26  ;;  %8297 = vst [vmem:[#allocation34_spill] sm:$0xff] %v4550_v60  ;;  %v4561_v58 = vadd.f32 %v4423_v16, %v4335_v2 }
 0x17d   : > { %v1871_v57 = vadd.f32 %v1870_v51, %v1869_v49  ;;  %v1473_v51 = vsel %vm1449_vm5, %v4550_v60, 0.0 }
 0x17e   : > { %v4530_v7 = vpop.f32.mrb[74].mxu0  ;;  %v1464_v0 = vadd.f32 %v1463_v50, %v1462_v32  ;;  %v1872_v32 = vsel %vm1449_vm5, %v1731_v59, 0.0  ;;  %v1733_v50 = vmul.f32 %v4539_v45, %v4539_v45  ;;  %8298 = vst [vmem:[#allocation35_spill] sm:$0xff] %v4561_v58  ;;  %v4572_v59 = vadd.f32 %v4423_v16, %v4344_v10  ;;  %v4585_v43 = vpop.f32.mrb[74].mxu1 }
 0x17f   : > { %v3388_v25 = vpop.f32.mrb[75].mxu0  ;;  %v1873_v2 = vadd.f32 %v1872_v32, %v1871_v57  ;;  %v1475_v32 = vsel %vm1449_vm5, %v4561_v58, 0.0  ;;  %v3589_v57 = vpop.f32.mrb[75].mxu1 }
 0x180   : > { %v1466_v5 = vadd.f32 %v1465_v44, %v1464_v0  ;;  %v1874_v0 = vsel %vm1449_vm5, %v1732_v14, 0.0  ;;  %v1734_v44 = vmul.f32 %v4550_v60, %v4550_v60  ;;  %8299 = vst [vmem:[#allocation36_spill] sm:$0xff] %v4572_v59  ;;  %v4583_v14 = vadd.f32 %v4423_v16, %v4352_v18 }
 0x181   : > { %v1875_v10 = vadd.f32 %v1874_v0, %v1873_v2  ;;  %v1477_v0 = vsel %vm1449_vm5, %v4572_v59, 0.0 }
 0x182   : > { %v4552_v25 = vpop.f32.mrb[76].mxu0  ;;  %v1468_v28 = vadd.f32 %v1467_v27, %v1466_v5  ;;  %v1876_v5 = vsel %vm1449_vm5, %v1733_v50, 0.0  ;;  %v1735_v27 = vmul.f32 %v4561_v58, %v4561_v58  ;;  %8300 = vst [vmem:[#allocation37_spill] sm:$0xff] %v4583_v14  ;;  %v4594_v50 = vadd.f32 %v4423_v16, %v4356_v24  ;;  %v4607_v57 = vpop.f32.mrb[76].mxu1 }
 0x183   : > { %v3391_v37 = vpop.f32.mrb[77].mxu0  ;;  %v1877_v18 = vadd.f32 %v1876_v5, %v1875_v10  ;;  %v1479_v5 = vsel %vm1449_vm5, %v4583_v14, 0.0  ;;  %v3592_v10 = vpop.f32.mrb[77].mxu1 }
 0x184   : > { %v1470_v26 = vadd.f32 %v1469_v38, %v1468_v28  ;;  %v1878_v28 = vsel %vm1449_vm5, %v1734_v44, 0.0  ;;  %v1736_v38 = vmul.f32 %v4572_v59, %v4572_v59  ;;  %8301 = vst [vmem:[#allocation38_spill] sm:$0xff] %v4594_v50  ;;  %v4605_v44 = vadd.f32 %v4423_v16, %v4360_v6 }
 0x185   : > { %v1879_v24 = vadd.f32 %v1878_v28, %v1877_v18  ;;  %v1481_v28 = vsel %vm1449_vm5, %v4594_v50, 0.0 }
 0x186   : > { %v4574_v37 = vpop.f32.mrb[78].mxu0  ;;  %v1472_v45 = vadd.f32 %v1471_v22, %v1470_v26  ;;  %v1880_v26 = vsel %vm1449_vm5, %v1735_v27, 0.0  ;;  %v1737_v22 = vmul.f32 %v4583_v14, %v4583_v14  ;;  %8302 = vst [vmem:[#allocation39_spill] sm:$0xff] %v4605_v44  ;;  %v4616_v27 = vadd.f32 %v4423_v16, %v4364_v34  ;;  %v4629_v10 = vpop.f32.mrb[78].mxu1 }
 0x187   : > { %v3394_v49 = vpop.f32.mrb[79].mxu0  ;;  %v1881_v6 = vadd.f32 %v1880_v26, %v1879_v24  ;;  %v1483_v26 = vsel %vm1449_vm5, %v4605_v44, 0.0  ;;  %v3595_v24 = vpop.f32.mrb[79].mxu1 }
 0x188   : > { %v1474_v60 = vadd.f32 %v1473_v51, %v1472_v45  ;;  %v1882_v45 = vsel %vm1449_vm5, %v1736_v38, 0.0  ;;  %v1738_v51 = vmul.f32 %v4594_v50, %v4594_v50  ;;  %8303 = vst [vmem:[#allocation40_spill] sm:$0xff] %v4616_v27  ;;  %v4627_v38 = vadd.f32 %v4423_v16, %v4368_v40 }
 0x189   : > { %v1883_v34 = vadd.f32 %v1882_v45, %v1881_v6  ;;  %v1485_v45 = vsel %vm1449_vm5, %v4616_v27, 0.0 }
 0x18a   : > { %v4596_v49 = vpop.f32.mrb[80].mxu0  ;;  %v1476_v58 = vadd.f32 %v1475_v32, %v1474_v60  ;;  %v1884_v60 = vsel %vm1449_vm5, %v1737_v22, 0.0  ;;  %v1739_v32 = vmul.f32 %v4605_v44, %v4605_v44  ;;  %8304 = vst [vmem:[#allocation41_spill] sm:$0xff] %v4627_v38  ;;  %v4638_v22 = vadd.f32 %v4423_v16, %v4372_v46  ;;  %v4651_v24 = vpop.f32.mrb[80].mxu1 }
 0x18b   : > { %v3397_v2 = vpop.f32.mrb[81].mxu0  ;;  %v1885_v40 = vadd.f32 %v1884_v60, %v1883_v34  ;;  %v1487_v60 = vsel %vm1449_vm5, %v4627_v38, 0.0  ;;  %v3598_v34 = vpop.f32.mrb[81].mxu1 }
 0x18c   : > { %v1478_v59 = vadd.f32 %v1477_v0, %v1476_v58  ;;  %v1886_v58 = vsel %vm1449_vm5, %v1738_v51, 0.0  ;;  %v1740_v0 = vmul.f32 %v4616_v27, %v4616_v27  ;;  %8305 = vst [vmem:[#allocation42_spill] sm:$0xff] %v4638_v22  ;;  %v4649_v51 = vadd.f32 %v4423_v16, %v4376_v53 }
 0x18d   : > { %v1887_v46 = vadd.f32 %v1886_v58, %v1885_v40  ;;  %v1489_v58 = vsel %vm1449_vm5, %v4638_v22, 0.0 }
 0x18e   : > { %v4618_v2 = vpop.f32.mrb[82].mxu0  ;;  %v1480_v14 = vadd.f32 %v1479_v5, %v1478_v59  ;;  %v1888_v59 = vsel %vm1449_vm5, %v1739_v32, 0.0  ;;  %v1741_v5 = vmul.f32 %v4627_v38, %v4627_v38  ;;  %8306 = vst [vmem:[#allocation43_spill] sm:$0xff] %v4649_v51  ;;  %v4660_v32 = vadd.f32 %v4423_v16, %v4380_v61  ;;  %v4673_v34 = vpop.f32.mrb[82].mxu1 }
 0x18f   : > { %v3400_v18 = vpop.f32.mrb[83].mxu0  ;;  %v1889_v53 = vadd.f32 %v1888_v59, %v1887_v46  ;;  %v1491_v59 = vsel %vm1449_vm5, %v4649_v51, 0.0  ;;  %v3601_v46 = vpop.f32.mrb[83].mxu1 }
 0x190   : > { %v1482_v50 = vadd.f32 %v1481_v28, %v1480_v14  ;;  %v1890_v14 = vsel %vm1449_vm5, %v1740_v0, 0.0  ;;  %v1742_v28 = vmul.f32 %v4638_v22, %v4638_v22  ;;  %8307 = vst [vmem:[#allocation44_spill] sm:$0xff] %v4660_v32  ;;  %v4671_v0 = vadd.f32 %v4423_v16, %v4384_v9 }
 0x191   : > { %v1891_v61 = vadd.f32 %v1890_v14, %v1889_v53  ;;  %v1493_v14 = vsel %vm1449_vm5, %v4660_v32, 0.0 }
 0x192   : > { %v4640_v18 = vpop.f32.mrb[84].mxu0  ;;  %v1484_v44 = vadd.f32 %v1483_v26, %v1482_v50  ;;  %v1892_v50 = vsel %vm1449_vm5, %v1741_v5, 0.0  ;;  %v1743_v26 = vmul.f32 %v4649_v51, %v4649_v51  ;;  %8308 = vst [vmem:[#allocation45_spill] sm:$0xff] %v4671_v0  ;;  %v4682_v5 = vadd.f32 %v4423_v16, %v4388_v20  ;;  %v4695_v46 = vpop.f32.mrb[84].mxu1 }
 0x193   : > { %v3403_v6 = vpop.f32.mrb[85].mxu0  ;;  %v1893_v9 = vadd.f32 %v1892_v50, %v1891_v61  ;;  %v1495_v50 = vsel %vm1449_vm5, %v4671_v0, 0.0  ;;  %v3604_v61 = vpop.f32.mrb[85].mxu1 }
 0x194   : > { %v1486_v27 = vadd.f32 %v1485_v45, %v1484_v44  ;;  %v1894_v44 = vsel %vm1449_vm5, %v1742_v28, 0.0  ;;  %v1744_v45 = vmul.f32 %v4660_v32, %v4660_v32  ;;  %8309 = vst [vmem:[#allocation46_spill] sm:$0xff] %v4682_v5  ;;  %v4693_v28 = vadd.f32 %v4423_v16, %v4392_v30 }
 0x195   : > { %v1895_v20 = vadd.f32 %v1894_v44, %v1893_v9  ;;  %v1497_v44 = vsel %vm1449_vm5, %v4682_v5, 0.0 }
 0x196   : > { %v4662_v6 = vpop.f32.mrb[86].mxu0  ;;  %v1488_v38 = vadd.f32 %v1487_v60, %v1486_v27  ;;  %v1896_v27 = vsel %vm1449_vm5, %v1743_v26, 0.0  ;;  %v1745_v60 = vmul.f32 %v4671_v0, %v4671_v0  ;;  %8310 = vst [vmem:[#allocation47_spill] sm:$0xff] %v4693_v28  ;;  %v4704_v26 = vadd.f32 %v4423_v16, %v4396_v42  ;;  %v4717_v61 = vpop.f32.mrb[86].mxu1 }
 0x197   : > { %v3406_v40 = vpop.f32.mrb[87].mxu0  ;;  %v1897_v30 = vadd.f32 %v1896_v27, %v1895_v20  ;;  %v1499_v27 = vsel %vm1449_vm5, %v4693_v28, 0.0  ;;  %v3607_v20 = vpop.f32.mrb[87].mxu1 }
 0x198   : > { %v1490_v22 = vadd.f32 %v1489_v58, %v1488_v38  ;;  %v1898_v38 = vsel %vm1449_vm5, %v1744_v45, 0.0  ;;  %v1746_v58 = vmul.f32 %v4682_v5, %v4682_v5  ;;  %8311 = vst [vmem:[#allocation48_spill] sm:$0xff] %v4704_v26  ;;  %v4715_v45 = vadd.f32 %v4423_v16, %v4400_v56 }
 0x199   : > { %v1899_v42 = vadd.f32 %v1898_v38, %v1897_v30  ;;  %v1501_v38 = vsel %vm1449_vm5, %v4704_v26, 0.0 }
 0x19a   : > { %v4684_v40 = vpop.f32.mrb[88].mxu0  ;;  %v1492_v51 = vadd.f32 %v1491_v59, %v1490_v22  ;;  %v1900_v22 = vsel %vm1449_vm5, %v1745_v60, 0.0  ;;  %v1747_v59 = vmul.f32 %v4693_v28, %v4693_v28  ;;  %8312 = vst [vmem:[#allocation49_spill] sm:$0xff] %v4715_v45  ;;  %v4726_v60 = vadd.f32 %v4423_v16, %v4404_v12  ;;  %v4739_v20 = vpop.f32.mrb[88].mxu1 }
 0x19b   : > { %v3409_v53 = vpop.f32.mrb[89].mxu0  ;;  %v1901_v56 = vadd.f32 %v1900_v22, %v1899_v42  ;;  %v1503_v22 = vsel %vm1449_vm5, %v4715_v45, 0.0  ;;  %v3610_v42 = vpop.f32.mrb[89].mxu1 }
 0x19c   : > { %v1494_v32 = vadd.f32 %v1493_v14, %v1492_v51  ;;  %v1902_v51 = vsel %vm1449_vm5, %v1746_v58, 0.0  ;;  %v1748_v14 = vmul.f32 %v4704_v26, %v4704_v26  ;;  %8313 = vst [vmem:[#allocation50_spill] sm:$0xff] %v4726_v60  ;;  %v4737_v58 = vadd.f32 %v4423_v16, %v4408_v33 }
 0x19d   : > { %v1903_v12 = vadd.f32 %v1902_v51, %v1901_v56  ;;  %v1505_v51 = vsel %vm1449_vm5, %v4726_v60, 0.0 }
 0x19e   : > { %v4706_v53 = vpop.f32.mrb[90].mxu0  ;;  %v1496_v0 = vadd.f32 %v1495_v50, %v1494_v32  ;;  %v1904_v32 = vsel %vm1449_vm5, %v1747_v59, 0.0  ;;  %v1749_v50 = vmul.f32 %v4715_v45, %v4715_v45  ;;  %8314 = vst [vmem:[#allocation51_spill] sm:$0xff] %v4737_v58  ;;  %v4748_v59 = vadd.f32 %v4423_v16, %v4412_v48  ;;  %v4761_v42 = vpop.f32.mrb[90].mxu1 }
 0x19f   : > { %v3412_v9 = vpop.f32.mrb[91].mxu0  ;;  %v1905_v33 = vadd.f32 %v1904_v32, %v1903_v12  ;;  %v1507_v32 = vsel %vm1449_vm5, %v4737_v58, 0.0  ;;  %v3613_v12 = vpop.f32.mrb[91].mxu1 }
 0x1a0   : > { %v1498_v5 = vadd.f32 %v1497_v44, %v1496_v0  ;;  %v1906_v0 = vsel %vm1449_vm5, %v1748_v14, 0.0  ;;  %v1750_v44 = vmul.f32 %v4726_v60, %v4726_v60  ;;  %8315 = vst [vmem:[#allocation52_spill] sm:$0xff] %v4748_v59  ;;  %v4759_v14 = vadd.f32 %v4423_v16, %v4416_v1 }
 0x1a1   : > { %v1907_v48 = vadd.f32 %v1906_v0, %v1905_v33  ;;  %v1509_v0 = vsel %vm1449_vm5, %v4748_v59, 0.0 }
 0x1a2   : > { %v4728_v9 = vpop.f32.mrb[92].mxu0  ;;  %v1500_v28 = vadd.f32 %v1499_v27, %v1498_v5  ;;  %v1908_v5 = vsel %vm1449_vm5, %v1749_v50, 0.0  ;;  %v1751_v27 = vmul.f32 %v4737_v58, %v4737_v58  ;;  %8316 = vst [vmem:[#allocation53_spill] sm:$0xff] %v4759_v14  ;;  %v4770_v50 = vadd.f32 %v4423_v16, %v4425_v39  ;;  %v4783_v12 = vpop.f32.mrb[92].mxu1 }
 0x1a3   : > { %v3415_v30 = vpop.f32.mrb[93].mxu0  ;;  %v1909_v1 = vadd.f32 %v1908_v5, %v1907_v48  ;;  %v1511_v5 = vsel %vm1449_vm5, %v4759_v14, 0.0  ;;  %v3616_v48 = vpop.f32.mrb[93].mxu1 }
 0x1a4   : > { %v1502_v26 = vadd.f32 %v1501_v38, %v1500_v28  ;;  %v1910_v28 = vsel %vm1449_vm5, %v1750_v44, 0.0  ;;  %v1752_v38 = vmul.f32 %v4748_v59, %v4748_v59  ;;  %8317 = vst [vmem:[#allocation54_spill] sm:$0xff] %v4770_v50  ;;  %v4781_v44 = vadd.f32 %v4423_v16, %v4441_v36 }
 0x1a5   : > { %v1911_v39 = vadd.f32 %v1910_v28, %v1909_v1  ;;  %v1513_v28 = vsel %vm1449_vm5, %v4770_v50, 0.0 }
 0x1a6   : > { %v4750_v30 = vpop.f32.mrb[94].mxu0  ;;  %v1504_v45 = vadd.f32 %v1503_v22, %v1502_v26  ;;  %v1912_v26 = vsel %vm1449_vm5, %v1751_v27, 0.0  ;;  %v1753_v22 = vmul.f32 %v4759_v14, %v4759_v14  ;;  %8318 = vst [vmem:[#allocation55_spill] sm:$0xff] %v4781_v44  ;;  %v4792_v27 = vadd.f32 %v4423_v16, %v4463_v52  ;;  %v4805_v48 = vpop.f32.mrb[94].mxu1 }
 0x1a7   : > { %v3418_v56 = vpop.f32.mrb[95].mxu0  ;;  %v1913_v36 = vadd.f32 %v1912_v26, %v1911_v39  ;;  %v1515_v26 = vsel %vm1449_vm5, %v4781_v44, 0.0  ;;  %v3619_v39 = vpop.f32.mrb[95].mxu1 }
 0x1a8   : > { %v1506_v60 = vadd.f32 %v1505_v51, %v1504_v45  ;;  %v1914_v45 = vsel %vm1449_vm5, %v1752_v38, 0.0  ;;  %v1754_v51 = vmul.f32 %v4770_v50, %v4770_v50  ;;  %8319 = vst [vmem:[#allocation56_spill] sm:$0xff] %v4792_v27  ;;  %v4803_v38 = vadd.f32 %v4423_v16, %v4486_v21 }
 0x1a9   : > { %v1915_v52 = vadd.f32 %v1914_v45, %v1913_v36  ;;  %v1517_v45 = vsel %vm1449_vm5, %v4792_v27, 0.0 }
 0x1aa   : > { %v4772_v56 = vpop.f32.mrb[96].mxu0  ;;  %v1508_v58 = vadd.f32 %v1507_v32, %v1506_v60  ;;  %v1916_v60 = vsel %vm1449_vm5, %v1753_v22, 0.0  ;;  %v1755_v32 = vmul.f32 %v4781_v44, %v4781_v44  ;;  %8320 = vst [vmem:[#allocation57_spill] sm:$0xff] %v4803_v38  ;;  %v4814_v22 = vadd.f32 %v4423_v16, %v4508_v54  ;;  %v4827_v39 = vpop.f32.mrb[96].mxu1 }
 0x1ab   : > { %v3421_v33 = vpop.f32.mrb[97].mxu0  ;;  %v1917_v21 = vadd.f32 %v1916_v60, %v1915_v52  ;;  %v1519_v60 = vsel %vm1449_vm5, %v4803_v38, 0.0  ;;  %v3622_v52 = vpop.f32.mrb[97].mxu1 }
 0x1ac   : > { %v1510_v59 = vadd.f32 %v1509_v0, %v1508_v58  ;;  %v1918_v58 = vsel %vm1449_vm5, %v1754_v51, 0.0  ;;  %v1756_v0 = vmul.f32 %v4792_v27, %v4792_v27  ;;  %8321 = vst [vmem:[#allocation58_spill] sm:$0xff] %v4814_v22  ;;  %v4825_v51 = vadd.f32 %v4423_v16, %v4530_v7 }
 0x1ad   : > { %v1919_v54 = vadd.f32 %v1918_v58, %v1917_v21  ;;  %v1521_v58 = vsel %vm1449_vm5, %v4814_v22, 0.0 }
 0x1ae   : > { %v4794_v33 = vpop.f32.mrb[98].mxu0  ;;  %v1512_v14 = vadd.f32 %v1511_v5, %v1510_v59  ;;  %v1920_v59 = vsel %vm1449_vm5, %v1755_v32, 0.0  ;;  %v1757_v5 = vmul.f32 %v4803_v38, %v4803_v38  ;;  %8322 = vst [vmem:[#allocation59_spill] sm:$0xff] %v4825_v51  ;;  %v4836_v32 = vadd.f32 %v4423_v16, %v4552_v25  ;;  %v4849_v52 = vpop.f32.mrb[98].mxu1 }
 0x1af   : > { %v3424_v1 = vpop.f32.mrb[99].mxu0  ;;  %v1921_v7 = vadd.f32 %v1920_v59, %v1919_v54  ;;  %v1523_v59 = vsel %vm1449_vm5, %v4825_v51, 0.0  ;;  %v3625_v54 = vpop.f32.mrb[99].mxu1 }
 0x1b0   : > { %v1514_v50 = vadd.f32 %v1513_v28, %v1512_v14  ;;  %v1922_v14 = vsel %vm1449_vm5, %v1756_v0, 0.0  ;;  %v1758_v28 = vmul.f32 %v4814_v22, %v4814_v22  ;;  %8323 = vst [vmem:[#allocation60_spill] sm:$0xff] %v4836_v32  ;;  %v4847_v0 = vadd.f32 %v4423_v16, %v4574_v37 }
 0x1b1   : > { %v1923_v25 = vadd.f32 %v1922_v14, %v1921_v7  ;;  %v1525_v14 = vsel %vm1449_vm5, %v4836_v32, 0.0 }
 0x1b2   : > { %v4816_v1 = vpop.f32.mrb[100].mxu0  ;;  %v1516_v44 = vadd.f32 %v1515_v26, %v1514_v50  ;;  %v1924_v50 = vsel %vm1449_vm5, %v1757_v5, 0.0  ;;  %v1759_v26 = vmul.f32 %v4825_v51, %v4825_v51  ;;  %8324 = vst [vmem:[#allocation61_spill] sm:$0xff] %v4847_v0  ;;  %v4858_v5 = vadd.f32 %v4423_v16, %v4596_v49  ;;  %v4871_v54 = vpop.f32.mrb[100].mxu1 }
 0x1b3   : > { %v3427_v36 = vpop.f32.mrb[101].mxu0  ;;  %v1925_v37 = vadd.f32 %v1924_v50, %v1923_v25  ;;  %v1527_v50 = vsel %vm1449_vm5, %v4847_v0, 0.0  ;;  %v3628_v25 = vpop.f32.mrb[101].mxu1 }
 0x1b4   : > { %v1518_v27 = vadd.f32 %v1517_v45, %v1516_v44  ;;  %v1926_v44 = vsel %vm1449_vm5, %v1758_v28, 0.0  ;;  %v1760_v45 = vmul.f32 %v4836_v32, %v4836_v32  ;;  %8325 = vst [vmem:[#allocation62_spill] sm:$0xff] %v4858_v5  ;;  %v4869_v28 = vadd.f32 %v4423_v16, %v4618_v2 }
 0x1b5   : > { %v1927_v49 = vadd.f32 %v1926_v44, %v1925_v37  ;;  %v1529_v44 = vsel %vm1449_vm5, %v4858_v5, 0.0 }
 0x1b6   : > { %v4838_v36 = vpop.f32.mrb[102].mxu0  ;;  %v1520_v38 = vadd.f32 %v1519_v60, %v1518_v27  ;;  %v1928_v27 = vsel %vm1449_vm5, %v1759_v26, 0.0  ;;  %v1761_v60 = vmul.f32 %v4847_v0, %v4847_v0  ;;  %8326 = vst [vmem:[#allocation63_spill] sm:$0xff] %v4869_v28  ;;  %v4880_v26 = vadd.f32 %v4423_v16, %v4640_v18  ;;  %v4893_v25 = vpop.f32.mrb[102].mxu1 }
 0x1b7   : > { %v3430_v21 = vpop.f32.mrb[103].mxu0  ;;  %v1929_v2 = vadd.f32 %v1928_v27, %v1927_v49  ;;  %v1531_v27 = vsel %vm1449_vm5, %v4869_v28, 0.0  ;;  %v3631_v49 = vpop.f32.mrb[103].mxu1 }
 0x1b8   : > { %v1522_v22 = vadd.f32 %v1521_v58, %v1520_v38  ;;  %v1930_v38 = vsel %vm1449_vm5, %v1760_v45, 0.0  ;;  %v1762_v58 = vmul.f32 %v4858_v5, %v4858_v5  ;;  %8327 = vst [vmem:[#allocation64_spill] sm:$0xff] %v4880_v26  ;;  %v4891_v45 = vadd.f32 %v4423_v16, %v4662_v6 }
 0x1b9   : > { %v1931_v18 = vadd.f32 %v1930_v38, %v1929_v2  ;;  %v1533_v38 = vsel %vm1449_vm5, %v4880_v26, 0.0 }
 0x1ba   : > { %v4860_v21 = vpop.f32.mrb[104].mxu0  ;;  %v1524_v51 = vadd.f32 %v1523_v59, %v1522_v22  ;;  %v1932_v22 = vsel %vm1449_vm5, %v1761_v60, 0.0  ;;  %v1763_v59 = vmul.f32 %v4869_v28, %v4869_v28  ;;  %8328 = vst [vmem:[#allocation65_spill] sm:$0xff] %v4891_v45  ;;  %v4902_v60 = vadd.f32 %v4423_v16, %v4684_v40  ;;  %v4915_v49 = vpop.f32.mrb[104].mxu1 }
 0x1bb   : > { %v3433_v7 = vpop.f32.mrb[105].mxu0  ;;  %v1933_v6 = vadd.f32 %v1932_v22, %v1931_v18  ;;  %v1535_v22 = vsel %vm1449_vm5, %v4891_v45, 0.0  ;;  %v3634_v18 = vpop.f32.mrb[105].mxu1 }
 0x1bc   : > { %v1526_v32 = vadd.f32 %v1525_v14, %v1524_v51  ;;  %v1934_v51 = vsel %vm1449_vm5, %v1762_v58, 0.0  ;;  %v1764_v14 = vmul.f32 %v4880_v26, %v4880_v26  ;;  %8329 = vst [vmem:[#allocation66_spill] sm:$0xff] %v4902_v60  ;;  %v4913_v58 = vadd.f32 %v4423_v16, %v4706_v53 }
 0x1bd   : > { %v1935_v40 = vadd.f32 %v1934_v51, %v1933_v6  ;;  %v1537_v51 = vsel %vm1449_vm5, %v4902_v60, 0.0 }
 0x1be   : > { %v4882_v7 = vpop.f32.mrb[106].mxu0  ;;  %v1528_v0 = vadd.f32 %v1527_v50, %v1526_v32  ;;  %v1936_v32 = vsel %vm1449_vm5, %v1763_v59, 0.0  ;;  %v1765_v50 = vmul.f32 %v4891_v45, %v4891_v45  ;;  %8330 = vst [vmem:[#allocation67_spill] sm:$0xff] %v4913_v58  ;;  %v4924_v59 = vadd.f32 %v4423_v16, %v4728_v9  ;;  %v4937_v18 = vpop.f32.mrb[106].mxu1 }
 0x1bf   : > { %v3436_v37 = vpop.f32.mrb[107].mxu0  ;;  %v1937_v53 = vadd.f32 %v1936_v32, %v1935_v40  ;;  %8333 = vst [vmem:[#allocation70_spill] sm:$0xff] %v4937_v18  ;;  %v1539_v32 = vsel %vm1449_vm5, %v4913_v58, 0.0  ;;  %v3637_v40 = vpop.f32.mrb[107].mxu1 }
 0x1c0   : > { %v1530_v5 = vadd.f32 %v1529_v44, %v1528_v0  ;;  %v1938_v0 = vsel %vm1449_vm5, %v1764_v14, 0.0  ;;  %v1766_v44 = vmul.f32 %v4902_v60, %v4902_v60  ;;  %8331 = vst [vmem:[#allocation68_spill] sm:$0xff] %v4924_v59  ;;  %v4935_v14 = vadd.f32 %v4423_v16, %v4750_v30 }
 0x1c1   : > { %v1939_v9 = vadd.f32 %v1938_v0, %v1937_v53  ;;  %v1541_v0 = vsel %vm1449_vm5, %v4924_v59, 0.0 }
 0x1c2   : > { %v4904_v37 = vpop.f32.mrb[108].mxu0  ;;  %v1532_v28 = vadd.f32 %v1531_v27, %v1530_v5  ;;  %v1940_v5 = vsel %vm1449_vm5, %v1765_v50, 0.0  ;;  %v1767_v27 = vmul.f32 %v4913_v58, %v4913_v58  ;;  %8332 = vst [vmem:[#allocation69_spill] sm:$0xff] %v4935_v14  ;;  %v4946_v50 = vadd.f32 %v4423_v16, %v4772_v56  ;;  %v4957_v18 = vpop.f32.mrb[108].mxu1 }
 0x1c3   : > { %v3439_v2 = vpop.f32.mrb[109].mxu0  ;;  %v1941_v30 = vadd.f32 %v1940_v5, %v1939_v9  ;;  %v1543_v5 = vsel %vm1449_vm5, %v4935_v14, 0.0  ;;  %v3640_v9 = vpop.f32.mrb[109].mxu1 }
 0x1c4   : > { %v1534_v26 = vadd.f32 %v1533_v38, %v1532_v28  ;;  %v1942_v28 = vsel %vm1449_vm5, %v1766_v44, 0.0  ;;  %v1768_v38 = vmul.f32 %v4924_v59, %v4924_v59  ;;  %8334 = vst [vmem:[#allocation71_spill] sm:$0xff] %v4946_v50  ;;  %v4955_v44 = vadd.f32 %v4423_v16, %v4794_v33 }
 0x1c5   : > { %v1943_v58 = vadd.f32 %v1942_v28, %v1941_v30  ;;  %v1545_v28 = vsel %vm1449_vm5, %v4946_v50, 0.0 }
 0x1c6   : > { %v4926_v2 = vpop.f32.mrb[110].mxu0  ;;  %v1536_v45 = vadd.f32 %v1535_v22, %v1534_v26  ;;  %v1944_v26 = vsel %vm1449_vm5, %v1767_v27, 0.0  ;;  %v1769_v22 = vmul.f32 %v4935_v14, %v4935_v14  ;;  %8335 = vst [vmem:[#allocation72_spill] sm:$0xff] %v4955_v44  ;;  %v4966_v27 = vadd.f32 %v4423_v16, %v4816_v1  ;;  %v4977_v59 = vpop.f32.mrb[110].mxu1 }
 0x1c7   : > { %v3442_v6 = vpop.f32.mrb[111].mxu0  ;;  %v1945_v33 = vadd.f32 %v1944_v26, %v1943_v58  ;;  %v1547_v26 = vsel %vm1449_vm5, %v4955_v44, 0.0 }
 0x1c8   : > { %v1538_v60 = vadd.f32 %v1537_v51, %v1536_v45  ;;  %v1946_v45 = vsel %vm1449_vm5, %v1768_v38, 0.0  ;;  %v1770_v51 = vmul.f32 %v4946_v50, %v4946_v50  ;;  %8336 = vst [vmem:[#allocation73_spill] sm:$0xff] %v4966_v27  ;;  %v4975_v38 = vadd.f32 %v4423_v16, %v4838_v36 }
 0x1c9   : > { %v1947_v14 = vadd.f32 %v1946_v45, %v1945_v33  ;;  %v4995_v33 = vadd.f32 %v4423_v16, %v4882_v7 }
 0x1ca   : > { %v1065_v6 = vpop.f32.mrb[112].mxu0  ;;  %v1540_v56 = vadd.f32 %v1539_v32, %v1538_v60  ;;  %v1948_v60 = vsel %vm1449_vm5, %v1769_v22, 0.0  ;;  %v1771_v32 = vmul.f32 %v4955_v44, %v4955_v44  ;;  %8337 = vst [vmem:[#allocation74_spill] sm:$0xff] %v4975_v38  ;;  %v1950_v58 = vsel %vm1449_vm5, %v1770_v51, 0.0 }
 0x1cb   : > { %v3445_v53 = vpop.f32.mrb[113].mxu0  ;;  %v4986_v22 = vadd.f32 %v4423_v16, %v4860_v21  ;;  %v1949_v36 = vadd.f32 %v1948_v60, %v1947_v14  ;;  %v1773_v51 = vmul.f32 %v4975_v38, %v4975_v38  ;;  %8339 = vst [vmem:[#allocation76_spill] sm:$0xff] %v4995_v33  ;;  %v1551_v60 = vsel %vm1449_vm5, %v4975_v38, 0.0 }
 0x1cc   : > { %v1542_v40 = vadd.f32 %v1541_v0, %v1540_v56  ;;  %v1772_v0 = vmul.f32 %v4966_v27, %v4966_v27  ;;  %v3643_v56 = vpop.f32.mrb[111].mxu1  ;;  %v1952_v45 = vsel %vm1449_vm5, %v1771_v32, 0.0  ;;  %v5006_v32 = vadd.f32 %v4423_v16, %v4904_v37 }
 0x1cd   : > { %8338 = vst [vmem:[#allocation75_spill] sm:$0xff] %v4986_v22  ;;  %v1951_v44 = vadd.f32 %v1950_v58, %v1949_v36  ;;  %v4997_v50 = vpop.f32.mrb[112].mxu1  ;;  %v1956_v58 = vsel %vm1449_vm5, %v1773_v51, 0.0  ;;  %v5015_v36 = vadd.f32 %v4423_v16, %v4926_v2  ;;  %v5025_v51 = vadd.f32 %v4423_v16, %v1065_v6 }
 0x1ce   : > { %v1070_v53 = vpop.f32.mrb[114].mxu0  ;;  %v1544_v1 = vadd.f32 %v1543_v5, %v1542_v40  ;;  %v1549_v5 = vsel %vm1449_vm5, %v4966_v27, 0.0  ;;  %v1954_v14 = vsel %vm1449_vm5, %v1772_v0, 0.0  ;;  %8340 = vst [vmem:[#allocation77_spill] sm:$0xff] %v5006_v32  ;;  %v1775_v0 = vmul.f32 %v4995_v33, %v4995_v33 }
 0x1cf   : > { %v3448_v30 = vpop.f32.mrb[115].mxu0  ;;  %v1953_v7 = vadd.f32 %v1952_v45, %v1951_v44  ;;  %8341 = vst [vmem:[#allocation78_spill] sm:$0xff] %v5015_v36  ;;  %v1555_v45 = vsel %vm1449_vm5, %v4995_v33, 0.0  ;;  %8342 = vst [vmem:[#allocation79_spill] sm:$0xff] %v5025_v51 }
 0x1d0   : > { %v1546_v9 = vadd.f32 %v1545_v28, %v1544_v1  ;;  %v1774_v28 = vmul.f32 %v4986_v22, %v4986_v22  ;;  %v3646_v1 = vpop.f32.mrb[113].mxu1 }
 0x1d1   : > { %v1955_v38 = vadd.f32 %v1954_v14, %v1953_v7  ;;  %v5017_v27 = vpop.f32.mrb[114].mxu1  ;;  %v1960_v14 = vsel %vm1449_vm5, %v1775_v0, 0.0  ;;  %v5033_v7 = vadd.f32 %v4423_v16, %v1070_v53 }
 0x1d2   : > { %v1075_v30 = vpop.f32.mrb[116].mxu0  ;;  %v1548_v21 = vadd.f32 %v1547_v26, %v1546_v9  ;;  %v1553_v26 = vsel %vm1449_vm5, %v4986_v22, 0.0  ;;  %v1958_v44 = vsel %vm1449_vm5, %v1774_v28, 0.0  ;;  %v1777_v28 = vmul.f32 %v5015_v36, %v5015_v36 }
 0x1d3   : > { %v3451_v40 = vpop.f32.mrb[117].mxu0  ;;  %v1957_v1 = vadd.f32 %v1956_v58, %v1955_v38  ;;  %8343 = vst [vmem:[#allocation80_spill] sm:$0xff] %v5033_v7  ;;  %v1559_v58 = vsel %vm1449_vm5, %v5015_v36, 0.0  ;;  %v5043_v0 = vadd.f32 %v4423_v16, %v1075_v30 }
 0x1d4   : > { %v1550_v56 = vadd.f32 %v1549_v5, %v1548_v21  ;;  %v1776_v5 = vmul.f32 %v5006_v32, %v5006_v32  ;;  %v3649_v21 = vpop.f32.mrb[115].mxu1 }
 0x1d5   : > { %v5035_v6 = vpop.f32.mrb[116].mxu1  ;;  %8344 = vst [vmem:[#allocation81_spill] sm:$0xff] %v5043_v0 }
 0x1d6   : > { %v1080_v40 = vpop.f32.mrb[118].mxu0  ;;  %v1552_v37 = vadd.f32 %v1551_v60, %v1550_v56  ;;  %v1557_v60 = vsel %vm1449_vm5, %v5006_v32, 0.0  ;;  %v1962_v38 = vsel %vm1449_vm5, %v1776_v5, 0.0  ;;  %v1779_v5 = vmul.f32 %v5033_v7, %v5033_v7 }
 0x1d7   : > { %v3454_v9 = vpop.f32.mrb[119].mxu0 }
 0x1d8   : > { %v1554_v2 = vadd.f32 %v1553_v26, %v1552_v37  ;;  %v1959_v9 = vadd.f32 %v1958_v44, %v1957_v1  ;;  %v1778_v26 = vmul.f32 %v5025_v51, %v5025_v51  ;;  %v3652_v37 = vpop.f32.mrb[117].mxu1  ;;  %v1964_v44 = vsel %vm1449_vm5, %v1777_v28, 0.0 }
 0x1d9   : > { %v5051_v1 = vadd.f32 %v4423_v16, %v1080_v40  ;;  %v5053_v30 = vpop.f32.mrb[118].mxu1 }
 0x1da   : > { %v1085_v22 = vpop.f32.mrb[120].mxu0  ;;  %v1556_v33 = vadd.f32 %v1555_v45, %v1554_v2  ;;  %v1961_v21 = vadd.f32 %v1960_v14, %v1959_v9  ;;  %v1561_v45 = vsel %vm1449_vm5, %v5025_v51, 0.0  ;;  %v1966_v14 = vsel %vm1449_vm5, %v1778_v26, 0.0  ;;  %v3655_v9 = vpop.f32.mrb[119].mxu1 }
 0x1db   : > { %v3457_v56 = vpop.f32.mrb[121].mxu0  ;;  %8345 = vst [vmem:[#allocation82_spill] sm:$0xff] %v5051_v1  ;;  %v5061_v28 = vadd.f32 %v4423_v16, %v1085_v22  ;;  %v1781_v26 = vmul.f32 %v5051_v1, %v5051_v1  ;;  %v5071_v22 = vpop.f32.mrb[120].mxu1 }
 0x1dc   : > { %v1558_v53 = vadd.f32 %v1557_v60, %v1556_v33  ;;  %v1963_v56 = vadd.f32 %v1962_v38, %v1961_v21  ;;  %v1563_v33 = vsel %vm1449_vm5, %v5033_v7, 0.0  ;;  %v1780_v60 = vmul.f32 %v5043_v0, %v5043_v0 }
 0x1dd   : > { %8346 = vst [vmem:[#allocation83_spill] sm:$0xff] %v5061_v28  ;;  %v1968_v38 = vsel %vm1449_vm5, %v1779_v5, 0.0 }
 0x1de   : > { %v1090_v32 = vpop.f32.mrb[122].mxu0  ;;  %v1560_v36 = vadd.f32 %v1559_v58, %v1558_v53  ;;  %v1965_v37 = vadd.f32 %v1964_v44, %v1963_v56  ;;  %v1565_v58 = vsel %vm1449_vm5, %v5043_v0, 0.0  ;;  %v1970_v44 = vsel %vm1449_vm5, %v1780_v60, 0.0  ;;  %v3658_v56 = vpop.f32.mrb[121].mxu1 }
 0x1df   : > { %v3460_v2 = vpop.f32.mrb[123].mxu0  ;;  %v5069_v21 = vadd.f32 %v4423_v16, %v1090_v32 }
 0x1e0   : > { %v1562_v40 = vadd.f32 %v1561_v45, %v1560_v36  ;;  %v1967_v2 = vadd.f32 %v1966_v14, %v1965_v37  ;;  %v1567_v36 = vsel %vm1449_vm5, %v5051_v1, 0.0  ;;  %v1782_v45 = vmul.f32 %v5061_v28, %v5061_v28 }
 0x1e1   : > { %8347 = vst [vmem:[#allocation84_spill] sm:$0xff] %v5069_v21  ;;  %v1972_v14 = vsel %vm1449_vm5, %v1781_v26, 0.0  ;;  %v1783_v60 = vmul.f32 %v5069_v21, %v5069_v21 }
 0x1e2   : > { %v1095_v51 = vpop.f32.mrb[124].mxu0  ;;  %v1564_v7 = vadd.f32 %v1563_v33, %v1562_v40  ;;  %v1969_v9 = vadd.f32 %v1968_v38, %v1967_v2  ;;  %v1569_v33 = vsel %vm1449_vm5, %v5061_v28, 0.0  ;;  %v1974_v38 = vsel %vm1449_vm5, %v1782_v45, 0.0 }
 0x1e3   : > { %v3463_v53 = vpop.f32.mrb[125].mxu0  ;;  %v5079_v5 = vadd.f32 %v4423_v16, %v1095_v51  ;;  %v5089_v51 = vpop.f32.mrb[122].mxu1 }
 0x1e4   : > { %v1566_v32 = vadd.f32 %v1565_v58, %v1564_v7  ;;  %v1971_v53 = vadd.f32 %v1970_v44, %v1969_v9  ;;  %v1571_v7 = vsel %vm1449_vm5, %v5069_v21, 0.0  ;;  %v3661_v26 = vpop.f32.mrb[123].mxu1 }
 0x1e5   : > { %8348 = vst [vmem:[#allocation85_spill] sm:$0xff] %v5079_v5  ;;  %v1784_v58 = vmul.f32 %v5079_v5, %v5079_v5  ;;  %v1573_v44 = vsel %vm1449_vm5, %v5079_v5, 0.0  ;;  %v5104_v21 = vpop.f32.mrb[124].mxu1 }
 0x1e6   : > { %v1100_v0 = vpop.f32.mrb[126].mxu0  ;;  %v1568_v1 = vadd.f32 %v1567_v36, %v1566_v32  ;;  %v1973_v2 = vadd.f32 %v1972_v14, %v1971_v53 }
 0x1e7   : > { %v5087_v37 = vadd.f32 %v4423_v16, %v1100_v0  ;;  %v3466_v40 = vpop.f32.mrb[127].mxu0  ;;  %v1976_v0 = vsel %vm1449_vm5, %v1783_v60, 0.0  ;;  %v1978_v14 = vsel %vm1449_vm5, %v1784_v58, 0.0  ;;  %v3664_v60 = vpop.f32.mrb[125].mxu1 }
 0x1e8   : > { %v1570_v56 = vadd.f32 %v1569_v33, %v1568_v1  ;;  %v1975_v32 = vadd.f32 %v1974_v38, %v1973_v2  ;;  %v5117_v38 = vld [vmem:[%s7977_s2] ss:$0 sm:$0xff] }
 0x1e9   : > { %8349 = vst [vmem:[#allocation86_spill] sm:$0xff] %v5087_v37  ;;  %v1785_v36 = vmul.f32 %v5087_v37, %v5087_v37  ;;  %v1575_v1 = vsel %vm1449_vm5, %v5087_v37, 0.0 }
 0x1ea   : > { %v1105_v28 = vpop.f32.mrb[128].mxu0  ;;  %v1572_v40 = vadd.f32 %v1571_v7, %v1570_v56  ;;  %v1977_v53 = vadd.f32 %v1976_v0, %v1975_v32  ;;  %v5126_v0 = vadd.f32 %v5117_v38, %v4212_v62 }
 0x1eb   : > { %v5102_v45 = vadd.f32 %v4423_v16, %v1105_v28  ;;  %v3469_v9 = vpop.f32.mrb[129].mxu0  ;;  %v1980_v16 = vsel %vm1449_vm5, %v1785_v36, 0.0 }
 0x1ec   : > { %v1574_v26 = vadd.f32 %v1573_v44, %v1572_v40  ;;  %v1979_v2 = vadd.f32 %v1978_v14, %v1977_v53  ;;  %v5122_v9 = vpop.f32.mrb[126].mxu1  ;;  %8352 = vst [vmem:[#allocation89_spill] sm:$0xff] %v5126_v0  ;;  %v5135_v14 = vadd.f32 %v5117_v38, %v4224_v4 }
 0x1ed   : > { %8350 = vst [vmem:[#allocation87_spill] sm:$0xff] %v5102_v45  ;;  %v1786_v33 = vmul.f32 %v5102_v45, %v5102_v45  ;;  %v1577_v28 = vsel %vm1449_vm5, %v5102_v45, 0.0  ;;  %v3667_v40 = vpop.f32.mrb[127].mxu1 }
 0x1ee   : > { %v1110_v5 = vpop.f32.mrb[130].mxu0  ;;  %v1576_v56 = vadd.f32 %v1575_v1, %v1574_v26  ;;  %8353 = vst [vmem:[#allocation90_spill] sm:$0xff] %v5135_v14  ;;  %v5141_v45 = vpop.f32.mrb[128].mxu1  ;;  %v1789_v40 = vmul.f32 %v5126_v0, %v5126_v0 }
 0x1ef   : > { %v5120_v7 = vadd.f32 %v5117_v38, %v1110_v5  ;;  %v3472_v58 = vpop.f32.mrb[131].mxu0  ;;  %v1982_v44 = vsel %vm1449_vm5, %v1786_v33, 0.0  ;;  %v1981_v5 = vadd.f32 %v1980_v16, %v1979_v2  ;;  %v5147_v16 = vadd.f32 %v5117_v38, %v4236_v11  ;;  %v3670_v2 = vpop.f32.mrb[129].mxu1 }
 0x1f0   : > { %v1578_v60 = vadd.f32 %v1577_v28, %v1576_v56  ;;  %v1988_v2 = vsel %vm1449_vm5, %v1789_v40, 0.0 }
 0x1f1   : > { %8351 = vst [vmem:[#allocation88_spill] sm:$0xff] %v5120_v7  ;;  %v1579_v36 = vsel %vm1449_vm5, %v5120_v7, 0.0  ;;  %v1787_v32 = vmul.f32 %v5120_v7, %v5120_v7  ;;  %v1983_v53 = vadd.f32 %v1982_v44, %v1981_v5  ;;  %8355 = vst [vmem:[#allocation92_spill] sm:$0xff] %v5147_v16  ;;  %v1583_v44 = vsel %vm1449_vm5, %v5126_v0, 0.0 }
 0x1f2   : > { %v1115_v58 = vpop.f32.mrb[132].mxu0  ;;  %v1580_v26 = vadd.f32 %v1579_v36, %v1578_v60  ;;  %v1790_v36 = vmul.f32 %v5135_v14, %v5135_v14  ;;  %v5159_v5 = vadd.f32 %v5117_v38, %v4248_v17 }
 0x1f3   : > { %v1984_v1 = vsel %vm1449_vm5, %v1787_v32, 0.0  ;;  %v5139_v62 = vadd.f32 %v5117_v38, %v1115_v58  ;;  %v3475_v33 = vpop.f32.mrb[133].mxu0 }
 0x1f4   : > { %v1985_v56 = vadd.f32 %v1984_v1, %v1983_v53  ;;  %8356 = vst [vmem:[#allocation93_spill] sm:$0xff] %v5159_v5  ;;  %v5162_v33 = vpop.f32.mrb[130].mxu1  ;;  %v1585_v1 = vsel %vm1449_vm5, %v5135_v14, 0.0  ;;  %v1791_v53 = vmul.f32 %v5147_v16, %v5147_v16  ;;  %v1792_v40 = vmul.f32 %v5159_v5, %v5159_v5 }
 0x1f5   : > { %8354 = vst [vmem:[#allocation91_spill] sm:$0xff] %v5139_v62  ;;  %v1581_v4 = vsel %vm1449_vm5, %v5139_v62, 0.0  ;;  %v1788_v28 = vmul.f32 %v5139_v62, %v5139_v62  ;;  %v3673_v17 = vpop.f32.mrb[131].mxu1 }
 0x1f6   : > { %v1582_v32 = vadd.f32 %v1581_v4, %v1580_v26  ;;  %v5171_v26 = vadd.f32 %v5117_v38, %v4260_v23  ;;  %v1992_v23 = vsel %vm1449_vm5, %v1791_v53, 0.0  ;;  %v1994_v17 = vsel %vm1449_vm5, %v1792_v40, 0.0 }
 0x1f7   : > { %v1986_v11 = vsel %vm1449_vm5, %v1788_v28, 0.0  ;;  %v1990_v28 = vsel %vm1449_vm5, %v1790_v36, 0.0  ;;  %v5198_v53 = vadd.f32 %v5117_v38, %v4296_v41 }
 0x1f8   : > { %v1584_v60 = vadd.f32 %v1583_v44, %v1582_v32  ;;  %v1987_v58 = vadd.f32 %v1986_v11, %v1985_v56  ;;  %8357 = vst [vmem:[#allocation94_spill] sm:$0xff] %v5171_v26  ;;  %v1587_v56 = vsel %vm1449_vm5, %v5147_v16, 0.0  ;;  %v5180_v32 = vadd.f32 %v5117_v38, %v4272_v29 }
 0x1f9   : > { %v1793_v36 = vmul.f32 %v5171_v26, %v5171_v26  ;;  %v1591_v29 = vsel %vm1449_vm5, %v5171_v26, 0.0  ;;  %8360 = vst [vmem:[#allocation97_spill] sm:$0xff] %v5198_v53 }
 0x1fa   : > { %v1586_v4 = vadd.f32 %v1585_v1, %v1584_v60  ;;  %v1989_v0 = vadd.f32 %v1988_v2, %v1987_v58  ;;  %8358 = vst [vmem:[#allocation95_spill] sm:$0xff] %v5180_v32  ;;  %v1589_v60 = vsel %vm1449_vm5, %v5159_v5, 0.0  ;;  %v5189_v58 = vadd.f32 %v5117_v38, %v4284_v35 }
 0x1fb   : > { %v1593_v35 = vsel %vm1449_vm5, %v5180_v32, 0.0 }
 0x1fc   : > { %v1588_v44 = vadd.f32 %v1587_v56, %v1586_v4  ;;  %v1991_v11 = vadd.f32 %v1990_v28, %v1989_v0  ;;  %8359 = vst [vmem:[#allocation96_spill] sm:$0xff] %v5189_v58  ;;  %v1794_v0 = vmul.f32 %v5180_v32, %v5180_v32  ;;  %v1996_v56 = vsel %vm1449_vm5, %v1793_v36, 0.0 }
 0x1fd   : > { %v1795_v40 = vmul.f32 %v5189_v58, %v5189_v58  ;;  %v1595_v41 = vsel %vm1449_vm5, %v5189_v58, 0.0  ;;  %v1796_v36 = vmul.f32 %v5198_v53, %v5198_v53 }
 0x1fe   : > { %v1590_v2 = vadd.f32 %v1589_v60, %v1588_v44  ;;  %v1993_v1 = vadd.f32 %v1992_v23, %v1991_v11  ;;  %v5207_v44 = vadd.f32 %v5117_v38, %v4308_v47  ;;  %v1998_v60 = vsel %vm1449_vm5, %v1794_v0, 0.0 }
 0x1ff   : > { %v1597_v47 = vsel %vm1449_vm5, %v5198_v53, 0.0 }
 0x200   : > { %v1592_v4 = vadd.f32 %v1591_v29, %v1590_v2  ;;  %v1995_v28 = vadd.f32 %v1994_v17, %v1993_v1  ;;  %8361 = vst [vmem:[#allocation98_spill] sm:$0xff] %v5207_v44  ;;  %v5216_v2 = vadd.f32 %v5117_v38, %v4320_v55  ;;  %v2000_v29 = vsel %vm1449_vm5, %v1795_v40, 0.0 }
 0x201   : > { %v1797_v0 = vmul.f32 %v5207_v44, %v5207_v44  ;;  %v1599_v55 = vsel %vm1449_vm5, %v5207_v44, 0.0 }
 0x202   : > { %v1594_v11 = vadd.f32 %v1593_v35, %v1592_v4  ;;  %v1997_v23 = vadd.f32 %v1996_v56, %v1995_v28  ;;  %8362 = vst [vmem:[#allocation99_spill] sm:$0xff] %v5216_v2  ;;  %v5225_v4 = vadd.f32 %v5117_v38, %v4332_v63  ;;  %v2002_v35 = vsel %vm1449_vm5, %v1796_v36, 0.0 }
 0x203   : > { %v1798_v40 = vmul.f32 %v5216_v2, %v5216_v2  ;;  %v1601_v63 = vsel %vm1449_vm5, %v5216_v2, 0.0 }
 0x204   : > { %v1596_v1 = vadd.f32 %v1595_v41, %v1594_v11  ;;  %v1999_v17 = vadd.f32 %v1998_v60, %v1997_v23  ;;  %8363 = vst [vmem:[#allocation100_spill] sm:$0xff] %v5225_v4  ;;  %v5234_v11 = vadd.f32 %v5117_v38, %v4341_v8  ;;  %v2004_v41 = vsel %vm1449_vm5, %v1797_v0, 0.0 }
 0x205   : > { %v1799_v36 = vmul.f32 %v5225_v4, %v5225_v4  ;;  %v1603_v8 = vsel %vm1449_vm5, %v5225_v4, 0.0 }
 0x206   : > { %v1598_v28 = vadd.f32 %v1597_v47, %v1596_v1  ;;  %v2001_v56 = vadd.f32 %v2000_v29, %v1999_v17  ;;  %8364 = vst [vmem:[#allocation101_spill] sm:$0xff] %v5234_v11  ;;  %v5243_v1 = vadd.f32 %v5117_v38, %v4349_v15  ;;  %v2006_v47 = vsel %vm1449_vm5, %v1798_v40, 0.0 }
 0x207   : > { %v1800_v0 = vmul.f32 %v5234_v11, %v5234_v11  ;;  %v2008_v2 = vsel %vm1449_vm5, %v1799_v36, 0.0  ;;  %v1605_v15 = vsel %vm1449_vm5, %v5234_v11, 0.0 }
 0x208   : > { %v1600_v23 = vadd.f32 %v1599_v55, %v1598_v28  ;;  %v2003_v60 = vadd.f32 %v2002_v35, %v2001_v56  ;;  %8365 = vst [vmem:[#allocation102_spill] sm:$0xff] %v5243_v1  ;;  %v8366_v28 = vld [vmem:[#allocation2_spill] sm:$0xff]  ;;  %v1801_v40 = vmul.f32 %v5243_v1, %v5243_v1 }
 0x209   : > { %v5252_v56 = vadd.f32 %v5117_v38, %v8366_v28  ;;  %v2010_v4 = vsel %vm1449_vm5, %v1800_v0, 0.0  ;;  %v8372_v0 = vld [vmem:[#allocation5_spill] sm:$0xff] }
 0x20a   : > { %v1602_v17 = vadd.f32 %v1601_v63, %v1600_v23  ;;  %v2005_v29 = vadd.f32 %v2004_v41, %v2003_v60  ;;  %v8368_v23 = vld [vmem:[#allocation3_spill] sm:$0xff]  ;;  %v2012_v11 = vsel %vm1449_vm5, %v1801_v40, 0.0  ;;  %v8374_v40 = vld [vmem:[#allocation6_spill] sm:$0xff] }
 0x20b   : > { %8367 = vst [vmem:[#allocation2_spill] sm:$0xff] %v5252_v56  ;;  %v5261_v60 = vadd.f32 %v5117_v38, %v8368_v23  ;;  %v1802_v36 = vmul.f32 %v5252_v56, %v5252_v56 }
 0x20c   : > { %v1604_v35 = vadd.f32 %v1603_v8, %v1602_v17  ;;  %v2007_v55 = vadd.f32 %v2006_v47, %v2005_v29  ;;  %v1607_v17 = vsel %vm1449_vm5, %v5243_v1, 0.0  ;;  %v8370_v29 = vld [vmem:[#allocation4_spill] sm:$0xff] }
 0x20d   : > { %8369 = vst [vmem:[#allocation3_spill] sm:$0xff] %v5261_v60  ;;  %v5270_v47 = vadd.f32 %v5117_v38, %v8370_v29  ;;  %v2014_v1 = vsel %vm1449_vm5, %v1802_v36, 0.0  ;;  %v8376_v36 = vld [vmem:[#allocation7_spill] sm:$0xff] }
 0x20e   : > { %v1606_v41 = vadd.f32 %v1605_v15, %v1604_v35  ;;  %v2009_v63 = vadd.f32 %v2008_v2, %v2007_v55  ;;  %v1609_v35 = vsel %vm1449_vm5, %v5252_v56, 0.0  ;;  %v1803_v2 = vmul.f32 %v5261_v60, %v5261_v60 }
 0x20f   : > { %8371 = vst [vmem:[#allocation4_spill] sm:$0xff] %v5270_v47  ;;  %v5279_v55 = vadd.f32 %v5117_v38, %v8372_v0 }
 0x210   : > { %v1608_v8 = vadd.f32 %v1607_v17, %v1606_v41  ;;  %v2011_v28 = vadd.f32 %v2010_v4, %v2009_v63  ;;  %v1611_v41 = vsel %vm1449_vm5, %v5261_v60, 0.0  ;;  %v1804_v4 = vmul.f32 %v5270_v47, %v5270_v47 }
 0x211   : > { %8373 = vst [vmem:[#allocation5_spill] sm:$0xff] %v5279_v55  ;;  %v5288_v63 = vadd.f32 %v5117_v38, %v8374_v40  ;;  %v2016_v56 = vsel %vm1449_vm5, %v1803_v2, 0.0  ;;  %v8378_v2 = vld [vmem:[#allocation8_spill] sm:$0xff] }
 0x212   : > { %v1610_v15 = vadd.f32 %v1609_v35, %v1608_v8  ;;  %v2013_v23 = vadd.f32 %v2012_v11, %v2011_v28  ;;  %v1613_v8 = vsel %vm1449_vm5, %v5270_v47, 0.0  ;;  %v1805_v11 = vmul.f32 %v5279_v55, %v5279_v55 }
 0x213   : > { %8375 = vst [vmem:[#allocation6_spill] sm:$0xff] %v5288_v63  ;;  %v5297_v28 = vadd.f32 %v5117_v38, %v8376_v36  ;;  %v2018_v60 = vsel %vm1449_vm5, %v1804_v4, 0.0  ;;  %v8380_v4 = vld [vmem:[#allocation9_spill] sm:$0xff] }
 0x214   : > { %v1612_v17 = vadd.f32 %v1611_v41, %v1610_v15  ;;  %v2015_v29 = vadd.f32 %v2014_v1, %v2013_v23  ;;  %v1615_v15 = vsel %vm1449_vm5, %v5279_v55, 0.0  ;;  %v1806_v1 = vmul.f32 %v5288_v63, %v5288_v63 }
 0x215   : > { %8377 = vst [vmem:[#allocation7_spill] sm:$0xff] %v5297_v28  ;;  %v5306_v23 = vadd.f32 %v5117_v38, %v8378_v2  ;;  %v2020_v47 = vsel %vm1449_vm5, %v1805_v11, 0.0  ;;  %v8382_v11 = vld [vmem:[#allocation10_spill] sm:$0xff] }
 0x216   : > { %v1614_v35 = vadd.f32 %v1613_v8, %v1612_v17  ;;  %v2017_v0 = vadd.f32 %v2016_v56, %v2015_v29  ;;  %v1617_v17 = vsel %vm1449_vm5, %v5288_v63, 0.0  ;;  %v1807_v56 = vmul.f32 %v5297_v28, %v5297_v28 }
 0x217   : > { %8379 = vst [vmem:[#allocation8_spill] sm:$0xff] %v5306_v23  ;;  %v5315_v29 = vadd.f32 %v5117_v38, %v8380_v4  ;;  %v2022_v55 = vsel %vm1449_vm5, %v1806_v1, 0.0  ;;  %v8383_v1 = vld [vmem:[#allocation11_spill] sm:$0xff] }
 0x218   : > { %v1616_v41 = vadd.f32 %v1615_v15, %v1614_v35  ;;  %v2019_v40 = vadd.f32 %v2018_v60, %v2017_v0  ;;  %v1619_v35 = vsel %vm1449_vm5, %v5297_v28, 0.0  ;;  %v1808_v60 = vmul.f32 %v5306_v23, %v5306_v23 }
 0x219   : > { %8381 = vst [vmem:[#allocation9_spill] sm:$0xff] %v5315_v29  ;;  %v5324_v0 = vadd.f32 %v5117_v38, %v8382_v11  ;;  %v2024_v63 = vsel %vm1449_vm5, %v1807_v56, 0.0 }
 0x21a   : > { %v1618_v8 = vadd.f32 %v1617_v17, %v1616_v41  ;;  %v2021_v36 = vadd.f32 %v2020_v47, %v2019_v40  ;;  %v1621_v41 = vsel %vm1449_vm5, %v5306_v23, 0.0  ;;  %v1809_v47 = vmul.f32 %v5315_v29, %v5315_v29 }
 0x21b   : > { %v5333_v40 = vadd.f32 %v5117_v38, %v8383_v1  ;;  %v2026_v28 = vsel %vm1449_vm5, %v1808_v60, 0.0  ;;  %v1810_v56 = vmul.f32 %v5324_v0, %v5324_v0  ;;  %v8385_v60 = vld [vmem:[#allocation13_spill] sm:$0xff] }
 0x21c   : > { %v2023_v15 = vadd.f32 %v2022_v55, %v2021_v36  ;;  %v1620_v2 = vadd.f32 %v1619_v35, %v1618_v8  ;;  %v1623_v55 = vsel %vm1449_vm5, %v5315_v29, 0.0  ;;  %v8384_v8 = vld [vmem:[#allocation12_spill] sm:$0xff]  ;;  %v2028_v23 = vsel %vm1449_vm5, %v1809_v47, 0.0  ;;  %v8386_v47 = vld [vmem:[#allocation14_spill] sm:$0xff] }
 0x21d   : > { %v5342_v36 = vadd.f32 %v5117_v38, %v8384_v8  ;;  %v2030_v29 = vsel %vm1449_vm5, %v1810_v56, 0.0  ;;  %v8387_v56 = vld [vmem:[#allocation15_spill] sm:$0xff] }
 0x21e   : > { %v1622_v17 = vadd.f32 %v1621_v41, %v1620_v2  ;;  %v2025_v4 = vadd.f32 %v2024_v63, %v2023_v15  ;;  %v1625_v2 = vsel %vm1449_vm5, %v5324_v0, 0.0  ;;  %v1811_v63 = vmul.f32 %v5333_v40, %v5333_v40 }
 0x21f   : > { %v5351_v15 = vadd.f32 %v5117_v38, %v8385_v60 }
 0x220   : > { %v1624_v35 = vadd.f32 %v1623_v55, %v1622_v17  ;;  %v2027_v11 = vadd.f32 %v2026_v28, %v2025_v4  ;;  %v1627_v17 = vsel %vm1449_vm5, %v5333_v40, 0.0  ;;  %v1812_v28 = vmul.f32 %v5342_v36, %v5342_v36 }
 0x221   : > { %v5360_v4 = vadd.f32 %v5117_v38, %v8386_v47  ;;  %v2032_v44 = vsel %vm1449_vm5, %v1811_v63, 0.0  ;;  %v8388_v63 = vld [vmem:[#allocation16_spill] sm:$0xff] }
 0x222   : > { %v1626_v41 = vadd.f32 %v1625_v2, %v1624_v35  ;;  %v2029_v1 = vadd.f32 %v2028_v23, %v2027_v11  ;;  %v1629_v35 = vsel %vm1449_vm5, %v5342_v36, 0.0  ;;  %v1813_v23 = vmul.f32 %v5351_v15, %v5351_v15 }
 0x223   : > { %v5369_v11 = vadd.f32 %v5117_v38, %v8387_v56  ;;  %v2034_v53 = vsel %vm1449_vm5, %v1812_v28, 0.0  ;;  %v8389_v28 = vld [vmem:[#allocation17_spill] sm:$0xff] }
 0x224   : > { %v1628_v55 = vadd.f32 %v1627_v17, %v1626_v41  ;;  %v2031_v8 = vadd.f32 %v2030_v29, %v2029_v1  ;;  %v1631_v41 = vsel %vm1449_vm5, %v5351_v15, 0.0  ;;  %v1814_v29 = vmul.f32 %v5360_v4, %v5360_v4 }
 0x225   : > { %v5378_v1 = vadd.f32 %v5117_v38, %v8388_v63  ;;  %v2036_v58 = vsel %vm1449_vm5, %v1813_v23, 0.0  ;;  %v8390_v23 = vld [vmem:[#allocation18_spill] sm:$0xff] }
 0x226   : > { %v1630_v2 = vadd.f32 %v1629_v35, %v1628_v55  ;;  %v2033_v60 = vadd.f32 %v2032_v44, %v2031_v8  ;;  %v1633_v55 = vsel %vm1449_vm5, %v5360_v4, 0.0  ;;  %v1815_v44 = vmul.f32 %v5369_v11, %v5369_v11 }
 0x227   : > { %v5387_v8 = vadd.f32 %v5117_v38, %v8389_v28  ;;  %v2038_v32 = vsel %vm1449_vm5, %v1814_v29, 0.0  ;;  %v8391_v29 = vld [vmem:[#allocation21_spill] sm:$0xff] }
 0x228   : > { %v1632_v17 = vadd.f32 %v1631_v41, %v1630_v2  ;;  %v2035_v47 = vadd.f32 %v2034_v53, %v2033_v60  ;;  %v1635_v2 = vsel %vm1449_vm5, %v5369_v11, 0.0  ;;  %v1816_v53 = vmul.f32 %v5378_v1, %v5378_v1 }
 0x229   : > { %v5396_v60 = vadd.f32 %v5117_v38, %v8390_v23  ;;  %v2040_v26 = vsel %vm1449_vm5, %v1815_v44, 0.0  ;;  %v8392_v44 = vld [vmem:[#allocation24_spill] sm:$0xff] }
 0x22a   : > { %v1634_v35 = vadd.f32 %v1633_v55, %v1632_v17  ;;  %v2037_v56 = vadd.f32 %v2036_v58, %v2035_v47  ;;  %v1637_v17 = vsel %vm1449_vm5, %v5378_v1, 0.0  ;;  %v1817_v58 = vmul.f32 %v5387_v8, %v5387_v8 }
 0x22b   : > { %v5405_v47 = vadd.f32 %v5117_v38, %v8391_v29  ;;  %v2042_v5 = vsel %vm1449_vm5, %v1816_v53, 0.0  ;;  %v8393_v53 = vld [vmem:[#allocation27_spill] sm:$0xff] }
 0x22c   : > { %v1636_v41 = vadd.f32 %v1635_v2, %v1634_v35  ;;  %v2039_v63 = vadd.f32 %v2038_v32, %v2037_v56  ;;  %v1639_v35 = vsel %vm1449_vm5, %v5387_v8, 0.0  ;;  %v1818_v32 = vmul.f32 %v5396_v60, %v5396_v60 }
 0x22d   : > { %v5414_v56 = vadd.f32 %v5117_v38, %v8392_v44  ;;  %v2044_v16 = vsel %vm1449_vm5, %v1817_v58, 0.0  ;;  %v5432_v58 = vadd.f32 %v5117_v38, %v4497_v13 }
 0x22e   : > { %v1638_v55 = vadd.f32 %v1637_v17, %v1636_v41  ;;  %v2041_v28 = vadd.f32 %v2040_v26, %v2039_v63  ;;  %v1641_v41 = vsel %vm1449_vm5, %v5396_v60, 0.0  ;;  %v1819_v26 = vmul.f32 %v5405_v47, %v5405_v47 }
 0x22f   : > { %v5423_v63 = vadd.f32 %v5117_v38, %v8393_v53  ;;  %v2046_v14 = vsel %vm1449_vm5, %v1818_v32, 0.0  ;;  %v5441_v32 = vadd.f32 %v5117_v38, %v4519_v3  ;;  %v1649_v3 = vsel %vm1449_vm5, %v5432_v58, 0.0 }
 0x230   : > { %v1640_v2 = vadd.f32 %v1639_v35, %v1638_v55  ;;  %v2043_v23 = vadd.f32 %v2042_v5, %v2041_v28  ;;  %v1643_v55 = vsel %vm1449_vm5, %v5405_v47, 0.0  ;;  %v1820_v5 = vmul.f32 %v5414_v56, %v5414_v56 }
 0x231   : > { %v2048_v44 = vsel %vm1449_vm5, %v1819_v26, 0.0  ;;  %v1647_v13 = vsel %vm1449_vm5, %v5423_v63, 0.0  ;;  %v5450_v26 = vadd.f32 %v5117_v38, %v4541_v19  ;;  %v1651_v19 = vsel %vm1449_vm5, %v5441_v32, 0.0 }
 0x232   : > { %v1642_v17 = vadd.f32 %v1641_v41, %v1640_v2  ;;  %v2045_v29 = vadd.f32 %v2044_v16, %v2043_v23  ;;  %v1645_v2 = vsel %vm1449_vm5, %v5414_v56, 0.0  ;;  %v1821_v16 = vmul.f32 %v5423_v63, %v5423_v63 }
 0x233   : > { %v2050_v53 = vsel %vm1449_vm5, %v1820_v5, 0.0  ;;  %v1823_v5 = vmul.f32 %v5441_v32, %v5441_v32 }
 0x234   : > { %v1644_v28 = vadd.f32 %v1643_v55, %v1642_v17  ;;  %v2047_v35 = vadd.f32 %v2046_v14, %v2045_v29  ;;  %v1822_v14 = vmul.f32 %v5432_v58, %v5432_v58  ;;  %v2052_v55 = vsel %vm1449_vm5, %v1821_v16, 0.0 }
 0x235   : > { %v1824_v16 = vmul.f32 %v5450_v26, %v5450_v26 }
 0x236   : > { %v1646_v23 = vadd.f32 %v1645_v2, %v1644_v28  ;;  %v2049_v41 = vadd.f32 %v2048_v44, %v2047_v35  ;;  %v5459_v28 = vadd.f32 %v5117_v38, %v4563_v31  ;;  %v2054_v2 = vsel %vm1449_vm5, %v1822_v14, 0.0 }
 0x237   : > { %v1653_v31 = vsel %vm1449_vm5, %v5450_v26, 0.0 }
 0x238   : > { %v1648_v17 = vadd.f32 %v1647_v13, %v1646_v23  ;;  %v2051_v29 = vadd.f32 %v2050_v53, %v2049_v41  ;;  %v5468_v23 = vadd.f32 %v5117_v38, %v4585_v43  ;;  %v2056_v13 = vsel %vm1449_vm5, %v1823_v5, 0.0 }
 0x239   : > { %v1825_v14 = vmul.f32 %v5459_v28, %v5459_v28  ;;  %v1655_v43 = vsel %vm1449_vm5, %v5459_v28, 0.0 }
 0x23a   : > { %v1650_v35 = vadd.f32 %v1649_v3, %v1648_v17  ;;  %v2053_v44 = vadd.f32 %v2052_v55, %v2051_v29  ;;  %v5477_v17 = vadd.f32 %v5117_v38, %v4607_v57  ;;  %v2058_v3 = vsel %vm1449_vm5, %v1824_v16, 0.0 }
 0x23b   : > { %v1826_v5 = vmul.f32 %v5468_v23, %v5468_v23  ;;  %v1657_v57 = vsel %vm1449_vm5, %v5468_v23, 0.0 }
 0x23c   : > { %v2055_v41 = vadd.f32 %v2054_v2, %v2053_v44  ;;  %v1652_v53 = vadd.f32 %v1651_v19, %v1650_v35  ;;  %v5486_v35 = vadd.f32 %v5117_v38, %v4629_v10  ;;  %v2060_v19 = vsel %vm1449_vm5, %v1825_v14, 0.0 }
 0x23d   : > { %v1827_v16 = vmul.f32 %v5477_v17, %v5477_v17  ;;  %v1659_v10 = vsel %vm1449_vm5, %v5477_v17, 0.0 }
 0x23e   : > { %v2057_v29 = vadd.f32 %v2056_v13, %v2055_v41  ;;  %v1654_v55 = vadd.f32 %v1653_v31, %v1652_v53  ;;  %v5495_v41 = vadd.f32 %v5117_v38, %v4651_v24  ;;  %v2062_v31 = vsel %vm1449_vm5, %v1826_v5, 0.0 }
 0x23f   : > { %v1828_v14 = vmul.f32 %v5486_v35, %v5486_v35  ;;  %v1661_v24 = vsel %vm1449_vm5, %v5486_v35, 0.0 }
 0x240   : > { %v2059_v44 = vadd.f32 %v2058_v3, %v2057_v29  ;;  %v1656_v2 = vadd.f32 %v1655_v43, %v1654_v55  ;;  %v5504_v29 = vadd.f32 %v5117_v38, %v4673_v34  ;;  %v2064_v43 = vsel %vm1449_vm5, %v1827_v16, 0.0 }
 0x241   : > { %v1829_v5 = vmul.f32 %v5495_v41, %v5495_v41  ;;  %v1663_v34 = vsel %vm1449_vm5, %v5495_v41, 0.0 }
 0x242   : > { %v2061_v53 = vadd.f32 %v2060_v19, %v2059_v44  ;;  %v1658_v13 = vadd.f32 %v1657_v57, %v1656_v2  ;;  %v5513_v44 = vadd.f32 %v5117_v38, %v4695_v46  ;;  %v2066_v57 = vsel %vm1449_vm5, %v1828_v14, 0.0 }
 0x243   : > { %v1830_v16 = vmul.f32 %v5504_v29, %v5504_v29  ;;  %v1665_v46 = vsel %vm1449_vm5, %v5504_v29, 0.0 }
 0x244   : > { %v2063_v55 = vadd.f32 %v2062_v31, %v2061_v53  ;;  %v1660_v3 = vadd.f32 %v1659_v10, %v1658_v13  ;;  %v5522_v53 = vadd.f32 %v5117_v38, %v4717_v61  ;;  %v2068_v10 = vsel %vm1449_vm5, %v1829_v5, 0.0 }
 0x245   : > { %v1831_v14 = vmul.f32 %v5513_v44, %v5513_v44  ;;  %v1667_v61 = vsel %vm1449_vm5, %v5513_v44, 0.0 }
 0x246   : > { %v2065_v2 = vadd.f32 %v2064_v43, %v2063_v55  ;;  %v1662_v19 = vadd.f32 %v1661_v24, %v1660_v3  ;;  %v5531_v55 = vadd.f32 %v5117_v38, %v4739_v20  ;;  %v2070_v24 = vsel %vm1449_vm5, %v1830_v16, 0.0 }
 0x247   : > { %v1832_v5 = vmul.f32 %v5522_v53, %v5522_v53  ;;  %v1669_v20 = vsel %vm1449_vm5, %v5522_v53, 0.0 }
 0x248   : > { %v2067_v13 = vadd.f32 %v2066_v57, %v2065_v2  ;;  %v1664_v31 = vadd.f32 %v1663_v34, %v1662_v19  ;;  %v5540_v2 = vadd.f32 %v5117_v38, %v4761_v42  ;;  %v2072_v34 = vsel %vm1449_vm5, %v1831_v14, 0.0 }
 0x249   : > { %v1833_v16 = vmul.f32 %v5531_v55, %v5531_v55  ;;  %v1671_v42 = vsel %vm1449_vm5, %v5531_v55, 0.0 }
 0x24a   : > { %v2069_v3 = vadd.f32 %v2068_v10, %v2067_v13  ;;  %v1666_v43 = vadd.f32 %v1665_v46, %v1664_v31  ;;  %v5549_v13 = vadd.f32 %v5117_v38, %v4783_v12  ;;  %v2074_v46 = vsel %vm1449_vm5, %v1832_v5, 0.0 }
 0x24b   : > { %v1834_v14 = vmul.f32 %v5540_v2, %v5540_v2  ;;  %v1673_v12 = vsel %vm1449_vm5, %v5540_v2, 0.0 }
 0x24c   : > { %v2071_v19 = vadd.f32 %v2070_v24, %v2069_v3  ;;  %v1668_v57 = vadd.f32 %v1667_v61, %v1666_v43  ;;  %v5558_v3 = vadd.f32 %v5117_v38, %v4805_v48  ;;  %v2076_v61 = vsel %vm1449_vm5, %v1833_v16, 0.0 }
 0x24d   : > { %v1835_v5 = vmul.f32 %v5549_v13, %v5549_v13  ;;  %v1675_v48 = vsel %vm1449_vm5, %v5549_v13, 0.0 }
 0x24e   : > { %v2073_v31 = vadd.f32 %v2072_v34, %v2071_v19  ;;  %v1670_v10 = vadd.f32 %v1669_v20, %v1668_v57  ;;  %v5567_v19 = vadd.f32 %v5117_v38, %v4827_v39  ;;  %v2078_v20 = vsel %vm1449_vm5, %v1834_v14, 0.0 }
 0x24f   : > { %v1836_v16 = vmul.f32 %v5558_v3, %v5558_v3  ;;  %v1677_v39 = vsel %vm1449_vm5, %v5558_v3, 0.0 }
 0x250   : > { %v2075_v43 = vadd.f32 %v2074_v46, %v2073_v31  ;;  %v1672_v24 = vadd.f32 %v1671_v42, %v1670_v10  ;;  %v5576_v31 = vadd.f32 %v5117_v38, %v4849_v52  ;;  %v2080_v42 = vsel %vm1449_vm5, %v1835_v5, 0.0 }
 0x251   : > { %v1837_v14 = vmul.f32 %v5567_v19, %v5567_v19  ;;  %v1679_v52 = vsel %vm1449_vm5, %v5567_v19, 0.0 }
 0x252   : > { %v2077_v57 = vadd.f32 %v2076_v61, %v2075_v43  ;;  %v1674_v34 = vadd.f32 %v1673_v12, %v1672_v24  ;;  %v5585_v43 = vadd.f32 %v5117_v38, %v4871_v54  ;;  %v2082_v12 = vsel %vm1449_vm5, %v1836_v16, 0.0 }
 0x253   : > { %v1838_v5 = vmul.f32 %v5576_v31, %v5576_v31  ;;  %v1681_v54 = vsel %vm1449_vm5, %v5576_v31, 0.0 }
 0x254   : > { %v2079_v10 = vadd.f32 %v2078_v20, %v2077_v57  ;;  %v1676_v46 = vadd.f32 %v1675_v48, %v1674_v34  ;;  %v5594_v57 = vadd.f32 %v5117_v38, %v4893_v25  ;;  %v2084_v48 = vsel %vm1449_vm5, %v1837_v14, 0.0 }
 0x255   : > { %v1839_v16 = vmul.f32 %v5585_v43, %v5585_v43  ;;  %v1683_v25 = vsel %vm1449_vm5, %v5585_v43, 0.0 }
 0x256   : > { %v2081_v24 = vadd.f32 %v2080_v42, %v2079_v10  ;;  %v1678_v61 = vadd.f32 %v1677_v39, %v1676_v46  ;;  %v5603_v10 = vadd.f32 %v5117_v38, %v4915_v49  ;;  %v2086_v39 = vsel %vm1449_vm5, %v1838_v5, 0.0 }
 0x257   : > { %v1840_v14 = vmul.f32 %v5594_v57, %v5594_v57  ;;  %v2088_v62 = vsel %vm1449_vm5, %v1839_v16, 0.0  ;;  %v1685_v49 = vsel %vm1449_vm5, %v5594_v57, 0.0  ;;  %v5626_v16 = vadd.f32 %v5117_v38, %v4957_v18 }
 0x258   : > { %v2083_v34 = vadd.f32 %v2082_v12, %v2081_v24  ;;  %v1680_v20 = vadd.f32 %v1679_v52, %v1678_v61  ;;  %v8394_v12 = vld [vmem:[#allocation70_spill] sm:$0xff]  ;;  %v1841_v5 = vmul.f32 %v5603_v10, %v5603_v10 }
 0x259   : > { %v5612_v52 = vadd.f32 %v5117_v38, %v8394_v12  ;;  %v1691_v12 = vsel %vm1449_vm5, %v5626_v16, 0.0 }
 0x25a   : > { %v2085_v46 = vadd.f32 %v2084_v48, %v2083_v34  ;;  %v1682_v42 = vadd.f32 %v1681_v54, %v1680_v20  ;;  %v2090_v48 = vsel %vm1449_vm5, %v1840_v14, 0.0  ;;  %v1687_v54 = vsel %vm1449_vm5, %v5603_v10, 0.0 }
 0x25c   : > { %v2087_v24 = vadd.f32 %v2086_v39, %v2085_v46  ;;  %v1684_v61 = vadd.f32 %v1683_v25, %v1682_v42  ;;  %v1842_v39 = vmul.f32 %v5612_v52, %v5612_v52  ;;  %v2092_v25 = vsel %vm1449_vm5, %v1841_v5, 0.0 }
 0x25e   : > { %v2089_v34 = vadd.f32 %v2088_v62, %v2087_v24  ;;  %v1686_v20 = vadd.f32 %v1685_v49, %v1684_v61  ;;  %v1689_v62 = vsel %vm1449_vm5, %v5612_v52, 0.0  ;;  %v2094_v14 = vsel %vm1449_vm5, %v1842_v39, 0.0 }
 0x25f   : > { %v1843_v49 = vmul.f32 %v5626_v16, %v5626_v16 }
 0x260   : > { %v2091_v46 = vadd.f32 %v2090_v48, %v2089_v34  ;;  %v1688_v42 = vadd.f32 %v1687_v54, %v1686_v20  ;;  %v5638_v34 = vadd.f32 %v5117_v38, %v4977_v59 }
 0x261   : > { %v2096_v5 = vsel %vm1449_vm5, %v1843_v49, 0.0 }
 0x262   : > { %v2093_v24 = vadd.f32 %v2092_v25, %v2091_v46  ;;  %v1690_v61 = vadd.f32 %v1689_v62, %v1688_v42  ;;  %v1693_v48 = vsel %vm1449_vm5, %v5638_v34, 0.0  ;;  %v1844_v54 = vmul.f32 %v5638_v34, %v5638_v34 }
 0x263   : > { %v5647_v46 = vadd.f32 %v5117_v38, %v4997_v50 }
 0x264   : > { %v2095_v18 = vadd.f32 %v2094_v14, %v2093_v24  ;;  %v1692_v20 = vadd.f32 %v1691_v12, %v1690_v61  ;;  %v2098_v25 = vsel %vm1449_vm5, %v1844_v54, 0.0  ;;  %v5656_v24 = vadd.f32 %v5117_v38, %v5017_v27 }
 0x265   : > { %v1695_v59 = vsel %vm1449_vm5, %v5647_v46, 0.0  ;;  %v1845_v62 = vmul.f32 %v5647_v46, %v5647_v46 }
 0x266   : > { %v2097_v42 = vadd.f32 %v2096_v5, %v2095_v18  ;;  %v1694_v39 = vadd.f32 %v1693_v48, %v1692_v20  ;;  %v1697_v50 = vsel %vm1449_vm5, %v5656_v24, 0.0  ;;  %v1846_v49 = vmul.f32 %v5656_v24, %v5656_v24 }
 0x267   : > { %v2100_v12 = vsel %vm1449_vm5, %v1845_v62, 0.0  ;;  %v5665_v18 = vadd.f32 %v5117_v38, %v5035_v6 }
 0x268   : > { %v2099_v61 = vadd.f32 %v2098_v25, %v2097_v42  ;;  %v1696_v14 = vadd.f32 %v1695_v59, %v1694_v39  ;;  %v2102_v48 = vsel %vm1449_vm5, %v1846_v49, 0.0  ;;  %v5674_v42 = vadd.f32 %v5117_v38, %v5053_v30 }
 0x269   : > { %v1699_v27 = vsel %vm1449_vm5, %v5665_v18, 0.0  ;;  %v1847_v54 = vmul.f32 %v5665_v18, %v5665_v18 }
 0x26a   : > { %v2101_v20 = vadd.f32 %v2100_v12, %v2099_v61  ;;  %v1698_v5 = vadd.f32 %v1697_v50, %v1696_v14  ;;  %v1701_v6 = vsel %vm1449_vm5, %v5674_v42, 0.0  ;;  %v1848_v62 = vmul.f32 %v5674_v42, %v5674_v42 }
 0x26b   : > { %v2104_v59 = vsel %vm1449_vm5, %v1847_v54, 0.0  ;;  %v5683_v61 = vadd.f32 %v5117_v38, %v5071_v22 }
 0x26c   : > { %v2103_v39 = vadd.f32 %v2102_v48, %v2101_v20  ;;  %v1700_v25 = vadd.f32 %v1699_v27, %v1698_v5  ;;  %v2106_v50 = vsel %vm1449_vm5, %v1848_v62, 0.0  ;;  %v5692_v20 = vadd.f32 %v5117_v38, %v5089_v51 }
 0x26d   : > { %v1703_v30 = vsel %vm1449_vm5, %v5683_v61, 0.0  ;;  %v1849_v49 = vmul.f32 %v5683_v61, %v5683_v61 }
 0x26e   : > { %v2105_v14 = vadd.f32 %v2104_v59, %v2103_v39  ;;  %v1702_v12 = vadd.f32 %v1701_v6, %v1700_v25  ;;  %v1705_v22 = vsel %vm1449_vm5, %v5692_v20, 0.0  ;;  %v1850_v54 = vmul.f32 %v5692_v20, %v5692_v20 }
 0x26f   : > { %v2108_v27 = vsel %vm1449_vm5, %v1849_v49, 0.0  ;;  %v5701_v39 = vadd.f32 %v5117_v38, %v5104_v21 }
 0x270   : > { %v2107_v5 = vadd.f32 %v2106_v50, %v2105_v14  ;;  %v1704_v48 = vadd.f32 %v1703_v30, %v1702_v12  ;;  %v2110_v6 = vsel %vm1449_vm5, %v1850_v54, 0.0  ;;  %v5710_v14 = vadd.f32 %v5117_v38, %v5122_v9 }
 0x271   : > { %8395 = vst [vmem:[#allocation10_spill] sm:$0xff] %v5701_v39  ;;  %v1707_v51 = vsel %vm1449_vm5, %v5701_v39, 0.0  ;;  %v1851_v62 = vmul.f32 %v5701_v39, %v5701_v39  ;;  %v5723_v9 = vadd.f32 %v5117_v38, %v5162_v33 }
 0x272   : > { %v2109_v25 = vadd.f32 %v2108_v27, %v2107_v5  ;;  %v1706_v59 = vadd.f32 %v1705_v22, %v1704_v48  ;;  %8396 = vst [vmem:[#allocation11_spill] sm:$0xff] %v5710_v14  ;;  %v1709_v21 = vsel %vm1449_vm5, %v5710_v14, 0.0  ;;  %v1852_v49 = vmul.f32 %v5710_v14, %v5710_v14 }
 0x273   : > { %v2112_v30 = vsel %vm1449_vm5, %v1851_v62, 0.0  ;;  %v5719_v5 = vadd.f32 %v5117_v38, %v5141_v45  ;;  %8398 = vst [vmem:[#allocation13_spill] sm:$0xff] %v5723_v9  ;;  %v1714_v45 = vsel %vm8261_vm6, %v5723_v9, 0.0 }
 0x274   : > { %v2111_v12 = vadd.f32 %v2110_v6, %v2109_v25  ;;  %v1708_v50 = vadd.f32 %v1707_v51, %v1706_v59  ;;  %v2114_v22 = vsel %vm1449_vm5, %v1852_v49, 0.0  ;;  %v1854_v51 = vmul.f32 %v5723_v9, %v5723_v9 }
 0x275   : > { %8397 = vst [vmem:[#allocation12_spill] sm:$0xff] %v5719_v5  ;;  %v1711_v54 = vsel %vm1449_vm5, %v5719_v5, 0.0  ;;  %v1853_v25 = vmul.f32 %v5719_v5, %v5719_v5 }
 0x276   : > { %v2113_v48 = vadd.f32 %v2112_v30, %v2111_v12  ;;  %v1710_v27 = vadd.f32 %v1709_v21, %v1708_v50  ;;  %v2118_v12 = vsel %vm8261_vm6, %v1854_v51, 0.0  ;;  %v8432_v51 = vld [vmem:[#allocation55_spill] sm:$0xff] }
 0x277   : > { %v2116_v38 = vsel %vm1449_vm5, %v1853_v25, 0.0 }
 0x278   : > { %v2115_v59 = vadd.f32 %v2114_v22, %v2113_v48  ;;  %v1712_v6 = vadd.f32 %v1711_v54, %v1710_v27 }
 0x27a   : > { %v2117_v33 = vadd.f32 %v2116_v38, %v2115_v59  ;;  %v1715_v62 = vadd.f32 %v1714_v45, %v1712_v6  ;;  %v8399_v45 = vld [vmem:[#allocation20_spill] sm:$0xff]  ;;  %v8400_v38 = vld [vmem:[#allocation19_spill] sm:$0xff] }
 0x27c   : > { %v1716_v50 = vrot.slane %v1715_v62, 4  ;;  %v2119_v30 = vadd.f32 %v2118_v12, %v2117_v33  ;;  %v8444_v12 = vld [vmem:[#allocation67_spill] sm:$0xff] }
 0x27e   : > { %v1717_v21 = vadd.f32 %v1716_v50, %v1715_v62  ;;  %v2120_v49 = vrot.slane %v2119_v30, 4  ;;  %v8446_v50 = vld [vmem:[#allocation69_spill] sm:$0xff] }
 0x280   : > { %v1718_v7 = vrot.slane %v1717_v21, 2  ;;  %v2121_v37 = vadd.f32 %v2120_v49, %v2119_v30 }
 0x282   : > { %v1719_v48 = vadd.f32 %v1718_v7, %v1717_v21  ;;  %v2122_v27 = vrot.slane %v2121_v37, 2  ;;  %v8401_v7 = vld [vmem:[#allocation22_spill] sm:$0xff] }
 0x284   : > { %v1720_v22 = vrot.slane %v1719_v48, 1  ;;  %v2123_v54 = vadd.f32 %v2122_v27, %v2121_v37  ;;  %v8402_v37 = vld [vmem:[#allocation23_spill] sm:$0xff] }
 0x286   : > { %v1721_v5 = vadd.f32 %v1720_v22, %v1719_v48  ;;  %v2124_v14 = vrot.slane %v2123_v54, 1 }
 0x288   : > { %v2125_v39 = vadd.f32 %v2124_v14, %v2123_v54  ;;  %v5736_v9 = vmul.f32 0.0009451796, %v1721_v5  ;;  %v8403_v14 = vld [vmem:[#allocation25_spill] sm:$0xff] }
 0x28a   : > { %v2127_v25 = vmul.f32 0.0009451796, %v2125_v39  ;;  %v2128_v59 = vmul.f32 %v5736_v9, %v5736_v9  ;;  %v8404_v39 = vld [vmem:[#allocation26_spill] sm:$0xff]  ;;  %v2220_v62 = vsub.f32 %v5333_v40, %v5736_v9  ;;  %v2223_v48 = vsub.f32 %v5360_v4, %v5736_v9 }
 0x28b   : > { %v2224_v22 = vsub.f32 %v5369_v11, %v5736_v9  ;;  %v2227_v40 = vsub.f32 %v5396_v60, %v5736_v9  ;;  %v2230_v4 = vsub.f32 %v5423_v63, %v5736_v9  ;;  %v2231_v11 = vsub.f32 %v5432_v58, %v5736_v9 }
 0x28c   : > { %v2129_v6 = vsub.f32 %v2127_v25, %v2128_v59  ;;  %v2219_v59 = vsub.f32 %v5324_v0, %v5736_v9  ;;  %v2225_v25 = vsub.f32 %v5378_v1, %v5736_v9  ;;  %v2226_v0 = vsub.f32 %v5387_v8, %v5736_v9 }
 0x28d   : > { %v2232_v1 = vsub.f32 %v5441_v32, %v5736_v9  ;;  %v2233_v8 = vsub.f32 %v5450_v26, %v5736_v9  ;;  %v2234_v60 = vsub.f32 %v5459_v28, %v5736_v9  ;;  %v2237_v63 = vsub.f32 %v5486_v35, %v5736_v9 }
 0x28e   : > { %v2130_v33 = vmax.f32 %v2129_v6, 0.0  ;;  %v8445_v6 = vld [vmem:[#allocation68_spill] sm:$0xff]  ;;  %v2238_v58 = vsub.f32 %v5495_v41, %v5736_v9  ;;  %v2239_v32 = vsub.f32 %v5504_v29, %v5736_v9  ;;  %v2240_v26 = vsub.f32 %v5513_v44, %v5736_v9 }
 0x28f   : > { %v2241_v28 = vsub.f32 %v5522_v53, %v5736_v9  ;;  %v2244_v35 = vsub.f32 %v5549_v13, %v5736_v9  ;;  %v2245_v41 = vsub.f32 %v5558_v3, %v5736_v9  ;;  %v2246_v29 = vsub.f32 %v5567_v19, %v5736_v9 }
 0x290   : > { %v2264_v5 = vadd.f32 1e-05, %v2130_v33  ;;  %v2221_v33 = vsub.f32 %v5342_v36, %v5736_v9  ;;  %v2228_v36 = vsub.f32 %v5405_v47, %v5736_v9  ;;  %v2235_v47 = vsub.f32 %v5468_v23, %v5736_v9 }
 0x291   : > { %v2242_v23 = vsub.f32 %v5531_v55, %v5736_v9  ;;  %v2247_v44 = vsub.f32 %v5576_v31, %v5736_v9  ;;  %v2248_v53 = vsub.f32 %v5585_v43, %v5736_v9  ;;  %v2249_v55 = vsub.f32 %v5594_v57, %v5736_v9 }
 0x292   : > { %3698 = vrsqrt.f32 %v2264_v5  ;;  %v2222_v5 = vsub.f32 %v5351_v15, %v5736_v9  ;;  %v2229_v15 = vsub.f32 %v5414_v56, %v5736_v9  ;;  %v2236_v56 = vsub.f32 %v5477_v17, %v5736_v9 }
 0x293   : > { %v2243_v17 = vsub.f32 %v5540_v2, %v5736_v9  ;;  %v2250_v2 = vsub.f32 %v5603_v10, %v5736_v9  ;;  %v2251_v13 = vsub.f32 %v5612_v52, %v5736_v9  ;;  %v2252_v3 = vsub.f32 %v5626_v16, %v5736_v9 }
 0x294   : > { %v2253_v19 = vsub.f32 %v5638_v34, %v5736_v9  ;;  %v2254_v31 = vsub.f32 %v5647_v46, %v5736_v9  ;;  %v2255_v43 = vsub.f32 %v5656_v24, %v5736_v9  ;;  %v2256_v57 = vsub.f32 %v5665_v18, %v5736_v9  ;;  %v8451_v34 = vld [vmem:[#allocation10_spill] sm:$0xff]  ;;  %v8452_v46 = vld [vmem:[#allocation11_spill] sm:$0xff]  ;;  %v8453_v24 = vld [vmem:[#allocation12_spill] sm:$0xff] }
 0x295   : > { %v2257_v10 = vsub.f32 %v5674_v42, %v5736_v9  ;;  %v2258_v52 = vsub.f32 %v5683_v61, %v5736_v9  ;;  %v2259_v16 = vsub.f32 %v5692_v20, %v5736_v9  ;;  %v2260_v54 = vsub.f32 %v8451_v34, %v5736_v9  ;;  %v8454_v18 = vld [vmem:[#allocation13_spill] sm:$0xff] }
 0x296   : > { %v2261_v27 = vsub.f32 %v8452_v46, %v5736_v9  ;;  %v2262_v49 = vsub.f32 %v8453_v24, %v5736_v9  ;;  %v2263_v30 = vsub.f32 %v8454_v18, %v5736_v9 }
 0x29c   : > { %v5910_v21 = vpop.eup %3698 }
 0x29d   : > { %v5937_v42 = vmul.f32 %v5910_v21, %v2219_v59  ;;  %v5940_v61 = vmul.f32 %v5910_v21, %v2220_v62  ;;  %v5943_v20 = vmul.f32 %v5910_v21, %v2221_v33  ;;  %v5946_v34 = vmul.f32 %v5910_v21, %v2222_v5 }
 0x29e   : > { %v5949_v46 = vmul.f32 %v5910_v21, %v2223_v48  ;;  %v5952_v24 = vmul.f32 %v5910_v21, %v2224_v22  ;;  %v5955_v18 = vmul.f32 %v5910_v21, %v2225_v25  ;;  %v5958_v59 = vmul.f32 %v5910_v21, %v2226_v0 }
 0x29f   : > { %8455 = vst [vmem:[#allocation14_spill] sm:$0xff] %v5937_v42  ;;  %8456 = vst [vmem:[#allocation15_spill] sm:$0xff] %v5940_v61  ;;  %v5961_v62 = vmul.f32 %v5910_v21, %v2227_v40  ;;  %v5964_v33 = vmul.f32 %v5910_v21, %v2228_v36  ;;  %v5967_v5 = vmul.f32 %v5910_v21, %v2229_v15 }
 0x2a0   : > { %8457 = vst [vmem:[#allocation16_spill] sm:$0xff] %v5943_v20  ;;  %8458 = vst [vmem:[#allocation17_spill] sm:$0xff] %v5946_v34  ;;  %v5970_v48 = vmul.f32 %v5910_v21, %v2230_v4  ;;  %v5973_v22 = vmul.f32 %v5910_v21, %v2231_v11  ;;  %v5976_v25 = vmul.f32 %v5910_v21, %v2232_v1 }
 0x2a1   : > { %8459 = vst [vmem:[#allocation18_spill] sm:$0xff] %v5949_v46  ;;  %8460 = vst [vmem:[#allocation21_spill] sm:$0xff] %v5952_v24  ;;  %v5979_v0 = vmul.f32 %v5910_v21, %v2233_v8  ;;  %v5982_v40 = vmul.f32 %v5910_v21, %v2234_v60  ;;  %v5985_v36 = vmul.f32 %v5910_v21, %v2235_v47 }
 0x2a2   : > { %8461 = vst [vmem:[#allocation24_spill] sm:$0xff] %v5955_v18  ;;  %8462 = vst [vmem:[#allocation27_spill] sm:$0xff] %v5958_v59  ;;  %v5988_v15 = vmul.f32 %v5910_v21, %v2236_v56  ;;  %v5991_v4 = vmul.f32 %v5910_v21, %v2237_v63  ;;  %v5994_v11 = vmul.f32 %v5910_v21, %v2238_v58 }
 0x2a3   : > { %8463 = vst [vmem:[#allocation70_spill] sm:$0xff] %v5961_v62  ;;  %8464 = vst [vmem:[#allocation20_spill] sm:$0xff] %v5964_v33  ;;  %v5997_v1 = vmul.f32 %v5910_v21, %v2239_v32  ;;  %v6000_v8 = vmul.f32 %v5910_v21, %v2240_v26  ;;  %v6003_v60 = vmul.f32 %v5910_v21, %v2241_v28 }
 0x2a4   : > { %8465 = vst [vmem:[#allocation19_spill] sm:$0xff] %v5967_v5  ;;  %8466 = vst [vmem:[#allocation22_spill] sm:$0xff] %v5970_v48  ;;  %v6006_v47 = vmul.f32 %v5910_v21, %v2242_v23  ;;  %v6009_v56 = vmul.f32 %v5910_v21, %v2243_v17  ;;  %v6012_v63 = vmul.f32 %v5910_v21, %v2244_v35 }
 0x2a5   : > { %8467 = vst [vmem:[#allocation23_spill] sm:$0xff] %v5973_v22  ;;  %8468 = vst [vmem:[#allocation25_spill] sm:$0xff] %v5976_v25  ;;  %v6015_v58 = vmul.f32 %v5910_v21, %v2245_v41  ;;  %v6018_v32 = vmul.f32 %v5910_v21, %v2246_v29  ;;  %v6021_v26 = vmul.f32 %v5910_v21, %v2247_v44 }
 0x2a6   : > { %8469 = vst [vmem:[#allocation26_spill] sm:$0xff] %v5979_v0  ;;  %8470 = vst [vmem:[#allocation55_spill] sm:$0xff] %v5982_v40  ;;  %v6024_v28 = vmul.f32 %v5910_v21, %v2248_v53  ;;  %v6027_v23 = vmul.f32 %v5910_v21, %v2249_v55  ;;  %v6030_v17 = vmul.f32 %v5910_v21, %v2250_v2 }
 0x2a7   : > { %8471 = vst [vmem:[#allocation67_spill] sm:$0xff] %v5985_v36  ;;  %8472 = vst [vmem:[#allocation68_spill] sm:$0xff] %v5988_v15  ;;  %v6033_v35 = vmul.f32 %v5910_v21, %v2251_v13  ;;  %v6036_v41 = vmul.f32 %v5910_v21, %v2252_v3  ;;  %v6039_v29 = vmul.f32 %v5910_v21, %v2253_v19  ;;  %v8534_v15 = vld [vmem:[#allocation8_spill] sm:$0xff]  ;;  %v8535_v36 = vld [vmem:[#allocation9_spill] sm:$0xff] }
 0x2a8   : > { %8473 = vst [vmem:[#allocation69_spill] sm:$0xff] %v5991_v4  ;;  %8474 = vst [vmem:[#allocation10_spill] sm:$0xff] %v5994_v11  ;;  %v6042_v44 = vmul.f32 %v5910_v21, %v2254_v31  ;;  %v6045_v53 = vmul.f32 %v5910_v21, %v2255_v43  ;;  %v6048_v55 = vmul.f32 %v5910_v21, %v2256_v57  ;;  %v8499_v57 = vld [vmem:[#allocation75_spill] sm:$0xff]  ;;  %v8532_v11 = vld [vmem:[#allocation6_spill] sm:$0xff] }
 0x2a9   : > { %8475 = vst [vmem:[#allocation11_spill] sm:$0xff] %v5997_v1  ;;  %8476 = vst [vmem:[#allocation12_spill] sm:$0xff] %v6000_v8  ;;  %v6051_v2 = vmul.f32 %v5910_v21, %v2257_v10  ;;  %v6054_v13 = vmul.f32 %v5910_v21, %v2258_v52  ;;  %v6057_v3 = vmul.f32 %v5910_v21, %v2259_v16  ;;  %v8500_v10 = vld [vmem:[#allocation76_spill] sm:$0xff]  ;;  %v8501_v52 = vld [vmem:[#allocation77_spill] sm:$0xff] }
 0x2aa   : > { %8477 = vst [vmem:[#allocation13_spill] sm:$0xff] %v6003_v60  ;;  %8478 = vst [vmem:[#allocation103_spill] sm:$0xff] %v6006_v47  ;;  %v6060_v19 = vmul.f32 %v5910_v21, %v2260_v54  ;;  %v6063_v31 = vmul.f32 %v5910_v21, %v2261_v27  ;;  %v6066_v43 = vmul.f32 %v5910_v21, %v2262_v49  ;;  %v8503_v54 = vld [vmem:[#allocation78_spill] sm:$0xff]  ;;  %v8504_v27 = vld [vmem:[#allocation79_spill] sm:$0xff] }
 0x2ab   : > { %8479 = vst [vmem:[#allocation104_spill] sm:$0xff] %v6009_v56  ;;  %8480 = vst [vmem:[#allocation105_spill] sm:$0xff] %v6012_v63  ;;  %v6075_v16 = vmul.f32 %v5910_v21, %v2263_v30  ;;  %v8505_v49 = vld [vmem:[#allocation80_spill] sm:$0xff]  ;;  %v8526_v63 = vld [vmem:[#allocation101_spill] sm:$0xff]  ;;  %v8536_v40 = vsub.f32 %v8399_v45, %v5736_v9  ;;  %v8537_v25 = vsub.f32 %v8400_v38, %v5736_v9 }
 0x2ac   : > { %8481 = vst [vmem:[#allocation106_spill] sm:$0xff] %v6015_v58  ;;  %8482 = vst [vmem:[#allocation107_spill] sm:$0xff] %v6018_v32  ;;  %v8509_v30 = vld [vmem:[#allocation84_spill] sm:$0xff]  ;;  %v8524_v32 = vld [vmem:[#allocation99_spill] sm:$0xff]  ;;  %v8538_v48 = vsub.f32 %v8401_v7, %v5736_v9  ;;  %v8539_v33 = vsub.f32 %v8402_v37, %v5736_v9 }
 0x2ad   : > { %8483 = vst [vmem:[#allocation108_spill] sm:$0xff] %v6021_v26  ;;  %8484 = vst [vmem:[#allocation109_spill] sm:$0xff] %v6024_v28  ;;  %v8522_v28 = vld [vmem:[#allocation97_spill] sm:$0xff]  ;;  %v8523_v26 = vld [vmem:[#allocation98_spill] sm:$0xff]  ;;  %v6147_v0 = vmul.f32 %v5910_v21, %v8536_v40  ;;  %v6153_v22 = vmul.f32 %v5910_v21, %v8537_v25  ;;  %v8540_v40 = vsub.f32 %v8403_v14, %v5736_v9 }
 0x2ae   : > { %8485 = vst [vmem:[#allocation110_spill] sm:$0xff] %v6027_v23  ;;  %8486 = vst [vmem:[#allocation111_spill] sm:$0xff] %v6030_v17  ;;  %v8520_v17 = vld [vmem:[#allocation95_spill] sm:$0xff]  ;;  %v8521_v23 = vld [vmem:[#allocation96_spill] sm:$0xff]  ;;  %v6159_v5 = vmul.f32 %v5910_v21, %v8538_v48  ;;  %v6165_v45 = vmul.f32 %v5910_v21, %v8539_v33  ;;  %v8541_v25 = vsub.f32 %v8404_v39, %v5736_v9 }
 0x2af   : > { %8487 = vst [vmem:[#allocation112_spill] sm:$0xff] %v6033_v35  ;;  %8488 = vst [vmem:[#allocation113_spill] sm:$0xff] %v6036_v41  ;;  %v8518_v41 = vld [vmem:[#allocation93_spill] sm:$0xff]  ;;  %v8519_v35 = vld [vmem:[#allocation94_spill] sm:$0xff]  ;;  %v6171_v38 = vmul.f32 %v5910_v21, %v8540_v40  ;;  %vm2399_vm7 = vcmp.gt.f32.partialorder %v6147_v0, 0.0  ;;  %vm2400_vm8 = vcmp.gt.f32.partialorder %v6153_v22, 0.0 }
 0x2b0   : > { %8489 = vst [vmem:[#allocation114_spill] sm:$0xff] %v6039_v29  ;;  %8490 = vst [vmem:[#allocation115_spill] sm:$0xff] %v6042_v44  ;;  %v8515_v44 = vld [vmem:[#allocation89_spill] sm:$0xff]  ;;  %v8517_v29 = vld [vmem:[#allocation92_spill] sm:$0xff]  ;;  %v6177_v7 = vmul.f32 %v5910_v21, %v8541_v25  ;;  %vm2401_vm9 = vcmp.gt.f32.partialorder %v6159_v5, 0.0  ;;  %vm2402_vm10 = vcmp.gt.f32.partialorder %v6165_v45, 0.0 }
 0x2b1   : > { %8491 = vst [vmem:[#allocation116_spill] sm:$0xff] %v6045_v53  ;;  %8492 = vst [vmem:[#allocation117_spill] sm:$0xff] %v6048_v55  ;;  %v8506_v55 = vld [vmem:[#allocation81_spill] sm:$0xff]  ;;  %v8514_v53 = vld [vmem:[#allocation91_spill] sm:$0xff]  ;;  %vm2403_vm11 = vcmp.gt.f32.partialorder %v6171_v38, 0.0 }
 0x2b2   : > { %8493 = vst [vmem:[#allocation118_spill] sm:$0xff] %v6051_v2  ;;  %8494 = vst [vmem:[#allocation119_spill] sm:$0xff] %v6054_v13  ;;  %v8507_v2 = vld [vmem:[#allocation82_spill] sm:$0xff]  ;;  %v8508_v13 = vld [vmem:[#allocation83_spill] sm:$0xff]  ;;  %vm2404_vm12 = vcmp.gt.f32.partialorder %v6177_v7, 0.0 }
 0x2b3   : > { %8495 = vst [vmem:[#allocation120_spill] sm:$0xff] %v6057_v3  ;;  %8496 = vst [vmem:[#allocation121_spill] sm:$0xff] %v6060_v19  ;;  %v8510_v19 = vld [vmem:[#allocation85_spill] sm:$0xff]  ;;  %v8513_v3 = vld [vmem:[#allocation88_spill] sm:$0xff] }
 0x2b4   : > { %8497 = vst [vmem:[#allocation122_spill] sm:$0xff] %v6063_v31  ;;  %8498 = vst [vmem:[#allocation123_spill] sm:$0xff] %v6066_v43  ;;  %v8511_v31 = vld [vmem:[#allocation86_spill] sm:$0xff]  ;;  %v8512_v43 = vld [vmem:[#allocation87_spill] sm:$0xff] }
 0x2b5   : > { %8502 = vst [vmem:[#allocation75_spill] sm:$0xff] %v6075_v16  ;;  %v8516_v16 = vld [vmem:[#allocation90_spill] sm:$0xff]  ;;  %v8525_v58 = vld [vmem:[#allocation100_spill] sm:$0xff]  ;;  %v8529_v60 = vld [vmem:[#allocation3_spill] sm:$0xff] }
 0x2b6   : > { %v8527_v56 = vld [vmem:[#allocation102_spill] sm:$0xff]  ;;  %v8530_v8 = vld [vmem:[#allocation4_spill] sm:$0xff]  ;;  %v8531_v1 = vld [vmem:[#allocation5_spill] sm:$0xff] }
 0x2b7   : > { %v8528_v47 = vld [vmem:[#allocation2_spill] sm:$0xff]  ;;  %v8533_v4 = vld [vmem:[#allocation7_spill] sm:$0xff]  ;;  %v8542_v48 = vld [vmem:[#allocation28_spill] sm:$0xff] }
 0x2b8   : > { %v8543_v62 = vsub.f32 %v8542_v48, %v5736_v9  ;;  %v8544_v33 = vld [vmem:[#allocation29_spill] sm:$0xff]  ;;  %v8546_v40 = vld [vmem:[#allocation30_spill] sm:$0xff]  ;;  %v8548_v25 = vld [vmem:[#allocation31_spill] sm:$0xff] }
 0x2b9   : > { %v8545_v59 = vsub.f32 %v8544_v33, %v5736_v9  ;;  %v8547_v18 = vsub.f32 %v8546_v40, %v5736_v9  ;;  %v8549_v24 = vsub.f32 %v8548_v25, %v5736_v9 }
 0x2ba   : > { %v6183_v37 = vmul.f32 %v5910_v21, %v8543_v62  ;;  %v8550_v62 = vld [vmem:[#allocation32_spill] sm:$0xff] }
 0x2bb   : > { %v6189_v14 = vmul.f32 %v5910_v21, %v8545_v59  ;;  %v6195_v39 = vmul.f32 %v5910_v21, %v8547_v18  ;;  %v6201_v48 = vmul.f32 %v5910_v21, %v8549_v24  ;;  %v8551_v46 = vsub.f32 %v8550_v62, %v5736_v9  ;;  %v8552_v59 = vld [vmem:[#allocation33_spill] sm:$0xff]  ;;  %v8555_v18 = vld [vmem:[#allocation34_spill] sm:$0xff]  ;;  %v8558_v24 = vld [vmem:[#allocation35_spill] sm:$0xff] }
 0x2bc   : > { %v8553_v34 = vsub.f32 %v8552_v59, %v5736_v9  ;;  %v8556_v20 = vsub.f32 %v8555_v18, %v5736_v9  ;;  %v8559_v61 = vsub.f32 %v8558_v24, %v5736_v9  ;;  %vm2405_vm13 = vcmp.gt.f32.partialorder %v6183_v37, 0.0 }
 0x2bd   : > { %v6207_v33 = vmul.f32 %v5910_v21, %v8551_v46  ;;  %v8561_v46 = vld [vmem:[#allocation36_spill] sm:$0xff]  ;;  %vm2406_vm14 = vcmp.gt.f32.partialorder %v6189_v14, 0.0  ;;  %vm2407_vm15 = vcmp.gt.f32.partialorder %v6195_v39, 0.0  ;;  %vm2408_vm0 = vcmp.gt.f32.partialorder %v6201_v48, 0.0 }
 0x2be   : > { %v6213_v40 = vmul.f32 %v5910_v21, %v8553_v34  ;;  %v6219_v25 = vmul.f32 %v5910_v21, %v8556_v20  ;;  %v6225_v62 = vmul.f32 %v5910_v21, %v8559_v61  ;;  %v8562_v42 = vsub.f32 %v8561_v46, %v5736_v9  ;;  %v8564_v34 = vld [vmem:[#allocation37_spill] sm:$0xff]  ;;  %v8567_v20 = vld [vmem:[#allocation38_spill] sm:$0xff]  ;;  %v8570_v61 = vld [vmem:[#allocation39_spill] sm:$0xff] }
 0x2bf   : > { %vm2409_vm1 = vcmp.gt.f32.partialorder %v6207_v33, 0.0 }
 0x2c0   : > { %8554 = vst [vmem:[#allocation76_spill] sm:$0xff] %v6213_v40  ;;  %8557 = vst [vmem:[#allocation77_spill] sm:$0xff] %v6219_v25  ;;  %v6231_v59 = vmul.f32 %v5910_v21, %v8562_v42  ;;  %v8565_v40 = vsub.f32 %v8564_v34, %v5736_v9  ;;  %v8568_v25 = vsub.f32 %v8567_v20, %v5736_v9  ;;  %v8573_v42 = vld [vmem:[#allocation40_spill] sm:$0xff] }
 0x2c1   : > { %8560 = vst [vmem:[#allocation78_spill] sm:$0xff] %v6225_v62  ;;  %v8571_v62 = vsub.f32 %v8570_v61, %v5736_v9 }
 0x2c2   : > { %8563 = vst [vmem:[#allocation79_spill] sm:$0xff] %v6231_v59  ;;  %v6237_v18 = vmul.f32 %v5910_v21, %v8565_v40  ;;  %v6243_v24 = vmul.f32 %v5910_v21, %v8568_v25  ;;  %v8574_v59 = vsub.f32 %v8573_v42, %v5736_v9  ;;  %v8576_v40 = vld [vmem:[#allocation41_spill] sm:$0xff]  ;;  %v8579_v25 = vld [vmem:[#allocation42_spill] sm:$0xff] }
 0x2c3   : > { %v6249_v46 = vmul.f32 %v5910_v21, %v8571_v62  ;;  %v8582_v62 = vld [vmem:[#allocation43_spill] sm:$0xff] }
 0x2c4   : > { %8566 = vst [vmem:[#allocation80_spill] sm:$0xff] %v6237_v18  ;;  %8569 = vst [vmem:[#allocation81_spill] sm:$0xff] %v6243_v24  ;;  %v6255_v34 = vmul.f32 %v5910_v21, %v8574_v59  ;;  %v8577_v18 = vsub.f32 %v8576_v40, %v5736_v9  ;;  %v8580_v24 = vsub.f32 %v8579_v25, %v5736_v9  ;;  %v8585_v59 = vld [vmem:[#allocation44_spill] sm:$0xff] }
 0x2c5   : > { %8572 = vst [vmem:[#allocation82_spill] sm:$0xff] %v6249_v46  ;;  %v8583_v46 = vsub.f32 %v8582_v62, %v5736_v9 }
 0x2c6   : > { %8575 = vst [vmem:[#allocation83_spill] sm:$0xff] %v6255_v34  ;;  %v6261_v20 = vmul.f32 %v5910_v21, %v8577_v18  ;;  %v6267_v61 = vmul.f32 %v5910_v21, %v8580_v24  ;;  %v8586_v34 = vsub.f32 %v8585_v59, %v5736_v9  ;;  %v8588_v18 = vld [vmem:[#allocation45_spill] sm:$0xff]  ;;  %v8591_v24 = vld [vmem:[#allocation46_spill] sm:$0xff] }
 0x2c7   : > { %v6273_v42 = vmul.f32 %v5910_v21, %v8583_v46  ;;  %v8594_v46 = vld [vmem:[#allocation47_spill] sm:$0xff] }
 0x2c8   : > { %8578 = vst [vmem:[#allocation84_spill] sm:$0xff] %v6261_v20  ;;  %8581 = vst [vmem:[#allocation85_spill] sm:$0xff] %v6267_v61  ;;  %v6279_v40 = vmul.f32 %v5910_v21, %v8586_v34  ;;  %v8589_v20 = vsub.f32 %v8588_v18, %v5736_v9  ;;  %v8592_v61 = vsub.f32 %v8591_v24, %v5736_v9  ;;  %v8597_v34 = vld [vmem:[#allocation48_spill] sm:$0xff] }
 0x2c9   : > { %8584 = vst [vmem:[#allocation86_spill] sm:$0xff] %v6273_v42  ;;  %v8595_v42 = vsub.f32 %v8594_v46, %v5736_v9 }
 0x2ca   : > { %8587 = vst [vmem:[#allocation87_spill] sm:$0xff] %v6279_v40  ;;  %v6285_v25 = vmul.f32 %v5910_v21, %v8589_v20  ;;  %v6291_v62 = vmul.f32 %v5910_v21, %v8592_v61  ;;  %v8598_v40 = vsub.f32 %v8597_v34, %v5736_v9  ;;  %v8600_v20 = vld [vmem:[#allocation49_spill] sm:$0xff]  ;;  %v8603_v61 = vld [vmem:[#allocation50_spill] sm:$0xff] }
 0x2cb   : > { %v6297_v59 = vmul.f32 %v5910_v21, %v8595_v42  ;;  %v8606_v42 = vld [vmem:[#allocation51_spill] sm:$0xff] }
 0x2cc   : > { %8590 = vst [vmem:[#allocation88_spill] sm:$0xff] %v6285_v25  ;;  %8593 = vst [vmem:[#allocation91_spill] sm:$0xff] %v6291_v62  ;;  %v6303_v18 = vmul.f32 %v5910_v21, %v8598_v40  ;;  %v8601_v25 = vsub.f32 %v8600_v20, %v5736_v9  ;;  %v8604_v62 = vsub.f32 %v8603_v61, %v5736_v9  ;;  %v8608_v40 = vld [vmem:[#allocation52_spill] sm:$0xff] }
 0x2cd   : > { %8596 = vst [vmem:[#allocation89_spill] sm:$0xff] %v6297_v59  ;;  %v8607_v59 = vsub.f32 %v8606_v42, %v5736_v9 }
 0x2ce   : > { %8599 = vst [vmem:[#allocation90_spill] sm:$0xff] %v6303_v18  ;;  %v6309_v24 = vmul.f32 %v5910_v21, %v8601_v25  ;;  %v6315_v46 = vmul.f32 %v5910_v21, %v8604_v62  ;;  %v8609_v18 = vsub.f32 %v8608_v40, %v5736_v9  ;;  %v8611_v25 = vld [vmem:[#allocation53_spill] sm:$0xff]  ;;  %v8614_v62 = vld [vmem:[#allocation54_spill] sm:$0xff] }
 0x2cf   : > { %v6321_v34 = vmul.f32 %v5910_v21, %v8607_v59  ;;  %v8617_v59 = vsub.f32 %v8432_v51, %v5736_v9 }
 0x2d0   : > { %8602 = vst [vmem:[#allocation92_spill] sm:$0xff] %v6309_v24  ;;  %8605 = vst [vmem:[#allocation93_spill] sm:$0xff] %v6315_v46  ;;  %v6327_v20 = vmul.f32 %v5910_v21, %v8609_v18  ;;  %v8612_v24 = vsub.f32 %v8611_v25, %v5736_v9  ;;  %v8615_v46 = vsub.f32 %v8614_v62, %v5736_v9  ;;  %v8619_v18 = vld [vmem:[#allocation56_spill] sm:$0xff] }
 0x2d1   : > { %v6345_v40 = vmul.f32 %v5910_v21, %v8617_v59  ;;  %v8628_v59 = vld [vmem:[#allocation59_spill] sm:$0xff] }
 0x2d2   : > { %8610 = vst [vmem:[#allocation94_spill] sm:$0xff] %v6327_v20  ;;  %v6333_v61 = vmul.f32 %v5910_v21, %v8612_v24  ;;  %v6339_v42 = vmul.f32 %v5910_v21, %v8615_v46  ;;  %v8620_v20 = vsub.f32 %v8619_v18, %v5736_v9  ;;  %v8622_v24 = vld [vmem:[#allocation57_spill] sm:$0xff]  ;;  %v8625_v46 = vld [vmem:[#allocation58_spill] sm:$0xff] }
 0x2d3   : > { %8618 = vst [vmem:[#allocation97_spill] sm:$0xff] %v6345_v40  ;;  %v8629_v40 = vsub.f32 %v8628_v59, %v5736_v9 }
 0x2d4   : > { %8613 = vst [vmem:[#allocation95_spill] sm:$0xff] %v6333_v61  ;;  %8616 = vst [vmem:[#allocation96_spill] sm:$0xff] %v6339_v42  ;;  %v6351_v25 = vmul.f32 %v5910_v21, %v8620_v20  ;;  %v8623_v61 = vsub.f32 %v8622_v24, %v5736_v9  ;;  %v8626_v42 = vsub.f32 %v8625_v46, %v5736_v9  ;;  %v8631_v20 = vld [vmem:[#allocation60_spill] sm:$0xff] }
 0x2d5   : > { %v6369_v18 = vmul.f32 %v5910_v21, %v8629_v40  ;;  %v8640_v40 = vld [vmem:[#allocation63_spill] sm:$0xff] }
 0x2d6   : > { %8621 = vst [vmem:[#allocation98_spill] sm:$0xff] %v6351_v25  ;;  %v6357_v62 = vmul.f32 %v5910_v21, %v8623_v61  ;;  %v6363_v51 = vmul.f32 %v5910_v21, %v8626_v42  ;;  %v8632_v25 = vsub.f32 %v8631_v20, %v5736_v9  ;;  %v8634_v61 = vld [vmem:[#allocation61_spill] sm:$0xff]  ;;  %v8637_v42 = vld [vmem:[#allocation62_spill] sm:$0xff] }
 0x2d7   : > { %8630 = vst [vmem:[#allocation101_spill] sm:$0xff] %v6369_v18  ;;  %v8641_v18 = vsub.f32 %v8640_v40, %v5736_v9 }
 0x2d8   : > { %8624 = vst [vmem:[#allocation99_spill] sm:$0xff] %v6357_v62  ;;  %8627 = vst [vmem:[#allocation100_spill] sm:$0xff] %v6363_v51  ;;  %v6375_v24 = vmul.f32 %v5910_v21, %v8632_v25  ;;  %v8635_v62 = vsub.f32 %v8634_v61, %v5736_v9  ;;  %v8638_v51 = vsub.f32 %v8637_v42, %v5736_v9  ;;  %v8642_v25 = vld [vmem:[#allocation64_spill] sm:$0xff] }
 0x2d9   : > { %v6393_v20 = vmul.f32 %v5910_v21, %v8641_v18  ;;  %v8649_v18 = vsub.f32 %v8444_v12, %v5736_v9 }
 0x2da   : > { %8633 = vst [vmem:[#allocation102_spill] sm:$0xff] %v6375_v24  ;;  %v6381_v46 = vmul.f32 %v5910_v21, %v8635_v62  ;;  %v6387_v59 = vmul.f32 %v5910_v21, %v8638_v51  ;;  %v8643_v24 = vsub.f32 %v8642_v25, %v5736_v9  ;;  %v8644_v62 = vld [vmem:[#allocation65_spill] sm:$0xff]  ;;  %v8646_v51 = vld [vmem:[#allocation66_spill] sm:$0xff] }
 0x2db   : > { %v6417_v25 = vmul.f32 %v5910_v21, %v8649_v18  ;;  %v8657_v18 = vld [vmem:[#allocation72_spill] sm:$0xff] }
 0x2dc   : > { %8636 = vst [vmem:[#allocation2_spill] sm:$0xff] %v6381_v46  ;;  %8639 = vst [vmem:[#allocation3_spill] sm:$0xff] %v6387_v59  ;;  %v6399_v61 = vmul.f32 %v5910_v21, %v8643_v24  ;;  %v8645_v46 = vsub.f32 %v8644_v62, %v5736_v9  ;;  %v8647_v59 = vsub.f32 %v8646_v51, %v5736_v9 }
 0x2dd   : > { %8650 = vst [vmem:[#allocation5_spill] sm:$0xff] %v6417_v25  ;;  %v8651_v24 = vsub.f32 %v8445_v6, %v5736_v9  ;;  %v8658_v25 = vsub.f32 %v8657_v18, %v5736_v9 }
 0x2de   : > { %v6405_v42 = vmul.f32 %v5910_v21, %v8645_v46  ;;  %v6411_v40 = vmul.f32 %v5910_v21, %v8647_v59  ;;  %v8653_v46 = vsub.f32 %v8446_v50, %v5736_v9  ;;  %v8655_v59 = vld [vmem:[#allocation71_spill] sm:$0xff] }
 0x2df   : > { %v6423_v62 = vmul.f32 %v5910_v21, %v8651_v24  ;;  %v6441_v6 = vmul.f32 %v5910_v21, %v8658_v25  ;;  %v8659_v24 = vld [vmem:[#allocation73_spill] sm:$0xff]  ;;  %v8664_v25 = vsub.f32 %v8500_v10, %v5736_v9 }
 0x2e0   : > { %8648 = vst [vmem:[#allocation4_spill] sm:$0xff] %v6411_v40  ;;  %v6429_v51 = vmul.f32 %v5910_v21, %v8653_v46  ;;  %v8656_v40 = vsub.f32 %v8655_v59, %v5736_v9  ;;  %v8661_v46 = vld [vmem:[#allocation74_spill] sm:$0xff]  ;;  %vm8971_vm6 = vcmp.gt.f32.partialorder %v6405_v42, 0.0 }
 0x2e1   : > { %8652 = vst [vmem:[#allocation6_spill] sm:$0xff] %v6423_v62  ;;  %v8660_v62 = vsub.f32 %v8659_v24, %v5736_v9  ;;  %v6465_v24 = vmul.f32 %v5910_v21, %v8664_v25  ;;  %v8668_v25 = vsub.f32 %v8505_v49, %v5736_v9 }
 0x2e2   : > { %8654 = vst [vmem:[#allocation7_spill] sm:$0xff] %v6429_v51  ;;  %v6435_v12 = vmul.f32 %v5910_v21, %v8656_v40  ;;  %v8662_v51 = vsub.f32 %v8661_v46, %v5736_v9  ;;  %v8663_v40 = vsub.f32 %v8499_v57, %v5736_v9 }
 0x2e3   : > { %v6447_v50 = vmul.f32 %v5910_v21, %v8660_v62  ;;  %v8665_v62 = vsub.f32 %v8501_v52, %v5736_v9  ;;  %v6489_v52 = vmul.f32 %v5910_v21, %v8668_v25  ;;  %v8672_v25 = vsub.f32 %v8509_v30, %v5736_v9 }
 0x2e4   : > { %v6453_v59 = vmul.f32 %v5910_v21, %v8662_v51  ;;  %v6459_v18 = vmul.f32 %v5910_v21, %v8663_v40  ;;  %v8666_v51 = vsub.f32 %v8503_v54, %v5736_v9  ;;  %v8667_v40 = vsub.f32 %v8504_v27, %v5736_v9 }
 0x2e5   : > { %v6471_v46 = vmul.f32 %v5910_v21, %v8665_v62  ;;  %v8669_v62 = vsub.f32 %v8506_v55, %v5736_v9  ;;  %v6513_v55 = vmul.f32 %v5910_v21, %v8672_v25  ;;  %v8676_v25 = vsub.f32 %v8513_v3, %v5736_v9 }
 0x2e6   : > { %v6477_v57 = vmul.f32 %v5910_v21, %v8666_v51  ;;  %v6483_v10 = vmul.f32 %v5910_v21, %v8667_v40  ;;  %v8670_v51 = vsub.f32 %v8507_v2, %v5736_v9  ;;  %v8671_v40 = vsub.f32 %v8508_v13, %v5736_v9 }
 0x2e7   : > { %v6495_v54 = vmul.f32 %v5910_v21, %v8669_v62  ;;  %v8673_v62 = vsub.f32 %v8510_v19, %v5736_v9  ;;  %v6537_v19 = vmul.f32 %v5910_v21, %v8676_v25  ;;  %v8684_v25 = vsub.f32 %v8517_v29, %v5736_v9 }
 0x2e8   : > { %v6501_v27 = vmul.f32 %v5910_v21, %v8670_v51  ;;  %v6507_v49 = vmul.f32 %v5910_v21, %v8671_v40  ;;  %v8674_v51 = vsub.f32 %v8511_v31, %v5736_v9  ;;  %v8675_v40 = vsub.f32 %v8512_v43, %v5736_v9 }
 0x2e9   : > { %v6519_v2 = vmul.f32 %v5910_v21, %v8673_v62  ;;  %8677 = vst [vmem:[#allocation8_spill] sm:$0xff] %v6537_v19  ;;  %v8678_v62 = vsub.f32 %v8514_v53, %v5736_v9  ;;  %v6561_v53 = vmul.f32 %v5910_v21, %v8684_v25  ;;  %v8692_v25 = vsub.f32 %v8521_v23, %v5736_v9  ;;  %v8747_v19 = vld [vmem:[#allocation93_spill] sm:$0xff] }
 0x2ea   : > { %v6525_v13 = vmul.f32 %v5910_v21, %v8674_v51  ;;  %v6531_v30 = vmul.f32 %v5910_v21, %v8675_v40  ;;  %v8680_v51 = vsub.f32 %v8515_v44, %v5736_v9  ;;  %v8682_v40 = vsub.f32 %v8516_v16, %v5736_v9 }
 0x2eb   : > { %v6543_v31 = vmul.f32 %v5910_v21, %v8678_v62  ;;  %8685 = vst [vmem:[#allocation30_spill] sm:$0xff] %v6561_v53  ;;  %v8686_v62 = vsub.f32 %v8518_v41, %v5736_v9  ;;  %v6585_v41 = vmul.f32 %v5910_v21, %v8692_v25  ;;  %v8700_v25 = vsub.f32 %v8525_v58, %v5736_v9  ;;  %v8735_v53 = vld [vmem:[#allocation87_spill] sm:$0xff] }
 0x2ec   : > { %v6549_v43 = vmul.f32 %v5910_v21, %v8680_v51  ;;  %v6555_v3 = vmul.f32 %v5910_v21, %v8682_v40  ;;  %v8688_v51 = vsub.f32 %v8519_v35, %v5736_v9  ;;  %v8690_v40 = vsub.f32 %v8520_v17, %v5736_v9 }
 0x2ed   : > { %8679 = vst [vmem:[#allocation9_spill] sm:$0xff] %v6543_v31  ;;  %v6567_v44 = vmul.f32 %v5910_v21, %v8686_v62  ;;  %8693 = vst [vmem:[#allocation34_spill] sm:$0xff] %v6585_v41  ;;  %v8694_v62 = vsub.f32 %v8522_v28, %v5736_v9  ;;  %v6609_v28 = vmul.f32 %v5910_v21, %v8700_v25  ;;  %v8730_v41 = vld [vmem:[#allocation84_spill] sm:$0xff]  ;;  %v8741_v31 = vld [vmem:[#allocation89_spill] sm:$0xff] }
 0x2ee   : > { %8681 = vst [vmem:[#allocation28_spill] sm:$0xff] %v6549_v43  ;;  %8683 = vst [vmem:[#allocation29_spill] sm:$0xff] %v6555_v3  ;;  %v6573_v16 = vmul.f32 %v5910_v21, %v8688_v51  ;;  %v6579_v29 = vmul.f32 %v5910_v21, %v8690_v40  ;;  %v8696_v51 = vsub.f32 %v8523_v26, %v5736_v9  ;;  %v6761_v3 = vmul.f32 0.2, %v8735_v53 }
 0x2ef   : > { %8687 = vst [vmem:[#allocation31_spill] sm:$0xff] %v6567_v44  ;;  %v6591_v35 = vmul.f32 %v5910_v21, %v8694_v62  ;;  %v8698_v40 = vsub.f32 %v8524_v32, %v5736_v9  ;;  %8701 = vst [vmem:[#allocation38_spill] sm:$0xff] %v6609_v28  ;;  %v8702_v62 = vsub.f32 %v8526_v63, %v5736_v9  ;;  %v8727_v28 = vld [vmem:[#allocation81_spill] sm:$0xff] }
 0x2f0   : > { %8689 = vst [vmem:[#allocation32_spill] sm:$0xff] %v6573_v16  ;;  %8691 = vst [vmem:[#allocation33_spill] sm:$0xff] %v6579_v29  ;;  %v6597_v17 = vmul.f32 %v5910_v21, %v8696_v51  ;;  %v8704_v51 = vsub.f32 %v8527_v56, %v5736_v9  ;;  %v8708_v25 = vsub.f32 %v8529_v60, %v5736_v9  ;;  %v6746_v29 = vmul.f32 0.2, %v8730_v41 }
 0x2f1   : > { %8695 = vst [vmem:[#allocation35_spill] sm:$0xff] %v6591_v35  ;;  %v6603_v23 = vmul.f32 %v5910_v21, %v8698_v40  ;;  %v6615_v26 = vmul.f32 %v5910_v21, %v8702_v62  ;;  %v8706_v40 = vsub.f32 %v8528_v47, %v5736_v9  ;;  %v8710_v62 = vsub.f32 %v8530_v8, %v5736_v9 }
 0x2f2   : > { %8697 = vst [vmem:[#allocation36_spill] sm:$0xff] %v6597_v17  ;;  %v6621_v32 = vmul.f32 %v5910_v21, %v8704_v51  ;;  %v6633_v63 = vmul.f32 %v5910_v21, %v8708_v25  ;;  %v8712_v51 = vsub.f32 %v8531_v1, %v5736_v9  ;;  %v8716_v25 = vsub.f32 %v8533_v4, %v5736_v9 }
 0x2f3   : > { %8699 = vst [vmem:[#allocation37_spill] sm:$0xff] %v6603_v23  ;;  %8703 = vst [vmem:[#allocation39_spill] sm:$0xff] %v6615_v26  ;;  %v6627_v58 = vmul.f32 %v5910_v21, %v8706_v40  ;;  %v6639_v56 = vmul.f32 %v5910_v21, %v8710_v62  ;;  %v8714_v40 = vsub.f32 %v8532_v11, %v5736_v9  ;;  %v2533_v4 = vmul.f32 0.2, %v6153_v22 }
 0x2f4   : > { %8705 = vst [vmem:[#allocation40_spill] sm:$0xff] %v6621_v32  ;;  %8709 = vst [vmem:[#allocation42_spill] sm:$0xff] %v6633_v63  ;;  %v6645_v47 = vmul.f32 %v5910_v21, %v8712_v51  ;;  %v6657_v8 = vmul.f32 %v5910_v21, %v8716_v25  ;;  %v8718_v62 = vsub.f32 %v8534_v15, %v5736_v9  ;;  %v2532_v15 = vmul.f32 0.2, %v6147_v0  ;;  %v8724_v63 = vld [vmem:[#allocation78_spill] sm:$0xff] }
 0x2f5   : > { %8707 = vst [vmem:[#allocation41_spill] sm:$0xff] %v6627_v58  ;;  %8711 = vst [vmem:[#allocation43_spill] sm:$0xff] %v6639_v56  ;;  %v6651_v60 = vmul.f32 %v5910_v21, %v8714_v40  ;;  %v8720_v11 = vsub.f32 %v8535_v36, %v5736_v9  ;;  %v2534_v40 = vmul.f32 0.2, %v6159_v5  ;;  %v2535_v25 = vmul.f32 0.2, %v6165_v45 }
 0x2f6   : > { %8713 = vst [vmem:[#allocation44_spill] sm:$0xff] %v6645_v47  ;;  %8717 = vst [vmem:[#allocation46_spill] sm:$0xff] %v6657_v8  ;;  %v6663_v1 = vmul.f32 %v5910_v21, %v8718_v62  ;;  %v2536_v62 = vmul.f32 0.2, %v6171_v38  ;;  %v2537_v8 = vmul.f32 0.2, %v6177_v7  ;;  %v2666_v56 = vsel %vm2400_vm8, %v6153_v22, %v2533_v4 }
 0x2f7   : > { %8715 = vst [vmem:[#allocation45_spill] sm:$0xff] %v6651_v60  ;;  %v6688_v51 = vmul.f32 %v5910_v21, %v8720_v11  ;;  %v2538_v60 = vmul.f32 0.2, %v6183_v37  ;;  %v2539_v9 = vmul.f32 0.2, %v6189_v14  ;;  %v2665_v21 = vsel %vm2399_vm7, %v6147_v0, %v2532_v15  ;;  %v8723_v36 = vld [vmem:[#allocation77_spill] sm:$0xff] }
 0x2f8   : > { %8719 = vst [vmem:[#allocation47_spill] sm:$0xff] %v6663_v1  ;;  %v8722_v1 = vld [vmem:[#allocation76_spill] sm:$0xff]  ;;  %vm2411_vm3 = vcmp.gt.f32.partialorder %v8723_v36, 0.0  ;;  %v2540_v11 = vmul.f32 0.2, %v6195_v39  ;;  %2798 = vst.msk [vmem:[%s6678_s5] sm:$0xff] %vm1449_vm5, %v2665_v21  ;;  %v2667_v32 = vsel %vm2401_vm9, %v6159_v5, %v2534_v40  ;;  %v2668_v17 = vsel %vm2402_vm10, %v6165_v45, %v2535_v25 }
 0x2f9   : > { %8721 = vst [vmem:[#allocation48_spill] sm:$0xff] %v6688_v51  ;;  %vm2410_vm2 = vcmp.gt.f32.partialorder %v8722_v1, 0.0  ;;  %v2541_v51 = vmul.f32 0.2, %v6201_v48  ;;  %v2542_v47 = vmul.f32 0.2, %v6207_v33  ;;  %v2669_v16 = vsel %vm2403_vm11, %v6171_v38, %v2536_v62 }
 0x2fa   : > { %vm2412_vm4 = vcmp.gt.f32.partialorder %v8724_v63, 0.0  ;;  %v2543_v58 = vmul.f32 0.2, %v8722_v1  ;;  %v6713_v0 = vmul.f32 0.2, %v8723_v36  ;;  %2799 = vst.msk [vmem:[%s6678_s5 + $0x8] sm:$0xff] %vm1449_vm5, %v2666_v56  ;;  %v2670_v43 = vsel %vm2404_vm12, %v6177_v7, %v2537_v8 }
 0x2fb   : > { %v6716_v15 = vmul.f32 0.2, %v8724_v63  ;;  %v8725_v22 = vld [vmem:[#allocation79_spill] sm:$0xff]  ;;  %v8726_v21 = vld [vmem:[#allocation80_spill] sm:$0xff]  ;;  %v6731_v23 = vmul.f32 0.2, %v8727_v28 }
 0x2fc   : > { %vm2413_vm7 = vcmp.gt.f32.partialorder %v8725_v22, 0.0  ;;  %v6725_v4 = vmul.f32 0.2, %v8725_v22  ;;  %v6728_v26 = vmul.f32 0.2, %v8726_v21  ;;  %2800 = vst.msk [vmem:[%s6678_s5 + $0x10] sm:$0xff] %vm1449_vm5, %v2667_v32 }
 0x2fd   : > { %vm2414_vm8 = vcmp.gt.f32.partialorder %v8726_v21, 0.0  ;;  %v8728_v5 = vld [vmem:[#allocation82_spill] sm:$0xff]  ;;  %v8729_v40 = vld [vmem:[#allocation83_spill] sm:$0xff]  ;;  %2801 = vst.msk [vmem:[%s6678_s5 + $0x18] sm:$0xff] %vm1449_vm5, %v2668_v17  ;;  %vm2415_vm9 = vcmp.gt.f32.partialorder %v8727_v28, 0.0  ;;  %v8731_v45 = vld [vmem:[#allocation85_spill] sm:$0xff] }
 0x2fe   : > { %v6740_v56 = vmul.f32 0.2, %v8728_v5  ;;  %v6743_v35 = vmul.f32 0.2, %v8729_v40  ;;  %v6755_v32 = vmul.f32 0.2, %v8731_v45 }
 0x2ff   : > { %v8733_v25 = vld [vmem:[#allocation86_spill] sm:$0xff]  ;;  %8736 = vst [vmem:[#allocation51_spill] sm:$0xff] %v6761_v3  ;;  %2802 = vst.msk [vmem:[%s6678_s5 + $0x20] sm:$0xff] %vm1449_vm5, %v2669_v16  ;;  %vm2416_vm10 = vcmp.gt.f32.partialorder %v8728_v5, 0.0  ;;  %v8737_v38 = vld [vmem:[#allocation88_spill] sm:$0xff]  ;;  %v2671_v3 = vsel %vm2405_vm13, %v6183_v37, %v2538_v60  ;;  %vm2417_vm11 = vcmp.gt.f32.partialorder %v8729_v40, 0.0 }
 0x300   : > { %8732 = vst [vmem:[#allocation49_spill] sm:$0xff] %v6755_v32  ;;  %v6758_v44 = vmul.f32 0.2, %v8733_v25  ;;  %v6770_v17 = vmul.f32 0.2, %v8737_v38  ;;  %v8739_v62 = vld [vmem:[#allocation91_spill] sm:$0xff] }
 0x301   : > { %v6773_v32 = vmul.f32 0.2, %v8739_v62  ;;  %2803 = vst.msk [vmem:[%s6678_s5 + $0x28] sm:$0xff] %vm1449_vm5, %v2670_v43  ;;  %v8743_v7 = vld [vmem:[#allocation90_spill] sm:$0xff]  ;;  %v8745_v8 = vld [vmem:[#allocation92_spill] sm:$0xff]  ;;  %2804 = vst.msk [vmem:[%s6678_s5 + $0x30] sm:$0xff] %vm1449_vm5, %v2671_v3 }
 0x302   : > { %8734 = vst [vmem:[#allocation50_spill] sm:$0xff] %v6758_v44  ;;  %8738 = vst [vmem:[#allocation52_spill] sm:$0xff] %v6770_v17  ;;  %v6776_v44 = vmul.f32 0.2, %v8741_v31  ;;  %v6785_v16 = vmul.f32 0.2, %v8743_v7 }
 0x303   : > { %8740 = vst [vmem:[#allocation53_spill] sm:$0xff] %v6773_v32  ;;  %v6788_v17 = vmul.f32 0.2, %v8745_v8  ;;  %v6791_v32 = vmul.f32 0.2, %v8747_v19  ;;  %vm2418_vm12 = vcmp.gt.f32.partialorder %v8730_v41, 0.0 }
 0x304   : > { %8742 = vst [vmem:[#allocation54_spill] sm:$0xff] %v6776_v44  ;;  %8744 = vst [vmem:[#allocation56_spill] sm:$0xff] %v6785_v16  ;;  %v2672_v44 = vsel %vm2406_vm14, %v6189_v14, %v2539_v9  ;;  %v6800_v37 = vmul.f32 0.2, %v6321_v34  ;;  %v8750_v43 = vld [vmem:[#allocation94_spill] sm:$0xff]  ;;  %v8752_v16 = vld [vmem:[#allocation95_spill] sm:$0xff] }
 0x305   : > { %8746 = vst [vmem:[#allocation57_spill] sm:$0xff] %v6788_v17  ;;  %8748 = vst [vmem:[#allocation58_spill] sm:$0xff] %v6791_v32  ;;  %v6803_v60 = vmul.f32 0.2, %v8750_v43  ;;  %v6806_v17 = vmul.f32 0.2, %v8752_v16  ;;  %v2673_v32 = vsel %vm2407_vm15, %v6195_v39, %v2540_v11 }
 0x306   : > { %8749 = vst [vmem:[#allocation59_spill] sm:$0xff] %v6800_v37  ;;  %2805 = vst.msk [vmem:[%s6678_s5 + $0x38] sm:$0xff] %vm1449_vm5, %v2672_v44  ;;  %vm2419_vm13 = vcmp.gt.f32.partialorder %v8731_v45, 0.0  ;;  %v8754_v14 = vld [vmem:[#allocation96_spill] sm:$0xff]  ;;  %v8756_v9 = vld [vmem:[#allocation97_spill] sm:$0xff]  ;;  %vm2420_vm14 = vcmp.gt.f32.partialorder %v8733_v25, 0.0 }
 0x307   : > { %8751 = vst [vmem:[#allocation60_spill] sm:$0xff] %v6803_v60  ;;  %8753 = vst [vmem:[#allocation61_spill] sm:$0xff] %v6806_v17  ;;  %v6815_v3 = vmul.f32 0.2, %v8754_v14  ;;  %v6818_v37 = vmul.f32 0.2, %v8756_v9  ;;  %v2674_v17 = vsel %vm2408_vm0, %v6201_v48, %v2541_v51 }
 0x308   : > { %v8758_v41 = vld [vmem:[#allocation98_spill] sm:$0xff]  ;;  %2806 = vst.msk [vmem:[%s6678_s5 + $0x40] sm:$0xff] %vm1449_vm5, %v2673_v32  ;;  %v8760_v39 = vld [vmem:[#allocation99_spill] sm:$0xff]  ;;  %v8762_v11 = vld [vmem:[#allocation100_spill] sm:$0xff]  ;;  %vm2421_vm15 = vcmp.gt.f32.partialorder %v8735_v53, 0.0  ;;  %vm2422_vm0 = vcmp.gt.f32.partialorder %v8737_v38, 0.0 }
 0x309   : > { %8755 = vst [vmem:[#allocation62_spill] sm:$0xff] %v6815_v3  ;;  %8757 = vst [vmem:[#allocation63_spill] sm:$0xff] %v6818_v37  ;;  %v6821_v60 = vmul.f32 0.2, %v8758_v41  ;;  %v6830_v44 = vmul.f32 0.2, %v8760_v39 }
 0x30a   : > { %v6833_v3 = vmul.f32 0.2, %v8762_v11  ;;  %v8764_v9 = vld [vmem:[#allocation101_spill] sm:$0xff]  ;;  %2807 = vst.msk [vmem:[%s6678_s5 + $0x48] sm:$0xff] %vm1449_vm5, %v2674_v17  ;;  %v8766_v48 = vld [vmem:[#allocation102_spill] sm:$0xff]  ;;  %v8769_v11 = vld [vmem:[#allocation3_spill] sm:$0xff] }
 0x30b   : > { %8759 = vst [vmem:[#allocation64_spill] sm:$0xff] %v6821_v60  ;;  %8761 = vst [vmem:[#allocation65_spill] sm:$0xff] %v6830_v44  ;;  %v6836_v37 = vmul.f32 0.2, %v8764_v9  ;;  %v2675_v60 = vsel %vm2409_vm1, %v6207_v33, %v2542_v47  ;;  %v6845_v51 = vmul.f32 0.2, %v8766_v48 }
 0x30c   : > { %8763 = vst [vmem:[#allocation66_spill] sm:$0xff] %v6833_v3  ;;  %v8767_v32 = vld [vmem:[#allocation2_spill] sm:$0xff]  ;;  %v6851_v3 = vmul.f32 0.2, %v8769_v11  ;;  %2808 = vst.msk [vmem:[%s6678_s5 + $0x50] sm:$0xff] %vm1449_vm5, %v2675_v60  ;;  %vm2423_vm1 = vcmp.gt.f32.partialorder %v8739_v62, 0.0 }
 0x30d   : > { %8765 = vst [vmem:[#allocation71_spill] sm:$0xff] %v6836_v37  ;;  %v6848_v44 = vmul.f32 0.2, %v8767_v32  ;;  %v2676_v37 = vsel %vm2410_vm2, %v8722_v1, %v2543_v58  ;;  %v6860_v33 = vmul.f32 0.2, %v6393_v20  ;;  %v8774_v58 = vld [vmem:[#allocation4_spill] sm:$0xff] }
 0x30e   : > { %8770 = vst [vmem:[#allocation73_spill] sm:$0xff] %v6851_v3  ;;  %v6863_v47 = vmul.f32 0.2, %v6399_v61  ;;  %v6866_v17 = vmul.f32 0.2, %v6405_v42  ;;  %v2677_v3 = vsel %vm2411_vm3, %v8723_v36, %v6713_v0  ;;  %2809 = vst.msk [vmem:[%s6678_s5 + $0x58] sm:$0xff] %vm1449_vm5, %v2676_v37 }
 0x30f   : > { %8768 = vst [vmem:[#allocation72_spill] sm:$0xff] %v6848_v44  ;;  %8771 = vst [vmem:[#allocation74_spill] sm:$0xff] %v6860_v33  ;;  %v6876_v1 = vmul.f32 0.2, %v8774_v58  ;;  %v8776_v60 = vld [vmem:[#allocation5_spill] sm:$0xff]  ;;  %vm2424_vm2 = vcmp.gt.f32.partialorder %v8741_v31, 0.0 }
 0x310   : > { %8772 = vst [vmem:[#allocation76_spill] sm:$0xff] %v6863_v47  ;;  %8773 = vst [vmem:[#allocation77_spill] sm:$0xff] %v6866_v17  ;;  %v6879_v33 = vmul.f32 0.2, %v8776_v60  ;;  %v8778_v47 = vld [vmem:[#allocation6_spill] sm:$0xff]  ;;  %v2678_v17 = vsel %vm2412_vm4, %v8724_v63, %v6716_v15  ;;  %v8780_v36 = vld [vmem:[#allocation7_spill] sm:$0xff] }
 0x311   : > { %8775 = vst [vmem:[#allocation78_spill] sm:$0xff] %v6876_v1  ;;  %v6882_v44 = vmul.f32 0.2, %v8778_v47  ;;  %2810 = vst.msk [vmem:[%s6678_s5 + $0x60] sm:$0xff] %vm1449_vm5, %v2677_v3  ;;  %v6892_v0 = vmul.f32 0.2, %v8780_v36 }
 0x312   : > { %8777 = vst [vmem:[#allocation79_spill] sm:$0xff] %v6879_v33  ;;  %v6895_v37 = vmul.f32 0.2, %v6435_v12  ;;  %v6898_v33 = vmul.f32 0.2, %v6441_v6  ;;  %2811 = vst.msk [vmem:[%s6678_s5 + $0x68] sm:$0xff] %vm1449_vm5, %v2678_v17 }
 0x313   : > { %8779 = vst [vmem:[#allocation80_spill] sm:$0xff] %v6882_v44  ;;  %8781 = vst [vmem:[#allocation81_spill] sm:$0xff] %v6892_v0  ;;  %v2679_v44 = vsel %vm2413_vm7, %v8725_v22, %v6725_v4  ;;  %vm2425_vm3 = vcmp.gt.f32.partialorder %v8743_v7, 0.0  ;;  %v6908_v63 = vmul.f32 0.2, %v6447_v50  ;;  %vm2426_vm4 = vcmp.gt.f32.partialorder %v8745_v8, 0.0 }
 0x314   : > { %8782 = vst [vmem:[#allocation82_spill] sm:$0xff] %v6895_v37  ;;  %8783 = vst [vmem:[#allocation83_spill] sm:$0xff] %v6898_v33  ;;  %v6911_v15 = vmul.f32 0.2, %v6453_v59  ;;  %v6914_v3 = vmul.f32 0.2, %v6459_v18  ;;  %v2680_v33 = vsel %vm2414_vm8, %v8726_v21, %v6728_v26 }
 0x315   : > { %8784 = vst [vmem:[#allocation85_spill] sm:$0xff] %v6908_v63  ;;  %2812 = vst.msk [vmem:[%s6678_s5 + $0x70] sm:$0xff] %vm1449_vm5, %v2679_v44  ;;  %v6924_v22 = vmul.f32 0.2, %v6465_v24  ;;  %v6927_v4 = vmul.f32 0.2, %v6471_v46 }
 0x316   : > { %8785 = vst [vmem:[#allocation86_spill] sm:$0xff] %v6911_v15  ;;  %8786 = vst [vmem:[#allocation87_spill] sm:$0xff] %v6914_v3  ;;  %v6930_v17 = vmul.f32 0.2, %v6477_v57  ;;  %v2681_v3 = vsel %vm2415_vm9, %v8727_v28, %v6731_v23  ;;  %vm2427_vm7 = vcmp.gt.f32.partialorder %v8747_v19, 0.0  ;;  %vm2428_vm8 = vcmp.gt.f32.partialorder %v6321_v34, 0.0 }
 0x317   : > { %8787 = vst [vmem:[#allocation88_spill] sm:$0xff] %v6924_v22  ;;  %8788 = vst [vmem:[#allocation91_spill] sm:$0xff] %v6927_v4  ;;  %v6940_v26 = vmul.f32 0.2, %v6483_v10  ;;  %v6943_v21 = vmul.f32 0.2, %v6489_v52 }
 0x318   : > { %8789 = vst [vmem:[#allocation89_spill] sm:$0xff] %v6930_v17  ;;  %2813 = vst.msk [vmem:[%s6678_s5 + $0x78] sm:$0xff] %vm1449_vm5, %v2680_v33  ;;  %v6946_v44 = vmul.f32 0.2, %v6495_v54  ;;  %v2682_v17 = vsel %vm2416_vm10, %v8728_v5, %v6740_v56  ;;  %v6956_v23 = vmul.f32 0.2, %v6501_v27 }
 0x319   : > { %8790 = vst [vmem:[#allocation90_spill] sm:$0xff] %v6940_v26  ;;  %8791 = vst [vmem:[#allocation92_spill] sm:$0xff] %v6943_v21  ;;  %v6959_v28 = vmul.f32 0.2, %v6507_v49  ;;  %v6962_v33 = vmul.f32 0.2, %v6513_v55 }
 0x31a   : > { %8792 = vst [vmem:[#allocation93_spill] sm:$0xff] %v6946_v44  ;;  %2814 = vst.msk [vmem:[%s6678_s5 + $0x80] sm:$0xff] %vm1449_vm5, %v2681_v3  ;;  %v2683_v44 = vsel %vm2417_vm11, %v8729_v40, %v6743_v35  ;;  %vm2429_vm9 = vcmp.gt.f32.partialorder %v8750_v43, 0.0  ;;  %v6972_v5 = vmul.f32 0.2, %v6519_v2  ;;  %vm2430_vm10 = vcmp.gt.f32.partialorder %v8752_v16, 0.0 }
 0x31b   : > { %8793 = vst [vmem:[#allocation94_spill] sm:$0xff] %v6956_v23  ;;  %8794 = vst [vmem:[#allocation95_spill] sm:$0xff] %v6959_v28  ;;  %v6975_v56 = vmul.f32 0.2, %v6525_v13  ;;  %v6978_v3 = vmul.f32 0.2, %v6531_v30 }
 0x31c   : > { %8795 = vst [vmem:[#allocation96_spill] sm:$0xff] %v6962_v33  ;;  %2815 = vst.msk [vmem:[%s6678_s5 + $0x88] sm:$0xff] %vm1449_vm5, %v2682_v17  ;;  %v8799_v33 = vld [vmem:[#allocation84_spill] sm:$0xff]  ;;  %v8802_v17 = vld [vmem:[#allocation9_spill] sm:$0xff]  ;;  %vm2431_vm11 = vcmp.gt.f32.partialorder %v8754_v14, 0.0 }
 0x31d   : > { %8796 = vst [vmem:[#allocation98_spill] sm:$0xff] %v6972_v5  ;;  %8797 = vst [vmem:[#allocation99_spill] sm:$0xff] %v6975_v56  ;;  %v2684_v28 = vsel %vm2418_vm12, %v8799_v33, %v6746_v29  ;;  %v8800_v35 = vld [vmem:[#allocation8_spill] sm:$0xff]  ;;  %v6991_v5 = vmul.f32 0.2, %v8802_v17  ;;  %v8807_v29 = vld [vmem:[#allocation29_spill] sm:$0xff] }
 0x31e   : > { %8798 = vst [vmem:[#allocation101_spill] sm:$0xff] %v6978_v3  ;;  %2816 = vst.msk [vmem:[%s6678_s5 + $0x90] sm:$0xff] %vm1449_vm5, %v2683_v44  ;;  %v6988_v40 = vmul.f32 0.2, %v8800_v35  ;;  %v8804_v56 = vld [vmem:[#allocation28_spill] sm:$0xff]  ;;  %v8806_v3 = vld [vmem:[#allocation49_spill] sm:$0xff] }
 0x31f   : > { %8803 = vst [vmem:[#allocation2_spill] sm:$0xff] %v6991_v5  ;;  %v6994_v23 = vmul.f32 0.2, %v8804_v56  ;;  %v2685_v21 = vsel %vm2419_vm13, %v8731_v45, %v8806_v3  ;;  %2817 = vst.msk [vmem:[%s6678_s5 + $0x98] sm:$0xff] %vm1449_vm5, %v2684_v28  ;;  %v7004_v44 = vmul.f32 0.2, %v8807_v29 }
 0x320   : > { %8801 = vst [vmem:[#allocation102_spill] sm:$0xff] %v6988_v40  ;;  %v8809_v33 = vld [vmem:[#allocation30_spill] sm:$0xff]  ;;  %v8811_v5 = vld [vmem:[#allocation31_spill] sm:$0xff]  ;;  %2818 = vst.msk [vmem:[%s6678_s5 + $0xa0] sm:$0xff] %vm1449_vm5, %v2685_v21  ;;  %vm2433_vm13 = vcmp.gt.f32.partialorder %v8758_v41, 0.0 }
 0x321   : > { %8805 = vst [vmem:[#allocation3_spill] sm:$0xff] %v6994_v23  ;;  %8808 = vst [vmem:[#allocation4_spill] sm:$0xff] %v7004_v44  ;;  %v7007_v40 = vmul.f32 0.2, %v8809_v33  ;;  %v7010_v26 = vmul.f32 0.2, %v8811_v5 }
 0x322   : > { %v8813_v23 = vld [vmem:[#allocation50_spill] sm:$0xff]  ;;  %v8814_v45 = vld [vmem:[#allocation97_spill] sm:$0xff]  ;;  %v8815_v28 = vld [vmem:[#allocation32_spill] sm:$0xff] }
 0x323   : > { %8810 = vst [vmem:[#allocation5_spill] sm:$0xff] %v7007_v40  ;;  %8812 = vst [vmem:[#allocation6_spill] sm:$0xff] %v7010_v26  ;;  %v2686_v4 = vsel %vm2420_vm14, %v8733_v25, %v8813_v23  ;;  %vm2432_vm12 = vcmp.gt.f32.partialorder %v8814_v45, 0.0  ;;  %v7020_v3 = vmul.f32 0.2, %v8815_v28  ;;  %v8817_v44 = vld [vmem:[#allocation33_spill] sm:$0xff] }
 0x324   : > { %v7023_v22 = vmul.f32 0.2, %v8817_v44  ;;  %v8819_v40 = vld [vmem:[#allocation34_spill] sm:$0xff]  ;;  %v8821_v26 = vld [vmem:[#allocation51_spill] sm:$0xff]  ;;  %2819 = vst.msk [vmem:[%s6678_s5 + $0xa8] sm:$0xff] %vm1449_vm5, %v2686_v4  ;;  %v8824_v23 = vld [vmem:[#allocation36_spill] sm:$0xff] }
 0x325   : > { %8816 = vst [vmem:[#allocation7_spill] sm:$0xff] %v7020_v3  ;;  %v7026_v15 = vmul.f32 0.2, %v8819_v40  ;;  %v2687_v63 = vsel %vm2421_vm15, %v8735_v53, %v8821_v26  ;;  %v8822_v25 = vld [vmem:[#allocation35_spill] sm:$0xff]  ;;  %v7039_v3 = vmul.f32 0.2, %v8824_v23 }
 0x326   : > { %8818 = vst [vmem:[#allocation84_spill] sm:$0xff] %v7023_v22  ;;  %v7036_v21 = vmul.f32 0.2, %v8822_v25  ;;  %v8826_v22 = vld [vmem:[#allocation37_spill] sm:$0xff]  ;;  %2820 = vst.msk [vmem:[%s6678_s5 + $0xb0] sm:$0xff] %vm1449_vm5, %v2687_v63  ;;  %vm2434_vm14 = vcmp.gt.f32.partialorder %v8760_v39, 0.0 }
 0x327   : > { %8820 = vst [vmem:[#allocation8_spill] sm:$0xff] %v7026_v15  ;;  %8825 = vst [vmem:[#allocation28_spill] sm:$0xff] %v7039_v3  ;;  %v7042_v37 = vmul.f32 0.2, %v8826_v22  ;;  %v8828_v15 = vld [vmem:[#allocation52_spill] sm:$0xff]  ;;  %v8829_v53 = vld [vmem:[#allocation38_spill] sm:$0xff] }
 0x328   : > { %8823 = vst [vmem:[#allocation9_spill] sm:$0xff] %v7036_v21  ;;  %v2688_v0 = vsel %vm2422_vm0, %v8737_v38, %v8828_v15  ;;  %v7052_v4 = vmul.f32 0.2, %v8829_v53  ;;  %v8831_v26 = vld [vmem:[#allocation39_spill] sm:$0xff]  ;;  %v8833_v3 = vld [vmem:[#allocation40_spill] sm:$0xff]  ;;  %v8837_v63 = vld [vmem:[#allocation41_spill] sm:$0xff] }
 0x329   : > { %8827 = vst [vmem:[#allocation49_spill] sm:$0xff] %v7042_v37  ;;  %v7055_v21 = vmul.f32 0.2, %v8831_v26  ;;  %v7058_v1 = vmul.f32 0.2, %v8833_v3  ;;  %v8835_v37 = vld [vmem:[#allocation53_spill] sm:$0xff] }
 0x32a   : > { %8830 = vst [vmem:[#allocation29_spill] sm:$0xff] %v7052_v4  ;;  %v2689_v22 = vsel %vm2423_vm1, %v8739_v62, %v8835_v37  ;;  %2821 = vst.msk [vmem:[%s6678_s5 + $0xb8] sm:$0xff] %vm1449_vm5, %v2688_v0  ;;  %v8836_v38 = vld [vmem:[#allocation100_spill] sm:$0xff]  ;;  %v7068_v15 = vmul.f32 0.2, %v8837_v63  ;;  %v8839_v4 = vld [vmem:[#allocation42_spill] sm:$0xff] }
 0x32b   : > { %8832 = vst [vmem:[#allocation30_spill] sm:$0xff] %v7055_v21  ;;  %8834 = vst [vmem:[#allocation31_spill] sm:$0xff] %v7058_v1  ;;  %vm2435_vm15 = vcmp.gt.f32.partialorder %v8836_v38, 0.0  ;;  %v7071_v53 = vmul.f32 0.2, %v8839_v4  ;;  %v8841_v21 = vld [vmem:[#allocation43_spill] sm:$0xff] }
 0x32c   : > { %8838 = vst [vmem:[#allocation50_spill] sm:$0xff] %v7068_v15  ;;  %v7074_v26 = vmul.f32 0.2, %v8841_v21  ;;  %v8843_v1 = vld [vmem:[#allocation54_spill] sm:$0xff]  ;;  %2822 = vst.msk [vmem:[%s6678_s5 + $0xc0] sm:$0xff] %vm1449_vm5, %v2689_v22  ;;  %vm2436_vm0 = vcmp.gt.f32.partialorder %v8764_v9, 0.0 }
 0x32d   : > { %8840 = vst [vmem:[#allocation97_spill] sm:$0xff] %v7071_v53  ;;  %v2690_v3 = vsel %vm2424_vm2, %v8741_v31, %v8843_v1  ;;  %v8844_v62 = vld [vmem:[#allocation44_spill] sm:$0xff]  ;;  %v8846_v37 = vld [vmem:[#allocation45_spill] sm:$0xff]  ;;  %v8848_v53 = vld [vmem:[#allocation46_spill] sm:$0xff]  ;;  %vm2437_vm1 = vcmp.gt.f32.partialorder %v8766_v48, 0.0  ;;  %vm2438_vm2 = vcmp.gt.f32.partialorder %v8767_v32, 0.0 }
 0x32e   : > { %8842 = vst [vmem:[#allocation32_spill] sm:$0xff] %v7074_v26  ;;  %v7084_v0 = vmul.f32 0.2, %v8844_v62  ;;  %v7087_v15 = vmul.f32 0.2, %v8846_v37  ;;  %v8850_v26 = vld [vmem:[#allocation56_spill] sm:$0xff] }
 0x32f   : > { %v7090_v4 = vmul.f32 0.2, %v8848_v53  ;;  %v2691_v21 = vsel %vm2425_vm3, %v8743_v7, %v8850_v26  ;;  %2823 = vst.msk [vmem:[%s6678_s5 + $0xc8] sm:$0xff] %vm1449_vm5, %v2690_v3  ;;  %v8851_v31 = vld [vmem:[#allocation47_spill] sm:$0xff]  ;;  %v8853_v22 = vld [vmem:[#allocation48_spill] sm:$0xff]  ;;  %vm2439_vm3 = vcmp.gt.f32.partialorder %v8769_v11, 0.0 }
 0x330   : > { %8845 = vst [vmem:[#allocation33_spill] sm:$0xff] %v7084_v0  ;;  %8847 = vst [vmem:[#allocation34_spill] sm:$0xff] %v7087_v15  ;;  %v7100_v1 = vmul.f32 0.2, %v8851_v31  ;;  %v7103_v0 = vmul.f32 0.2, %v8853_v22 }
 0x331   : > { %8849 = vst [vmem:[#allocation51_spill] sm:$0xff] %v7090_v4  ;;  %v8855_v15 = vld [vmem:[#allocation14_spill] sm:$0xff]  ;;  %v8857_v4 = vld [vmem:[#allocation57_spill] sm:$0xff]  ;;  %2824 = vst.msk [vmem:[%s6678_s5 + $0xd0] sm:$0xff] %vm1449_vm5, %v2691_v21 }
 0x332   : > { %8852 = vst [vmem:[#allocation52_spill] sm:$0xff] %v7100_v1  ;;  %8854 = vst [vmem:[#allocation53_spill] sm:$0xff] %v7103_v0  ;;  %v7106_v37 = vmul.f32 0.2, %v8855_v15  ;;  %v2692_v53 = vsel %vm2426_vm4, %v8745_v8, %v8857_v4  ;;  %v8858_v7 = vld [vmem:[#allocation15_spill] sm:$0xff]  ;;  %v8860_v26 = vld [vmem:[#allocation16_spill] sm:$0xff] }
 0x333   : > { %v7116_v3 = vmul.f32 0.2, %v8858_v7  ;;  %v7119_v1 = vmul.f32 0.2, %v8860_v26  ;;  %v8862_v0 = vld [vmem:[#allocation17_spill] sm:$0xff]  ;;  %2825 = vst.msk [vmem:[%s6678_s5 + $0xd8] sm:$0xff] %vm1449_vm5, %v2692_v53 }
 0x334   : > { %8856 = vst [vmem:[#allocation100_spill] sm:$0xff] %v7106_v37  ;;  %v7122_v22 = vmul.f32 0.2, %v8862_v0  ;;  %v8864_v37 = vld [vmem:[#allocation58_spill] sm:$0xff]  ;;  %v8867_v4 = vld [vmem:[#allocation21_spill] sm:$0xff]  ;;  %v8869_v26 = vld [vmem:[#allocation24_spill] sm:$0xff] }
 0x335   : > { %8859 = vst [vmem:[#allocation41_spill] sm:$0xff] %v7116_v3  ;;  %8861 = vst [vmem:[#allocation54_spill] sm:$0xff] %v7119_v1  ;;  %v2693_v15 = vsel %vm2427_vm7, %v8747_v19, %v8864_v37  ;;  %v8865_v8 = vld [vmem:[#allocation18_spill] sm:$0xff]  ;;  %v7135_v3 = vmul.f32 0.2, %v8867_v4  ;;  %vm2440_vm4 = vcmp.gt.f32.partialorder %v6393_v20, 0.0 }
 0x336   : > { %8863 = vst [vmem:[#allocation44_spill] sm:$0xff] %v7122_v22  ;;  %v7132_v21 = vmul.f32 0.2, %v8865_v8  ;;  %v7138_v1 = vmul.f32 0.2, %v8869_v26  ;;  %v8871_v22 = vld [vmem:[#allocation59_spill] sm:$0xff] }
 0x337   : > { %8868 = vst [vmem:[#allocation57_spill] sm:$0xff] %v7135_v3  ;;  %v2694_v0 = vsel %vm2428_vm8, %v6321_v34, %v8871_v22  ;;  %2826 = vst.msk [vmem:[%s6678_s5 + $0xe0] sm:$0xff] %vm1449_vm5, %v2693_v15  ;;  %v8872_v19 = vld [vmem:[#allocation27_spill] sm:$0xff]  ;;  %v8874_v37 = vld [vmem:[#allocation70_spill] sm:$0xff]  ;;  %vm8990_vm8 = vcmp.gt.f32.partialorder %v6453_v59, 0.0 }
 0x338   : > { %8866 = vst [vmem:[#allocation56_spill] sm:$0xff] %v7132_v21  ;;  %8870 = vst [vmem:[#allocation15_spill] sm:$0xff] %v7138_v1  ;;  %v7148_v53 = vmul.f32 0.2, %v8872_v19  ;;  %v7151_v21 = vmul.f32 0.2, %v8874_v37 }
 0x339   : > { %v8876_v3 = vld [vmem:[#allocation20_spill] sm:$0xff]  ;;  %2827 = vst.msk [vmem:[%s6678_s5 + $0xe8] sm:$0xff] %vm1449_vm5, %v2694_v0  ;;  %v8879_v34 = vld [vmem:[#allocation19_spill] sm:$0xff]  ;;  %v8881_v22 = vld [vmem:[#allocation22_spill] sm:$0xff] }
 0x33a   : > { %8873 = vst [vmem:[#allocation58_spill] sm:$0xff] %v7148_v53  ;;  %8875 = vst [vmem:[#allocation18_spill] sm:$0xff] %v7151_v21  ;;  %v7154_v4 = vmul.f32 0.2, %v8876_v3  ;;  %v8878_v26 = vld [vmem:[#allocation60_spill] sm:$0xff]  ;;  %v8883_v53 = vld [vmem:[#allocation23_spill] sm:$0xff] }
 0x33b   : > { %v2695_v1 = vsel %vm2429_vm9, %v8750_v43, %v8878_v26  ;;  %v7165_v15 = vmul.f32 0.2, %v8879_v34  ;;  %v7168_v21 = vmul.f32 0.2, %v8881_v22  ;;  %v8885_v3 = vld [vmem:[#allocation61_spill] sm:$0xff]  ;;  %vm2443_vm9 = vcmp.gt.f32.partialorder %v8774_v58, 0.0 }
 0x33c   : > { %8877 = vst [vmem:[#allocation59_spill] sm:$0xff] %v7154_v4  ;;  %v7171_v4 = vmul.f32 0.2, %v8883_v53  ;;  %v2696_v43 = vsel %vm2430_vm10, %v8752_v16, %v8885_v3  ;;  %2828 = vst.msk [vmem:[%s6678_s5 + $0xf0] sm:$0xff] %vm1449_vm5, %v2695_v1  ;;  %v8886_v0 = vld [vmem:[#allocation25_spill] sm:$0xff]  ;;  %v8892_v16 = vld [vmem:[#allocation62_spill] sm:$0xff] }
 0x33d   : > { %8880 = vst [vmem:[#allocation27_spill] sm:$0xff] %v7165_v15  ;;  %8882 = vst [vmem:[#allocation70_spill] sm:$0xff] %v7168_v21  ;;  %v7184_v26 = vmul.f32 0.2, %v8886_v0  ;;  %v8890_v15 = vld [vmem:[#allocation55_spill] sm:$0xff]  ;;  %v2697_v1 = vsel %vm2431_vm11, %v8754_v14, %v8892_v16  ;;  %vm2447_vm10 = vcmp.gt.f32.partialorder %v6435_v12, 0.0 }
 0x33e   : > { %8884 = vst [vmem:[#allocation60_spill] sm:$0xff] %v7171_v4  ;;  %v8888_v4 = vld [vmem:[#allocation26_spill] sm:$0xff]  ;;  %v7190_v53 = vmul.f32 0.2, %v8890_v15  ;;  %2829 = vst.msk [vmem:[%s6678_s5 + $0xf8] sm:$0xff] %vm1449_vm5, %v2696_v43  ;;  %v8893_v3 = vld [vmem:[#allocation67_spill] sm:$0xff] }
 0x33f   : > { %8887 = vst [vmem:[#allocation19_spill] sm:$0xff] %v7184_v26  ;;  %v7187_v21 = vmul.f32 0.2, %v8888_v4  ;;  %v8897_v15 = vld [vmem:[#allocation69_spill] sm:$0xff]  ;;  %v8899_v14 = vld [vmem:[#allocation63_spill] sm:$0xff]  ;;  %2830 = vst.msk [vmem:[%s6678_s5 + $0x100] sm:$0xff] %vm1449_vm5, %v2697_v1 }
 0x340   : > { %8891 = vst [vmem:[#allocation61_spill] sm:$0xff] %v7190_v53  ;;  %v8895_v53 = vld [vmem:[#allocation68_spill] sm:$0xff]  ;;  %v7209_v4 = vmul.f32 0.2, %v8897_v15  ;;  %v2698_v43 = vsel %vm2432_vm12, %v8814_v45, %v8899_v14  ;;  %vm2451_vm11 = vcmp.gt.f32.partialorder %v6459_v18, 0.0  ;;  %v8900_v16 = vld [vmem:[#allocation10_spill] sm:$0xff] }
 0x341   : > { %8889 = vst [vmem:[#allocation22_spill] sm:$0xff] %v7187_v21  ;;  %v7203_v21 = vmul.f32 0.2, %v8893_v3  ;;  %v7206_v26 = vmul.f32 0.2, %v8895_v53  ;;  %v8904_v15 = vld [vmem:[#allocation12_spill] sm:$0xff] }
 0x342   : > { %8898 = vst [vmem:[#allocation67_spill] sm:$0xff] %v7209_v4  ;;  %v8902_v4 = vld [vmem:[#allocation11_spill] sm:$0xff]  ;;  %v7228_v53 = vmul.f32 0.2, %v8904_v15  ;;  %v8906_v45 = vld [vmem:[#allocation64_spill] sm:$0xff]  ;;  %2831 = vst.msk [vmem:[%s6678_s5 + $0x108] sm:$0xff] %vm1449_vm5, %v2698_v43 }
 0x343   : > { %8894 = vst [vmem:[#allocation25_spill] sm:$0xff] %v7203_v21  ;;  %8896 = vst [vmem:[#allocation62_spill] sm:$0xff] %v7206_v26  ;;  %v7222_v26 = vmul.f32 0.2, %v8900_v16  ;;  %v7225_v21 = vmul.f32 0.2, %v8902_v4  ;;  %v2699_v1 = vsel %vm2433_vm13, %v8758_v41, %v8906_v45 }
 0x344   : > { %8905 = vst [vmem:[#allocation124_spill] sm:$0xff] %v7228_v53  ;;  %vm2455_vm12 = vcmp.gt.f32.partialorder %v6483_v10, 0.0  ;;  %v8907_v14 = vld [vmem:[#allocation13_spill] sm:$0xff]  ;;  %v8909_v53 = vld [vmem:[#allocation103_spill] sm:$0xff]  ;;  %v8911_v15 = vld [vmem:[#allocation104_spill] sm:$0xff]  ;;  %vm2459_vm13 = vcmp.gt.f32.partialorder %v6507_v49, 0.0 }
 0x345   : > { %8901 = vst [vmem:[#allocation63_spill] sm:$0xff] %v7222_v26  ;;  %8903 = vst [vmem:[#allocation10_spill] sm:$0xff] %v7225_v21  ;;  %v7241_v21 = vmul.f32 0.2, %v8907_v14  ;;  %v7244_v26 = vmul.f32 0.2, %v8909_v53 }
 0x346   : > { %v7247_v4 = vmul.f32 0.2, %v8911_v15  ;;  %v8913_v41 = vld [vmem:[#allocation65_spill] sm:$0xff]  ;;  %2832 = vst.msk [vmem:[%s6678_s5 + $0x110] sm:$0xff] %vm1449_vm5, %v2699_v1  ;;  %v8918_v15 = vld [vmem:[#allocation107_spill] sm:$0xff]  ;;  %v8972_v31 = vld [vmem:[#allocation14_spill] sm:$0xff] }
 0x347   : > { %8908 = vst [vmem:[#allocation64_spill] sm:$0xff] %v7241_v21  ;;  %8910 = vst [vmem:[#allocation13_spill] sm:$0xff] %v7244_v26  ;;  %v2700_v43 = vsel %vm2434_vm14, %v8760_v39, %v8913_v41  ;;  %v8914_v45 = vld [vmem:[#allocation105_spill] sm:$0xff]  ;;  %v7266_v53 = vmul.f32 0.2, %v8918_v15  ;;  %v8920_v39 = vld [vmem:[#allocation66_spill] sm:$0xff] }
 0x348   : > { %8912 = vst [vmem:[#allocation125_spill] sm:$0xff] %v7247_v4  ;;  %v7260_v26 = vmul.f32 0.2, %v8914_v45  ;;  %v8916_v4 = vld [vmem:[#allocation106_spill] sm:$0xff]  ;;  %v2701_v1 = vsel %vm2435_vm15, %v8836_v38, %v8920_v39  ;;  %2833 = vst.msk [vmem:[%s6678_s5 + $0x118] sm:$0xff] %vm1449_vm5, %v2700_v43  ;;  %vm2463_vm14 = vcmp.gt.f32.partialorder %v6531_v30, 0.0 }
 0x349   : > { %v7263_v21 = vmul.f32 0.2, %v8916_v4  ;;  %8919 = vst [vmem:[#allocation126_spill] sm:$0xff] %v7266_v53  ;;  %v8921_v41 = vld [vmem:[#allocation108_spill] sm:$0xff]  ;;  %v8923_v53 = vld [vmem:[#allocation109_spill] sm:$0xff]  ;;  %v8925_v15 = vld [vmem:[#allocation110_spill] sm:$0xff] }
 0x34a   : > { %8915 = vst [vmem:[#allocation65_spill] sm:$0xff] %v7260_v26  ;;  %v7282_v26 = vmul.f32 0.2, %v8923_v53  ;;  %v7285_v4 = vmul.f32 0.2, %v8925_v15  ;;  %v8927_v38 = vld [vmem:[#allocation71_spill] sm:$0xff] }
 0x34b   : > { %8917 = vst [vmem:[#allocation105_spill] sm:$0xff] %v7263_v21  ;;  %v7279_v21 = vmul.f32 0.2, %v8921_v41  ;;  %v2702_v43 = vsel %vm2436_vm0, %v8764_v9, %v8927_v38  ;;  %2834 = vst.msk [vmem:[%s6678_s5 + $0x120] sm:$0xff] %vm1449_vm5, %v2701_v1  ;;  %vm2467_vm15 = vcmp.gt.f32.partialorder %v8807_v29, 0.0  ;;  %v8928_v39 = vld [vmem:[#allocation111_spill] sm:$0xff]  ;;  %v2703_v9 = vsel %vm2437_vm1, %v8766_v48, %v6845_v51 }
 0x34c   : > { %8924 = vst [vmem:[#allocation108_spill] sm:$0xff] %v7282_v26  ;;  %8926 = vst [vmem:[#allocation127_spill] sm:$0xff] %v7285_v4  ;;  %v7298_v26 = vmul.f32 0.2, %v8928_v39  ;;  %v8930_v4 = vld [vmem:[#allocation112_spill] sm:$0xff]  ;;  %v8932_v15 = vld [vmem:[#allocation113_spill] sm:$0xff] }
 0x34d   : > { %8922 = vst [vmem:[#allocation66_spill] sm:$0xff] %v7279_v21  ;;  %v7301_v21 = vmul.f32 0.2, %v8930_v4  ;;  %v7304_v53 = vmul.f32 0.2, %v8932_v15  ;;  %2835 = vst.msk [vmem:[%s6678_s5 + $0x128] sm:$0xff] %vm1449_vm5, %v2702_v43 }
 0x34e   : > { %8929 = vst [vmem:[#allocation71_spill] sm:$0xff] %v7298_v26  ;;  %vm2471_vm0 = vcmp.gt.f32.partialorder %v8817_v44, 0.0  ;;  %v8934_v1 = vld [vmem:[#allocation114_spill] sm:$0xff]  ;;  %v8938_v26 = vld [vmem:[#allocation116_spill] sm:$0xff]  ;;  %2836 = vst.msk [vmem:[%s6678_s5 + $0x130] sm:$0xff] %vm1449_vm5, %v2703_v9  ;;  %vm2487_vm7 = vcmp.gt.f32.partialorder %v8972_v31, 0.0 }
 0x34f   : > { %8931 = vst [vmem:[#allocation111_spill] sm:$0xff] %v7301_v21  ;;  %8933 = vst [vmem:[#allocation128_spill] sm:$0xff] %v7304_v53  ;;  %v7317_v38 = vmul.f32 0.2, %v8934_v1  ;;  %v8936_v53 = vld [vmem:[#allocation115_spill] sm:$0xff]  ;;  %v8940_v48 = vld [vmem:[#allocation72_spill] sm:$0xff] }
 0x350   : > { %v7320_v21 = vmul.f32 0.2, %v8936_v53  ;;  %v7323_v15 = vmul.f32 0.2, %v8938_v26  ;;  %v2704_v51 = vsel %vm2438_vm2, %v8767_v32, %v8940_v48  ;;  %v8941_v43 = vld [vmem:[#allocation37_spill] sm:$0xff]  ;;  %v8942_v4 = vld [vmem:[#allocation38_spill] sm:$0xff] }
 0x351   : > { %8935 = vst [vmem:[#allocation129_spill] sm:$0xff] %v7317_v38  ;;  %vm2475_vm1 = vcmp.gt.f32.partialorder %v8941_v43, 0.0  ;;  %v8943_v23 = vld [vmem:[#allocation39_spill] sm:$0xff]  ;;  %v8951_v32 = vld [vmem:[#allocation73_spill] sm:$0xff]  ;;  %2837 = vst.msk [vmem:[%s6678_s5 + $0x138] sm:$0xff] %vm1449_vm5, %v2704_v51  ;;  %vm8981_vm2 = vcmp.gt.f32.partialorder %v8780_v36, 0.0 }
 0x352   : > { %8937 = vst [vmem:[#allocation130_spill] sm:$0xff] %v7320_v21  ;;  %8939 = vst [vmem:[#allocation131_spill] sm:$0xff] %v7323_v15  ;;  %v8945_v21 = vld [vmem:[#allocation117_spill] sm:$0xff]  ;;  %v8947_v15 = vld [vmem:[#allocation118_spill] sm:$0xff]  ;;  %v2705_v9 = vsel %vm2439_vm3, %v8769_v11, %v8951_v32 }
 0x353   : > { %v7336_v53 = vmul.f32 0.2, %v8945_v21  ;;  %v7339_v26 = vmul.f32 0.2, %v8947_v15  ;;  %v8949_v1 = vld [vmem:[#allocation119_spill] sm:$0xff]  ;;  %v8952_v48 = vld [vmem:[#allocation42_spill] sm:$0xff] }
 0x354   : > { %v7342_v25 = vmul.f32 0.2, %v8949_v1  ;;  %v8958_v15 = vld [vmem:[#allocation122_spill] sm:$0xff]  ;;  %2838 = vst.msk [vmem:[%s6678_s5 + $0x140] sm:$0xff] %vm1449_vm5, %v2705_v9  ;;  %v8961_v32 = vld [vmem:[#allocation45_spill] sm:$0xff] }
 0x355   : > { %8946 = vst [vmem:[#allocation72_spill] sm:$0xff] %v7336_v53  ;;  %8948 = vst [vmem:[#allocation37_spill] sm:$0xff] %v7339_v26  ;;  %v8954_v26 = vld [vmem:[#allocation120_spill] sm:$0xff]  ;;  %v7361_v21 = vmul.f32 0.2, %v8958_v15  ;;  %v8960_v11 = vld [vmem:[#allocation74_spill] sm:$0xff] }
 0x356   : > { %8950 = vst [vmem:[#allocation38_spill] sm:$0xff] %v7342_v25  ;;  %v7355_v53 = vmul.f32 0.2, %v8954_v26  ;;  %v8956_v25 = vld [vmem:[#allocation121_spill] sm:$0xff]  ;;  %v2706_v51 = vsel %vm2440_vm4, %v6393_v20, %v8960_v11  ;;  %v8962_v38 = vld [vmem:[#allocation46_spill] sm:$0xff]  ;;  %v8968_v26 = vld [vmem:[#allocation76_spill] sm:$0xff] }
 0x357   : > { %v7358_v1 = vmul.f32 0.2, %v8956_v25  ;;  %8959 = vst [vmem:[#allocation42_spill] sm:$0xff] %v7361_v21  ;;  %v8966_v21 = vld [vmem:[#allocation75_spill] sm:$0xff]  ;;  %vm8969_vm4 = vcmp.gt.f32.partialorder %v6399_v61, 0.0  ;;  %v8970_v9 = vld [vmem:[#allocation77_spill] sm:$0xff] }
 0x358   : > { %8955 = vst [vmem:[#allocation39_spill] sm:$0xff] %v7355_v53  ;;  %v8963_v53 = vld [vmem:[#allocation48_spill] sm:$0xff]  ;;  %v7377_v25 = vmul.f32 0.2, %v8966_v21  ;;  %v2707_v20 = vsel %vm8969_vm4, %v6399_v61, %v8968_v26  ;;  %v2708_v11 = vsel %vm8971_vm6, %v6405_v42, %v8970_v9  ;;  %2839 = vst.msk [vmem:[%s6678_s5 + $0x148] sm:$0xff] %vm1449_vm5, %v2706_v51  ;;  %v8976_v26 = vld [vmem:[#allocation79_spill] sm:$0xff] }
 0x359   : > { %8957 = vst [vmem:[#allocation73_spill] sm:$0xff] %v7358_v1  ;;  %v8964_v1 = vld [vmem:[#allocation123_spill] sm:$0xff]  ;;  %vm8977_vm6 = vcmp.gt.f32.partialorder %v8776_v60, 0.0  ;;  %v8978_v51 = vld [vmem:[#allocation80_spill] sm:$0xff]  ;;  %vm8979_vm4 = vcmp.gt.f32.partialorder %v8778_v47, 0.0  ;;  %2840 = vst.msk [vmem:[%s6678_s5 + $0x150] sm:$0xff] %vm1449_vm5, %v2707_v20 }
 0x35a   : > { %v7374_v15 = vmul.f32 0.2, %v8964_v1  ;;  %8967 = vst [vmem:[#allocation45_spill] sm:$0xff] %v7377_v25  ;;  %v8975_v25 = vld [vmem:[#allocation78_spill] sm:$0xff]  ;;  %v2710_v42 = vsel %vm8977_vm6, %v8776_v60, %v8976_v26  ;;  %v2711_v9 = vsel %vm8979_vm4, %v8778_v47, %v8978_v51  ;;  %2841 = vst.msk [vmem:[%s6678_s5 + $0x158] sm:$0xff] %vm1449_vm5, %v2708_v11  ;;  %v8983_v60 = vld [vmem:[#allocation24_spill] sm:$0xff] }
 0x35b   : > { %v2709_v61 = vsel %vm2443_vm9, %v8774_v58, %v8975_v25  ;;  %vm2491_vm9 = vcmp.gt.f32.partialorder %v8865_v8, 0.0  ;;  %v8982_v58 = vld [vmem:[#allocation21_spill] sm:$0xff]  ;;  %v8984_v25 = vld [vmem:[#allocation82_spill] sm:$0xff]  ;;  %v8985_v26 = vld [vmem:[#allocation83_spill] sm:$0xff]  ;;  %vm8988_vm4 = vcmp.gt.f32.partialorder %v6447_v50, 0.0  ;;  %2843 = vst.msk [vmem:[%s6678_s5 + $0x168] sm:$0xff] %vm1449_vm5, %v2710_v42 }
 0x35c   : > { %8965 = vst [vmem:[#allocation74_spill] sm:$0xff] %v7374_v15  ;;  %v8980_v15 = vld [vmem:[#allocation81_spill] sm:$0xff]  ;;  %vm2492_vm3 = vcmp.gt.f32.partialorder %v8982_v58, 0.0  ;;  %v2713_v47 = vsel %vm2447_vm10, %v6435_v12, %v8984_v25  ;;  %v8989_v11 = vld [vmem:[#allocation86_spill] sm:$0xff]  ;;  %2842 = vst.msk [vmem:[%s6678_s5 + $0x160] sm:$0xff] %vm1449_vm5, %v2709_v61  ;;  %vm8996_vm10 = vcmp.gt.f32.partialorder %v6471_v46, 0.0 }
 0x35d   : > { %v2712_v21 = vsel %vm8981_vm2, %v8780_v36, %v8980_v15  ;;  %vm8986_vm2 = vcmp.gt.f32.partialorder %v6441_v6, 0.0  ;;  %v8987_v15 = vld [vmem:[#allocation85_spill] sm:$0xff]  ;;  %v2716_v51 = vsel %vm8990_vm8, %v6453_v59, %v8989_v11  ;;  %2844 = vst.msk [vmem:[%s6678_s5 + $0x170] sm:$0xff] %vm1449_vm5, %v2711_v9  ;;  %v8991_v12 = vld [vmem:[#allocation20_spill] sm:$0xff]  ;;  %vm8994_vm8 = vcmp.gt.f32.partialorder %v6465_v24, 0.0  ;;  %2846 = vst.msk [vmem:[%s6678_s5 + $0x180] sm:$0xff] %vm1449_vm5, %v2713_v47 }
 0x35e   : > { %v2714_v36 = vsel %vm8986_vm2, %v6441_v6, %v8985_v26  ;;  %v2715_v20 = vsel %vm8988_vm4, %v6447_v50, %v8987_v15  ;;  %2845 = vst.msk [vmem:[%s6678_s5 + $0x178] sm:$0xff] %vm1449_vm5, %v2712_v21  ;;  %vm2496_vm2 = vcmp.gt.f32.partialorder %v8991_v12, 0.0  ;;  %v8992_v6 = vld [vmem:[#allocation87_spill] sm:$0xff]  ;;  %v8993_v59 = vld [vmem:[#allocation88_spill] sm:$0xff]  ;;  %v8997_v9 = vld [vmem:[#allocation89_spill] sm:$0xff]  ;;  %vm8998_vm6 = vcmp.gt.f32.partialorder %v6477_v57, 0.0 }
 0x35f   : > { %v2717_v50 = vsel %vm2451_vm11, %v6459_v18, %v8992_v6  ;;  %v2718_v61 = vsel %vm8994_vm8, %v6465_v24, %v8993_v59  ;;  %v8995_v21 = vld [vmem:[#allocation91_spill] sm:$0xff]  ;;  %v2720_v25 = vsel %vm8998_vm6, %v6477_v57, %v8997_v9  ;;  %2847 = vst.msk [vmem:[%s6678_s5 + $0x188] sm:$0xff] %vm1449_vm5, %v2714_v36  ;;  %2848 = vst.msk [vmem:[%s6678_s5 + $0x190] sm:$0xff] %vm1449_vm5, %v2715_v20  ;;  %vm2500_vm8 = vcmp.gt.f32.partialorder %v8886_v0, 0.0  ;;  %v9000_v24 = vld [vmem:[#allocation26_spill] sm:$0xff] }
 0x360   : > { %v2719_v42 = vsel %vm8996_vm10, %v6471_v46, %v8995_v21  ;;  %2849 = vst.msk [vmem:[%s6678_s5 + $0x198] sm:$0xff] %vm1449_vm5, %v2716_v51  ;;  %v8999_v18 = vld [vmem:[#allocation23_spill] sm:$0xff]  ;;  %v9002_v26 = vld [vmem:[#allocation90_spill] sm:$0xff]  ;;  %v9003_v47 = vld [vmem:[#allocation92_spill] sm:$0xff]  ;;  %vm9004_vm6 = vcmp.gt.f32.partialorder %v6489_v52, 0.0  ;;  %vm9006_vm11 = vcmp.gt.f32.partialorder %v6495_v54, 0.0 }
 0x361   : > { %v9001_v46 = vld [vmem:[#allocation55_spill] sm:$0xff]  ;;  %v2721_v57 = vsel %vm2455_vm12, %v6483_v10, %v9002_v26  ;;  %v2722_v36 = vsel %vm9004_vm6, %v6489_v52, %v9003_v47  ;;  %v9005_v15 = vld [vmem:[#allocation93_spill] sm:$0xff]  ;;  %v9007_v11 = vld [vmem:[#allocation94_spill] sm:$0xff]  ;;  %vm9008_vm4 = vcmp.gt.f32.partialorder %v6501_v27, 0.0  ;;  %2850 = vst.msk [vmem:[%s6678_s5 + $0x1a0] sm:$0xff] %vm1449_vm5, %v2717_v50  ;;  %vm9015_vm12 = vcmp.gt.f32.partialorder %v6519_v2, 0.0 }
 0x362   : > { %v2723_v20 = vsel %vm9006_vm11, %v6495_v54, %v9005_v15  ;;  %v2724_v51 = vsel %vm9008_vm4, %v6501_v27, %v9007_v11  ;;  %2851 = vst.msk [vmem:[%s6678_s5 + $0x1a8] sm:$0xff] %vm1449_vm5, %v2718_v61  ;;  %2852 = vst.msk [vmem:[%s6678_s5 + $0x1b0] sm:$0xff] %vm1449_vm5, %v2719_v42  ;;  %v9009_v10 = vld [vmem:[#allocation68_spill] sm:$0xff]  ;;  %v9010_v52 = vld [vmem:[#allocation69_spill] sm:$0xff]  ;;  %vm9013_vm4 = vcmp.gt.f32.partialorder %v6513_v55, 0.0  ;;  %vm9017_vm10 = vcmp.gt.f32.partialorder %v6525_v13, 0.0 }
 0x363   : > { %2853 = vst.msk [vmem:[%s6678_s5 + $0x1b8] sm:$0xff] %vm1449_vm5, %v2720_v25  ;;  %vm2504_vm6 = vcmp.gt.f32.partialorder %v9009_v10, 0.0  ;;  %v9011_v54 = vld [vmem:[#allocation95_spill] sm:$0xff]  ;;  %v9012_v6 = vld [vmem:[#allocation96_spill] sm:$0xff]  ;;  %v9014_v59 = vld [vmem:[#allocation98_spill] sm:$0xff]  ;;  %vm9027_vm11 = vcmp.gt.f32.partialorder %v8804_v56, 0.0 }
 0x364   : > { %v2725_v27 = vsel %vm2459_vm13, %v6507_v49, %v9011_v54  ;;  %v2726_v50 = vsel %vm9013_vm4, %v6513_v55, %v9012_v6  ;;  %v2727_v61 = vsel %vm9015_vm12, %v6519_v2, %v9014_v59  ;;  %v9016_v21 = vld [vmem:[#allocation99_spill] sm:$0xff]  ;;  %2854 = vst.msk [vmem:[%s6678_s5 + $0x1c0] sm:$0xff] %vm1449_vm5, %v2721_v57  ;;  %2855 = vst.msk [vmem:[%s6678_s5 + $0x1c8] sm:$0xff] %vm1449_vm5, %v2722_v36  ;;  %v9019_v55 = vld [vmem:[#allocation12_spill] sm:$0xff]  ;;  %vm9025_vm13 = vcmp.gt.f32.partialorder %v8802_v17, 0.0 }
 0x365   : > { %v2728_v42 = vsel %vm9017_vm10, %v6525_v13, %v9016_v21  ;;  %2856 = vst.msk [vmem:[%s6678_s5 + $0x1d0] sm:$0xff] %vm1449_vm5, %v2723_v20  ;;  %2857 = vst.msk [vmem:[%s6678_s5 + $0x1d8] sm:$0xff] %vm1449_vm5, %v2724_v51  ;;  %v9018_v49 = vld [vmem:[#allocation11_spill] sm:$0xff]  ;;  %vm2508_vm4 = vcmp.gt.f32.partialorder %v9019_v55, 0.0  ;;  %v9021_v9 = vld [vmem:[#allocation101_spill] sm:$0xff]  ;;  %vm9023_vm10 = vcmp.gt.f32.partialorder %v8800_v35, 0.0 }
 0x366   : > { %v9020_v2 = vld [vmem:[#allocation103_spill] sm:$0xff]  ;;  %v2729_v13 = vsel %vm2463_vm14, %v6531_v30, %v9021_v9  ;;  %v9022_v25 = vld [vmem:[#allocation102_spill] sm:$0xff]  ;;  %2858 = vst.msk [vmem:[%s6678_s5 + $0x1e0] sm:$0xff] %vm1449_vm5, %v2725_v27  ;;  %2859 = vst.msk [vmem:[%s6678_s5 + $0x1e8] sm:$0xff] %vm1449_vm5, %v2726_v50  ;;  %vm9035_vm14 = vcmp.gt.f32.partialorder %v8811_v5, 0.0  ;;  %vm9037_vm12 = vcmp.gt.f32.partialorder %v8815_v28, 0.0 }
 0x367   : > { %v2730_v26 = vsel %vm9023_vm10, %v8800_v35, %v9022_v25  ;;  %v9024_v57 = vld [vmem:[#allocation2_spill] sm:$0xff]  ;;  %v9026_v36 = vld [vmem:[#allocation3_spill] sm:$0xff]  ;;  %2860 = vst.msk [vmem:[%s6678_s5 + $0x1f0] sm:$0xff] %vm1449_vm5, %v2727_v61  ;;  %2861 = vst.msk [vmem:[%s6678_s5 + $0x1f8] sm:$0xff] %vm1449_vm5, %v2728_v42  ;;  %vm2512_vm10 = vcmp.gt.f32.partialorder %v8914_v45, 0.0 }
 0x368   : > { %v2731_v47 = vsel %vm9025_vm13, %v8802_v17, %v9024_v57  ;;  %v2732_v15 = vsel %vm9027_vm11, %v8804_v56, %v9026_v36  ;;  %v9028_v30 = vld [vmem:[#allocation104_spill] sm:$0xff]  ;;  %v9029_v35 = vld [vmem:[#allocation106_spill] sm:$0xff]  ;;  %v9030_v17 = vld [vmem:[#allocation107_spill] sm:$0xff]  ;;  %vm9033_vm11 = vcmp.gt.f32.partialorder %v8809_v33, 0.0  ;;  %2862 = vst.msk [vmem:[%s6678_s5 + $0x200] sm:$0xff] %vm1449_vm5, %v2729_v13 }
 0x369   : > { %v9031_v20 = vld [vmem:[#allocation4_spill] sm:$0xff]  ;;  %v9032_v11 = vld [vmem:[#allocation5_spill] sm:$0xff]  ;;  %v9034_v54 = vld [vmem:[#allocation6_spill] sm:$0xff]  ;;  %2863 = vst.msk [vmem:[%s6678_s5 + $0x208] sm:$0xff] %vm1449_vm5, %v2730_v26 }
 0x36a   : > { %v2733_v56 = vsel %vm2467_vm15, %v8807_v29, %v9031_v20  ;;  %v2734_v51 = vsel %vm9033_vm11, %v8809_v33, %v9032_v11  ;;  %v2735_v27 = vsel %vm9035_vm14, %v8811_v5, %v9034_v54  ;;  %v9036_v6 = vld [vmem:[#allocation7_spill] sm:$0xff]  ;;  %2864 = vst.msk [vmem:[%s6678_s5 + $0x210] sm:$0xff] %vm1449_vm5, %v2731_v47  ;;  %2865 = vst.msk [vmem:[%s6678_s5 + $0x218] sm:$0xff] %vm1449_vm5, %v2732_v15  ;;  %v9038_v29 = vld [vmem:[#allocation109_spill] sm:$0xff] }
 0x36b   : > { %v2736_v50 = vsel %vm9037_vm12, %v8815_v28, %v9036_v6  ;;  %vm2516_vm11 = vcmp.gt.f32.partialorder %v9038_v29, 0.0  ;;  %v9039_v5 = vld [vmem:[#allocation110_spill] sm:$0xff]  ;;  %v9040_v33 = vld [vmem:[#allocation84_spill] sm:$0xff]  ;;  %vm9042_vm12 = vcmp.gt.f32.partialorder %v8819_v40, 0.0  ;;  %v9043_v21 = vld [vmem:[#allocation9_spill] sm:$0xff]  ;;  %2866 = vst.msk [vmem:[%s6678_s5 + $0x220] sm:$0xff] %vm1449_vm5, %v2733_v56 }
 0x36c   : > { %v2737_v28 = vsel %vm2471_vm0, %v8817_v44, %v9040_v33  ;;  %v9041_v59 = vld [vmem:[#allocation8_spill] sm:$0xff]  ;;  %v9044_v42 = vld [vmem:[#allocation35_spill] sm:$0xff]  ;;  %2867 = vst.msk [vmem:[%s6678_s5 + $0x228] sm:$0xff] %vm1449_vm5, %v2734_v51  ;;  %2868 = vst.msk [vmem:[%s6678_s5 + $0x230] sm:$0xff] %vm1449_vm5, %v2735_v27  ;;  %vm9057_vm0 = vcmp.gt.f32.partialorder %v8943_v23, 0.0 }
 0x36d   : > { %v2738_v61 = vsel %vm9042_vm12, %v8819_v40, %v9041_v59  ;;  %vm9045_vm15 = vcmp.gt.f32.partialorder %v9044_v42, 0.0  ;;  %v9046_v13 = vld [vmem:[#allocation28_spill] sm:$0xff]  ;;  %2869 = vst.msk [vmem:[%s6678_s5 + $0x238] sm:$0xff] %vm1449_vm5, %v2736_v50  ;;  %v9050_v44 = vld [vmem:[#allocation113_spill] sm:$0xff]  ;;  %v9051_v57 = vld [vmem:[#allocation114_spill] sm:$0xff]  ;;  %vm9068_vm12 = vcmp.gt.f32.partialorder %v8952_v48, 0.0 }
 0x36e   : > { %v2739_v9 = vsel %vm9045_vm15, %v9044_v42, %v9043_v21  ;;  %v9047_v25 = vld [vmem:[#allocation36_spill] sm:$0xff]  ;;  %v9052_v47 = vld [vmem:[#allocation115_spill] sm:$0xff]  ;;  %v9053_v36 = vld [vmem:[#allocation49_spill] sm:$0xff]  ;;  %2870 = vst.msk [vmem:[%s6678_s5 + $0x240] sm:$0xff] %vm1449_vm5, %v2737_v28  ;;  %vm9073_vm15 = vcmp.gt.f32.partialorder %v8844_v62, 0.0 }
 0x36f   : > { %vm9048_vm13 = vcmp.gt.f32.partialorder %v9047_v25, 0.0  ;;  %v9049_v40 = vld [vmem:[#allocation112_spill] sm:$0xff]  ;;  %v2741_v15 = vsel %vm2475_vm1, %v8941_v43, %v9053_v36  ;;  %v9054_v20 = vld [vmem:[#allocation29_spill] sm:$0xff]  ;;  %v9056_v11 = vld [vmem:[#allocation30_spill] sm:$0xff]  ;;  %2871 = vst.msk [vmem:[%s6678_s5 + $0x248] sm:$0xff] %vm1449_vm5, %v2738_v61 }
 0x370   : > { %v2740_v26 = vsel %vm9048_vm13, %v9047_v25, %v9046_v13  ;;  %vm9055_vm13 = vcmp.gt.f32.partialorder %v8942_v4, 0.0  ;;  %v2743_v51 = vsel %vm9057_vm0, %v8943_v23, %v9056_v11  ;;  %v9058_v54 = vld [vmem:[#allocation31_spill] sm:$0xff]  ;;  %v9059_v27 = vld [vmem:[#allocation40_spill] sm:$0xff]  ;;  %2872 = vst.msk [vmem:[%s6678_s5 + $0x250] sm:$0xff] %vm1449_vm5, %v2739_v9  ;;  %v9062_v43 = vld [vmem:[#allocation117_spill] sm:$0xff]  ;;  %vm9085_vm0 = vcmp.gt.f32.partialorder %v8963_v53, 0.0 }
 0x371   : > { %v2742_v56 = vsel %vm9055_vm13, %v8942_v4, %v9054_v20  ;;  %vm9060_vm14 = vcmp.gt.f32.partialorder %v9059_v27, 0.0  ;;  %2873 = vst.msk [vmem:[%s6678_s5 + $0x258] sm:$0xff] %vm1449_vm5, %v2740_v26  ;;  %v9061_v4 = vld [vmem:[#allocation116_spill] sm:$0xff]  ;;  %v9063_v23 = vld [vmem:[#allocation118_spill] sm:$0xff]  ;;  %v9064_v50 = vld [vmem:[#allocation119_spill] sm:$0xff]  ;;  %vm9080_vm13 = vcmp.gt.f32.partialorder %v8962_v38, 0.0 }
 0x372   : > { %v2744_v6 = vsel %vm9060_vm14, %v9059_v27, %v9058_v54  ;;  %v9065_v33 = vld [vmem:[#allocation50_spill] sm:$0xff]  ;;  %vm9066_vm14 = vcmp.gt.f32.partialorder %v8837_v63, 0.0  ;;  %v9067_v28 = vld [vmem:[#allocation97_spill] sm:$0xff]  ;;  %v9069_v21 = vld [vmem:[#allocation32_spill] sm:$0xff]  ;;  %2874 = vst.msk [vmem:[%s6678_s5 + $0x260] sm:$0xff] %vm1449_vm5, %v2741_v15 }
 0x373   : > { %v2745_v59 = vsel %vm9066_vm14, %v8837_v63, %v9065_v33  ;;  %v2746_v61 = vsel %vm9068_vm12, %v8952_v48, %v9067_v28  ;;  %v9070_v42 = vld [vmem:[#allocation43_spill] sm:$0xff]  ;;  %v9072_v13 = vld [vmem:[#allocation33_spill] sm:$0xff]  ;;  %2875 = vst.msk [vmem:[%s6678_s5 + $0x268] sm:$0xff] %vm1449_vm5, %v2742_v56  ;;  %2876 = vst.msk [vmem:[%s6678_s5 + $0x270] sm:$0xff] %vm1449_vm5, %v2743_v51 }
 0x374   : > { %vm9071_vm1 = vcmp.gt.f32.partialorder %v9070_v42, 0.0  ;;  %v2748_v25 = vsel %vm9073_vm15, %v8844_v62, %v9072_v13  ;;  %2877 = vst.msk [vmem:[%s6678_s5 + $0x278] sm:$0xff] %vm1449_vm5, %v2744_v6  ;;  %v9074_v63 = vld [vmem:[#allocation120_spill] sm:$0xff]  ;;  %v9075_v48 = vld [vmem:[#allocation121_spill] sm:$0xff]  ;;  %v9076_v26 = vld [vmem:[#allocation122_spill] sm:$0xff]  ;;  %vm9078_vm15 = vcmp.gt.f32.partialorder %v8961_v32, 0.0 }
 0x375   : > { %v2747_v9 = vsel %vm9071_vm1, %v9070_v42, %v9069_v21  ;;  %vm2527_vm12 = vcmp.gt.f32.partialorder %v9074_v63, 0.0  ;;  %vm2529_vm1 = vcmp.gt.f32.partialorder %v9076_v26, 0.0  ;;  %v9077_v62 = vld [vmem:[#allocation34_spill] sm:$0xff]  ;;  %v9079_v15 = vld [vmem:[#allocation51_spill] sm:$0xff]  ;;  %v9081_v56 = vld [vmem:[#allocation52_spill] sm:$0xff]  ;;  %2878 = vst.msk [vmem:[%s6678_s5 + $0x280] sm:$0xff] %vm1449_vm5, %v2745_v59 }
 0x376   : > { %v2749_v36 = vsel %vm9078_vm15, %v8961_v32, %v9077_v62  ;;  %v2750_v20 = vsel %vm9080_vm13, %v8962_v38, %v9079_v15  ;;  %v9082_v11 = vld [vmem:[#allocation47_spill] sm:$0xff]  ;;  %v9084_v54 = vld [vmem:[#allocation53_spill] sm:$0xff]  ;;  %2879 = vst.msk [vmem:[%s6678_s5 + $0x288] sm:$0xff] %vm1449_vm5, %v2746_v61  ;;  %2880 = vst.msk [vmem:[%s6678_s5 + $0x290] sm:$0xff] %vm1449_vm5, %v2747_v9 }
 0x377   : > { %vm9083_vm14 = vcmp.gt.f32.partialorder %v9082_v11, 0.0  ;;  %v2752_v27 = vsel %vm9085_vm0, %v8963_v53, %v9084_v54  ;;  %2881 = vst.msk [vmem:[%s6678_s5 + $0x298] sm:$0xff] %vm1449_vm5, %v2748_v25  ;;  %v9086_v38 = vld [vmem:[#allocation75_spill] sm:$0xff]  ;;  %v9087_v32 = vld [vmem:[#allocation100_spill] sm:$0xff]  ;;  %v9088_v53 = vld [vmem:[#allocation41_spill] sm:$0xff]  ;;  %vm9089_vm0 = vcmp.gt.f32.partialorder %v8858_v7, 0.0 }
 0x378   : > { %v2751_v51 = vsel %vm9083_vm14, %v9082_v11, %v9081_v56  ;;  %vm2531_vm13 = vcmp.gt.f32.partialorder %v9086_v38, 0.0  ;;  %v2753_v6 = vsel %vm2487_vm7, %v8972_v31, %v9087_v32  ;;  %v2754_v33 = vsel %vm9089_vm0, %v8858_v7, %v9088_v53  ;;  %v9090_v59 = vld [vmem:[#allocation54_spill] sm:$0xff]  ;;  %v9091_v28 = vld [vmem:[#allocation16_spill] sm:$0xff]  ;;  %v9094_v42 = vld [vmem:[#allocation17_spill] sm:$0xff]  ;;  %2882 = vst.msk [vmem:[%s6678_s5 + $0x2a0] sm:$0xff] %vm1449_vm5, %v2749_v36 }
 0x379   : > { %vm9092_vm14 = vcmp.gt.f32.partialorder %v9091_v28, 0.0  ;;  %v9093_v21 = vld [vmem:[#allocation44_spill] sm:$0xff]  ;;  %vm9095_vm15 = vcmp.gt.f32.partialorder %v9094_v42, 0.0  ;;  %2883 = vst.msk [vmem:[%s6678_s5 + $0x2a8] sm:$0xff] %vm1449_vm5, %v2750_v20  ;;  %2884 = vst.msk [vmem:[%s6678_s5 + $0x2b0] sm:$0xff] %vm1449_vm5, %v2751_v51  ;;  %v9097_v13 = vld [vmem:[#allocation57_spill] sm:$0xff] }
 0x37a   : > { %v2755_v61 = vsel %vm9092_vm14, %v9091_v28, %v9090_v59  ;;  %v2756_v9 = vsel %vm9095_vm15, %v9094_v42, %v9093_v21  ;;  %2885 = vst.msk [vmem:[%s6678_s5 + $0x2b8] sm:$0xff] %vm1449_vm5, %v2752_v27  ;;  %v9096_v31 = vld [vmem:[#allocation56_spill] sm:$0xff]  ;;  %v2758_v25 = vsel %vm2492_vm3, %v8982_v58, %v9097_v13  ;;  %v9098_v62 = vld [vmem:[#allocation15_spill] sm:$0xff]  ;;  %vm9099_vm7 = vcmp.gt.f32.partialorder %v8983_v60, 0.0  ;;  %v9100_v15 = vld [vmem:[#allocation58_spill] sm:$0xff] }
 0x37b   : > { %v2757_v7 = vsel %vm2491_vm9, %v8865_v8, %v9096_v31  ;;  %v2759_v36 = vsel %vm9099_vm7, %v8983_v60, %v9098_v62  ;;  %vm9101_vm0 = vcmp.gt.f32.partialorder %v8872_v19, 0.0  ;;  %2886 = vst.msk [vmem:[%s6678_s5 + $0x2c0] sm:$0xff] %vm1449_vm5, %v2753_v6  ;;  %2887 = vst.msk [vmem:[%s6678_s5 + $0x2c8] sm:$0xff] %vm1449_vm5, %v2754_v33  ;;  %v9102_v8 = vld [vmem:[#allocation18_spill] sm:$0xff]  ;;  %vm9103_vm3 = vcmp.gt.f32.partialorder %v8874_v37, 0.0  ;;  %v9104_v60 = vld [vmem:[#allocation59_spill] sm:$0xff] }
 0x37c   : > { %v2760_v20 = vsel %vm9101_vm0, %v8872_v19, %v9100_v15  ;;  %2888 = vst.msk [vmem:[%s6678_s5 + $0x2d0] sm:$0xff] %vm1449_vm5, %v2755_v61  ;;  %2889 = vst.msk [vmem:[%s6678_s5 + $0x2d8] sm:$0xff] %vm1449_vm5, %v2756_v9  ;;  %v2761_v58 = vsel %vm9103_vm3, %v8874_v37, %v9102_v8  ;;  %v2762_v19 = vsel %vm2496_vm2, %v8991_v12, %v9104_v60  ;;  %v9105_v56 = vld [vmem:[#allocation27_spill] sm:$0xff]  ;;  %vm9106_vm9 = vcmp.gt.f32.partialorder %v8879_v34, 0.0  ;;  %v9107_v51 = vld [vmem:[#allocation70_spill] sm:$0xff] }
 0x37d   : > { %v2763_v11 = vsel %vm9106_vm9, %v8879_v34, %v9105_v56  ;;  %vm9108_vm14 = vcmp.gt.f32.partialorder %v8881_v22, 0.0  ;;  %2890 = vst.msk [vmem:[%s6678_s5 + $0x2e0] sm:$0xff] %vm1449_vm5, %v2757_v7  ;;  %2891 = vst.msk [vmem:[%s6678_s5 + $0x2e8] sm:$0xff] %vm1449_vm5, %v2758_v25  ;;  %v9109_v37 = vld [vmem:[#allocation60_spill] sm:$0xff]  ;;  %vm9110_vm2 = vcmp.gt.f32.partialorder %v8999_v18, 0.0  ;;  %v9111_v12 = vld [vmem:[#allocation19_spill] sm:$0xff] }
 0x37e   : > { %v2764_v54 = vsel %vm9108_vm14, %v8881_v22, %v9107_v51  ;;  %2892 = vst.msk [vmem:[%s6678_s5 + $0x2f0] sm:$0xff] %vm1449_vm5, %v2759_v36  ;;  %2893 = vst.msk [vmem:[%s6678_s5 + $0x2f8] sm:$0xff] %vm1449_vm5, %v2760_v20  ;;  %v2765_v34 = vsel %vm9110_vm2, %v8999_v18, %v9109_v37  ;;  %v2766_v22 = vsel %vm2500_vm8, %v8886_v0, %v9111_v12  ;;  %v9112_v27 = vld [vmem:[#allocation22_spill] sm:$0xff]  ;;  %vm9113_vm15 = vcmp.gt.f32.partialorder %v9000_v24, 0.0  ;;  %v9114_v6 = vld [vmem:[#allocation61_spill] sm:$0xff] }
 0x37f   : > { %v2767_v32 = vsel %vm9113_vm15, %v9000_v24, %v9112_v27  ;;  %vm9115_vm7 = vcmp.gt.f32.partialorder %v9001_v46, 0.0  ;;  %2894 = vst.msk [vmem:[%s6678_s5 + $0x300] sm:$0xff] %vm1449_vm5, %v2761_v58  ;;  %2895 = vst.msk [vmem:[%s6678_s5 + $0x308] sm:$0xff] %vm1449_vm5, %v2762_v19  ;;  %v9116_v0 = vld [vmem:[#allocation25_spill] sm:$0xff]  ;;  %vm9117_vm8 = vcmp.gt.f32.partialorder %v8893_v3, 0.0  ;;  %v9118_v24 = vld [vmem:[#allocation62_spill] sm:$0xff] }
 0x380   : > { %v2768_v53 = vsel %vm9115_vm7, %v9001_v46, %v9114_v6  ;;  %2896 = vst.msk [vmem:[%s6678_s5 + $0x310] sm:$0xff] %vm1449_vm5, %v2763_v11  ;;  %2897 = vst.msk [vmem:[%s6678_s5 + $0x318] sm:$0xff] %vm1449_vm5, %v2764_v54  ;;  %v2769_v18 = vsel %vm9117_vm8, %v8893_v3, %v9116_v0  ;;  %v2770_v46 = vsel %vm2504_vm6, %v9009_v10, %v9118_v24  ;;  %v9119_v33 = vld [vmem:[#allocation67_spill] sm:$0xff]  ;;  %vm9120_vm0 = vcmp.gt.f32.partialorder %v9010_v52, 0.0  ;;  %v9123_v3 = vld [vmem:[#allocation10_spill] sm:$0xff] }
 0x381   : > { %v2771_v59 = vsel %vm9120_vm0, %v9010_v52, %v9119_v33  ;;  %v9121_v28 = vld [vmem:[#allocation63_spill] sm:$0xff]  ;;  %vm9122_vm3 = vcmp.gt.f32.partialorder %v8900_v16, 0.0  ;;  %2898 = vst.msk [vmem:[%s6678_s5 + $0x320] sm:$0xff] %vm1449_vm5, %v2765_v34  ;;  %2899 = vst.msk [vmem:[%s6678_s5 + $0x328] sm:$0xff] %vm1449_vm5, %v2766_v22  ;;  %vm9124_vm6 = vcmp.gt.f32.partialorder %v9018_v49, 0.0  ;;  %v9125_v52 = vld [vmem:[#allocation124_spill] sm:$0xff] }
 0x382   : > { %v2772_v61 = vsel %vm9122_vm3, %v8900_v16, %v9121_v28  ;;  %2900 = vst.msk [vmem:[%s6678_s5 + $0x330] sm:$0xff] %vm1449_vm5, %v2767_v32  ;;  %2901 = vst.msk [vmem:[%s6678_s5 + $0x338] sm:$0xff] %vm1449_vm5, %v2768_v53  ;;  %v2773_v10 = vsel %vm9124_vm6, %v9018_v49, %v9123_v3  ;;  %v2774_v16 = vsel %vm2508_vm4, %v9019_v55, %v9125_v52  ;;  %v9126_v21 = vld [vmem:[#allocation64_spill] sm:$0xff]  ;;  %vm9127_vm9 = vcmp.gt.f32.partialorder %v8907_v14, 0.0  ;;  %v9128_v9 = vld [vmem:[#allocation13_spill] sm:$0xff] }
 0x383   : > { %v2775_v42 = vsel %vm9127_vm9, %v8907_v14, %v9126_v21  ;;  %vm9129_vm14 = vcmp.gt.f32.partialorder %v9020_v2, 0.0  ;;  %2902 = vst.msk [vmem:[%s6678_s5 + $0x340] sm:$0xff] %vm1449_vm5, %v2769_v18  ;;  %2903 = vst.msk [vmem:[%s6678_s5 + $0x348] sm:$0xff] %vm1449_vm5, %v2770_v46  ;;  %v9130_v49 = vld [vmem:[#allocation125_spill] sm:$0xff]  ;;  %vm9131_vm4 = vcmp.gt.f32.partialorder %v9028_v30, 0.0  ;;  %vm9134_vm2 = vcmp.gt.f32.partialorder %v9029_v35, 0.0 }
 0x384   : > { %v2776_v31 = vsel %vm9129_vm14, %v9020_v2, %v9128_v9  ;;  %2904 = vst.msk [vmem:[%s6678_s5 + $0x350] sm:$0xff] %vm1449_vm5, %v2771_v59  ;;  %2905 = vst.msk [vmem:[%s6678_s5 + $0x358] sm:$0xff] %vm1449_vm5, %v2772_v61  ;;  %v2777_v14 = vsel %vm9131_vm4, %v9028_v30, %v9130_v49  ;;  %v9132_v55 = vld [vmem:[#allocation65_spill] sm:$0xff]  ;;  %v9135_v25 = vld [vmem:[#allocation126_spill] sm:$0xff]  ;;  %vm9136_vm15 = vcmp.gt.f32.partialorder %v9030_v17, 0.0  ;;  %vm9141_vm7 = vcmp.gt.f32.partialorder %v9039_v5, 0.0 }
 0x385   : > { %v2778_v2 = vsel %vm2512_vm10, %v8914_v45, %v9132_v55  ;;  %v9133_v7 = vld [vmem:[#allocation105_spill] sm:$0xff]  ;;  %v2780_v62 = vsel %vm9136_vm15, %v9030_v17, %v9135_v25  ;;  %2906 = vst.msk [vmem:[%s6678_s5 + $0x360] sm:$0xff] %vm1449_vm5, %v2773_v10  ;;  %2907 = vst.msk [vmem:[%s6678_s5 + $0x368] sm:$0xff] %vm1449_vm5, %v2774_v16  ;;  %v9137_v45 = vld [vmem:[#allocation66_spill] sm:$0xff]  ;;  %vm9138_vm10 = vcmp.gt.f32.partialorder %v8921_v41, 0.0  ;;  %vm9143_vm8 = vcmp.gt.f32.partialorder %v8928_v39, 0.0 }
 0x386   : > { %v2779_v13 = vsel %vm9134_vm2, %v9029_v35, %v9133_v7  ;;  %2908 = vst.msk [vmem:[%s6678_s5 + $0x370] sm:$0xff] %vm1449_vm5, %v2775_v42  ;;  %2909 = vst.msk [vmem:[%s6678_s5 + $0x378] sm:$0xff] %vm1449_vm5, %v2776_v31  ;;  %v2781_v30 = vsel %vm9138_vm10, %v8921_v41, %v9137_v45  ;;  %v9139_v35 = vld [vmem:[#allocation108_spill] sm:$0xff]  ;;  %v9140_v36 = vld [vmem:[#allocation127_spill] sm:$0xff]  ;;  %vm9147_vm0 = vcmp.gt.f32.partialorder %v9050_v44, 0.0  ;;  %vm9149_vm3 = vcmp.gt.f32.partialorder %v9051_v57, 0.0 }
 0x387   : > { %v2782_v17 = vsel %vm2516_vm11, %v9038_v29, %v9139_v35  ;;  %v2783_v15 = vsel %vm9141_vm7, %v9039_v5, %v9140_v36  ;;  %v9142_v20 = vld [vmem:[#allocation71_spill] sm:$0xff]  ;;  %2910 = vst.msk [vmem:[%s6678_s5 + $0x380] sm:$0xff] %vm1449_vm5, %v2777_v14  ;;  %2911 = vst.msk [vmem:[%s6678_s5 + $0x388] sm:$0xff] %vm1449_vm5, %v2778_v2  ;;  %vm9145_vm11 = vcmp.gt.f32.partialorder %v9049_v40, 0.0  ;;  %v9146_v5 = vld [vmem:[#allocation128_spill] sm:$0xff]  ;;  %vm9151_vm6 = vcmp.gt.f32.partialorder %v9052_v47, 0.0 }
 0x388   : > { %v2784_v8 = vsel %vm9143_vm8, %v8928_v39, %v9142_v20  ;;  %2912 = vst.msk [vmem:[%s6678_s5 + $0x390] sm:$0xff] %vm1449_vm5, %v2779_v13  ;;  %2913 = vst.msk [vmem:[%s6678_s5 + $0x398] sm:$0xff] %vm1449_vm5, %v2780_v62  ;;  %v9144_v41 = vld [vmem:[#allocation111_spill] sm:$0xff]  ;;  %v2786_v39 = vsel %vm9147_vm0, %v9050_v44, %v9146_v5  ;;  %v9148_v58 = vld [vmem:[#allocation129_spill] sm:$0xff]  ;;  %vm9153_vm9 = vcmp.gt.f32.partialorder %v9061_v4, 0.0  ;;  %vm9155_vm14 = vcmp.gt.f32.partialorder %v9062_v43, 0.0 }
 0x389   : > { %v2785_v29 = vsel %vm9145_vm11, %v9049_v40, %v9144_v41  ;;  %v2787_v60 = vsel %vm9149_vm3, %v9051_v57, %v9148_v58  ;;  %v9150_v19 = vld [vmem:[#allocation130_spill] sm:$0xff]  ;;  %2914 = vst.msk [vmem:[%s6678_s5 + $0x3a0] sm:$0xff] %vm1449_vm5, %v2781_v30  ;;  %2915 = vst.msk [vmem:[%s6678_s5 + $0x3a8] sm:$0xff] %vm1449_vm5, %v2782_v17  ;;  %v9152_v40 = vld [vmem:[#allocation131_spill] sm:$0xff]  ;;  %vm9157_vm4 = vcmp.gt.f32.partialorder %v9063_v23, 0.0  ;;  %vm9159_vm2 = vcmp.gt.f32.partialorder %v9064_v50, 0.0 }
 0x38a   : > { %v2788_v56 = vsel %vm9151_vm6, %v9052_v47, %v9150_v19  ;;  %2916 = vst.msk [vmem:[%s6678_s5 + $0x3b0] sm:$0xff] %vm1449_vm5, %v2783_v15  ;;  %2917 = vst.msk [vmem:[%s6678_s5 + $0x3b8] sm:$0xff] %vm1449_vm5, %v2784_v8  ;;  %v2789_v44 = vsel %vm9153_vm9, %v9061_v4, %v9152_v40  ;;  %v9154_v57 = vld [vmem:[#allocation72_spill] sm:$0xff]  ;;  %v9156_v11 = vld [vmem:[#allocation37_spill] sm:$0xff]  ;;  %vm9162_vm15 = vcmp.gt.f32.partialorder %v9075_v48, 0.0  ;;  %vm9165_vm10 = vcmp.gt.f32.partialorder %v8964_v1, 0.0 }
 0x38b   : > { %v2790_v47 = vsel %vm9155_vm14, %v9062_v43, %v9154_v57  ;;  %v2791_v51 = vsel %vm9157_vm4, %v9063_v23, %v9156_v11  ;;  %v9158_v54 = vld [vmem:[#allocation38_spill] sm:$0xff]  ;;  %2918 = vst.msk [vmem:[%s6678_s5 + $0x3c0] sm:$0xff] %vm1449_vm5, %v2785_v29  ;;  %2919 = vst.msk [vmem:[%s6678_s5 + $0x3c8] sm:$0xff] %vm1449_vm5, %v2786_v39  ;;  %v9160_v4 = vld [vmem:[#allocation39_spill] sm:$0xff] }
 0x38c   : > { %v2792_v37 = vsel %vm9159_vm2, %v9064_v50, %v9158_v54  ;;  %2920 = vst.msk [vmem:[%s6678_s5 + $0x3d0] sm:$0xff] %vm1449_vm5, %v2787_v60  ;;  %2921 = vst.msk [vmem:[%s6678_s5 + $0x3d8] sm:$0xff] %vm1449_vm5, %v2788_v56  ;;  %v2793_v43 = vsel %vm2527_vm12, %v9074_v63, %v9160_v4  ;;  %v9161_v23 = vld [vmem:[#allocation73_spill] sm:$0xff]  ;;  %v9163_v34 = vld [vmem:[#allocation42_spill] sm:$0xff]  ;;  %vm9167_vm12 = vcmask 123904  }
 0x38d   : > { %v2794_v50 = vsel %vm9162_vm15, %v9075_v48, %v9161_v23  ;;  %v2795_v12 = vsel %vm2529_vm1, %v9076_v26, %v9163_v34  ;;  %v9164_v22 = vld [vmem:[#allocation74_spill] sm:$0xff]  ;;  %2922 = vst.msk [vmem:[%s6678_s5 + $0x3e0] sm:$0xff] %vm1449_vm5, %v2789_v44  ;;  %2923 = vst.msk [vmem:[%s6678_s5 + $0x3e8] sm:$0xff] %vm1449_vm5, %v2790_v47  ;;  %v9166_v63 = vld [vmem:[#allocation45_spill] sm:$0xff] }
 0x38e   : > { %v2796_v27 = vsel %vm9165_vm10, %v8964_v1, %v9164_v22  ;;  %2924 = vst.msk [vmem:[%s6678_s5 + $0x3f0] sm:$0xff] %vm1449_vm5, %v2791_v51  ;;  %2925 = vst.msk [vmem:[%s6678_s5 + $0x3f8] sm:$0xff] %vm1449_vm5, %v2792_v37  ;;  %v2797_v48 = vsel %vm2531_vm13, %v9086_v38, %v9166_v63 }
 0x38f   : > { %2926 = vst.msk [vmem:[%s6678_s5 + $0x400] sm:$0xff] %vm1449_vm5, %v2793_v43  ;;  %2927 = vst.msk [vmem:[%s6678_s5 + $0x408] sm:$0xff] %vm1449_vm5, %v2794_v50 }
 0x390   : > { %2928 = vst.msk [vmem:[%s6678_s5 + $0x410] sm:$0xff] %vm1449_vm5, %v2795_v12  ;;  %2929 = vst.msk [vmem:[%s6678_s5 + $0x418] sm:$0xff] %vm1449_vm5, %v2796_v27 }
 0x391   : > { %2930 = vst.msk [vmem:[%s6678_s5 + $0x420] sm:$0x3] %vm9167_vm12, %v2797_v48 }
 0x392 PF: > { %s13_s12 = sadd.s32 1, %s3707_s12  }
 0x393   : > { %p10_p4 = scmp.ge.s32.totalorder %s13_s12, 4  }
 0x395   :  { %12 = sbr.rel (!%p10_p4) target bundleno = 1 (0x1), region = 62 }

// kernel: patch_discriminator_forward.6
= control target key start
LH: loop header
LB: loop body
LE: loop exit
PB: predicated region body
PF: predicated region fallthrough
CT: control target
= control target key end

     0   :  { %s1114_s12 = smov 0   ;;  %s1947_s0 = inlined_call_operand.vmem [shape: f32[2,242,144], index: 0, kind: input, shape index: {}]   ;;  %s1948_s1 = inlined_call_operand.vmem [shape: f32[144,16], index: 1, kind: input, shape index: {}]   ;;  %s1949_s2 = inlined_call_operand.vmem [shape: f32[1,16], index: 2, kind: input, shape index: {}]   ;;  %s1950_s3 = inlined_call_operand.vmem [shape: f32[2,242,16], index: 3, kind: output, shape index: {}]  }
   0x1 LB: > { %s986_s13 = sadd.s32 4294967295, %s1091_s12   ;;  %p990_p0 = scmp.ge.s32.totalorder %s1091_s12, 1  ;;  %s1091_s12 = sphi %s1114_s12, %s13_s12  }
   0x2   : > { %p137_p1 = scmp.lt.s32.totalorder %s1091_s12, 3 }
   0x4   : > { %p138_p2 = pnand %p990_p0, %p137_p1 }
   0x5   : > { %v233_v0 = vld [vmem:[%s1948_s1] sm:$0xff] (!%p138_p2)  ;;  %v234_v1 = vld [vmem:[%s1948_s1 + $0x8] sm:$0xff] (!%p138_p2)  ;;  %v235_v2 = vld [vmem:[%s1948_s1 + $0x10] sm:$0xff] (!%p138_p2)  ;;  %p161_p3 = scmp.lt.s32.totalorder (!%p138_p2), %s986_s13, 1  ;;  %v1093_v3 = vmov (!%p138_p2), 0.0|0.0   ;;  %vm258_vm0 = vcmask (!%p138_p2), 130048  }
   0x6   : > { %141 = sbr.rel (%p138_p2) target bundleno = 421 (0x1a5), region = 32  ;;  %1027 = vmatprep.subr.bf16.mxu0 (!%p138_p2), %v1093_v3  ;;  %v1028_v4 = vpack.c.bf16 (!%p138_p2), %v234_v1, %v233_v0  ;;  %v236_v5 = vld [vmem:[%s1948_s1 + $0x18] sm:$0xff] (!%p138_p2)  ;;  %1054 = vmatprep.subr.bf16.mxu1 (!%p138_p2), %v1093_v3  ;;  %v237_v7 = vld [vmem:[%s1948_s1 + $0x20] sm:$0xff] (!%p138_p2)  ;;  %v238_v8 = vld [vmem:[%s1948_s1 + $0x28] sm:$0xff] (!%p138_p2)  ;;  %vm1951_vm1 = vcmask (!%p138_p2), 123904  }
   0x7   : > { %v1031_v6 = vpack.c.bf16 (!%p138_p2), %v236_v5, %v235_v2  ;;  %v1034_v9 = vpack.c.bf16 (!%p138_p2), %v238_v8, %v237_v7  ;;  %v239_v11 = vld [vmem:[%s1948_s1 + $0x30] sm:$0xff] (!%p138_p2)  ;;  %v240_v12 = vld [vmem:[%s1948_s1 + $0x38] sm:$0xff] (!%p138_p2)  ;;  %v241_v14 = vld [vmem:[%s1948_s1 + $0x40] sm:$0xff] (!%p138_p2) }
   0x8   : > { %1029 = vmatpush1.bf16.msra.mxu0 (!%p138_p2), %v1028_v4  ;;  %1063 = vmatpush1.bf16.msra.mxu1 (!%p138_p2), %v1028_v4  ;;  %v1037_v13 = vpack.c.bf16 (!%p138_p2), %v240_v12, %v239_v11  ;;  %v242_v15 = vld [vmem:[%s1948_s1 + $0x48] sm:$0xff] (!%p138_p2)  ;;  %v243_v18 = vld [vmem:[%s1948_s1 + $0x50] sm:$0xff] (!%p138_p2)  ;;  %v244_v19 = vld [vmem:[%s1948_s1 + $0x58] sm:$0xff] (!%p138_p2) }
   0x9   : > { %1030 = vmatprep.subr.bf16.mxu0 (!%p138_p2), %v1093_v3  ;;  %1055 = vmatprep.subr.bf16.mxu1 (!%p138_p2), %v1093_v3  ;;  %v1040_v17 = vpack.c.bf16 (!%p138_p2), %v242_v15, %v241_v14  ;;  %v1043_v20 = vpack.c.bf16 (!%p138_p2), %v244_v19, %v243_v18  ;;  %v245_v21 = vld [vmem:[%s1948_s1 + $0x60] sm:$0xff] (!%p138_p2)  ;;  %v246_v22 = vld [vmem:[%s1948_s1 + $0x68] sm:$0xff] (!%p138_p2)  ;;  %v247_v24 = vld [vmem:[%s1948_s1 + $0x70] sm:$0xff] (!%p138_p2) }
   0xa   : > { %v1046_v23 = vpack.c.bf16 (!%p138_p2), %v246_v22, %v245_v21  ;;  %v248_v25 = vld [vmem:[%s1948_s1 + $0x78] sm:$0xff] (!%p138_p2)  ;;  %v249_v27 = vld [vmem:[%s1948_s1 + $0x80] sm:$0xff] (!%p138_p2)  ;;  %v250_v28 = vld [vmem:[%s1948_s1 + $0x88] sm:$0xff] (!%p138_p2) }
   0xb   : > { %v1049_v26 = vpack.c.bf16 (!%p138_p2), %v248_v25, %v247_v24  ;;  %v1052_v29 = vpack.c.bf16 (!%p138_p2), %v250_v28, %v249_v27 }
   0xc   : > { %1032 = vmatpush1.bf16.msra.mxu0 (!%p138_p2), %v1031_v6  ;;  %1064 = vmatpush1.bf16.msra.mxu1 (!%p138_p2), %v1031_v6 }
   0xd   : > { %s1968_s13 = smov (!%p161_p3, %s986_s13), 1  ;;  %1033 = vmatprep.subr.bf16.mxu0 %v1093_v3  ;;  %1056 = vmatprep.subr.bf16.mxu1 %v1093_v3 }
   0xe   : > { %s1072_s26 = smul.u32 496, %s1968_s13 }
   0xf   : > { %s1073_s4 = smul.u32 248, %s1968_s13 }
  0x10   : > { %s1150_s29 = scalar_lea.vmem %s1947_s0, %s1072_s26  ;;  %1035 = vmatpush1.bf16.msra.mxu0 %v1034_v9  ;;  %1065 = vmatpush1.bf16.msra.mxu1 %v1034_v9 }
  0x11   : > { %v172_v10 = vld [vmem:[%s1150_s29 + $0x8] sm:$0xff]  ;;  %1036 = vmatprep.subr.bf16.mxu0 %v1093_v3  ;;  %1057 = vmatprep.subr.bf16.mxu1 %v1093_v3  ;;  %v171_v30 = vld [vmem:[%s1150_s29] sm:$0xff]  ;;  %v174_v32 = vld [vmem:[%s1150_s29 + $0x18] sm:$0xff]  ;;  %s1735_s6 = scalar_lea.vmem %s1950_s3, %s1073_s4 }
  0x12   : > { %994 = vmatprep.mubr.msk.f32.mxu0 %vm258_vm0, %v172_v10  ;;  %v204_v16 = vld [vmem:[%s1150_s29 + $0x108] sm:$0xff]  ;;  %v203_v31 = vld [vmem:[%s1150_s29 + $0x100] sm:$0xff]  ;;  %v206_v33 = vld [vmem:[%s1150_s29 + $0x118] sm:$0xff] }
  0x13   : > { %1010 = vmatprep.mubr.msk.f32.mxu1 %vm258_vm0, %v204_v16  ;;  %v173_v34 = vld [vmem:[%s1150_s29 + $0x10] sm:$0xff]  ;;  %v176_v36 = vld [vmem:[%s1150_s29 + $0x28] sm:$0xff]  ;;  %v175_v38 = vld [vmem:[%s1150_s29 + $0x20] sm:$0xff] }
  0x14   : > { %1038 = vmatpush1.bf16.msra.mxu0 %v1037_v13  ;;  %1066 = vmatpush1.bf16.msra.mxu1 %v1037_v13  ;;  %v205_v35 = vld [vmem:[%s1150_s29 + $0x110] sm:$0xff]  ;;  %v208_v37 = vld [vmem:[%s1150_s29 + $0x128] sm:$0xff]  ;;  %v207_v39 = vld [vmem:[%s1150_s29 + $0x120] sm:$0xff] }
  0x15   : > { %1039 = vmatprep.subr.bf16.mxu0 %v1093_v3  ;;  %1058 = vmatprep.subr.bf16.mxu1 %v1093_v3  ;;  %v178_v40 = vld [vmem:[%s1150_s29 + $0x38] sm:$0xff]  ;;  %v177_v42 = vld [vmem:[%s1150_s29 + $0x30] sm:$0xff]  ;;  %v180_v44 = vld [vmem:[%s1150_s29 + $0x48] sm:$0xff] }
  0x16   : > { %v210_v41 = vld [vmem:[%s1150_s29 + $0x138] sm:$0xff]  ;;  %v209_v43 = vld [vmem:[%s1150_s29 + $0x130] sm:$0xff]  ;;  %v212_v45 = vld [vmem:[%s1150_s29 + $0x148] sm:$0xff] }
  0x17   : > { %v179_v46 = vld [vmem:[%s1150_s29 + $0x40] sm:$0xff]  ;;  %v182_v48 = vld [vmem:[%s1150_s29 + $0x58] sm:$0xff]  ;;  %v181_v50 = vld [vmem:[%s1150_s29 + $0x50] sm:$0xff] }
  0x18   : > { %1041 = vmatpush1.bf16.msra.mxu0 %v1040_v17  ;;  %1067 = vmatpush1.bf16.msra.mxu1 %v1040_v17  ;;  %v211_v47 = vld [vmem:[%s1150_s29 + $0x140] sm:$0xff]  ;;  %v214_v49 = vld [vmem:[%s1150_s29 + $0x158] sm:$0xff]  ;;  %v213_v51 = vld [vmem:[%s1150_s29 + $0x150] sm:$0xff] }
  0x19   : > { %1042 = vmatprep.subr.bf16.mxu0 %v1093_v3  ;;  %1059 = vmatprep.subr.bf16.mxu1 %v1093_v3  ;;  %v184_v52 = vld [vmem:[%s1150_s29 + $0x68] sm:$0xff]  ;;  %v183_v54 = vld [vmem:[%s1150_s29 + $0x60] sm:$0xff]  ;;  %v186_v56 = vld [vmem:[%s1150_s29 + $0x78] sm:$0xff] }
  0x1a   : > { %v216_v53 = vld [vmem:[%s1150_s29 + $0x168] sm:$0xff]  ;;  %v215_v55 = vld [vmem:[%s1150_s29 + $0x160] sm:$0xff]  ;;  %v218_v57 = vld [vmem:[%s1150_s29 + $0x178] sm:$0xff] }
  0x1b   : > { %v185_v58 = vld [vmem:[%s1150_s29 + $0x70] sm:$0xff]  ;;  %v188_v60 = vld [vmem:[%s1150_s29 + $0x88] sm:$0xff]  ;;  %v187_v62 = vld [vmem:[%s1150_s29 + $0x80] sm:$0xff] }
  0x1c   : > { %1044 = vmatpush1.bf16.msra.mxu0 %v1043_v20  ;;  %1068 = vmatpush1.bf16.msra.mxu1 %v1043_v20  ;;  %v217_v59 = vld [vmem:[%s1150_s29 + $0x170] sm:$0xff]  ;;  %v220_v61 = vld [vmem:[%s1150_s29 + $0x188] sm:$0xff]  ;;  %v219_v63 = vld [vmem:[%s1150_s29 + $0x180] sm:$0xff] }
  0x1d   : > { %1045 = vmatprep.subr.bf16.mxu0 %v1093_v3  ;;  %1060 = vmatprep.subr.bf16.mxu1 %v1093_v3  ;;  %v190_v0 = vld [vmem:[%s1150_s29 + $0x98] sm:$0xff]  ;;  %v189_v2 = vld [vmem:[%s1150_s29 + $0x90] sm:$0xff]  ;;  %v192_v4 = vld [vmem:[%s1150_s29 + $0xa8] sm:$0xff] }
  0x1e   : > { %v222_v1 = vld [vmem:[%s1150_s29 + $0x198] sm:$0xff]  ;;  %v224_v5 = vld [vmem:[%s1150_s29 + $0x1a8] sm:$0xff]  ;;  %v191_v6 = vld [vmem:[%s1150_s29 + $0xa0] sm:$0xff] }
  0x1f   : > { %v223_v7 = vld [vmem:[%s1150_s29 + $0x1a0] sm:$0xff]  ;;  %v194_v8 = vld [vmem:[%s1150_s29 + $0xb8] sm:$0xff]  ;;  %v193_v10 = vld [vmem:[%s1150_s29 + $0xb0] sm:$0xff] }
  0x20   : > { %1047 = vmatpush1.bf16.msra.mxu0 %v1046_v23  ;;  %1069 = vmatpush1.bf16.msra.mxu1 %v1046_v23  ;;  %v226_v9 = vld [vmem:[%s1150_s29 + $0x1b8] sm:$0xff]  ;;  %v225_v11 = vld [vmem:[%s1150_s29 + $0x1b0] sm:$0xff]  ;;  %v196_v12 = vld [vmem:[%s1150_s29 + $0xc8] sm:$0xff] }
  0x21   : > { %1048 = vmatprep.subr.bf16.mxu0 %v1093_v3  ;;  %1061 = vmatprep.subr.bf16.mxu1 %v1093_v3  ;;  %v228_v13 = vld [vmem:[%s1150_s29 + $0x1c8] sm:$0xff]  ;;  %v195_v14 = vld [vmem:[%s1150_s29 + $0xc0] sm:$0xff]  ;;  %v198_v16 = vld [vmem:[%s1150_s29 + $0xd8] sm:$0xff] }
  0x22   : > { %v227_v15 = vld [vmem:[%s1150_s29 + $0x1c0] sm:$0xff]  ;;  %v230_v17 = vld [vmem:[%s1150_s29 + $0x1d8] sm:$0xff]  ;;  %v197_v18 = vld [vmem:[%s1150_s29 + $0xd0] sm:$0xff] }
  0x23   : > { %v229_v19 = vld [vmem:[%s1150_s29 + $0x1d0] sm:$0xff]  ;;  %v200_v20 = vld [vmem:[%s1150_s29 + $0xe8] sm:$0xff]  ;;  %v199_v22 = vld [vmem:[%s1150_s29 + $0xe0] sm:$0xff] }
  0x24   : > { %1050 = vmatpush1.bf16.msra.mxu0 %v1049_v26  ;;  %1070 = vmatpush1.bf16.msra.mxu1 %v1049_v26  ;;  %v232_v21 = vld [vmem:[%s1150_s29 + $0x1e8] sm:$0x3]  ;;  %v231_v23 = vld [vmem:[%s1150_s29 + $0x1e0] sm:$0x3]  ;;  %v202_v24 = vld [vmem:[%s1150_s29 + $0xf8] sm:$0xff] }
  0x25   : > { %1051 = vmatprep.subr.bf16.mxu0 %v1093_v3  ;;  %1062 = vmatprep.subr.bf16.mxu1 %v1093_v3  ;;  %v221_v3 = vld [vmem:[%s1150_s29 + $0x190] sm:$0xff] }
  0x26   : > { %v201_v25 = vld [vmem:[%s1150_s29 + $0xf0] sm:$0xff] }
  0x28   : > { %1053 = vmatpush1.bf16.msra.mxu0 %v1052_v29  ;;  %1071 = vmatpush1.bf16.msra.mxu1 %v1052_v29 }
  0x2b   : > { %417 = vmatmul.mubr.f32.vlgmr.msra.gmra.mrb[0].mxu0 %v171_v30  ;;  %497 = vmatmul.mubr.f32.vlgmr.msra.gmra.mrb[0].mxu1 %v203_v31 }
  0x2c   : > { %995 = vmatprep.mubr.msk.f32.mxu0 %vm258_vm0, %v174_v32  ;;  %1011 = vmatprep.mubr.msk.f32.mxu1 %vm258_vm0, %v206_v33 }
  0x2f   : > { %422 = vmatmul.mubr.f32.gmra.mrb[2].mxu0 %v173_v34  ;;  %502 = vmatmul.mubr.f32.gmra.mrb[2].mxu1 %v205_v35 }
  0x30   : > { %996 = vmatprep.mubr.msk.f32.mxu0 %vm258_vm0, %v176_v36  ;;  %1012 = vmatprep.mubr.msk.f32.mxu1 %vm258_vm0, %v208_v37 }
  0x33   : > { %427 = vmatmul.mubr.f32.gmra.mrb[4].mxu0 %v175_v38  ;;  %507 = vmatmul.mubr.f32.gmra.mrb[4].mxu1 %v207_v39 }
  0x34   : > { %997 = vmatprep.mubr.msk.f32.mxu0 %vm258_vm0, %v178_v40  ;;  %1013 = vmatprep.mubr.msk.f32.mxu1 %vm258_vm0, %v210_v41 }
  0x37   : > { %432 = vmatmul.mubr.f32.gmra.mrb[6].mxu0 %v177_v42  ;;  %512 = vmatmul.mubr.f32.gmra.mrb[6].mxu1 %v209_v43 }
  0x38   : > { %998 = vmatprep.mubr.msk.f32.mxu0 %vm258_vm0, %v180_v44  ;;  %1014 = vmatprep.mubr.msk.f32.mxu1 %vm258_vm0, %v212_v45 }
  0x3b   : > { %437 = vmatmul.mubr.f32.gmra.mrb[8].mxu0 %v179_v46  ;;  %517 = vmatmul.mubr.f32.gmra.mrb[8].mxu1 %v211_v47 }
  0x3c   : > { %999 = vmatprep.mubr.msk.f32.mxu0 %vm258_vm0, %v182_v48  ;;  %1015 = vmatprep.mubr.msk.f32.mxu1 %vm258_vm0, %v214_v49  ;;  %v1310_v48 = vld [vmem:[%s1949_s2] ss:$0 sm:$0xff] }
  0x3f   : > { %442 = vmatmul.mubr.f32.gmra.mrb[10].mxu0 %v181_v50  ;;  %522 = vmatmul.mubr.f32.gmra.mrb[10].mxu1 %v213_v51 }
  0x40   : > { %1000 = vmatprep.mubr.msk.f32.mxu0 %vm258_vm0, %v184_v52  ;;  %1016 = vmatprep.mubr.msk.f32.mxu1 %vm258_vm0, %v216_v53 }
  0x43   : > { %447 = vmatmul.mubr.f32.gmra.mrb[12].mxu0 %v183_v54  ;;  %527 = vmatmul.mubr.f32.gmra.mrb[12].mxu1 %v215_v55 }
  0x44   : > { %1001 = vmatprep.mubr.msk.f32.mxu0 %vm258_vm0, %v186_v56  ;;  %1017 = vmatprep.mubr.msk.f32.mxu1 %vm258_vm0, %v218_v57 }
  0x47   : > { %452 = vmatmul.mubr.f32.gmra.mrb[14].mxu0 %v185_v58  ;;  %532 = vmatmul.mubr.f32.gmra.mrb[14].mxu1 %v217_v59 }
  0x48   : > { %1002 = vmatprep.mubr.msk.f32.mxu0 %vm258_vm0, %v188_v60  ;;  %1018 = vmatprep.mubr.msk.f32.mxu1 %vm258_vm0, %v220_v61 }
  0x4b   : > { %457 = vmatmul.mubr.f32.gmra.mrb[16].mxu0 %v187_v62  ;;  %537 = vmatmul.mubr.f32.gmra.mrb[16].mxu1 %v219_v63 }
  0x4c   : > { %1003 = vmatprep.mubr.msk.f32.mxu0 %vm258_vm0, %v190_v0  ;;  %1019 = vmatprep.mubr.msk.f32.mxu1 %vm258_vm0, %v222_v1 }
  0x4f   : > { %462 = vmatmul.mubr.f32.gmra.mrb[18].mxu0 %v189_v2  ;;  %542 = vmatmul.mubr.f32.gmra.mrb[18].mxu1 %v221_v3 }
  0x50   : > { %1004 = vmatprep.mubr.msk.f32.mxu0 %vm258_vm0, %v192_v4  ;;  %1020 = vmatprep.mubr.msk.f32.mxu1 %vm258_vm0, %v224_v5 }
  0x53   : > { %467 = vmatmul.mubr.f32.gmra.mrb[20].mxu0 %v191_v6  ;;  %547 = vmatmul.mubr.f32.gmra.mrb[20].mxu1 %v223_v7 }
  0x54   : > { %1005 = vmatprep.mubr.msk.f32.mxu0 %vm258_vm0, %v194_v8  ;;  %1021 = vmatprep.mubr.msk.f32.mxu1 %vm258_vm0, %v226_v9 }
  0x57   : > { %472 = vmatmul.mubr.f32.gmra.mrb[22].mxu0 %v193_v10  ;;  %552 = vmatmul.mubr.f32.gmra.mrb[22].mxu1 %v225_v11 }
  0x58   : > { %1006 = vmatprep.mubr.msk.f32.mxu0 %vm258_vm0, %v196_v12  ;;  %1022 = vmatprep.mubr.msk.f32.mxu1 %vm258_vm0, %v228_v13 }
  0x5b   : > { %477 = vmatmul.mubr.f32.gmra.mrb[24].mxu0 %v195_v14  ;;  %557 = vmatmul.mubr.f32.gmra.mrb[24].mxu1 %v227_v15 }
  0x5c   : > { %1007 = vmatprep.mubr.msk.f32.mxu0 %vm258_vm0, %v198_v16  ;;  %1023 = vmatprep.mubr.msk.f32.mxu1 %vm258_vm0, %v230_v17 }
  0x5f   : > { %482 = vmatmul.mubr.f32.gmra.mrb[26].mxu0 %v197_v18  ;;  %562 = vmatmul.mubr.f32.gmra.mrb[26].mxu1 %v229_v19 }
  0x60   : > { %1008 = vmatprep.mubr.msk.f32.mxu0 %vm258_vm0, %v200_v20  ;;  %1024 = vmatprep.mubr.msk.f32.mxu1 %vm258_vm0, %v232_v21 }
  0x63   : > { %487 = vmatmul.mubr.f32.gmra.mrb[28].mxu0 %v199_v22  ;;  %567 = vmatmul.mubr.f32.gmra.mrb[28].mxu1 %v231_v23 }
  0x64   : > { %1009 = vmatprep.mubr.msk.f32.mxu0 %vm258_vm0, %v202_v24 }
  0x67   : > { %492 = vmatmul.mubr.f32.gmra.mrb[30].mxu0 %v201_v25 }
  0xfe   : > { %v418_v26 = vpop.f32.mrb[0].mxu0  ;;  %v1295_v27 = vpop.f32.mrb[0].mxu1 }
  0xff   : > { %v420_v28 = vpop.f32.mrb[1].mxu0  ;;  %v500_v29 = vpop.f32.mrb[1].mxu1  ;;  %v1316_v52 = vadd.f32 %v1310_v48, %v418_v26 }
 0x101   : > { %v640_v60 = vmul.f32 %v1316_v52, %v1316_v52  ;;  %v572_v4 = vsel %vm258_vm0, %v1316_v52, 0.0 }
 0x102   : > { %v423_v30 = vpop.f32.mrb[2].mxu0  ;;  %v1297_v31 = vpop.f32.mrb[2].mxu1 }
 0x103   : > { %v425_v32 = vpop.f32.mrb[3].mxu0  ;;  %v505_v33 = vpop.f32.mrb[3].mxu1  ;;  %v1313_v51 = vadd.f32 %v1310_v48, %v423_v30  ;;  %v671_v9 = vsel %vm258_vm0, %v640_v60, 0.0 }
 0x105   : > { %v641_v58 = vmul.f32 %v1313_v51, %v1313_v51  ;;  %v573_v63 = vsel %vm258_vm0, %v1313_v51, 0.0 }
 0x106   : > { %v428_v34 = vpop.f32.mrb[4].mxu0  ;;  %v1299_v35 = vpop.f32.mrb[4].mxu1  ;;  %v574_v10 = vadd.f32 %v573_v63, %v572_v4 }
 0x107   : > { %v430_v36 = vpop.f32.mrb[5].mxu0  ;;  %v510_v37 = vpop.f32.mrb[5].mxu1  ;;  %v1321_v55 = vadd.f32 %v1310_v48, %v428_v34  ;;  %v672_v5 = vsel %vm258_vm0, %v641_v58, 0.0 }
 0x108   : > { %v673_v19 = vadd.f32 %v672_v5, %v671_v9 }
 0x109   : > { %v642_v0 = vmul.f32 %v1321_v55, %v1321_v55  ;;  %v575_v6 = vsel %vm258_vm0, %v1321_v55, 0.0 }
 0x10a   : > { %v433_v38 = vpop.f32.mrb[6].mxu0  ;;  %v1301_v39 = vpop.f32.mrb[6].mxu1  ;;  %v576_v20 = vadd.f32 %v575_v6, %v574_v10 }
 0x10b   : > { %v435_v40 = vpop.f32.mrb[7].mxu0  ;;  %v515_v41 = vpop.f32.mrb[7].mxu1  ;;  %v1326_v59 = vadd.f32 %v1310_v48, %v433_v38  ;;  %v674_v13 = vsel %vm258_vm0, %v642_v0, 0.0 }
 0x10c   : > { %v675_v25 = vadd.f32 %v674_v13, %v673_v19 }
 0x10d   : > { %v643_v7 = vmul.f32 %v1326_v59, %v1326_v59  ;;  %v577_v14 = vsel %vm258_vm0, %v1326_v59, 0.0 }
 0x10e   : > { %v438_v42 = vpop.f32.mrb[8].mxu0  ;;  %v1303_v43 = vpop.f32.mrb[8].mxu1  ;;  %v578_v26 = vadd.f32 %v577_v14, %v576_v20 }
 0x10f   : > { %v440_v44 = vpop.f32.mrb[9].mxu0  ;;  %v520_v45 = vpop.f32.mrb[9].mxu1  ;;  %v1337_v1 = vadd.f32 %v1310_v48, %v438_v42  ;;  %v676_v21 = vsel %vm258_vm0, %v643_v7, 0.0 }
 0x110   : > { %v677_v38 = vadd.f32 %v676_v21, %v675_v25 }
 0x111   : > { %v644_v15 = vmul.f32 %v1337_v1, %v1337_v1  ;;  %v579_v22 = vsel %vm258_vm0, %v1337_v1, 0.0 }
 0x112   : > { %v443_v46 = vpop.f32.mrb[10].mxu0  ;;  %v1305_v47 = vpop.f32.mrb[10].mxu1  ;;  %v580_v40 = vadd.f32 %v579_v22, %v578_v26 }
 0x113   : > { %v445_v49 = vpop.f32.mrb[11].mxu0  ;;  %v525_v50 = vpop.f32.mrb[11].mxu1  ;;  %v1347_v8 = vadd.f32 %v1310_v48, %v443_v46  ;;  %v678_v30 = vsel %vm258_vm0, %v644_v15, 0.0 }
 0x114   : > { %v679_v46 = vadd.f32 %v678_v30, %v677_v38 }
 0x115   : > { %v645_v23 = vmul.f32 %v1347_v8, %v1347_v8  ;;  %v581_v32 = vsel %vm258_vm0, %v1347_v8, 0.0 }
 0x116   : > { %v448_v53 = vpop.f32.mrb[12].mxu0  ;;  %v1318_v54 = vpop.f32.mrb[12].mxu1  ;;  %v582_v49 = vadd.f32 %v581_v32, %v580_v40 }
 0x117   : > { %v450_v56 = vpop.f32.mrb[13].mxu0  ;;  %v530_v57 = vpop.f32.mrb[13].mxu1  ;;  %v1358_v16 = vadd.f32 %v1310_v48, %v448_v53  ;;  %v680_v41 = vsel %vm258_vm0, %v645_v23, 0.0 }
 0x118   : > { %v681_v0 = vadd.f32 %v680_v41, %v679_v46 }
 0x119   : > { %v646_v33 = vmul.f32 %v1358_v16, %v1358_v16  ;;  %v583_v42 = vsel %vm258_vm0, %v1358_v16, 0.0 }
 0x11a   : > { %v453_v61 = vpop.f32.mrb[14].mxu0  ;;  %v1330_v62 = vpop.f32.mrb[14].mxu1 }
 0x11b   : > { %v455_v2 = vpop.f32.mrb[15].mxu0  ;;  %v535_v3 = vpop.f32.mrb[15].mxu1  ;;  %v1366_v24 = vadd.f32 %v1310_v48, %v453_v61  ;;  %v682_v56 = vsel %vm258_vm0, %v646_v33, 0.0 }
 0x11c   : > { %v584_v2 = vadd.f32 %v583_v42, %v582_v49  ;;  %v683_v6 = vadd.f32 %v682_v56, %v681_v0 }
 0x11d   : > { %v647_v44 = vmul.f32 %v1366_v24, %v1366_v24  ;;  %v585_v57 = vsel %vm258_vm0, %v1366_v24, 0.0 }
 0x11e   : > { %v458_v11 = vpop.f32.mrb[16].mxu0  ;;  %v1350_v12 = vpop.f32.mrb[16].mxu1  ;;  %v586_v7 = vadd.f32 %v585_v57, %v584_v2 }
 0x11f   : > { %v460_v17 = vpop.f32.mrb[17].mxu0  ;;  %v540_v18 = vpop.f32.mrb[17].mxu1  ;;  %v1376_v34 = vadd.f32 %v1310_v48, %v458_v11  ;;  %v684_v3 = vsel %vm258_vm0, %v647_v44, 0.0 }
 0x120   : > { %v685_v19 = vadd.f32 %v684_v3, %v683_v6 }
 0x121   : > { %v648_v58 = vmul.f32 %v1376_v34, %v1376_v34  ;;  %v587_v4 = vsel %vm258_vm0, %v1376_v34, 0.0 }
 0x122   : > { %v463_v28 = vpop.f32.mrb[18].mxu0  ;;  %v1368_v29 = vpop.f32.mrb[18].mxu1  ;;  %v588_v20 = vadd.f32 %v587_v4, %v586_v7 }
 0x123   : > { %v465_v36 = vpop.f32.mrb[19].mxu0  ;;  %v545_v37 = vpop.f32.mrb[19].mxu1  ;;  %v1384_v45 = vadd.f32 %v1310_v48, %v463_v28  ;;  %v686_v11 = vsel %vm258_vm0, %v648_v58, 0.0 }
 0x124   : > { %v687_v25 = vadd.f32 %v686_v11, %v685_v19 }
 0x125   : > { %v649_v5 = vmul.f32 %v1384_v45, %v1384_v45  ;;  %v589_v13 = vsel %vm258_vm0, %v1384_v45, 0.0 }
 0x126   : > { %v468_v50 = vpop.f32.mrb[20].mxu0  ;;  %v1386_v53 = vpop.f32.mrb[20].mxu1  ;;  %v590_v26 = vadd.f32 %v589_v13, %v588_v20  ;;  %v1447_v20 = vadd.f32 %v1310_v48, %v1295_v27 }
 0x127   : > { %v1394_v60 = vadd.f32 %v1310_v48, %v468_v50  ;;  %v470_v61 = vpop.f32.mrb[21].mxu0  ;;  %v550_v63 = vpop.f32.mrb[21].mxu1  ;;  %v688_v21 = vsel %vm258_vm0, %v649_v5, 0.0 }
 0x128   : > { %v689_v40 = vadd.f32 %v688_v21, %v687_v25 }
 0x129   : > { %v650_v14 = vmul.f32 %v1394_v60, %v1394_v60  ;;  %v591_v22 = vsel %vm258_vm0, %v1394_v60, 0.0 }
 0x12a   : > { %v473_v9 = vpop.f32.mrb[22].mxu0  ;;  %v1401_v10 = vpop.f32.mrb[22].mxu1  ;;  %v592_v41 = vadd.f32 %v591_v22, %v590_v26  ;;  %v1455_v26 = vadd.f32 %v1310_v48, %v1297_v31 }
 0x12b   : > { %v1409_v15 = vadd.f32 %v1310_v48, %v473_v9  ;;  %v475_v17 = vpop.f32.mrb[23].mxu0  ;;  %v555_v18 = vpop.f32.mrb[23].mxu1  ;;  %v690_v32 = vsel %vm258_vm0, %v650_v14, 0.0 }
 0x12c   : > { %v691_v49 = vadd.f32 %v690_v32, %v689_v40 }
 0x12d   : > { %v651_v23 = vmul.f32 %v1409_v15, %v1409_v15  ;;  %v593_v33 = vsel %vm258_vm0, %v1409_v15, 0.0 }
 0x12e   : > { %v478_v28 = vpop.f32.mrb[24].mxu0  ;;  %v1416_v30 = vpop.f32.mrb[24].mxu1  ;;  %v594_v50 = vadd.f32 %v593_v33, %v592_v41 }
 0x12f   : > { %v1422_v36 = vadd.f32 %v1310_v48, %v478_v28  ;;  %v480_v37 = vpop.f32.mrb[25].mxu0  ;;  %v560_v38 = vpop.f32.mrb[25].mxu1  ;;  %v692_v42 = vsel %vm258_vm0, %v651_v23, 0.0 }
 0x130   : > { %v693_v2 = vadd.f32 %v692_v42, %v691_v49  ;;  %v656_v37 = vmul.f32 %v1447_v20, %v1447_v20  ;;  %v1465_v38 = vadd.f32 %v1310_v48, %v1299_v35  ;;  %v603_v42 = vsel %vm258_vm0, %v1447_v20, 0.0 }
 0x131   : > { %v595_v44 = vsel %vm258_vm0, %v1422_v36, 0.0  ;;  %v652_v46 = vmul.f32 %v1422_v36, %v1422_v36 }
 0x132   : > { %v483_v56 = vpop.f32.mrb[26].mxu0  ;;  %v1429_v57 = vpop.f32.mrb[26].mxu1  ;;  %v596_v3 = vadd.f32 %v595_v44, %v594_v50  ;;  %v657_v44 = vmul.f32 %v1455_v26, %v1455_v26 }
 0x133   : > { %v694_v58 = vsel %vm258_vm0, %v652_v46, 0.0  ;;  %v1433_v61 = vadd.f32 %v1310_v48, %v483_v56  ;;  %v485_v63 = vpop.f32.mrb[27].mxu0  ;;  %v565_v0 = vpop.f32.mrb[27].mxu1  ;;  %v1477_v46 = vadd.f32 %v1310_v48, %v1301_v39  ;;  %v702_v56 = vsel %vm258_vm0, %v656_v37, 0.0 }
 0x134   : > { %v695_v6 = vadd.f32 %v694_v58, %v693_v2  ;;  %v605_v58 = vsel %vm258_vm0, %v1455_v26, 0.0  ;;  %v658_v63 = vmul.f32 %v1465_v38, %v1465_v38  ;;  %v1487_v0 = vadd.f32 %v1310_v48, %v1303_v43 }
 0x135   : > { %v597_v4 = vsel %vm258_vm0, %v1433_v61, 0.0  ;;  %v653_v5 = vmul.f32 %v1433_v61, %v1433_v61  ;;  %v704_v39 = vsel %vm258_vm0, %v657_v44, 0.0  ;;  %v609_v43 = vsel %vm258_vm0, %v1477_v46, 0.0 }
 0x136   : > { %v598_v7 = vadd.f32 %v597_v4, %v596_v3  ;;  %v488_v9 = vpop.f32.mrb[28].mxu0  ;;  %v1439_v11 = vpop.f32.mrb[28].mxu1  ;;  %v607_v4 = vsel %vm258_vm0, %v1465_v38, 0.0 }
 0x137   : > { %v696_v13 = vsel %vm258_vm0, %v653_v5, 0.0  ;;  %v1443_v14 = vadd.f32 %v1310_v48, %v488_v9  ;;  %v490_v17 = vpop.f32.mrb[29].mxu0  ;;  %v570_v18 = vpop.f32.mrb[29].mxu1  ;;  %v659_v5 = vmul.f32 %v1477_v46, %v1477_v46 }
 0x138   : > { %v697_v19 = vadd.f32 %v696_v13, %v695_v6  ;;  %v1496_v6 = vadd.f32 %v1310_v48, %v1305_v47  ;;  %v706_v13 = vsel %vm258_vm0, %v658_v63, 0.0  ;;  %v660_v17 = vmul.f32 %v1487_v0, %v1487_v0 }
 0x139   : > { %v599_v21 = vsel %vm258_vm0, %v1443_v14, 0.0  ;;  %v654_v22 = vmul.f32 %v1443_v14, %v1443_v14  ;;  %v1505_v18 = vadd.f32 %v1310_v48, %v1318_v54  ;;  %v611_v47 = vsel %vm258_vm0, %v1487_v0, 0.0 }
 0x13a   : > { %v600_v23 = vadd.f32 %v599_v21, %v598_v7  ;;  %v493_v25 = vpop.f32.mrb[30].mxu0  ;;  %v613_v54 = vsel %vm258_vm0, %v1496_v6, 0.0 }
 0x13b   : > { %v698_v28 = vsel %vm258_vm0, %v654_v22, 0.0  ;;  %v1459_v32 = vadd.f32 %v1310_v48, %v493_v25  ;;  %v495_v33 = vpop.f32.mrb[31].mxu0  ;;  %v708_v22 = vsel %vm258_vm0, %v659_v5, 0.0  ;;  %v1514_v25 = vadd.f32 %v1310_v48, %v1330_v62 }
 0x13c   : > { %v699_v27 = vadd.f32 %v698_v28, %v697_v19  ;;  %v662_v37 = vmul.f32 %v1505_v18, %v1505_v18  ;;  %v1527_v62 = vadd.f32 %v1310_v48, %v1368_v29  ;;  %v615_v44 = vsel %vm258_vm0, %v1505_v18, 0.0 }
 0x13d   : > { %v601_v40 = vsel %vm258_vm0, %v1459_v32, 0.0  ;;  %v655_v31 = vmul.f32 %v1459_v32, %v1459_v32  ;;  %v1541_v29 = vadd.f32 %v1310_v48, %v1386_v53  ;;  %v1550_v5 = vadd.f32 %v1310_v48, %v1401_v10 }
 0x13e   : > { %v602_v41 = vadd.f32 %v601_v40, %v600_v23  ;;  %v661_v23 = vmul.f32 %v1496_v6, %v1496_v6  ;;  %v1523_v40 = vadd.f32 %v1310_v48, %v1350_v12  ;;  %v617_v12 = vsel %vm258_vm0, %v1514_v25, 0.0 }
 0x13f   : > { %v700_v35 = vsel %vm258_vm0, %v655_v31, 0.0  ;;  %v621_v53 = vsel %vm258_vm0, %v1527_v62, 0.0  ;;  %v623_v10 = vsel %vm258_vm0, %v1541_v29, 0.0 }
 0x140   : > { %v604_v49 = vadd.f32 %v603_v42, %v602_v41  ;;  %v701_v50 = vadd.f32 %v700_v35, %v699_v27  ;;  %v710_v27 = vsel %vm258_vm0, %v660_v17, 0.0  ;;  %v712_v42 = vsel %vm258_vm0, %v661_v23, 0.0 }
 0x141   : > { %v663_v35 = vmul.f32 %v1514_v25, %v1514_v25  ;;  %v1559_v17 = vadd.f32 %v1310_v48, %v1416_v30  ;;  %v1568_v23 = vadd.f32 %v1310_v48, %v1429_v57 }
 0x142   : > { %v606_v2 = vadd.f32 %v605_v58, %v604_v49  ;;  %v703_v3 = vadd.f32 %v702_v56, %v701_v50  ;;  %v714_v56 = vsel %vm258_vm0, %v662_v37, 0.0  ;;  %v664_v58 = vmul.f32 %v1523_v40, %v1523_v40 }
 0x143   : > { %v668_v37 = vmul.f32 %v1559_v17, %v1559_v17 }
 0x144   : > { %v608_v7 = vadd.f32 %v607_v4, %v606_v2  ;;  %v705_v9 = vadd.f32 %v704_v39, %v703_v3  ;;  %v665_v3 = vmul.f32 %v1527_v62, %v1527_v62  ;;  %v716_v39 = vsel %vm258_vm0, %v663_v35, 0.0 }
 0x145   : > { %v619_v4 = vsel %vm258_vm0, %v1523_v40, 0.0 }
 0x146   : > { %v707_v19 = vadd.f32 %v706_v13, %v705_v9  ;;  %v610_v21 = vadd.f32 %v609_v43, %v608_v7  ;;  %v718_v13 = vsel %vm258_vm0, %v664_v58, 0.0  ;;  %v666_v43 = vmul.f32 %v1541_v29, %v1541_v29 }
 0x148   : > { %v612_v28 = vadd.f32 %v611_v47, %v610_v21  ;;  %v709_v33 = vadd.f32 %v708_v22, %v707_v19  ;;  %v720_v22 = vsel %vm258_vm0, %v665_v3, 0.0  ;;  %v667_v47 = vmul.f32 %v1550_v5, %v1550_v5 }
 0x14a   : > { %v614_v31 = vadd.f32 %v613_v54, %v612_v28  ;;  %v711_v41 = vadd.f32 %v710_v27, %v709_v33  ;;  %v1572_v28 = vadd.f32 %v1310_v48, %v1439_v11  ;;  %v722_v27 = vsel %vm258_vm0, %v666_v43, 0.0 }
 0x14b   : > { %v625_v54 = vsel %vm258_vm0, %v1550_v5, 0.0  ;;  %v724_v57 = vsel %vm258_vm0, %v667_v47, 0.0  ;;  %v669_v48 = vmul.f32 %v1568_v23, %v1568_v23 }
 0x14c   : > { %v616_v49 = vadd.f32 %v615_v44, %v614_v31  ;;  %v713_v50 = vadd.f32 %v712_v42, %v711_v41  ;;  %v627_v42 = vsel %vm258_vm0, %v1559_v17, 0.0  ;;  %v670_v11 = vmul.f32 %v1572_v28, %v1572_v28 }
 0x14e   : > { %v618_v63 = vadd.f32 %v617_v12, %v616_v49  ;;  %v715_v2 = vadd.f32 %v714_v56, %v713_v50  ;;  %v726_v49 = vsel %vm258_vm0, %v668_v37, 0.0  ;;  %v629_v50 = vsel %vm258_vm0, %v1568_v23, 0.0 }
 0x14f   : > { %v632_v56 = vsel %vm1951_vm1, %v1572_v28, 0.0 }
 0x150   : > { %v717_v7 = vadd.f32 %v716_v39, %v715_v2  ;;  %v620_v9 = vadd.f32 %v619_v4, %v618_v63  ;;  %v728_v63 = vsel %vm258_vm0, %v669_v48, 0.0  ;;  %v730_v2 = vsel %vm1951_vm1, %v670_v11, 0.0 }
 0x152   : > { %v719_v19 = vadd.f32 %v718_v13, %v717_v7  ;;  %v622_v21 = vadd.f32 %v621_v53, %v620_v9 }
 0x154   : > { %v721_v30 = vadd.f32 %v720_v22, %v719_v19  ;;  %v624_v33 = vadd.f32 %v623_v10, %v622_v21 }
 0x156   : > { %v723_v31 = vadd.f32 %v722_v27, %v721_v30  ;;  %v626_v41 = vadd.f32 %v625_v54, %v624_v33 }
 0x158   : > { %v725_v44 = vadd.f32 %v724_v57, %v723_v31  ;;  %v628_v35 = vadd.f32 %v627_v42, %v626_v41 }
 0x15a   : > { %v727_v12 = vadd.f32 %v726_v49, %v725_v44  ;;  %v630_v58 = vadd.f32 %v629_v50, %v628_v35 }
 0x15c   : > { %v729_v3 = vadd.f32 %v728_v63, %v727_v12  ;;  %v633_v39 = vadd.f32 %v632_v56, %v630_v58 }
 0x15e   : > { %v634_v4 = vrot.slane %v633_v39, 4  ;;  %v731_v7 = vadd.f32 %v730_v2, %v729_v3 }
 0x160   : > { %v635_v9 = vadd.f32 %v634_v4, %v633_v39  ;;  %v732_v13 = vrot.slane %v731_v7, 4 }
 0x162   : > { %v636_v53 = vrot.slane %v635_v9, 2  ;;  %v733_v43 = vadd.f32 %v732_v13, %v731_v7 }
 0x164   : > { %v637_v19 = vadd.f32 %v636_v53, %v635_v9  ;;  %v734_v21 = vrot.slane %v733_v43, 2 }
 0x166   : > { %v638_v22 = vrot.slane %v637_v19, 1  ;;  %v735_v10 = vadd.f32 %v734_v21, %v733_v43 }
 0x168   : > { %v639_v47 = vadd.f32 %v638_v22, %v637_v19  ;;  %v736_v30 = vrot.slane %v735_v10, 1 }
 0x16a   : > { %v737_v33 = vadd.f32 %v736_v30, %v735_v10  ;;  %v1593_v27 = vmul.f32 0.004132231, %v639_v47 }
 0x16c   : > { %v739_v54 = vmul.f32 0.004132231, %v737_v33  ;;  %v740_v37 = vmul.f32 %v1593_v27, %v1593_v27  ;;  %v755_v41 = vsub.f32 %v1422_v36, %v1593_v27  ;;  %v756_v42 = vsub.f32 %v1433_v61, %v1593_v27 }
 0x16d   : > { %v757_v48 = vsub.f32 %v1443_v14, %v1593_v27  ;;  %v758_v11 = vsub.f32 %v1459_v32, %v1593_v27  ;;  %v764_v44 = vsub.f32 %v1496_v6, %v1593_v27  ;;  %v765_v35 = vsub.f32 %v1505_v18, %v1593_v27 }
 0x16e   : > { %v741_v31 = vsub.f32 %v739_v54, %v740_v37  ;;  %v766_v49 = vsub.f32 %v1514_v25, %v1593_v27  ;;  %v767_v36 = vsub.f32 %v1523_v40, %v1593_v27  ;;  %v768_v61 = vsub.f32 %v1527_v62, %v1593_v27 }
 0x16f   : > { %v769_v14 = vsub.f32 %v1541_v29, %v1593_v27  ;;  %v770_v32 = vsub.f32 %v1550_v5, %v1593_v27  ;;  %v771_v6 = vsub.f32 %v1559_v17, %v1593_v27  ;;  %v772_v18 = vsub.f32 %v1568_v23, %v1593_v27 }
 0x170   : > { %v742_v57 = vmax.f32 %v741_v31, 0.0  ;;  %v773_v25 = vsub.f32 %v1572_v28, %v1593_v27  ;;  %v743_v40 = vsub.f32 %v1316_v52, %v1593_v27  ;;  %v744_v62 = vsub.f32 %v1313_v51, %v1593_v27 }
 0x171   : > { %v745_v29 = vsub.f32 %v1321_v55, %v1593_v27  ;;  %v746_v5 = vsub.f32 %v1326_v59, %v1593_v27  ;;  %v747_v17 = vsub.f32 %v1337_v1, %v1593_v27  ;;  %v748_v23 = vsub.f32 %v1347_v8, %v1593_v27 }
 0x172   : > { %v774_v50 = vadd.f32 1e-05, %v742_v57  ;;  %v749_v28 = vsub.f32 %v1358_v16, %v1593_v27  ;;  %v750_v52 = vsub.f32 %v1366_v24, %v1593_v27  ;;  %v751_v51 = vsub.f32 %v1376_v34, %v1593_v27 }
 0x173   : > { %v752_v55 = vsub.f32 %v1384_v45, %v1593_v27  ;;  %v753_v59 = vsub.f32 %v1394_v60, %v1593_v27  ;;  %v754_v1 = vsub.f32 %v1409_v15, %v1593_v27  ;;  %v759_v8 = vsub.f32 %v1447_v20, %v1593_v27 }
 0x174   : > { %1083 = vrsqrt.f32 %v774_v50  ;;  %v760_v16 = vsub.f32 %v1455_v26, %v1593_v27  ;;  %v761_v24 = vsub.f32 %v1465_v38, %v1593_v27  ;;  %v762_v34 = vsub.f32 %v1477_v46, %v1593_v27 }
 0x175   : > { %v763_v45 = vsub.f32 %v1487_v0, %v1593_v27 }
 0x17e   : > { %v1084_v56 = vpop.eup %1083 }
 0x17f   : > { %v1659_v60 = vmul.f32 %v1084_v56, %v743_v40  ;;  %v1661_v12 = vmul.f32 %v1084_v56, %v744_v62  ;;  %v1663_v15 = vmul.f32 %v1084_v56, %v745_v29  ;;  %v1665_v20 = vmul.f32 %v1084_v56, %v746_v5 }
 0x180   : > { %v1667_v58 = vmul.f32 %v1084_v56, %v747_v17  ;;  %v1669_v26 = vmul.f32 %v1084_v56, %v748_v23  ;;  %v1671_v63 = vmul.f32 %v1084_v56, %v749_v28  ;;  %v1673_v38 = vmul.f32 %v1084_v56, %v750_v52 }
 0x181   : > { %v1675_v46 = vmul.f32 %v1084_v56, %v751_v51  ;;  %v1677_v2 = vmul.f32 %v1084_v56, %v752_v55  ;;  %v1679_v0 = vmul.f32 %v1084_v56, %v753_v59  ;;  %v1681_v3 = vmul.f32 %v1084_v56, %v754_v1 }
 0x182   : > { %v1683_v39 = vmul.f32 %v1084_v56, %v755_v41  ;;  %v1685_v4 = vmul.f32 %v1084_v56, %v756_v42  ;;  %v1687_v7 = vmul.f32 %v1084_v56, %v757_v48  ;;  %v1689_v9 = vmul.f32 %v1084_v56, %v758_v11 }
 0x183   : > { %v1691_v13 = vmul.f32 %v1084_v56, %v759_v8  ;;  %v1693_v53 = vmul.f32 %v1084_v56, %v760_v16  ;;  %v1695_v43 = vmul.f32 %v1084_v56, %v761_v24  ;;  %v1697_v19 = vmul.f32 %v1084_v56, %v762_v34 }
 0x184   : > { %v1699_v21 = vmul.f32 %v1084_v56, %v763_v45  ;;  %v1701_v22 = vmul.f32 %v1084_v56, %v764_v44  ;;  %v1703_v10 = vmul.f32 %v1084_v56, %v765_v35  ;;  %v1705_v47 = vmul.f32 %v1084_v56, %v766_v49 }
 0x185   : > { %v1707_v30 = vmul.f32 %v1084_v56, %v767_v36  ;;  %v1709_v33 = vmul.f32 %v1084_v56, %v768_v61  ;;  %v1711_v27 = vmul.f32 %v1084_v56, %v769_v14  ;;  %v1713_v54 = vmul.f32 %v1084_v56, %v770_v32 }
 0x186   : > { %v1715_v37 = vmul.f32 %v1084_v56, %v771_v6  ;;  %v1717_v31 = vmul.f32 %v1084_v56, %v772_v18  ;;  %v1719_v41 = vmul.f32 %v1084_v56, %v773_v25  ;;  %vm807_vm2 = vcmp.gt.f32.partialorder %v1659_v60, 0.0 }
 0x187   : > { %vm808_vm3 = vcmp.gt.f32.partialorder %v1661_v12, 0.0  ;;  %vm809_vm4 = vcmp.gt.f32.partialorder %v1663_v15, 0.0  ;;  %vm810_vm5 = vcmp.gt.f32.partialorder %v1665_v20, 0.0  ;;  %vm811_vm6 = vcmp.gt.f32.partialorder %v1667_v58, 0.0 }
 0x188   : > { %vm812_vm7 = vcmp.gt.f32.partialorder %v1669_v26, 0.0  ;;  %vm813_vm8 = vcmp.gt.f32.partialorder %v1671_v63, 0.0  ;;  %vm817_vm12 = vcmp.gt.f32.partialorder %v1679_v0, 0.0  ;;  %v838_v57 = vmul.f32 0.2, %v1659_v60 }
 0x189   : > { %v839_v42 = vmul.f32 0.2, %v1661_v12  ;;  %vm822_vm11 = vcmp.gt.f32.partialorder %v1689_v9, 0.0  ;;  %vm823_vm10 = vcmp.gt.f32.partialorder %v1691_v13, 0.0  ;;  %v840_v48 = vmul.f32 0.2, %v1663_v15 }
 0x18a   : > { %v841_v11 = vmul.f32 0.2, %v1665_v20  ;;  %v842_v44 = vmul.f32 0.2, %v1667_v58  ;;  %vm828_vm1 = vcmp.gt.f32.partialorder %v1701_v22, 0.0  ;;  %v869_v61 = vsel %vm807_vm2, %v1659_v60, %v838_v57 }
 0x18b   : > { %v843_v35 = vmul.f32 0.2, %v1669_v26  ;;  %v844_v49 = vmul.f32 0.2, %v1671_v63  ;;  %v845_v36 = vmul.f32 0.2, %v1673_v38  ;;  %v870_v18 = vsel %vm808_vm3, %v1661_v12, %v839_v42 }
 0x18c   : > { %vm829_vm9 = vcmp.gt.f32.partialorder %v1703_v10, 0.0  ;;  %v846_v14 = vmul.f32 0.2, %v1675_v46  ;;  %v847_v32 = vmul.f32 0.2, %v1677_v2  ;;  %900 = vst.msk [vmem:[%s1735_s6] sm:$0xff] %vm258_vm0, %v869_v61  ;;  %v871_v62 = vsel %vm809_vm4, %v1663_v15, %v840_v48 }
 0x18d   : > { %v848_v6 = vmul.f32 0.2, %v1679_v0  ;;  %vm833_vm2 = vcmp.gt.f32.partialorder %v1711_v27, 0.0  ;;  %vm834_vm15 = vcmp.gt.f32.partialorder %v1713_v54, 0.0  ;;  %vm835_vm14 = vcmp.gt.f32.partialorder %v1715_v37, 0.0  ;;  %901 = vst.msk [vmem:[%s1735_s6 + $0x8] sm:$0xff] %vm258_vm0, %v870_v18 }
 0x18e   : > { %vm836_vm13 = vcmp.gt.f32.partialorder %v1717_v31, 0.0  ;;  %v849_v25 = vmul.f32 0.2, %v1681_v3  ;;  %v850_v50 = vmul.f32 0.2, %v1683_v39  ;;  %vm837_vm3 = vcmp.gt.f32.partialorder %v1719_v41, 0.0 }
 0x18f   : > { %v851_v40 = vmul.f32 0.2, %v1685_v4  ;;  %v852_v29 = vmul.f32 0.2, %v1687_v7  ;;  %v853_v5 = vmul.f32 0.2, %v1689_v9  ;;  %v872_v23 = vsel %vm810_vm5, %v1665_v20, %v841_v11 }
 0x190   : > { %v854_v17 = vmul.f32 0.2, %v1691_v13  ;;  %902 = vst.msk [vmem:[%s1735_s6 + $0x10] sm:$0xff] %vm258_vm0, %v871_v62  ;;  %v855_v28 = vmul.f32 0.2, %v1693_v53  ;;  %v873_v55 = vsel %vm811_vm6, %v1667_v58, %v842_v44  ;;  %903 = vst.msk [vmem:[%s1735_s6 + $0x18] sm:$0xff] %vm258_vm0, %v872_v23  ;;  %v874_v56 = vsel %vm812_vm7, %v1669_v26, %v843_v35 }
 0x191   : > { %v856_v52 = vmul.f32 0.2, %v1695_v43  ;;  %v857_v51 = vmul.f32 0.2, %v1697_v19  ;;  %v858_v59 = vmul.f32 0.2, %v1699_v21  ;;  %v875_v45 = vsel %vm813_vm8, %v1671_v63, %v844_v49 }
 0x192   : > { %v859_v1 = vmul.f32 0.2, %v1701_v22  ;;  %v860_v8 = vmul.f32 0.2, %v1703_v10  ;;  %904 = vst.msk [vmem:[%s1735_s6 + $0x20] sm:$0xff] %vm258_vm0, %v873_v55  ;;  %905 = vst.msk [vmem:[%s1735_s6 + $0x28] sm:$0xff] %vm258_vm0, %v874_v56 }
 0x193   : > { %v861_v16 = vmul.f32 0.2, %v1705_v47  ;;  %v862_v24 = vmul.f32 0.2, %v1707_v30  ;;  %v863_v34 = vmul.f32 0.2, %v1709_v33 }
 0x194   : > { %v864_v60 = vmul.f32 0.2, %v1711_v27  ;;  %v865_v12 = vmul.f32 0.2, %v1713_v54  ;;  %v866_v15 = vmul.f32 0.2, %v1715_v37 }
 0x195   : > { %vm1952_vm4 = vcmp.gt.f32.partialorder %v1673_v38, 0.0  ;;  %906 = vst.msk [vmem:[%s1735_s6 + $0x30] sm:$0xff] %vm258_vm0, %v875_v45  ;;  %v867_v58 = vmul.f32 0.2, %v1717_v31  ;;  %v868_v26 = vmul.f32 0.2, %v1719_v41 }
 0x196   : > { %v876_v20 = vsel %vm1952_vm4, %v1673_v38, %v845_v36  ;;  %vm1953_vm5 = vcmp.gt.f32.partialorder %v1675_v46, 0.0  ;;  %vm1954_vm6 = vcmp.gt.f32.partialorder %v1677_v2, 0.0  ;;  %v879_v38 = vsel %vm817_vm12, %v1679_v0, %v848_v6 }
 0x197   : > { %v877_v63 = vsel %vm1953_vm5, %v1675_v46, %v846_v14  ;;  %v878_v57 = vsel %vm1954_vm6, %v1677_v2, %v847_v32  ;;  %907 = vst.msk [vmem:[%s1735_s6 + $0x38] sm:$0xff] %vm258_vm0, %v876_v20  ;;  %vm1955_vm7 = vcmp.gt.f32.partialorder %v1681_v3, 0.0  ;;  %vm1956_vm8 = vcmp.gt.f32.partialorder %v1683_v39, 0.0  ;;  %910 = vst.msk [vmem:[%s1735_s6 + $0x50] sm:$0xff] %vm258_vm0, %v879_v38 }
 0x198   : > { %v880_v42 = vsel %vm1955_vm7, %v1681_v3, %v849_v25  ;;  %v881_v48 = vsel %vm1956_vm8, %v1683_v39, %v850_v50  ;;  %vm1957_vm4 = vcmp.gt.f32.partialorder %v1685_v4, 0.0  ;;  %908 = vst.msk [vmem:[%s1735_s6 + $0x40] sm:$0xff] %vm258_vm0, %v877_v63  ;;  %909 = vst.msk [vmem:[%s1735_s6 + $0x48] sm:$0xff] %vm258_vm0, %v878_v57  ;;  %vm1958_vm12 = vcmp.gt.f32.partialorder %v1687_v7, 0.0 }
 0x199   : > { %v882_v46 = vsel %vm1957_vm4, %v1685_v4, %v851_v40  ;;  %v883_v2 = vsel %vm1958_vm12, %v1687_v7, %v852_v29  ;;  %v884_v0 = vsel %vm822_vm11, %v1689_v9, %v853_v5  ;;  %v885_v3 = vsel %vm823_vm10, %v1691_v13, %v854_v17  ;;  %911 = vst.msk [vmem:[%s1735_s6 + $0x58] sm:$0xff] %vm258_vm0, %v880_v42 }
 0x19a   : > { %vm1959_vm5 = vcmp.gt.f32.partialorder %v1693_v53, 0.0  ;;  %912 = vst.msk [vmem:[%s1735_s6 + $0x60] sm:$0xff] %vm258_vm0, %v881_v48  ;;  %913 = vst.msk [vmem:[%s1735_s6 + $0x68] sm:$0xff] %vm258_vm0, %v882_v46  ;;  %vm1960_vm11 = vcmp.gt.f32.partialorder %v1695_v43, 0.0  ;;  %vm1961_vm10 = vcmp.gt.f32.partialorder %v1697_v19, 0.0  ;;  %vm1962_vm6 = vcmp.gt.f32.partialorder %v1699_v21, 0.0 }
 0x19b   : > { %v886_v39 = vsel %vm1959_vm5, %v1693_v53, %v855_v28  ;;  %v887_v4 = vsel %vm1960_vm11, %v1695_v43, %v856_v52  ;;  %v888_v7 = vsel %vm1961_vm10, %v1697_v19, %v857_v51  ;;  %v889_v9 = vsel %vm1962_vm6, %v1699_v21, %v858_v59  ;;  %914 = vst.msk [vmem:[%s1735_s6 + $0x70] sm:$0xff] %vm258_vm0, %v883_v2 }
 0x19c   : > { %v890_v13 = vsel %vm828_vm1, %v1701_v22, %v859_v1  ;;  %915 = vst.msk [vmem:[%s1735_s6 + $0x78] sm:$0xff] %vm258_vm0, %v884_v0  ;;  %916 = vst.msk [vmem:[%s1735_s6 + $0x80] sm:$0xff] %vm258_vm0, %v885_v3  ;;  %v891_v53 = vsel %vm829_vm9, %v1703_v10, %v860_v8  ;;  %vm1963_vm7 = vcmp.gt.f32.partialorder %v1705_v47, 0.0  ;;  %vm1964_vm1 = vcmp.gt.f32.partialorder %v1707_v30, 0.0 }
 0x19d   : > { %917 = vst.msk [vmem:[%s1735_s6 + $0x88] sm:$0xff] %vm258_vm0, %v886_v39  ;;  %v892_v43 = vsel %vm1963_vm7, %v1705_v47, %v861_v16  ;;  %v893_v19 = vsel %vm1964_vm1, %v1707_v30, %v862_v24  ;;  %vm1965_vm8 = vcmp.gt.f32.partialorder %v1709_v33, 0.0  ;;  %918 = vst.msk [vmem:[%s1735_s6 + $0x90] sm:$0xff] %vm258_vm0, %v887_v4  ;;  %v895_v22 = vsel %vm833_vm2, %v1711_v27, %v864_v60 }
 0x19e   : > { %v894_v21 = vsel %vm1965_vm8, %v1709_v33, %v863_v34  ;;  %919 = vst.msk [vmem:[%s1735_s6 + $0x98] sm:$0xff] %vm258_vm0, %v888_v7  ;;  %920 = vst.msk [vmem:[%s1735_s6 + $0xa0] sm:$0xff] %vm258_vm0, %v889_v9  ;;  %v896_v10 = vsel %vm834_vm15, %v1713_v54, %v865_v12  ;;  %v897_v47 = vsel %vm835_vm14, %v1715_v37, %v866_v15  ;;  %vm1966_vm9 = vcmask 123904  }
 0x19f   : > { %921 = vst.msk [vmem:[%s1735_s6 + $0xa8] sm:$0xff] %vm258_vm0, %v890_v13  ;;  %v898_v30 = vsel %vm836_vm13, %v1717_v31, %v867_v58  ;;  %922 = vst.msk [vmem:[%s1735_s6 + $0xb0] sm:$0xff] %vm258_vm0, %v891_v53  ;;  %v899_v33 = vsel %vm837_vm3, %v1719_v41, %v868_v26 }
 0x1a0   : > { %923 = vst.msk [vmem:[%s1735_s6 + $0xb8] sm:$0xff] %vm258_vm0, %v892_v43  ;;  %924 = vst.msk [vmem:[%s1735_s6 + $0xc0] sm:$0xff] %vm258_vm0, %v893_v19 }
 0x1a1   : > { %925 = vst.msk [vmem:[%s1735_s6 + $0xc8] sm:$0xff] %vm258_vm0, %v894_v21  ;;  %926 = vst.msk [vmem:[%s1735_s6 + $0xd0] sm:$0xff] %vm258_vm0, %v895_v22 }
 0x1a2   : > { %927 = vst.msk [vmem:[%s1735_s6 + $0xd8] sm:$0xff] %vm258_vm0, %v896_v10  ;;  %928 = vst.msk [vmem:[%s1735_s6 + $0xe0] sm:$0xff] %vm258_vm0, %v897_v47 }
 0x1a3   : > { %929 = vst.msk [vmem:[%s1735_s6 + $0xe8] sm:$0xff] %vm258_vm0, %v898_v30 }
 0x1a4   : > { %930 = vst.msk [vmem:[%s1735_s6 + $0xf0] sm:$0x3] %vm1966_vm9, %v899_v33 }
 0x1a5 PF: > { %s13_s12 = sadd.s32 1, %s1091_s12  }
 0x1a6   : > { %p10_p4 = scmp.ge.s32.totalorder %s13_s12, 4  }
 0x1a8   :  { %12 = sbr.rel (!%p10_p4) target bundleno = 1 (0x1), region = 62 }

// kernel: patch_discriminator_forward.7
= control target key start
LH: loop header
LB: loop body
LE: loop exit
PB: predicated region body
PF: predicated region fallthrough
CT: control target
= control target key end

     0   :  { %s587_s12 = smov 0   ;;  %s751_s0 = inlined_call_operand.vmem [shape: f32[2,50,144], index: 0, kind: input, shape index: {}]   ;;  %s752_s1 = inlined_call_operand.vmem [shape: f32[144,32], index: 1, kind: input, shape index: {}]   ;;  %s753_s2 = inlined_call_operand.vmem [shape: f32[1,32], index: 2, kind: input, shape index: {}]   ;;  %s754_s3 = inlined_call_operand.vmem [shape: f32[2,50,32], index: 3, kind: output, shape index: {}]  }
   0x1 LB: > { %s483_s13 = sadd.s32 4294967295, %s564_s12   ;;  %p487_p0 = scmp.ge.s32.totalorder %s564_s12, 1  ;;  %s564_s12 = sphi %s587_s12, %s13_s12  }
   0x2   : > { %p137_p1 = scmp.lt.s32.totalorder %s564_s12, 3 }
   0x4   : > { %p138_p2 = pnand %p487_p0, %p137_p1 }
   0x5   : > { %v185_v0 = vld [vmem:[%s752_s1] sm:$0xff] (!%p138_p2)  ;;  %v186_v1 = vld [vmem:[%s752_s1 + $0x8] sm:$0xff] (!%p138_p2)  ;;  %v187_v2 = vld [vmem:[%s752_s1 + $0x10] sm:$0xff] (!%p138_p2)  ;;  %p161_p3 = scmp.lt.s32.totalorder (!%p138_p2), %s483_s13, 1  ;;  %v566_v3 = vmov (!%p138_p2), 0.0|0.0   ;;  %vm210_vm0 = vcmask (!%p138_p2), 130048  }
   0x6   : > { %141 = sbr.rel (%p138_p2) target bundleno = 322 (0x142), region = 32  ;;  %500 = vmatprep.subr.bf16.mxu0 (!%p138_p2), %v566_v3  ;;  %v501_v4 = vpack.c.bf16 (!%p138_p2), %v186_v1, %v185_v0  ;;  %v188_v5 = vld [vmem:[%s752_s1 + $0x18] sm:$0xff] (!%p138_p2)  ;;  %527 = vmatprep.subr.bf16.mxu1 (!%p138_p2), %v566_v3  ;;  %v189_v7 = vld [vmem:[%s752_s1 + $0x20] sm:$0xff] (!%p138_p2)  ;;  %v190_v8 = vld [vmem:[%s752_s1 + $0x28] sm:$0xff] (!%p138_p2)  ;;  %vm332_vm1 = vcmask (!%p138_p2), 261120   ;;  %vm344_vm2 = vcmask (!%p138_p2), 254976  }
   0x7   : > { %v504_v6 = vpack.c.bf16 (!%p138_p2), %v188_v5, %v187_v2  ;;  %v507_v9 = vpack.c.bf16 (!%p138_p2), %v190_v8, %v189_v7  ;;  %v191_v11 = vld [vmem:[%s752_s1 + $0x30] sm:$0xff] (!%p138_p2)  ;;  %v192_v12 = vld [vmem:[%s752_s1 + $0x38] sm:$0xff] (!%p138_p2)  ;;  %v193_v15 = vld [vmem:[%s752_s1 + $0x40] sm:$0xff] (!%p138_p2) }
   0x8   : > { %502 = vmatpush1.bf16.msra.mxu0 (!%p138_p2), %v501_v4  ;;  %536 = vmatpush1.bf16.msra.mxu1 (!%p138_p2), %v501_v4  ;;  %v510_v14 = vpack.c.bf16 (!%p138_p2), %v192_v12, %v191_v11  ;;  %v194_v16 = vld [vmem:[%s752_s1 + $0x48] sm:$0xff] (!%p138_p2)  ;;  %v195_v18 = vld [vmem:[%s752_s1 + $0x50] sm:$0xff] (!%p138_p2)  ;;  %v196_v19 = vld [vmem:[%s752_s1 + $0x58] sm:$0xff] (!%p138_p2) }
   0x9   : > { %503 = vmatprep.subr.bf16.mxu0 (!%p138_p2), %v566_v3  ;;  %528 = vmatprep.subr.bf16.mxu1 (!%p138_p2), %v566_v3  ;;  %v513_v17 = vpack.c.bf16 (!%p138_p2), %v194_v16, %v193_v15  ;;  %v516_v20 = vpack.c.bf16 (!%p138_p2), %v196_v19, %v195_v18  ;;  %v197_v21 = vld [vmem:[%s752_s1 + $0x60] sm:$0xff] (!%p138_p2)  ;;  %v198_v22 = vld [vmem:[%s752_s1 + $0x68] sm:$0xff] (!%p138_p2)  ;;  %v199_v24 = vld [vmem:[%s752_s1 + $0x70] sm:$0xff] (!%p138_p2) }
   0xa   : > { %v519_v23 = vpack.c.bf16 (!%p138_p2), %v198_v22, %v197_v21  ;;  %v200_v25 = vld [vmem:[%s752_s1 + $0x78] sm:$0xff] (!%p138_p2)  ;;  %v201_v27 = vld [vmem:[%s752_s1 + $0x80] sm:$0xff] (!%p138_p2)  ;;  %v202_v28 = vld [vmem:[%s752_s1 + $0x88] sm:$0xff] (!%p138_p2) }
   0xb   : > { %v522_v26 = vpack.c.bf16 (!%p138_p2), %v200_v25, %v199_v24  ;;  %v525_v29 = vpack.c.bf16 (!%p138_p2), %v202_v28, %v201_v27  ;;  %v490_v42 = vld [vmem:[%s753_s2] ss:$0 sm:$0xff] (!%p138_p2) }
   0xc   : > { %505 = vmatpush1.bf16.msra.mxu0 (!%p138_p2), %v504_v6  ;;  %537 = vmatpush1.bf16.msra.mxu1 (!%p138_p2), %v504_v6 }
   0xd   : > { %s756_s13 = smov (!%p161_p3, %s483_s13), 1  ;;  %506 = vmatprep.subr.bf16.mxu0 %v566_v3  ;;  %529 = vmatprep.subr.bf16.mxu1 %v566_v3 }
   0xe   : > { %s545_s26 = smul.u32 112, %s756_s13 }
  0x10   : > { %s623_s29 = scalar_lea.vmem %s751_s0, %s545_s26  ;;  %508 = vmatpush1.bf16.msra.mxu0 %v507_v9  ;;  %538 = vmatpush1.bf16.msra.mxu1 %v507_v9 }
  0x11   : > { %v172_v10 = vld [vmem:[%s623_s29 + $0x8] sm:$0xff]  ;;  %509 = vmatprep.subr.bf16.mxu0 %v566_v3  ;;  %530 = vmatprep.subr.bf16.mxu1 %v566_v3  ;;  %v171_v30 = vld [vmem:[%s623_s29] sm:$0xff]  ;;  %v174_v32 = vld [vmem:[%s623_s29 + $0x18] sm:$0xff] }
  0x12   : > { %491 = vmatprep.mubr.msk.f32.mxu0 %vm210_vm0, %v172_v10  ;;  %v180_v13 = vld [vmem:[%s623_s29 + $0x48] sm:$0xff]  ;;  %v179_v31 = vld [vmem:[%s623_s29 + $0x40] sm:$0xff]  ;;  %v182_v33 = vld [vmem:[%s623_s29 + $0x58] sm:$0xff] }
  0x13   : > { %495 = vmatprep.mubr.msk.f32.mxu1 %vm210_vm0, %v180_v13  ;;  %v173_v34 = vld [vmem:[%s623_s29 + $0x10] sm:$0xff]  ;;  %v176_v36 = vld [vmem:[%s623_s29 + $0x28] sm:$0xff]  ;;  %v175_v38 = vld [vmem:[%s623_s29 + $0x20] sm:$0xff] }
  0x14   : > { %511 = vmatpush1.bf16.msra.mxu0 %v510_v14  ;;  %539 = vmatpush1.bf16.msra.mxu1 %v510_v14  ;;  %v181_v35 = vld [vmem:[%s623_s29 + $0x50] sm:$0xff]  ;;  %v184_v37 = vld [vmem:[%s623_s29 + $0x68] sm:$0x3]  ;;  %v183_v39 = vld [vmem:[%s623_s29 + $0x60] sm:$0x3] }
  0x15   : > { %512 = vmatprep.subr.bf16.mxu0 %v566_v3  ;;  %531 = vmatprep.subr.bf16.mxu1 %v566_v3  ;;  %v178_v40 = vld [vmem:[%s623_s29 + $0x38] sm:$0xff]  ;;  %v177_v41 = vld [vmem:[%s623_s29 + $0x30] sm:$0xff]  ;;  %s546_s29 = smul.u32 56, %s756_s13 }
  0x17   : > { %s170_s7 = scalar_lea.vmem %s754_s3, %s546_s29 }
  0x18   : > { %514 = vmatpush1.bf16.msra.mxu0 %v513_v17  ;;  %540 = vmatpush1.bf16.msra.mxu1 %v513_v17 }
  0x19   : > { %515 = vmatprep.subr.bf16.mxu0 %v566_v3  ;;  %532 = vmatprep.subr.bf16.mxu1 %v566_v3 }
  0x1c   : > { %517 = vmatpush1.bf16.msra.mxu0 %v516_v20  ;;  %541 = vmatpush1.bf16.msra.mxu1 %v516_v20 }
  0x1d   : > { %518 = vmatprep.subr.bf16.mxu0 %v566_v3  ;;  %533 = vmatprep.subr.bf16.mxu1 %v566_v3 }
  0x20   : > { %520 = vmatpush1.bf16.msra.mxu0 %v519_v23  ;;  %542 = vmatpush1.bf16.msra.mxu1 %v519_v23 }
  0x21   : > { %521 = vmatprep.subr.bf16.mxu0 %v566_v3  ;;  %534 = vmatprep.subr.bf16.mxu1 %v566_v3 }
  0x24   : > { %523 = vmatpush1.bf16.msra.mxu0 %v522_v26  ;;  %543 = vmatpush1.bf16.msra.mxu1 %v522_v26 }
  0x25   : > { %524 = vmatprep.subr.bf16.mxu0 %v566_v3  ;;  %535 = vmatprep.subr.bf16.mxu1 %v566_v3 }
  0x28   : > { %526 = vmatpush1.bf16.msra.mxu0 %v525_v29  ;;  %544 = vmatpush1.bf16.msra.mxu1 %v525_v29 }
  0x2b   : > { %297 = vmatmul.mubr.f32.vlgmr.msra.gmra.mrb[0].mxu0 %v171_v30  ;;  %317 = vmatmul.mubr.f32.vlgmr.msra.gmra.mrb[0].mxu1 %v179_v31 }
  0x2c   : > { %492 = vmatprep.mubr.msk.f32.mxu0 %vm210_vm0, %v174_v32  ;;  %496 = vmatprep.mubr.msk.f32.mxu1 %vm210_vm0, %v182_v33 }
  0x2f   : > { %302 = vmatmul.mubr.f32.gmra.mrb[2].mxu0 %v173_v34  ;;  %322 = vmatmul.mubr.f32.gmra.mrb[2].mxu1 %v181_v35 }
  0x30   : > { %493 = vmatprep.mubr.msk.f32.mxu0 %vm210_vm0, %v176_v36  ;;  %497 = vmatprep.mubr.msk.f32.mxu1 %vm210_vm0, %v184_v37 }
  0x33   : > { %307 = vmatmul.mubr.f32.gmra.mrb[4].mxu0 %v175_v38  ;;  %327 = vmatmul.mubr.f32.gmra.mrb[4].mxu1 %v183_v39 }
  0x34   : > { %494 = vmatprep.mubr.msk.f32.mxu0 %vm210_vm0, %v178_v40 }
  0x37   : > { %312 = vmatmul.mubr.f32.gmra.mrb[6].mxu0 %v177_v41 }
  0xfe   : > { %v298_v43 = vpop.f32.mrb[0].mxu0  ;;  %v318_v44 = vpop.f32.mrb[0].mxu1 }
  0xff   : > { %v699_v45 = vadd.f32 %v490_v42, %v298_v43  ;;  %v300_v46 = vpop.f32.mrb[1].mxu0  ;;  %v320_v47 = vpop.f32.mrb[1].mxu1  ;;  %v719_v4 = vadd.f32 %v490_v42, %v318_v44 }
 0x101   : > { %v353_v50 = vmul.f32 %v699_v45, %v699_v45  ;;  %v333_v54 = vsel %vm332_vm1, %v699_v45, 0.0  ;;  %v357_v13 = vmul.f32 %v719_v4, %v719_v4  ;;  %v340_v17 = vsel %vm332_vm1, %v719_v4, 0.0 }
 0x102   : > { %v303_v48 = vpop.f32.mrb[2].mxu0  ;;  %v323_v49 = vpop.f32.mrb[2].mxu1 }
 0x103   : > { %v703_v51 = vadd.f32 %v490_v42, %v303_v48  ;;  %v305_v52 = vpop.f32.mrb[3].mxu0  ;;  %v325_v53 = vpop.f32.mrb[3].mxu1  ;;  %v360_v60 = vsel %vm332_vm1, %v353_v50, 0.0  ;;  %v324_v10 = vadd.f32 %v490_v42, %v323_v49  ;;  %v367_v23 = vsel %vm332_vm1, %v357_v13, 0.0 }
 0x105   : > { %v334_v55 = vsel %vm332_vm1, %v703_v51, 0.0  ;;  %v354_v56 = vmul.f32 %v703_v51, %v703_v51  ;;  %v358_v19 = vmul.f32 %v324_v10, %v324_v10  ;;  %v342_v24 = vsel %vm332_vm1, %v324_v10, 0.0 }
 0x106   : > { %v335_v57 = vadd.f32 %v334_v55, %v333_v54  ;;  %v308_v58 = vpop.f32.mrb[4].mxu0  ;;  %v328_v59 = vpop.f32.mrb[4].mxu1 }
 0x107   : > { %v361_v61 = vsel %vm332_vm1, %v354_v56, 0.0  ;;  %v713_v62 = vadd.f32 %v490_v42, %v308_v58  ;;  %v310_v63 = vpop.f32.mrb[5].mxu0  ;;  %v330_v0 = vpop.f32.mrb[5].mxu1  ;;  %v329_v11 = vadd.f32 %v490_v42, %v328_v59  ;;  %v369_v28 = vsel %vm332_vm1, %v358_v19, 0.0 }
 0x108   : > { %v362_v1 = vadd.f32 %v361_v61, %v360_v60 }
 0x109   : > { %v336_v2 = vsel %vm332_vm1, %v713_v62, 0.0  ;;  %v355_v3 = vmul.f32 %v713_v62, %v713_v62  ;;  %v359_v20 = vmul.f32 %v329_v11, %v329_v11  ;;  %v345_v25 = vsel %vm344_vm2, %v329_v11, 0.0 }
 0x10a   : > { %v337_v5 = vadd.f32 %v336_v2, %v335_v57  ;;  %v313_v6 = vpop.f32.mrb[6].mxu0 }
 0x10b   : > { %v363_v7 = vsel %vm332_vm1, %v355_v3, 0.0  ;;  %v314_v8 = vadd.f32 %v490_v42, %v313_v6  ;;  %v315_v9 = vpop.f32.mrb[7].mxu0  ;;  %v371_v29 = vsel %vm344_vm2, %v359_v20, 0.0 }
 0x10c   : > { %v364_v12 = vadd.f32 %v363_v7, %v362_v1 }
 0x10d   : > { %v338_v14 = vsel %vm332_vm1, %v314_v8, 0.0  ;;  %v356_v15 = vmul.f32 %v314_v8, %v314_v8 }
 0x10e   : > { %v339_v16 = vadd.f32 %v338_v14, %v337_v5 }
 0x10f   : > { %v365_v18 = vsel %vm332_vm1, %v356_v15, 0.0 }
 0x110   : > { %v366_v21 = vadd.f32 %v365_v18, %v364_v12  ;;  %v341_v22 = vadd.f32 %v340_v17, %v339_v16 }
 0x112   : > { %v343_v26 = vadd.f32 %v342_v24, %v341_v22  ;;  %v368_v27 = vadd.f32 %v367_v23, %v366_v21 }
 0x114   : > { %v370_v30 = vadd.f32 %v369_v28, %v368_v27  ;;  %v346_v31 = vadd.f32 %v345_v25, %v343_v26 }
 0x116   : > { %v347_v32 = vrot.slane %v346_v31, 4  ;;  %v372_v33 = vadd.f32 %v371_v29, %v370_v30 }
 0x118   : > { %v348_v34 = vadd.f32 %v347_v32, %v346_v31  ;;  %v373_v35 = vrot.slane %v372_v33, 4 }
 0x11a   : > { %v349_v36 = vrot.slane %v348_v34, 2  ;;  %v374_v37 = vadd.f32 %v373_v35, %v372_v33 }
 0x11c   : > { %v350_v38 = vadd.f32 %v349_v36, %v348_v34  ;;  %v375_v39 = vrot.slane %v374_v37, 2 }
 0x11e   : > { %v351_v40 = vrot.slane %v350_v38, 1  ;;  %v376_v41 = vadd.f32 %v375_v39, %v374_v37 }
 0x120   : > { %v352_v42 = vadd.f32 %v351_v40, %v350_v38  ;;  %v377_v43 = vrot.slane %v376_v41, 1 }
 0x122   : > { %v378_v44 = vadd.f32 %v377_v43, %v376_v41  ;;  %v379_v46 = vmul.f32 0.02, %v352_v42 }
 0x124   : > { %v380_v47 = vmul.f32 0.02, %v378_v44  ;;  %v381_v48 = vmul.f32 %v379_v46, %v379_v46  ;;  %v384_v49 = vsub.f32 %v699_v45, %v379_v46  ;;  %v385_v50 = vsub.f32 %v703_v51, %v379_v46 }
 0x125   : > { %v386_v52 = vsub.f32 %v713_v62, %v379_v46  ;;  %v387_v53 = vsub.f32 %v314_v8, %v379_v46  ;;  %v388_v54 = vsub.f32 %v719_v4, %v379_v46  ;;  %v389_v55 = vsub.f32 %v324_v10, %v379_v46 }
 0x126   : > { %v382_v56 = vsub.f32 %v380_v47, %v381_v48  ;;  %v390_v57 = vsub.f32 %v329_v11, %v379_v46 }
 0x128   : > { %v383_v58 = vmax.f32 %v382_v56, 0.0 }
 0x12a   : > { %v391_v59 = vadd.f32 1e-05, %v383_v58 }
 0x12c   : > { %556 = vrsqrt.f32 %v391_v59 }
 0x136   : > { %v557_v60 = vpop.eup %556 }
 0x137   : > { %v393_v61 = vmul.f32 %v557_v60, %v384_v49  ;;  %v394_v63 = vmul.f32 %v557_v60, %v385_v50  ;;  %v395_v0 = vmul.f32 %v557_v60, %v386_v52  ;;  %v396_v1 = vmul.f32 %v557_v60, %v387_v53 }
 0x138   : > { %v397_v45 = vmul.f32 %v557_v60, %v388_v54  ;;  %v398_v2 = vmul.f32 %v557_v60, %v389_v55  ;;  %v399_v51 = vmul.f32 %v557_v60, %v390_v57 }
 0x139   : > { %vm400_vm3 = vcmp.gt.f32.partialorder %v393_v61, 0.0  ;;  %vm401_vm4 = vcmp.gt.f32.partialorder %v394_v63, 0.0  ;;  %vm402_vm5 = vcmp.gt.f32.partialorder %v395_v0, 0.0  ;;  %vm403_vm6 = vcmp.gt.f32.partialorder %v396_v1, 0.0 }
 0x13a   : > { %vm404_vm7 = vcmp.gt.f32.partialorder %v397_v45, 0.0  ;;  %vm405_vm8 = vcmp.gt.f32.partialorder %v398_v2, 0.0  ;;  %vm406_vm9 = vcmp.gt.f32.partialorder %v399_v51, 0.0  ;;  %v407_v62 = vmul.f32 0.2, %v393_v61 }
 0x13b   : > { %v408_v3 = vmul.f32 0.2, %v394_v63  ;;  %v409_v4 = vmul.f32 0.2, %v395_v0  ;;  %v410_v5 = vmul.f32 0.2, %v396_v1 }
 0x13c   : > { %v411_v6 = vmul.f32 0.2, %v397_v45  ;;  %v412_v7 = vmul.f32 0.2, %v398_v2  ;;  %v413_v8 = vmul.f32 0.2, %v399_v51  ;;  %v414_v9 = vsel %vm400_vm3, %v393_v61, %v407_v62 }
 0x13d   : > { %v415_v10 = vsel %vm401_vm4, %v394_v63, %v408_v3  ;;  %v416_v11 = vsel %vm402_vm5, %v395_v0, %v409_v4  ;;  %v417_v12 = vsel %vm403_vm6, %v396_v1, %v410_v5  ;;  %421 = vst.msk [vmem:[%s170_s7] sm:$0xff] %vm332_vm1, %v414_v9 }
 0x13e   : > { %v418_v13 = vsel %vm404_vm7, %v397_v45, %v411_v6  ;;  %v419_v14 = vsel %vm405_vm8, %v398_v2, %v412_v7  ;;  %v420_v15 = vsel %vm406_vm9, %v399_v51, %v413_v8  ;;  %422 = vst.msk [vmem:[%s170_s7 + $0x8] sm:$0xff] %vm332_vm1, %v415_v10  ;;  %423 = vst.msk [vmem:[%s170_s7 + $0x10] sm:$0xff] %vm332_vm1, %v416_v11 }
 0x13f   : > { %424 = vst.msk [vmem:[%s170_s7 + $0x18] sm:$0xff] %vm332_vm1, %v417_v12  ;;  %425 = vst.msk [vmem:[%s170_s7 + $0x20] sm:$0xff] %vm332_vm1, %v418_v13 }
 0x140   : > { %426 = vst.msk [vmem:[%s170_s7 + $0x28] sm:$0xff] %vm332_vm1, %v419_v14 }
 0x141   : > { %427 = vst.msk [vmem:[%s170_s7 + $0x30] sm:$0x3] %vm344_vm2, %v420_v15 }
 0x142 PF: > { %s13_s12 = sadd.s32 1, %s564_s12  }
 0x143   : > { %p10_p4 = scmp.ge.s32.totalorder %s13_s12, 4  }
 0x145   :  { %12 = sbr.rel (!%p10_p4) target bundleno = 1 (0x1), region = 62 }

// kernel: patch_discriminator_forward.8
= control target key start
LH: loop header
LB: loop body
LE: loop exit
PB: predicated region body
PF: predicated region fallthrough
CT: control target
= control target key end

     0   :  { %s662_s12 = smov 0   ;;  %s823_s0 = inlined_call_operand.vmem [shape: f32[2,18,288], index: 0, kind: input, shape index: {}]   ;;  %s824_s1 = inlined_call_operand.vmem [shape: f32[288,64], index: 1, kind: input, shape index: {}]   ;;  %s825_s2 = inlined_call_operand.vmem [shape: f32[1,64], index: 2, kind: input, shape index: {}]   ;;  %s826_s3 = inlined_call_operand.vmem [shape: f32[2,18,64], index: 3, kind: output, shape index: {}]  }
   0x1 LB: > { %s500_s13 = sadd.s32 4294967295, %s637_s12   ;;  %p504_p0 = scmp.ge.s32.totalorder %s637_s12, 1  ;;  %s637_s12 = sphi %s662_s12, %s13_s12  }
   0x2   : > { %p137_p1 = scmp.lt.s32.totalorder %s637_s12, 3 }
   0x4   : > { %p138_p2 = pnand %p504_p0, %p137_p1 }
   0x5   : > { %v196_v0 = vld [vmem:[%s824_s1 + $0x80] sm:$0xff] (!%p138_p2)  ;;  %v197_v1 = vld [vmem:[%s824_s1 + $0x88] sm:$0xff] (!%p138_p2)  ;;  %p161_p3 = scmp.lt.s32.totalorder (!%p138_p2), %s500_s13, 1  ;;  %v198_v5 = vld [vmem:[%s824_s1 + $0x90] sm:$0xff] (!%p138_p2)  ;;  %v639_v7 = vmov (!%p138_p2), 0.0|0.0   ;;  %vm640_vm0 = vmmov (!%p138_p2), 0  }
   0x6   : > { %141 = sbr.rel (%p138_p2) target bundleno = 311 (0x137), region = 32  ;;  %v180_v2 = vld [vmem:[%s824_s1] sm:$0xff] (!%p138_p2)  ;;  %v578_v3 = vpack.c.bf16 (!%p138_p2), %v197_v1, %v196_v0  ;;  %v181_v4 = vld [vmem:[%s824_s1 + $0x8] sm:$0xff] (!%p138_p2)  ;;  %v199_v6 = vld [vmem:[%s824_s1 + $0x98] sm:$0xff] (!%p138_p2)  ;;  %610 = vmatprep.subr.bf16.mxu1 (!%p138_p2), %v639_v7  ;;  %v641_v13 = vmov (!%p138_p2), 0.0   ;;  %vm223_vm1 = vcmask (!%p138_p2), 261120  }
   0x7   : > { %v580_v8 = vpack.c.bf16 (!%p138_p2), %v181_v4, %v180_v2  ;;  %v582_v9 = vpack.c.bf16 (!%p138_p2), %v199_v6, %v198_v5  ;;  %v182_v10 = vld [vmem:[%s824_s1 + $0x10] sm:$0xff] (!%p138_p2)  ;;  %v183_v11 = vld [vmem:[%s824_s1 + $0x18] sm:$0xff] (!%p138_p2)  ;;  %v200_v12 = vld [vmem:[%s824_s1 + $0xa0] sm:$0xff] (!%p138_p2)  ;;  %569 = vmatprep.mubr.msk.f32.mxu1 (!%p138_p2), %vm640_vm0, %v641_v13  ;;  %vm393_vm2 = vcmask (!%p138_p2), 523264   ;;  %vm397_vm3 = vcmask (!%p138_p2), 517120  }
   0x8   : > { %579 = vmatprep.subr.bf16.mxu0 (!%p138_p2), %v578_v3  ;;  %v201_v14 = vld [vmem:[%s824_s1 + $0xa8] sm:$0xff] (!%p138_p2)  ;;  %v584_v15 = vpack.c.bf16 (!%p138_p2), %v183_v11, %v182_v10  ;;  %v184_v17 = vld [vmem:[%s824_s1 + $0x20] sm:$0xff] (!%p138_p2)  ;;  %v202_v19 = vld [vmem:[%s824_s1 + $0xb0] sm:$0xff] (!%p138_p2) }
   0x9   : > { %581 = vmatpush3.bf16.msra.mxu0 (!%p138_p2), %v580_v8  ;;  %v586_v16 = vpack.c.bf16 (!%p138_p2), %v201_v14, %v200_v12  ;;  %v185_v18 = vld [vmem:[%s824_s1 + $0x28] sm:$0xff] (!%p138_p2)  ;;  %v203_v20 = vld [vmem:[%s824_s1 + $0xb8] sm:$0xff] (!%p138_p2)  ;;  %v186_v23 = vld [vmem:[%s824_s1 + $0x30] sm:$0xff] (!%p138_p2) }
   0xa   : > { %583 = vmatprep.subr.bf16.mxu0 (!%p138_p2), %v582_v9  ;;  %v588_v21 = vpack.c.bf16 (!%p138_p2), %v185_v18, %v184_v17  ;;  %v590_v22 = vpack.c.bf16 (!%p138_p2), %v203_v20, %v202_v19  ;;  %v187_v24 = vld [vmem:[%s824_s1 + $0x38] sm:$0xff] (!%p138_p2)  ;;  %v204_v25 = vld [vmem:[%s824_s1 + $0xc0] sm:$0xff] (!%p138_p2)  ;;  %v205_v26 = vld [vmem:[%s824_s1 + $0xc8] sm:$0xff] (!%p138_p2) }
   0xb   : > { %v212_v27 = vld [vmem:[%s824_s1 + $0x100] sm:$0xff] (!%p138_p2)  ;;  %v213_v28 = vld [vmem:[%s824_s1 + $0x108] sm:$0xff] (!%p138_p2)  ;;  %v592_v30 = vpack.c.bf16 (!%p138_p2), %v187_v24, %v186_v23  ;;  %v214_v32 = vld [vmem:[%s824_s1 + $0x110] sm:$0xff] (!%p138_p2)  ;;  %v594_v34 = vpack.c.bf16 (!%p138_p2), %v205_v26, %v204_v25 }
   0xc   : > { %v611_v31 = vpack.c.bf16 (!%p138_p2), %v213_v28, %v212_v27  ;;  %v215_v33 = vld [vmem:[%s824_s1 + $0x118] sm:$0xff] (!%p138_p2)  ;;  %v188_v35 = vld [vmem:[%s824_s1 + $0x40] sm:$0xff] (!%p138_p2)  ;;  %v189_v36 = vld [vmem:[%s824_s1 + $0x48] sm:$0xff] (!%p138_p2) }
   0xd   : > { %s828_s13 = smov (!%p161_p3, %s500_s13), 1  ;;  %585 = vmatpush3.bf16.msra.mxu0 %v584_v15  ;;  %v206_v37 = vld [vmem:[%s824_s1 + $0xd0] sm:$0xff]  ;;  %v207_v38 = vld [vmem:[%s824_s1 + $0xd8] sm:$0xff]  ;;  %v614_v39 = vpack.c.bf16 %v215_v33, %v214_v32  ;;  %v596_v40 = vpack.c.bf16 %v189_v36, %v188_v35  ;;  %v208_v44 = vld [vmem:[%s824_s1 + $0xe0] sm:$0xff] }
   0xe   : > { %s616_s7 = smul.u32 72, %s828_s13  ;;  %587 = vmatprep.subr.bf16.mxu0 %v586_v16  ;;  %612 = vmatpush3.bf16.msra.mxu1 %v611_v31  ;;  %v598_v41 = vpack.c.bf16 %v207_v38, %v206_v37  ;;  %v190_v42 = vld [vmem:[%s824_s1 + $0x50] sm:$0xff]  ;;  %v191_v43 = vld [vmem:[%s824_s1 + $0x58] sm:$0xff]  ;;  %v209_v45 = vld [vmem:[%s824_s1 + $0xe8] sm:$0xff] }
   0xf   : > { %613 = vmatprep.subr.bf16.mxu1 %v639_v7  ;;  %v600_v47 = vpack.c.bf16 %v191_v43, %v190_v42  ;;  %v602_v48 = vpack.c.bf16 %v209_v45, %v208_v44  ;;  %v192_v49 = vld [vmem:[%s824_s1 + $0x60] sm:$0xff]  ;;  %v193_v50 = vld [vmem:[%s824_s1 + $0x68] sm:$0xff]  ;;  %v210_v51 = vld [vmem:[%s824_s1 + $0xf0] sm:$0xff] }
  0x10   : > { %s720_s20 = scalar_lea.vmem %s823_s0, %s616_s7  ;;  %v211_v52 = vld [vmem:[%s824_s1 + $0xf8] sm:$0xff]  ;;  %v604_v54 = vpack.c.bf16 %v193_v50, %v192_v49  ;;  %v194_v56 = vld [vmem:[%s824_s1 + $0x70] sm:$0xff]  ;;  %v507_v9 = vld [vmem:[%s825_s2] ss:$0 sm:$0xff] }
  0x11   : > { %v172_v29 = vld [vmem:[%s720_s20 + $0x8] sm:$0xff]  ;;  %589 = vmatpush3.bf16.msra.mxu0 %v588_v21  ;;  %v173_v46 = vld [vmem:[%s720_s20 + $0x10] sm:$0xff]  ;;  %v606_v55 = vpack.c.bf16 %v211_v52, %v210_v51  ;;  %v195_v57 = vld [vmem:[%s824_s1 + $0x78] sm:$0xff] }
  0x12   : > { %297 = vmatprep.mubr.f32.mxu0 %v172_v29  ;;  %591 = vmatprep.subr.bf16.mxu0 %v590_v22  ;;  %v176_v53 = vld [vmem:[%s720_s20 + $0x28] sm:$0xff]  ;;  %v179_v58 = vld [vmem:[%s720_s20 + $0x40] sm:$0x3]  ;;  %v608_v59 = vpack.c.bf16 %v195_v57, %v194_v56  ;;  %v174_v62 = vld [vmem:[%s720_s20 + $0x18] sm:$0xff] }
  0x13   : > { %615 = vmatpush3.bf16.msra.mxu1 %v614_v39  ;;  %v171_v60 = vld [vmem:[%s720_s20] sm:$0xff]  ;;  %v178_v63 = vld [vmem:[%s720_s20 + $0x38] sm:$0x3]  ;;  %v177_v0 = vld [vmem:[%s720_s20 + $0x30] sm:$0x3] }
  0x14   : > { %v175_v61 = vld [vmem:[%s720_s20 + $0x20] sm:$0xff]  ;;  %s617_s20 = smul.u32 24, %s828_s13 }
  0x15   : > { %593 = vmatpush3.bf16.msra.mxu0 %v592_v30 }
  0x16   : > { %595 = vmatprep.subr.bf16.mxu0 %v594_v34  ;;  %570 = vmatmul.mubr.msk.f32.vlgmr.msra.gmra.mrb[0].mxu1 %vm223_vm1, %v173_v46  ;;  %s170_s21 = scalar_lea.vmem %s826_s3, %s617_s20 }
  0x17   : > { %572 = vmatprep.mubr.msk.f32.mxu1 %vm640_vm0, %v641_v13 }
  0x19   : > { %597 = vmatpush3.bf16.msra.mxu0 %v596_v40 }
  0x1a   : > { %599 = vmatprep.subr.bf16.mxu0 %v598_v41  ;;  %573 = vmatmul.mubr.msk.f32.gmra.mrb[2].mxu1 %vm223_vm1, %v176_v53 }
  0x1b   : > { %575 = vmatprep.mubr.msk.f32.mxu1 %vm640_vm0, %v641_v13 }
  0x1d   : > { %601 = vmatpush3.bf16.msra.mxu0 %v600_v47 }
  0x1e   : > { %603 = vmatprep.subr.bf16.mxu0 %v602_v48  ;;  %576 = vmatmul.mubr.msk.f32.gmra.mrb[4].mxu1 %vm223_vm1, %v179_v58 }
  0x21   : > { %605 = vmatpush3.bf16.msra.mxu0 %v604_v54 }
  0x22   : > { %607 = vmatprep.subr.bf16.mxu0 %v606_v55 }
  0x25   : > { %609 = vmatpush3.bf16.msra.mxu0 %v608_v59 }
  0x28   : > { %298 = vmatmul.mubr.f32.vlgmr.msra.gmra.mrb[0].mxu0 %v171_v60 }
  0x29   : > { %302 = vmatprep.mubr.f32.mxu0 %v175_v61 }
  0x2c   : > { %303 = vmatmul.mubr.f32.gmra.mrb[2].mxu0 %v174_v62 }
  0x2d   : > { %307 = vmatprep.mubr.f32.mxu0 %v178_v63 }
  0x30   : > { %308 = vmatmul.mubr.f32.gmra.mrb[4].mxu0 %v177_v0 }
  0xe9   : > { %v379_v1 = vpop.f32.mrb[0].mxu1 }
  0xea   : > { %v571_v2 = vpop.f32.mrb[1].mxu1 }
  0xed   : > { %v384_v3 = vpop.f32.mrb[2].mxu1 }
  0xee   : > { %v574_v4 = vpop.f32.mrb[3].mxu1 }
  0xf1   : > { %v389_v5 = vpop.f32.mrb[4].mxu1 }
  0xf2   : > { %v577_v6 = vpop.f32.mrb[5].mxu1 }
  0xfb   : > { %v545_v7 = vpop.f32.mrb[0].mxu0 }
  0xfc   : > { %v546_v8 = vpop.f32.mrb[1].mxu0 }
  0xfd   : > { %v547_v10 = vadd.f32 %v546_v8, %v545_v7 }
  0xff   : > { %v548_v11 = vpop.f32.mrb[2].mxu0  ;;  %v300_v12 = vadd.f32 %v547_v10, %v507_v9 }
 0x100   : > { %v549_v13 = vpop.f32.mrb[3].mxu0 }
 0x101   : > { %v380_v14 = vadd.f32 %v379_v1, %v300_v12  ;;  %v550_v15 = vadd.f32 %v549_v13, %v548_v11 }
 0x103   : > { %v551_v16 = vpop.f32.mrb[4].mxu0  ;;  %v305_v17 = vadd.f32 %v550_v15, %v507_v9  ;;  %v406_v19 = vmul.f32 %v380_v14, %v380_v14  ;;  %v394_v22 = vsel %vm393_vm2, %v380_v14, 0.0 }
 0x104   : > { %v552_v18 = vpop.f32.mrb[5].mxu0 }
 0x105   : > { %v385_v20 = vadd.f32 %v384_v3, %v305_v17  ;;  %v553_v21 = vadd.f32 %v552_v18, %v551_v16  ;;  %v409_v27 = vsel %vm393_vm2, %v406_v19, 0.0 }
 0x107   : > { %v395_v23 = vsel %vm393_vm2, %v385_v20, 0.0  ;;  %v407_v24 = vmul.f32 %v385_v20, %v385_v20  ;;  %v310_v25 = vadd.f32 %v553_v21, %v507_v9 }
 0x108   : > { %v396_v26 = vadd.f32 %v395_v23, %v394_v22 }
 0x109   : > { %v410_v28 = vsel %vm393_vm2, %v407_v24, 0.0  ;;  %v390_v29 = vadd.f32 %v389_v5, %v310_v25 }
 0x10a   : > { %v411_v30 = vadd.f32 %v410_v28, %v409_v27 }
 0x10b   : > { %v398_v31 = vsel %vm397_vm3, %v390_v29, 0.0  ;;  %v408_v32 = vmul.f32 %v390_v29, %v390_v29 }
 0x10c   : > { %v399_v33 = vadd.f32 %v398_v31, %v396_v26 }
 0x10d   : > { %v412_v34 = vsel %vm397_vm3, %v408_v32, 0.0 }
 0x10e   : > { %v400_v35 = vrot.slane %v399_v33, 4  ;;  %v413_v36 = vadd.f32 %v412_v34, %v411_v30 }
 0x110   : > { %v401_v37 = vadd.f32 %v400_v35, %v399_v33  ;;  %v414_v38 = vrot.slane %v413_v36, 4 }
 0x112   : > { %v402_v39 = vrot.slane %v401_v37, 2  ;;  %v415_v40 = vadd.f32 %v414_v38, %v413_v36 }
 0x114   : > { %v403_v41 = vadd.f32 %v402_v39, %v401_v37  ;;  %v416_v42 = vrot.slane %v415_v40, 2 }
 0x116   : > { %v404_v43 = vrot.slane %v403_v41, 1  ;;  %v417_v44 = vadd.f32 %v416_v42, %v415_v40 }
 0x118   : > { %v405_v45 = vadd.f32 %v404_v43, %v403_v41  ;;  %v418_v46 = vrot.slane %v417_v44, 1 }
 0x11a   : > { %v419_v47 = vadd.f32 %v418_v46, %v417_v44  ;;  %v420_v48 = vmul.f32 0.055555556, %v405_v45 }
 0x11c   : > { %v421_v49 = vmul.f32 0.055555556, %v419_v47  ;;  %v422_v50 = vmul.f32 %v420_v48, %v420_v48  ;;  %v425_v51 = vsub.f32 %v380_v14, %v420_v48  ;;  %v426_v52 = vsub.f32 %v385_v20, %v420_v48 }
 0x11d   : > { %v427_v53 = vsub.f32 %v390_v29, %v420_v48 }
 0x11e   : > { %v423_v54 = vsub.f32 %v421_v49, %v422_v50 }
 0x120   : > { %v424_v55 = vmax.f32 %v423_v54, 0.0 }
 0x122   : > { %v428_v56 = vadd.f32 1e-05, %v424_v55 }
 0x124   : > { %629 = vrsqrt.f32 %v428_v56 }
 0x12e   : > { %v630_v57 = vpop.eup %629 }
 0x12f   : > { %v430_v58 = vmul.f32 %v630_v57, %v425_v51  ;;  %v431_v59 = vmul.f32 %v630_v57, %v426_v52  ;;  %v432_v60 = vmul.f32 %v630_v57, %v427_v53 }
 0x131   : > { %vm433_vm4 = vcmp.gt.f32.partialorder %v430_v58, 0.0  ;;  %vm434_vm5 = vcmp.gt.f32.partialorder %v431_v59, 0.0  ;;  %vm435_vm6 = vcmp.gt.f32.partialorder %v432_v60, 0.0  ;;  %v436_v61 = vmul.f32 0.2, %v430_v58 }
 0x132   : > { %v437_v62 = vmul.f32 0.2, %v431_v59  ;;  %v438_v63 = vmul.f32 0.2, %v432_v60 }
 0x133   : > { %v439_v0 = vsel %vm433_vm4, %v430_v58, %v436_v61 }
 0x134   : > { %v440_v1 = vsel %vm434_vm5, %v431_v59, %v437_v62  ;;  %v441_v2 = vsel %vm435_vm6, %v432_v60, %v438_v63  ;;  %442 = vst.msk [vmem:[%s170_s21] sm:$0xff] %vm393_vm2, %v439_v0 }
 0x135   : > { %443 = vst.msk [vmem:[%s170_s21 + $0x8] sm:$0xff] %vm393_vm2, %v440_v1 }
 0x136   : > { %444 = vst.msk [vmem:[%s170_s21 + $0x10] sm:$0x3] %vm397_vm3, %v441_v2 }
 0x137 PF: > { %s13_s12 = sadd.s32 1, %s637_s12  }
 0x138   : > { %p10_p4 = scmp.ge.s32.totalorder %s13_s12, 4  }
 0x13a   :  { %12 = sbr.rel (!%p10_p4) target bundleno = 1 (0x1), region = 62 }

// kernel: patch_discriminator_forward.9
= control target key start
LH: loop header
LB: loop body
LE: loop exit
PB: predicated region body
PF: predicated region fallthrough
CT: control target
= control target key end

     0   :  { %s796_s14 = smov 0   ;;  %s1047_s0 = inlined_call_operand.vmem [shape: f32[2,2,576], index: 0, kind: input, shape index: {}]   ;;  %s1048_s1 = inlined_call_operand.vmem [shape: f32[576,1], index: 1, kind: input, shape index: {}]   ;;  %s1049_s2 = inlined_call_operand.<no memory space> [shape: f32[1,1], index: 2, kind: input, shape index: {}]   ;;  %s1050_s3 = inlined_call_operand.vmem [shape: f32[2,2,1], index: 3, kind: output, shape index: {}]  }
   0x1   :  { %v8_v0 = vstv %s1049_s2 }
   0x2   :  { %9 = vst [vmem:[#allocation2] sm:$0x1] %v8_v0 }
   0x3 LB: > { %s556_s15 = sadd.s32 4294967295, %s767_s14   ;;  %p560_p0 = scmp.ge.s32.totalorder %s767_s14, 1  ;;  %s767_s14 = sphi %s796_s14, %s15_s14  }
   0x4   : > { %p139_p1 = scmp.lt.s32.totalorder %s767_s14, 3 }
   0x6   : > { %p140_p2 = pnand %p560_p0, %p139_p1 }
   0x7   : > { %v189_v1 = vld [vmem:[%s1048_s1 + $0x80] sm:$0xff] (!%p140_p2)  ;;  %v190_v2 = vld [vmem:[%s1048_s1 + $0x88] sm:$0xff] (!%p140_p2)  ;;  %v191_v12 = vld [vmem:[%s1048_s1 + $0x90] sm:$0xff] (!%p140_p2)  ;;  %p860_p3 = scmp.lt.s32.totalorder (!%p140_p2), %s556_s15, 1  ;;  %v769_v44 = vmov (!%p140_p2), 1983009808   ;;  %v258_v46 = vlaneseq (!%p140_p2) }
   0x8   : > { %143 = sbr.rel (%p140_p2) target bundleno = 299 (0x12b), region = 32  ;;  %v173_v3 = vld [vmem:[%s1048_s1] sm:$0xff] (!%p140_p2)  ;;  %v667_v4 = vpack.c.bf16 (!%p140_p2), %v190_v2, %v189_v1  ;;  %v174_v5 = vld [vmem:[%s1048_s1 + $0x8] sm:$0xff] (!%p140_p2)  ;;  %v192_v14 = vld [vmem:[%s1048_s1 + $0x98] sm:$0xff] (!%p140_p2)  ;;  %v256_v45 = vunpack.c.l.s4 (!%p140_p2), %v769_v44  ;;  %vm771_vm0 = vmmov (!%p140_p2), 0   ;;  %vm282_vm1 = vcmask (!%p140_p2), 523264  }
   0x9   : > { %v221_v6 = vld [vmem:[%s1048_s1 + $0x180] sm:$0xff] (!%p140_p2)  ;;  %v222_v7 = vld [vmem:[%s1048_s1 + $0x188] sm:$0xff] (!%p140_p2)  ;;  %v669_v8 = vpack.c.bf16 (!%p140_p2), %v174_v5, %v173_v3  ;;  %v175_v15 = vld [vmem:[%s1048_s1 + $0x10] sm:$0xff] (!%p140_p2)  ;;  %v671_v17 = vpack.c.bf16 (!%p140_p2), %v192_v14, %v191_v12  ;;  %v259_v61 = vshrl.u32 (!%p140_p2), %v258_v46, 7  ;;  %vm501_vm2 = vcmask (!%p140_p2), 1024  }
   0xa   : > { %v699_v9 = vpack.c.bf16 (!%p140_p2), %v222_v7, %v221_v6  ;;  %v205_v10 = vld [vmem:[%s1048_s1 + $0x100] sm:$0xff] (!%p140_p2)  ;;  %v206_v11 = vld [vmem:[%s1048_s1 + $0x108] sm:$0xff] (!%p140_p2)  ;;  %668 = vmatprep.subr.bf16.mxu0 (!%p140_p2), %v667_v4  ;;  %v176_v16 = vld [vmem:[%s1048_s1 + $0x18] sm:$0xff] (!%p140_p2)  ;;  %v257_v60 = vunpack.c.0.s8 (!%p140_p2), %v256_v45 }
   0xb   : > { %v701_v13 = vpack.c.bf16 (!%p140_p2), %v206_v11, %v205_v10  ;;  %670 = vmatpush3.bf16.msra.mxu0 (!%p140_p2), %v669_v8  ;;  %v673_v18 = vpack.c.bf16 (!%p140_p2), %v176_v16, %v175_v15  ;;  %v223_v19 = vld [vmem:[%s1048_s1 + $0x190] sm:$0xff] (!%p140_p2)  ;;  %v224_v20 = vld [vmem:[%s1048_s1 + $0x198] sm:$0xff] (!%p140_p2)  ;;  %v193_v24 = vld [vmem:[%s1048_s1 + $0xa0] sm:$0xff] (!%p140_p2) }
   0xc   : > { %700 = vmatprep.subr.bf16.mxu1 (!%p140_p2), %v699_v9  ;;  %v207_v21 = vld [vmem:[%s1048_s1 + $0x110] sm:$0xff] (!%p140_p2)  ;;  %v703_v22 = vpack.c.bf16 (!%p140_p2), %v224_v20, %v223_v19  ;;  %v208_v23 = vld [vmem:[%s1048_s1 + $0x118] sm:$0xff] (!%p140_p2)  ;;  %v194_v25 = vld [vmem:[%s1048_s1 + $0xa8] sm:$0xff] (!%p140_p2)  ;;  %672 = vmatprep.subr.bf16.mxu0 (!%p140_p2), %v671_v17  ;;  %v260_v11 = vsub.s32 (!%p140_p2), %v257_v60, %v259_v61 }
   0xd   : > { %702 = vmatpush3.bf16.msra.mxu1 (!%p140_p2), %v701_v13  ;;  %v705_v26 = vpack.c.bf16 (!%p140_p2), %v208_v23, %v207_v21  ;;  %v675_v27 = vpack.c.bf16 (!%p140_p2), %v194_v25, %v193_v24  ;;  %v177_v28 = vld [vmem:[%s1048_s1 + $0x20] sm:$0xff] (!%p140_p2)  ;;  %v178_v29 = vld [vmem:[%s1048_s1 + $0x28] sm:$0xff] (!%p140_p2)  ;;  %v195_v36 = vld [vmem:[%s1048_s1 + $0xb0] sm:$0xff] (!%p140_p2) }
   0xe   : > { %v225_v30 = vld [vmem:[%s1048_s1 + $0x1a0] sm:$0xff] (!%p140_p2)  ;;  %704 = vmatprep.subr.bf16.mxu1 (!%p140_p2), %v703_v22  ;;  %v226_v31 = vld [vmem:[%s1048_s1 + $0x1a8] sm:$0xff] (!%p140_p2)  ;;  %v677_v34 = vpack.c.bf16 (!%p140_p2), %v178_v29, %v177_v28  ;;  %v196_v37 = vld [vmem:[%s1048_s1 + $0xb8] sm:$0xff] (!%p140_p2) }
   0xf   : > { %v209_v32 = vld [vmem:[%s1048_s1 + $0x120] sm:$0xff]  ;;  %v210_v33 = vld [vmem:[%s1048_s1 + $0x128] sm:$0xff]  ;;  %674 = vmatpush3.bf16.msra.mxu0 %v673_v18  ;;  %v707_v35 = vpack.c.bf16 %v226_v31, %v225_v30  ;;  %v179_v38 = vld [vmem:[%s1048_s1 + $0x30] sm:$0xff]  ;;  %v679_v40 = vpack.c.bf16 %v196_v37, %v195_v36  ;;  %s1053_s15 = smov (!%p860_p3, %s556_s15), 1 }
  0x10   : > { %676 = vmatprep.subr.bf16.mxu0 %v675_v27  ;;  %v709_v39 = vpack.c.bf16 %v210_v33, %v209_v32  ;;  %v180_v41 = vld [vmem:[%s1048_s1 + $0x38] sm:$0xff]  ;;  %v227_v42 = vld [vmem:[%s1048_s1 + $0x1b0] sm:$0xff]  ;;  %v197_v50 = vld [vmem:[%s1048_s1 + $0xc0] sm:$0xff]  ;;  %s743_s17 = smul.u32 10, %s1053_s15 }
  0x11   : > { %706 = vmatpush3.bf16.msra.mxu1 %v705_v26  ;;  %v228_v43 = vld [vmem:[%s1048_s1 + $0x1b8] sm:$0xff]  ;;  %v211_v48 = vld [vmem:[%s1048_s1 + $0x130] sm:$0xff]  ;;  %v198_v51 = vld [vmem:[%s1048_s1 + $0xc8] sm:$0xff]  ;;  %v681_v52 = vpack.c.bf16 %v180_v41, %v179_v38 }
  0x12   : > { %708 = vmatprep.subr.bf16.mxu1 %v707_v35  ;;  %v711_v47 = vpack.c.bf16 %v228_v43, %v227_v42  ;;  %v212_v49 = vld [vmem:[%s1048_s1 + $0x138] sm:$0xff]  ;;  %v229_v53 = vld [vmem:[%s1048_s1 + $0x1c0] sm:$0xff]  ;;  %v230_v54 = vld [vmem:[%s1048_s1 + $0x1c8] sm:$0xff]  ;;  %v683_v56 = vpack.c.bf16 %v198_v51, %v197_v50  ;;  %s964_s10 = scalar_lea.vmem %s1047_s0, %s743_s17 }
  0x13   : > { %678 = vmatpush3.bf16.msra.mxu0 %v677_v34  ;;  %v713_v55 = vpack.c.bf16 %v212_v49, %v211_v48  ;;  %v181_v57 = vld [vmem:[%s1048_s1 + $0x40] sm:$0xff]  ;;  %v182_v58 = vld [vmem:[%s1048_s1 + $0x48] sm:$0xff]  ;;  %v715_v62 = vpack.c.bf16 %v230_v54, %v229_v53  ;;  %v199_v0 = vld [vmem:[%s1048_s1 + $0xd0] sm:$0xff]  ;;  %v770_v48 = vmov 0.0|0.0   ;;  %v772_v54 = vmov 0.0  }
  0x14   : > { %680 = vmatprep.subr.bf16.mxu0 %v679_v40  ;;  %v213_v59 = vld [vmem:[%s1048_s1 + $0x140] sm:$0xff]  ;;  %v214_v63 = vld [vmem:[%s1048_s1 + $0x148] sm:$0xff]  ;;  %v200_v1 = vld [vmem:[%s1048_s1 + $0xd8] sm:$0xff]  ;;  %v685_v4 = vpack.c.bf16 %v182_v58, %v181_v57 }
  0x15   : > { %710 = vmatpush3.bf16.msra.mxu1 %v709_v39  ;;  %v231_v2 = vld [vmem:[%s1048_s1 + $0x1d0] sm:$0xff]  ;;  %v232_v3 = vld [vmem:[%s1048_s1 + $0x1d8] sm:$0xff]  ;;  %v717_v6 = vpack.c.bf16 %v214_v63, %v213_v59  ;;  %v687_v7 = vpack.c.bf16 %v200_v1, %v199_v0  ;;  %v201_v13 = vld [vmem:[%s1048_s1 + $0xe0] sm:$0xff] }
  0x16   : > { %712 = vmatprep.subr.bf16.mxu1 %v711_v47  ;;  %v183_v5 = vld [vmem:[%s1048_s1 + $0x50] sm:$0xff]  ;;  %v184_v8 = vld [vmem:[%s1048_s1 + $0x58] sm:$0xff]  ;;  %v719_v12 = vpack.c.bf16 %v232_v3, %v231_v2  ;;  %v202_v14 = vld [vmem:[%s1048_s1 + $0xe8] sm:$0xff] }
  0x17   : > { %682 = vmatpush3.bf16.msra.mxu0 %v681_v52  ;;  %v215_v9 = vld [vmem:[%s1048_s1 + $0x150] sm:$0xff]  ;;  %v216_v10 = vld [vmem:[%s1048_s1 + $0x158] sm:$0xff]  ;;  %v233_v15 = vld [vmem:[%s1048_s1 + $0x1e0] sm:$0xff]  ;;  %v689_v17 = vpack.c.bf16 %v184_v8, %v183_v5  ;;  %v691_v20 = vpack.c.bf16 %v202_v14, %v201_v13 }
  0x18   : > { %684 = vmatprep.subr.bf16.mxu0 %v683_v56  ;;  %v234_v16 = vld [vmem:[%s1048_s1 + $0x1e8] sm:$0xff]  ;;  %v721_v18 = vpack.c.bf16 %v216_v10, %v215_v9  ;;  %v171_v19 = vld [vmem:[%s964_s10] sm:$0xff]  ;;  %v203_v28 = vld [vmem:[%s1048_s1 + $0xf0] sm:$0xff] }
  0x19   : > { %714 = vmatpush3.bf16.msra.mxu1 %v713_v55  ;;  %v185_v21 = vld [vmem:[%s1048_s1 + $0x60] sm:$0xff]  ;;  %v186_v22 = vld [vmem:[%s1048_s1 + $0x68] sm:$0xff]  ;;  %v261_v24 = vrot.slane %v171_v19, %v260_v11  ;;  %v254_v25 = vcombine.high %v171_v19, %v171_v19  ;;  %v723_v26 = vpack.c.bf16 %v234_v16, %v233_v15  ;;  %v204_v29 = vld [vmem:[%s1048_s1 + $0xf8] sm:$0xff] }
  0x1a   : > { %716 = vmatprep.subr.bf16.mxu1 %v715_v62  ;;  %v217_v23 = vld [vmem:[%s1048_s1 + $0x160] sm:$0xff]  ;;  %v218_v27 = vld [vmem:[%s1048_s1 + $0x168] sm:$0xff]  ;;  %v235_v30 = vld [vmem:[%s1048_s1 + $0x1f0] sm:$0xff]  ;;  %v693_v34 = vpack.c.bf16 %v186_v22, %v185_v21  ;;  %v695_v36 = vpack.c.bf16 %v204_v29, %v203_v28 }
  0x1b   : > { %686 = vmatpush3.bf16.msra.mxu0 %v685_v4  ;;  %v236_v31 = vld [vmem:[%s1048_s1 + $0x1f8] sm:$0xff]  ;;  %v269_v32 = vcombine.high %v261_v24, %v261_v24  ;;  %v268_v33 = vrot.slane %v254_v25, %v260_v11  ;;  %v725_v35 = vpack.c.bf16 %v218_v27, %v217_v23  ;;  %v187_v37 = vld [vmem:[%s1048_s1 + $0x70] sm:$0xff]  ;;  %v237_v45 = vld [vmem:[%s1048_s1 + $0x200] sm:$0xff] }
  0x1c   : > { %688 = vmatprep.subr.bf16.mxu0 %v687_v7  ;;  %v188_v38 = vld [vmem:[%s1048_s1 + $0x78] sm:$0xff]  ;;  %v727_v40 = vpack.c.bf16 %v236_v31, %v235_v30  ;;  %v219_v41 = vld [vmem:[%s1048_s1 + $0x170] sm:$0xff]  ;;  %v238_v46 = vld [vmem:[%s1048_s1 + $0x208] sm:$0xff] }
  0x1d   : > { %718 = vmatpush3.bf16.msra.mxu1 %v717_v6  ;;  %v270_v39 = vcombine.high %v268_v33, %v268_v33  ;;  %349 = vmatprep.mubr.f32.mxu0 %v269_v32  ;;  %v220_v42 = vld [vmem:[%s1048_s1 + $0x178] sm:$0xff]  ;;  %v697_v43 = vpack.c.bf16 %v188_v38, %v187_v37  ;;  %v732_v47 = vpack.c.bf16 %v238_v46, %v237_v45  ;;  %v239_v49 = vld [vmem:[%s1048_s1 + $0x210] sm:$0xff]  ;;  %v241_v52 = vld [vmem:[%s1048_s1 + $0x220] sm:$0xff] }
  0x1e   : > { %720 = vmatprep.subr.bf16.mxu1 %v719_v12  ;;  %v729_v44 = vpack.c.bf16 %v220_v42, %v219_v41  ;;  %v240_v50 = vld [vmem:[%s1048_s1 + $0x218] sm:$0xff]  ;;  %v242_v53 = vld [vmem:[%s1048_s1 + $0x228] sm:$0xff]  ;;  %v243_v56 = vld [vmem:[%s1048_s1 + $0x230] sm:$0xff] }
  0x1f   : > { %690 = vmatpush3.bf16.msra.mxu0 %v689_v17  ;;  %419 = vmatprep.mubr.f32.mxu1 %v270_v39  ;;  %v735_v51 = vpack.c.bf16 %v240_v50, %v239_v49  ;;  %v738_v55 = vpack.c.bf16 %v242_v53, %v241_v52  ;;  %v244_v57 = vld [vmem:[%s1048_s1 + $0x238] sm:$0xff]  ;;  %v564_v59 = vld.sshfl [vmem:[%s964_s10 + $0x8] sm:$0x3 pattern:$0x76325410]  ;;  %s562_s10 = sshll.u32 %s1053_s15, 1 }
  0x20   : > { %692 = vmatprep.subr.bf16.mxu0 %v691_v20  ;;  %v741_v58 = vpack.c.bf16 %v244_v57, %v243_v56  ;;  %v563_v61 = vld [vmem:[#allocation2] ss:$0 sm:$0xff]  ;;  %s170_s11 = scalar_lea.vmem %s1050_s3, %s562_s10 }
  0x21   : > { %722 = vmatpush3.bf16.msra.mxu1 %v721_v18 }
  0x22   : > { %724 = vmatprep.subr.bf16.mxu1 %v723_v26 }
  0x23   : > { %694 = vmatpush3.bf16.msra.mxu0 %v693_v34 }
  0x24   : > { %696 = vmatprep.subr.bf16.mxu0 %v695_v36 }
  0x25   : > { %726 = vmatpush3.bf16.msra.mxu1 %v725_v35 }
  0x26   : > { %728 = vmatprep.subr.bf16.mxu1 %v727_v40 }
  0x27   : > { %698 = vmatpush3.bf16.msra.mxu0 %v697_v43 }
  0x28   : > { %731 = vmatprep.subr.bf16.mxu0 %v770_v48 }
  0x29   : > { %730 = vmatpush3.bf16.msra.mxu1 %v729_v44 }
  0x2a   : > { %350 = vmatmul.mubr.f32.vlgmr.msra.gmra.mrb[0].mxu0 %v261_v24 }
  0x2b   : > { %733 = vmatpush3.bf16.msra.mxu0 %v732_v47  ;;  %664 = vmatprep.mubr.msk.f32.mxu0 %vm771_vm0, %v772_v54 }
  0x2c   : > { %420 = vmatmul.mubr.f32.vlgmr.msra.gmra.mrb[0].mxu1 %v268_v33  ;;  %734 = vmatprep.subr.bf16.mxu0 %v770_v48 }
  0x2f   : > { %736 = vmatpush3.bf16.msra.mxu0 %v735_v51 }
  0x30   : > { %737 = vmatprep.subr.bf16.mxu0 %v770_v48 }
  0x33   : > { %739 = vmatpush3.bf16.msra.mxu0 %v738_v55 }
  0x34   : > { %740 = vmatprep.subr.bf16.mxu0 %v770_v48 }
  0x37   : > { %742 = vmatpush3.bf16.msra.mxu0 %v741_v58 }
  0x3a   : > { %665 = vmatmul.mubr.msk.f32.vlgmr.msra.gmra.mrb[2].mxu0 %vm282_vm1, %v564_v59 }
  0xfd   : > { %v601_v60 = vpop.f32.mrb[0].mxu0 }
  0xfe   : > { %v602_v62 = vpop.f32.mrb[1].mxu0 }
  0xff   : > { %v636_v63 = vpop.f32.mrb[0].mxu1  ;;  %v603_v0 = vadd.f32 %v602_v62, %v601_v60 }
 0x100   : > { %v637_v1 = vpop.f32.mrb[1].mxu1 }
 0x101   : > { %v638_v2 = vadd.f32 %v637_v1, %v636_v63  ;;  %v352_v3 = vadd.f32 %v603_v0, %v563_v61 }
 0x103   : > { %v422_v4 = vadd.f32 %v638_v2, %v352_v3 }
 0x10d   : > { %v491_v5 = vpop.f32.mrb[2].mxu0 }
 0x10e   : > { %v492_v6 = vadd.f32 %v491_v5, %v422_v4  ;;  %v666_v7 = vpop.f32.mrb[3].mxu0 }
 0x110   : > { %v566_v8 = vmul.f32 -1.442695, %v492_v6 }
 0x112   : > { %757 = vpow2.f32 %v566_v8 }
 0x11c   : > { %v758_v9 = vpop.eup %757 }
 0x11d   : > { %v498_v10 = vadd.f32 1.0, %v758_v9 }
 0x11f   : > { %759 = vrcp.f32 %v498_v10 }
 0x129   : > { %v760_v11 = vpop.eup %759 }
 0x12a   : > { %502 = vst.msk [vmem:[%s170_s11] sm:$0x3] %vm501_vm2, %v760_v11 }
 0x12b PF: > { %s15_s14 = sadd.s32 1, %s767_s14  }
 0x12c   : > { %p12_p4 = scmp.ge.s32.totalorder %s15_s14, 4  }
 0x12e   :  { %14 = sbr.rel (!%p12_p4) target bundleno = 3 (0x3), region = 62 }

</bundles_post_ra>
